<compile_context>
chip_gen: v5e
topology: v5e:2x2
jax: 0.10.0
libtpu: 0.0.40
codegen_flags: <defaults>
</compile_context>

<pallas_src>
import functools
import math

import numpy as np
import jax
import jax.numpy as jnp
from jax.experimental import pallas as pl
from jax.experimental.pallas import tpu as pltpu

# ------------------------------------------------------------------
# Config (small, consistent with the module's forward)
# ------------------------------------------------------------------
NUM_ACTIONS = 6
EMB_DIM     = 32      # embedding_dim == features_dim of ObservationEncoder
HIDDEN_DIM  = 64
NUM_LAYERS  = 2
NUM_HEADS   = 2
CTX_LEN     = 8       # context sequence length S (transformer seq = S + 1)
GRID_H = GRID_W = 5
NUM_TILES   = 16
NUM_COLORS  = 16
BATCH       = 2
CONV_CH     = 32
CONV_K      = 2
OH1, OW1 = GRID_H - 1, GRID_W - 1          # 4 x 4 after conv1
OH2, OW2 = GRID_H - 2, GRID_W - 2          # 3 x 3 after conv2


# ==================================================================
# ONE fused kernel: encoder + embed_transition + transformer + head
# ==================================================================
def _dpt_kernel(obs_ref, act_ref, rew_ref, bias_ref,
                emb_tab_ref, c1w_ref, c1b_ref, c2w_ref, c2b_ref, ehw_ref, ehb_ref,
                wobs_ref, wact_ref, wnext_ref, wrew_ref, eb_ref,
                ln1g_ref, ln1b_ref, wqkv_ref, bqkv_ref, wout_ref, bout_ref,
                ln2g_ref, ln2b_ref, wm1_ref, bm1_ref, wm2_ref, bm2_ref,
                hw_ref, hb_ref, o_ref,
                *, batch, seq_s, n_pad, num_layers, num_heads, hidden, num_actions):
    """obs_ref : [25*NP, 2] int32   (entity, color) indices, rows ordered (h, w, sample)
       act_ref : [B*T, 1]  int32    action index per token (-1 at the query token)
       rew_ref : [B*T, 1]  f32      reward per token (0 at the query token)
       bias_ref: [B*H*T, B*H*T] f32 additive attention bias (block-diag causal)
       o_ref   : [B, num_actions]   eval-mode action logits (last token)"""
    f32 = jnp.float32
    T = seq_s + 1
    items = 1 + 2 * seq_s
    BT = batch * T
    d = hidden
    hd = d // num_heads
    scale = 1.0 / math.sqrt(hd)
    NP = n_pad

    # ---------------- ObservationEncoder ----------------
    # one-hot (entity | color+16) @ block-diag table -> [25*NP, 2E] NHWC image
    obs = obs_ref[...]                                                        # [25*NP, 2] int32
    lanes = jax.lax.broadcasted_iota(jnp.int32,
                                     (GRID_H * GRID_W * NP, NUM_TILES + NUM_COLORS), 1)
    onehot = jnp.logical_or(lanes == obs[:, 0:1],
                            lanes == obs[:, 1:2] + NUM_TILES).astype(f32)     # [25*NP, 32]
    img = jnp.dot(onehot, emb_tab_ref[...], preferred_element_type=f32)       # [25*NP, 64]

    # conv1 (2x2, valid) + ReLU as ONE matmul on an in-VMEM, sublane-aligned im2col
    taps1 = []
    for i in range(CONV_K):
        for j in range(CONV_K):
            taps1.append(jnp.concatenate(
                [img[((oh + i) * GRID_W + j) * NP:((oh + i) * GRID_W + j + OW1) * NP, :]
                 for oh in range(OH1)], axis=0))                              # [OH1*OW1*NP, 64]
    col1 = jnp.concatenate(taps1, axis=-1)                                    # [640, 256]
    y1 = jnp.maximum(jnp.dot(col1, c1w_ref[...], preferred_element_type=f32)
                     + c1b_ref[...], 0.0)                                     # [640, 32] rows (p1, n)

    # conv2 (2x2, valid) + ReLU as ONE matmul
    taps2 = []
    for i in range(CONV_K):
        for j in range(CONV_K):
            taps2.append(jnp.concatenate(
                [y1[((oh + i) * OW1 + j) * NP:((oh + i) * OW1 + j + OW2) * NP, :]
                 for oh in range(OH2)], axis=0))                              # [OH2*OW2*NP, 32]
    col2 = jnp.concatenate(taps2, axis=-1)                                    # [360, 128]
    y2 = jnp.maximum(jnp.dot(col2, c2w_ref[...], preferred_element_type=f32)
                     + c2b_ref[...], 0.0)                                     # [360, 32] rows (p2, n)

    # flatten (spatial-major, channel-minor) + Linear(features_dim)
    # TODO(synk): flatten order is (spatial, channel) vs PyTorch's channel-first flatten;
    # distributions are identical since head_w is freshly initialized anyway.
    flat = jnp.concatenate([y2[p * NP:(p + 1) * NP, :] for p in range(OH2 * OW2)],
                           axis=-1)                                           # [NP, 288]
    emb = jnp.dot(flat, ehw_ref[...], preferred_element_type=f32) + ehb_ref[...]  # [NP, E]

    # ---------------- embed_transition (split weight blocks, no lane concat) ----------------
    obs_part = jnp.concatenate(
        [emb[b * items:b * items + T, :] for b in range(batch)], axis=0)      # [BT, E]
    nxt_full = jnp.concatenate(
        [emb[b * items + seq_s:b * items + seq_s + T, :] for b in range(batch)], axis=0)
    ri = jax.lax.broadcasted_iota(jnp.int32, (BT, 1), 0)
    is_t0 = ri == 0
    for b in range(1, batch):
        is_t0 = jnp.logical_or(is_t0, ri == b * T)
    next_part = jnp.where(is_t0, 0.0, nxt_full)                               # zero row at t==0
    act_oh = (jax.lax.broadcasted_iota(jnp.int32, (BT, num_actions), 1)
              == act_ref[...]).astype(f32)                                    # [BT, A] (-1 -> zeros)
    x = (jnp.dot(obs_part, wobs_ref[...], preferred_element_type=f32)
         + jnp.dot(act_oh, wact_ref[...], preferred_element_type=f32)
         + jnp.dot(next_part, wnext_ref[...], preferred_element_type=f32)
         + rew_ref[...] * wrew_ref[...]
         + eb_ref[...])                                                       # [BT, D]

    # ---------------- pre-norm transformer blocks ----------------
    def layer_norm(z, g, bb):
        mu = jnp.mean(z, axis=-1, keepdims=True)
        var = jnp.mean((z - mu) * (z - mu), axis=-1, keepdims=True)
        return (z - mu) * jax.lax.rsqrt(var + 1e-5) * g + bb

    bias = bias_ref[...]                                                      # [BHT, BHT]
    for l in range(num_layers):
        # causal MHA with all (head, batch) blocks stacked along rows
        h1 = layer_norm(x, ln1g_ref[l], ln1b_ref[l])
        qkv = jnp.dot(h1, wqkv_ref[l], preferred_element_type=f32) + bqkv_ref[l]   # [BT, 3D]
        qs = jnp.concatenate([qkv[:, h * hd:(h + 1) * hd] for h in range(num_heads)], axis=0)
        ks = jnp.concatenate([qkv[:, d + h * hd:d + (h + 1) * hd] for h in range(num_heads)], axis=0)
        vs = jnp.concatenate([qkv[:, 2 * d + h * hd:2 * d + (h + 1) * hd] for h in range(num_heads)], axis=0)
        s = jax.lax.dot_general(qs, ks, (((1,), (1,)), ((), ())),
                                preferred_element_type=f32) * scale + bias    # [BHT, BHT]
        s = s - jnp.max(s, axis=-1, keepdims=True)
        p = jnp.exp(s)
        p = p * pl.reciprocal(jnp.sum(p, axis=-1, keepdims=True), approx=True)
        o_s = jnp.dot(p, vs, preferred_element_type=f32)                      # [BHT, hd]
        o_cat = jnp.concatenate([o_s[h * BT:(h + 1) * BT, :] for h in range(num_heads)],
                                axis=-1)                                      # [BT, D]
        x = x + jnp.dot(o_cat, wout_ref[l], preferred_element_type=f32) + bout_ref[l]
        # pre-norm MLP
        h2 = layer_norm(x, ln2g_ref[l], ln2b_ref[l])
        m = jnp.dot(h2, wm1_ref[l], preferred_element_type=f32) + bm1_ref[l]
        # TODO(synk): PyTorch nn.GELU default is exact erf; tanh approximation used here.
        m = jax.nn.gelu(m, approximate=True)
        x = x + jnp.dot(m, wm2_ref[l], preferred_element_type=f32) + bm2_ref[l]

    # ---------------- action head (eval mode: last token per batch) ----------------
    logits = jnp.dot(x, hw_ref[...], preferred_element_type=f32) + hb_ref[...]    # [BT, A]
    for b in range(batch):
        o_ref[b:b + 1, :] = logits[(b + 1) * T - 1:(b + 1) * T, :].astype(o_ref.dtype)


# ==================================================================
# Forward pass (only tiny int32/float concats + transpose stay in XLA)
# ==================================================================
def model_forward(params, query_obs, ctx_obs, ctx_actions, ctx_next_obs, ctx_rewards):
    b, s = ctx_rewards.shape
    t = s + 1
    items = 1 + 2 * s
    n = b * items
    n_pad = ((n + 7) // 8) * 8           # sample dim padded to a sublane multiple
    bt = b * t
    bht = b * NUM_HEADS * t

    # observations of query / context / next-context batched together, (h, w, sample)-major
    all_obs = jnp.concatenate([query_obs[:, None], ctx_obs, ctx_next_obs], axis=1).astype(jnp.int32)
    flat = all_obs.reshape(n, GRID_H, GRID_W, 2)
    if n_pad > n:
        flat = jnp.concatenate([flat, jnp.zeros((n_pad - n, GRID_H, GRID_W, 2), jnp.int32)], axis=0)
    obs_idx = jnp.transpose(flat, (1, 2, 0, 3)).reshape(GRID_H * GRID_W * n_pad, 2)

    # per-token action index (-1 == query token -> zero one-hot) and reward
    act_idx = jnp.concatenate([jnp.full((b, 1), -1, jnp.int32),
                               ctx_actions.astype(jnp.int32)], axis=1).reshape(bt, 1)
    rew = jnp.concatenate([jnp.zeros((b, 1), jnp.float32),
                           ctx_rewards.astype(jnp.float32)], axis=1).reshape(bt, 1)

    # constant additive attention bias: block-diagonal over (head, batch) blocks + causal
    r = np.arange(bht)
    same_blk = (r[:, None] // t) == (r[None, :] // t)
    causal = r[:, None] >= r[None, :]
    attn_bias = jnp.asarray(np.where(same_blk & causal, 0.0, -1e30), jnp.float32)

    kernel = functools.partial(
        _dpt_kernel, batch=b, seq_s=s, n_pad=n_pad, num_layers=NUM_LAYERS,
        num_heads=NUM_HEADS, hidden=HIDDEN_DIM, num_actions=NUM_ACTIONS)

    out = pl.pallas_call(
        kernel,
        out_shape=jax.ShapeDtypeStruct((b, NUM_ACTIONS), jnp.float32),
        compiler_params=pltpu.CompilerParams(vmem_limit_bytes=32 * 1024 * 1024),
    )(obs_idx, act_idx, rew, attn_bias,
      params["emb_tab"], params["conv1_w"], params["conv1_b"],
      params["conv2_w"], params["conv2_b"], params["enc_head_w"], params["enc_head_b"],
      params["embed_w_obs"], params["embed_w_act"], params["embed_w_next"],
      params["embed_w_rew"], params["embed_b"],
      params["ln1_g"], params["ln1_b"], params["wqkv"], params["bqkv"],
      params["wout"], params["bout"], params["ln2_g"], params["ln2_b"],
      params["wm1"], params["bm1"], params["wm2"], params["bm2"],
      params["head_w"], params["head_b"])
    return out                                                # [B, NUM_ACTIONS]


# ==================================================================
# Deterministic parameter init (mirrors _init_weights)
# ==================================================================
def _orthogonal(key, rows, cols, gain):
    a = np.asarray(jax.random.normal(key, (max(rows, cols), min(rows, cols)), jnp.float32))
    q, r = np.linalg.qr(a)
    q = q * np.sign(np.diag(r))
    if rows < cols:
        q = q.T
    return jnp.asarray(gain * q[:rows, :cols], jnp.float32)


def init_params(key):
    keys = iter(jax.random.split(key, 32))
    nrm = lambda shape: 0.02 * jax.random.normal(next(keys), shape, jnp.float32)
    gain = math.sqrt(2.0)  # relu gain for the orthogonal conv init
    L, D, E, A = NUM_LAYERS, HIDDEN_DIM, EMB_DIM, NUM_ACTIONS
    CIN = 2 * E

    # block-diagonal embedding table: rows 0..15 entity -> lanes 0..31, rows 16..31 color -> lanes 32..63
    ent = nrm((NUM_TILES, E))
    col = nrm((NUM_COLORS, E))
    emb_tab = jnp.zeros((NUM_TILES + NUM_COLORS, CIN), jnp.float32)
    emb_tab = emb_tab.at[:NUM_TILES, :E].set(ent).at[NUM_TILES:, E:].set(col)

    # conv weights stored as im2col matrices (tap-major, channel-minor rows);
    # orthogonal(gain=sqrt(2)) matches nn.init.orthogonal_ on the flattened conv weight.
    # TODO(synk): tap/channel ordering differs from PyTorch's (c, kh, kw) flatten -- only
    # matters if pretrained PyTorch weights are ever loaded.
    conv1_w = _orthogonal(next(keys), CONV_CH, CONV_K * CONV_K * CIN, gain).T       # [256, 32]
    conv2_w = _orthogonal(next(keys), CONV_CH, CONV_K * CONV_K * CONV_CH, gain).T   # [128, 32]

    # embed_transition Linear(2E + A + 1, D), split into feature blocks for the kernel
    embed_full = nrm((2 * E + A + 1, D))                                            # [71, 64]

    return dict(
        emb_tab=emb_tab,
        conv1_w=conv1_w, conv1_b=jnp.zeros((1, CONV_CH), jnp.float32),
        conv2_w=conv2_w, conv2_b=jnp.zeros((1, CONV_CH), jnp.float32),
        enc_head_w=nrm((OH2 * OW2 * CONV_CH, E)), enc_head_b=jnp.zeros((1, E), jnp.float32),
        embed_w_obs=embed_full[:E],
        embed_w_act=embed_full[E:E + A],
        embed_w_next=embed_full[E + A:2 * E + A],
        embed_w_rew=embed_full[2 * E + A:],
        embed_b=jnp.zeros((1, D), jnp.float32),
        ln1_g=jnp.ones((L, 1, D), jnp.float32),
        ln1_b=jnp.zeros((L, 1, D), jnp.float32),
        wqkv=nrm((L, D, 3 * D)),
        bqkv=jnp.zeros((L, 1, 3 * D), jnp.float32),
        wout=nrm((L, D, D)),
        bout=jnp.zeros((L, 1, D), jnp.float32),
        ln2_g=jnp.ones((L, 1, D), jnp.float32),
        ln2_b=jnp.zeros((L, 1, D), jnp.float32),
        wm1=nrm((L, D, 4 * D)),
        bm1=jnp.zeros((L, 1, 4 * D), jnp.float32),
        wm2=nrm((L, 4 * D, D)),
        bm2=jnp.zeros((L, 1, D), jnp.float32),
        head_w=nrm((D, A)),
        head_b=jnp.zeros((1, A), jnp.float32),
    )


# ==================================================================
if __name__ == "__main__":
    key = jax.random.PRNGKey(0)
    kq, ko, kn, ka, kr, kp = jax.random.split(key, 6)

    query_obs = jax.random.randint(kq, (BATCH, GRID_H, GRID_W, 2), 0, NUM_TILES, dtype=jnp.int32)
    ctx_obs = jax.random.randint(ko, (BATCH, CTX_LEN, GRID_H, GRID_W, 2), 0, NUM_TILES, dtype=jnp.int32)
    ctx_next_obs = jax.random.randint(kn, (BATCH, CTX_LEN, GRID_H, GRID_W, 2), 0, NUM_TILES, dtype=jnp.int32)
    ctx_actions = jax.random.randint(ka, (BATCH, CTX_LEN), 0, NUM_ACTIONS, dtype=jnp.int32)
    ctx_rewards = jax.random.uniform(kr, (BATCH, CTX_LEN), jnp.float32)

    params = init_params(kp)

    fwd = jax.jit(model_forward)
    out = fwd(params, query_obs, ctx_obs, ctx_actions, ctx_next_obs, ctx_rewards)
    out = jax.block_until_ready(out)

    assert out.shape == (BATCH, NUM_ACTIONS), out.shape
    assert bool(jnp.all(jnp.isfinite(out)))
    print("KERNEL_OK")
</pallas_src>

<mosaic_0001>
module attributes {stable_mosaic.version = 11 : i64} {
  func.func @_dpt_kernel(%arg0: memref<1000x2xi32, #tpu.memory_space<vmem>>, %arg1: memref<18x1xi32, #tpu.memory_space<vmem>>, %arg2: memref<18x1xf32, #tpu.memory_space<vmem>>, %arg3: memref<36x36xf32, #tpu.memory_space<vmem>>, %arg4: memref<32x64xf32, #tpu.memory_space<vmem>>, %arg5: memref<256x32xf32, #tpu.memory_space<vmem>>, %arg6: memref<1x32xf32, #tpu.memory_space<vmem>>, %arg7: memref<128x32xf32, #tpu.memory_space<vmem>>, %arg8: memref<1x32xf32, #tpu.memory_space<vmem>>, %arg9: memref<288x32xf32, #tpu.memory_space<vmem>>, %arg10: memref<1x32xf32, #tpu.memory_space<vmem>>, %arg11: memref<32x64xf32, #tpu.memory_space<vmem>>, %arg12: memref<6x64xf32, #tpu.memory_space<vmem>>, %arg13: memref<32x64xf32, #tpu.memory_space<vmem>>, %arg14: memref<1x64xf32, #tpu.memory_space<vmem>>, %arg15: memref<1x64xf32, #tpu.memory_space<vmem>>, %arg16: memref<2x1x64xf32, #tpu.memory_space<vmem>>, %arg17: memref<2x1x64xf32, #tpu.memory_space<vmem>>, %arg18: memref<2x64x192xf32, #tpu.memory_space<vmem>>, %arg19: memref<2x1x192xf32, #tpu.memory_space<vmem>>, %arg20: memref<2x64x64xf32, #tpu.memory_space<vmem>>, %arg21: memref<2x1x64xf32, #tpu.memory_space<vmem>>, %arg22: memref<2x1x64xf32, #tpu.memory_space<vmem>>, %arg23: memref<2x1x64xf32, #tpu.memory_space<vmem>>, %arg24: memref<2x64x256xf32, #tpu.memory_space<vmem>>, %arg25: memref<2x1x256xf32, #tpu.memory_space<vmem>>, %arg26: memref<2x256x64xf32, #tpu.memory_space<vmem>>, %arg27: memref<2x1x64xf32, #tpu.memory_space<vmem>>, %arg28: memref<64x6xf32, #tpu.memory_space<vmem>>, %arg29: memref<1x6xf32, #tpu.memory_space<vmem>>, %arg30: memref<2x6xf32, #tpu.memory_space<vmem>>) attributes {dimension_semantics = [], scalar_prefetch = 0 : i64, scratch_operands = 0 : i64, tpu.core_type = #tpu.core_type<tc>} {
    %c0 = arith.constant 0 : index
    %c0_0 = arith.constant 0 : index
    %0 = vector.load %arg0[%c0, %c0_0] : memref<1000x2xi32, #tpu.memory_space<vmem>>, vector<1000x2xi32>
    %1 = tpu.iota {dimensions = array<i32: 1>} : vector<1000x32xi32>
    %2 = vector.extract_strided_slice %0 {offsets = [0, 0], sizes = [1000, 1], strides = [1, 1]} : vector<1000x2xi32> to vector<1000x1xi32>
    %3 = vector.broadcast %2 : vector<1000x1xi32> to vector<1000x32xi32>
    %4 = arith.cmpi eq, %1, %3 : vector<1000x32xi32>
    %5 = vector.extract_strided_slice %0 {offsets = [0, 1], sizes = [1000, 1], strides = [1, 1]} : vector<1000x2xi32> to vector<1000x1xi32>
    %c16_i32 = arith.constant 16 : i32
    %6 = vector.broadcast %c16_i32 : i32 to vector<1000x1xi32>
    %7 = arith.addi %5, %6 : vector<1000x1xi32>
    %8 = vector.broadcast %7 : vector<1000x1xi32> to vector<1000x32xi32>
    %9 = arith.cmpi eq, %1, %8 : vector<1000x32xi32>
    %10 = arith.ori %4, %9 : vector<1000x32xi1>
    %11 = arith.extui %10 : vector<1000x32xi1> to vector<1000x32xi32>
    %12 = arith.sitofp %11 : vector<1000x32xi32> to vector<1000x32xf32>
    %c0_1 = arith.constant 0 : index
    %c0_2 = arith.constant 0 : index
    %13 = vector.load %arg4[%c0_1, %c0_2] : memref<32x64xf32, #tpu.memory_space<vmem>>, vector<32x64xf32>
    %cst = arith.constant dense<0.000000e+00> : vector<1000x64xf32>
    %14 = tpu.matmul %12, %13, %cst {dimension_numbers = #tpu.dot_dimension_numbers<[1], [0], [0], [1], [0, 0, 1, 1], [], []>} : vector<1000x32xf32>, vector<32x64xf32>, vector<1000x64xf32> -> vector<1000x64xf32>
    %15 = vector.extract_strided_slice %14 {offsets = [0, 0], sizes = [160, 64], strides = [1, 1]} : vector<1000x64xf32> to vector<160x64xf32>
    %16 = vector.extract_strided_slice %14 {offsets = [200, 0], sizes = [160, 64], strides = [1, 1]} : vector<1000x64xf32> to vector<160x64xf32>
    %17 = vector.extract_strided_slice %14 {offsets = [400, 0], sizes = [160, 64], strides = [1, 1]} : vector<1000x64xf32> to vector<160x64xf32>
    %18 = vector.extract_strided_slice %14 {offsets = [600, 0], sizes = [160, 64], strides = [1, 1]} : vector<1000x64xf32> to vector<160x64xf32>
    %19 = tpu.concatenate %15, %16, %17, %18 in 0 : vector<160x64xf32>, vector<160x64xf32>, vector<160x64xf32>, vector<160x64xf32> -> vector<640x64xf32>
    %20 = vector.extract_strided_slice %14 {offsets = [40, 0], sizes = [160, 64], strides = [1, 1]} : vector<1000x64xf32> to vector<160x64xf32>
    %21 = vector.extract_strided_slice %14 {offsets = [240, 0], sizes = [160, 64], strides = [1, 1]} : vector<1000x64xf32> to vector<160x64xf32>
    %22 = vector.extract_strided_slice %14 {offsets = [440, 0], sizes = [160, 64], strides = [1, 1]} : vector<1000x64xf32> to vector<160x64xf32>
    %23 = vector.extract_strided_slice %14 {offsets = [640, 0], sizes = [160, 64], strides = [1, 1]} : vector<1000x64xf32> to vector<160x64xf32>
    %24 = tpu.concatenate %20, %21, %22, %23 in 0 : vector<160x64xf32>, vector<160x64xf32>, vector<160x64xf32>, vector<160x64xf32> -> vector<640x64xf32>
    %25 = vector.extract_strided_slice %14 {offsets = [200, 0], sizes = [160, 64], strides = [1, 1]} : vector<1000x64xf32> to vector<160x64xf32>
    %26 = vector.extract_strided_slice %14 {offsets = [400, 0], sizes = [160, 64], strides = [1, 1]} : vector<1000x64xf32> to vector<160x64xf32>
    %27 = vector.extract_strided_slice %14 {offsets = [600, 0], sizes = [160, 64], strides = [1, 1]} : vector<1000x64xf32> to vector<160x64xf32>
    %28 = vector.extract_strided_slice %14 {offsets = [800, 0], sizes = [160, 64], strides = [1, 1]} : vector<1000x64xf32> to vector<160x64xf32>
    %29 = tpu.concatenate %25, %26, %27, %28 in 0 : vector<160x64xf32>, vector<160x64xf32>, vector<160x64xf32>, vector<160x64xf32> -> vector<640x64xf32>
    %30 = vector.extract_strided_slice %14 {offsets = [240, 0], sizes = [160, 64], strides = [1, 1]} : vector<1000x64xf32> to vector<160x64xf32>
    %31 = vector.extract_strided_slice %14 {offsets = [440, 0], sizes = [160, 64], strides = [1, 1]} : vector<1000x64xf32> to vector<160x64xf32>
    %32 = vector.extract_strided_slice %14 {offsets = [640, 0], sizes = [160, 64], strides = [1, 1]} : vector<1000x64xf32> to vector<160x64xf32>
    %33 = vector.extract_strided_slice %14 {offsets = [840, 0], sizes = [160, 64], strides = [1, 1]} : vector<1000x64xf32> to vector<160x64xf32>
    %34 = tpu.concatenate %30, %31, %32, %33 in 0 : vector<160x64xf32>, vector<160x64xf32>, vector<160x64xf32>, vector<160x64xf32> -> vector<640x64xf32>
    %35 = tpu.concatenate %19, %24, %29, %34 in 1 : vector<640x64xf32>, vector<640x64xf32>, vector<640x64xf32>, vector<640x64xf32> -> vector<640x256xf32>
    %c0_3 = arith.constant 0 : index
    %c0_4 = arith.constant 0 : index
    %36 = vector.load %arg5[%c0_3, %c0_4] : memref<256x32xf32, #tpu.memory_space<vmem>>, vector<256x32xf32>
    %cst_5 = arith.constant dense<0.000000e+00> : vector<640x32xf32>
    %37 = tpu.matmul %35, %36, %cst_5 {dimension_numbers = #tpu.dot_dimension_numbers<[1], [0], [0], [1], [0, 0, 1, 1], [], []>} : vector<640x256xf32>, vector<256x32xf32>, vector<640x32xf32> -> vector<640x32xf32>
    %c0_6 = arith.constant 0 : index
    %c0_7 = arith.constant 0 : index
    %38 = vector.load %arg6[%c0_6, %c0_7] : memref<1x32xf32, #tpu.memory_space<vmem>>, vector<1x32xf32>
    %39 = vector.broadcast %38 : vector<1x32xf32> to vector<640x32xf32>
    %40 = arith.addf %37, %39 : vector<640x32xf32>
    %cst_8 = arith.constant 0.000000e+00 : f32
    %41 = vector.broadcast %cst_8 : f32 to vector<640x32xf32>
    %42 = arith.maximumf %40, %41 : vector<640x32xf32>
    %43 = vector.extract_strided_slice %42 {offsets = [0, 0], sizes = [120, 32], strides = [1, 1]} : vector<640x32xf32> to vector<120x32xf32>
    %44 = vector.extract_strided_slice %42 {offsets = [160, 0], sizes = [120, 32], strides = [1, 1]} : vector<640x32xf32> to vector<120x32xf32>
    %45 = vector.extract_strided_slice %42 {offsets = [320, 0], sizes = [120, 32], strides = [1, 1]} : vector<640x32xf32> to vector<120x32xf32>
    %46 = tpu.concatenate %43, %44, %45 in 0 : vector<120x32xf32>, vector<120x32xf32>, vector<120x32xf32> -> vector<360x32xf32>
    %47 = vector.extract_strided_slice %42 {offsets = [40, 0], sizes = [120, 32], strides = [1, 1]} : vector<640x32xf32> to vector<120x32xf32>
    %48 = vector.extract_strided_slice %42 {offsets = [200, 0], sizes = [120, 32], strides = [1, 1]} : vector<640x32xf32> to vector<120x32xf32>
    %49 = vector.extract_strided_slice %42 {offsets = [360, 0], sizes = [120, 32], strides = [1, 1]} : vector<640x32xf32> to vector<120x32xf32>
    %50 = tpu.concatenate %47, %48, %49 in 0 : vector<120x32xf32>, vector<120x32xf32>, vector<120x32xf32> -> vector<360x32xf32>
    %51 = vector.extract_strided_slice %42 {offsets = [160, 0], sizes = [120, 32], strides = [1, 1]} : vector<640x32xf32> to vector<120x32xf32>
    %52 = vector.extract_strided_slice %42 {offsets = [320, 0], sizes = [120, 32], strides = [1, 1]} : vector<640x32xf32> to vector<120x32xf32>
    %53 = vector.extract_strided_slice %42 {offsets = [480, 0], sizes = [120, 32], strides = [1, 1]} : vector<640x32xf32> to vector<120x32xf32>
    %54 = tpu.concatenate %51, %52, %53 in 0 : vector<120x32xf32>, vector<120x32xf32>, vector<120x32xf32> -> vector<360x32xf32>
    %55 = vector.extract_strided_slice %42 {offsets = [200, 0], sizes = [120, 32], strides = [1, 1]} : vector<640x32xf32> to vector<120x32xf32>
    %56 = vector.extract_strided_slice %42 {offsets = [360, 0], sizes = [120, 32], strides = [1, 1]} : vector<640x32xf32> to vector<120x32xf32>
    %57 = vector.extract_strided_slice %42 {offsets = [520, 0], sizes = [120, 32], strides = [1, 1]} : vector<640x32xf32> to vector<120x32xf32>
    %58 = tpu.concatenate %55, %56, %57 in 0 : vector<120x32xf32>, vector<120x32xf32>, vector<120x32xf32> -> vector<360x32xf32>
    %59 = tpu.concatenate %46, %50, %54, %58 in 1 : vector<360x32xf32>, vector<360x32xf32>, vector<360x32xf32>, vector<360x32xf32> -> vector<360x128xf32>
    %c0_9 = arith.constant 0 : index
    %c0_10 = arith.constant 0 : index
    %60 = vector.load %arg7[%c0_9, %c0_10] : memref<128x32xf32, #tpu.memory_space<vmem>>, vector<128x32xf32>
    %cst_11 = arith.constant dense<0.000000e+00> : vector<360x32xf32>
    %61 = tpu.matmul %59, %60, %cst_11 {dimension_numbers = #tpu.dot_dimension_numbers<[1], [0], [0], [1], [0, 0, 1, 1], [], []>} : vector<360x128xf32>, vector<128x32xf32>, vector<360x32xf32> -> vector<360x32xf32>
    %c0_12 = arith.constant 0 : index
    %c0_13 = arith.constant 0 : index
    %62 = vector.load %arg8[%c0_12, %c0_13] : memref<1x32xf32, #tpu.memory_space<vmem>>, vector<1x32xf32>
    %63 = vector.broadcast %62 : vector<1x32xf32> to vector<360x32xf32>
    %64 = arith.addf %61, %63 : vector<360x32xf32>
    %cst_14 = arith.constant 0.000000e+00 : f32
    %65 = vector.broadcast %cst_14 : f32 to vector<360x32xf32>
    %66 = arith.maximumf %64, %65 : vector<360x32xf32>
    %67 = vector.extract_strided_slice %66 {offsets = [0, 0], sizes = [40, 32], strides = [1, 1]} : vector<360x32xf32> to vector<40x32xf32>
    %68 = vector.extract_strided_slice %66 {offsets = [40, 0], sizes = [40, 32], strides = [1, 1]} : vector<360x32xf32> to vector<40x32xf32>
    %69 = vector.extract_strided_slice %66 {offsets = [80, 0], sizes = [40, 32], strides = [1, 1]} : vector<360x32xf32> to vector<40x32xf32>
    %70 = vector.extract_strided_slice %66 {offsets = [120, 0], sizes = [40, 32], strides = [1, 1]} : vector<360x32xf32> to vector<40x32xf32>
    %71 = vector.extract_strided_slice %66 {offsets = [160, 0], sizes = [40, 32], strides = [1, 1]} : vector<360x32xf32> to vector<40x32xf32>
    %72 = vector.extract_strided_slice %66 {offsets = [200, 0], sizes = [40, 32], strides = [1, 1]} : vector<360x32xf32> to vector<40x32xf32>
    %73 = vector.extract_strided_slice %66 {offsets = [240, 0], sizes = [40, 32], strides = [1, 1]} : vector<360x32xf32> to vector<40x32xf32>
    %74 = vector.extract_strided_slice %66 {offsets = [280, 0], sizes = [40, 32], strides = [1, 1]} : vector<360x32xf32> to vector<40x32xf32>
    %75 = vector.extract_strided_slice %66 {offsets = [320, 0], sizes = [40, 32], strides = [1, 1]} : vector<360x32xf32> to vector<40x32xf32>
    %76 = tpu.concatenate %67, %68, %69, %70, %71, %72, %73, %74, %75 in 1 : vector<40x32xf32>, vector<40x32xf32>, vector<40x32xf32>, vector<40x32xf32>, vector<40x32xf32>, vector<40x32xf32>, vector<40x32xf32>, vector<40x32xf32>, vector<40x32xf32> -> vector<40x288xf32>
    %c0_15 = arith.constant 0 : index
    %c0_16 = arith.constant 0 : index
    %77 = vector.load %arg9[%c0_15, %c0_16] : memref<288x32xf32, #tpu.memory_space<vmem>>, vector<288x32xf32>
    %cst_17 = arith.constant dense<0.000000e+00> : vector<40x32xf32>
    %78 = tpu.matmul %76, %77, %cst_17 {dimension_numbers = #tpu.dot_dimension_numbers<[1], [0], [0], [1], [0, 0, 1, 1], [], []>} : vector<40x288xf32>, vector<288x32xf32>, vector<40x32xf32> -> vector<40x32xf32>
    %c0_18 = arith.constant 0 : index
    %c0_19 = arith.constant 0 : index
    %79 = vector.load %arg10[%c0_18, %c0_19] : memref<1x32xf32, #tpu.memory_space<vmem>>, vector<1x32xf32>
    %80 = vector.broadcast %79 : vector<1x32xf32> to vector<40x32xf32>
    %81 = arith.addf %78, %80 : vector<40x32xf32>
    %82 = vector.extract_strided_slice %81 {offsets = [0, 0], sizes = [9, 32], strides = [1, 1]} : vector<40x32xf32> to vector<9x32xf32>
    %83 = vector.extract_strided_slice %81 {offsets = [17, 0], sizes = [9, 32], strides = [1, 1]} : vector<40x32xf32> to vector<9x32xf32>
    %84 = tpu.concatenate %82, %83 in 0 : vector<9x32xf32>, vector<9x32xf32> -> vector<18x32xf32>
    %85 = vector.extract_strided_slice %81 {offsets = [8, 0], sizes = [9, 32], strides = [1, 1]} : vector<40x32xf32> to vector<9x32xf32>
    %86 = vector.extract_strided_slice %81 {offsets = [25, 0], sizes = [9, 32], strides = [1, 1]} : vector<40x32xf32> to vector<9x32xf32>
    %87 = tpu.concatenate %85, %86 in 0 : vector<9x32xf32>, vector<9x32xf32> -> vector<18x32xf32>
    %88 = tpu.iota {dimensions = array<i32: 0>} : vector<18x1xi32>
    %c0_i32 = arith.constant 0 : i32
    %89 = vector.broadcast %c0_i32 : i32 to vector<18x1xi32>
    %90 = arith.cmpi eq, %88, %89 : vector<18x1xi32>
    %c9_i32 = arith.constant 9 : i32
    %91 = vector.broadcast %c9_i32 : i32 to vector<18x1xi32>
    %92 = arith.cmpi eq, %88, %91 : vector<18x1xi32>
    %93 = arith.ori %90, %92 : vector<18x1xi1>
    %cst_20 = arith.constant 0.000000e+00 : f32
    %94 = vector.shape_cast %93 : vector<18x1xi1> to vector<18x1xi1>
    %95 = vector.broadcast %94 : vector<18x1xi1> to vector<18x32xi1>
    %96 = vector.broadcast %cst_20 : f32 to vector<18x32xf32>
    %97 = arith.select %95, %96, %87 : vector<18x32xi1>, vector<18x32xf32>
    %98 = tpu.iota {dimensions = array<i32: 1>} : vector<18x6xi32>
    %c0_21 = arith.constant 0 : index
    %c0_22 = arith.constant 0 : index
    %99 = vector.load %arg1[%c0_21, %c0_22] : memref<18x1xi32, #tpu.memory_space<vmem>>, vector<18x1xi32>
    %100 = vector.broadcast %99 : vector<18x1xi32> to vector<18x6xi32>
    %101 = arith.cmpi eq, %98, %100 : vector<18x6xi32>
    %102 = arith.extui %101 : vector<18x6xi1> to vector<18x6xi32>
    %103 = arith.sitofp %102 : vector<18x6xi32> to vector<18x6xf32>
    %c0_23 = arith.constant 0 : index
    %c0_24 = arith.constant 0 : index
    %104 = vector.load %arg11[%c0_23, %c0_24] : memref<32x64xf32, #tpu.memory_space<vmem>>, vector<32x64xf32>
    %cst_25 = arith.constant dense<0.000000e+00> : vector<18x64xf32>
    %105 = tpu.matmul %84, %104, %cst_25 {dimension_numbers = #tpu.dot_dimension_numbers<[1], [0], [0], [1], [0, 0, 1, 1], [], []>} : vector<18x32xf32>, vector<32x64xf32>, vector<18x64xf32> -> vector<18x64xf32>
    %c0_26 = arith.constant 0 : index
    %c0_27 = arith.constant 0 : index
    %106 = vector.load %arg12[%c0_26, %c0_27] : memref<6x64xf32, #tpu.memory_space<vmem>>, vector<6x64xf32>
    %cst_28 = arith.constant dense<0.000000e+00> : vector<18x64xf32>
    %107 = tpu.matmul %103, %106, %cst_28 {dimension_numbers = #tpu.dot_dimension_numbers<[1], [0], [0], [1], [0, 0, 1, 1], [], []>} : vector<18x6xf32>, vector<6x64xf32>, vector<18x64xf32> -> vector<18x64xf32>
    %108 = arith.addf %105, %107 : vector<18x64xf32>
    %c0_29 = arith.constant 0 : index
    %c0_30 = arith.constant 0 : index
    %109 = vector.load %arg13[%c0_29, %c0_30] : memref<32x64xf32, #tpu.memory_space<vmem>>, vector<32x64xf32>
    %cst_31 = arith.constant dense<0.000000e+00> : vector<18x64xf32>
    %110 = tpu.matmul %97, %109, %cst_31 {dimension_numbers = #tpu.dot_dimension_numbers<[1], [0], [0], [1], [0, 0, 1, 1], [], []>} : vector<18x32xf32>, vector<32x64xf32>, vector<18x64xf32> -> vector<18x64xf32>
    %111 = arith.addf %108, %110 : vector<18x64xf32>
    %c0_32 = arith.constant 0 : index
    %c0_33 = arith.constant 0 : index
    %112 = vector.load %arg2[%c0_32, %c0_33] : memref<18x1xf32, #tpu.memory_space<vmem>>, vector<18x1xf32>
    %c0_34 = arith.constant 0 : index
    %c0_35 = arith.constant 0 : index
    %113 = vector.load %arg14[%c0_34, %c0_35] : memref<1x64xf32, #tpu.memory_space<vmem>>, vector<1x64xf32>
    %114 = vector.broadcast %112 : vector<18x1xf32> to vector<18x64xf32>
    %115 = vector.broadcast %113 : vector<1x64xf32> to vector<18x64xf32>
    %116 = arith.mulf %114, %115 : vector<18x64xf32>
    %117 = arith.addf %111, %116 : vector<18x64xf32>
    %c0_36 = arith.constant 0 : index
    %c0_37 = arith.constant 0 : index
    %118 = vector.load %arg15[%c0_36, %c0_37] : memref<1x64xf32, #tpu.memory_space<vmem>>, vector<1x64xf32>
    %119 = vector.broadcast %118 : vector<1x64xf32> to vector<18x64xf32>
    %120 = arith.addf %117, %119 : vector<18x64xf32>
    %c0_38 = arith.constant 0 : index
    %c0_39 = arith.constant 0 : index
    %121 = vector.load %arg3[%c0_38, %c0_39] : memref<36x36xf32, #tpu.memory_space<vmem>>, vector<36x36xf32>
    %c0_40 = arith.constant 0 : index
    %c0_41 = arith.constant 0 : index
    %c0_42 = arith.constant 0 : index
    %122 = vector.load %arg16[%c0_40, %c0_41, %c0_42] : memref<2x1x64xf32, #tpu.memory_space<vmem>>, vector<1x1x64xf32>
    %123 = vector.shape_cast %122 : vector<1x1x64xf32> to vector<1x64xf32>
    %c0_43 = arith.constant 0 : index
    %c0_44 = arith.constant 0 : index
    %c0_45 = arith.constant 0 : index
    %124 = vector.load %arg17[%c0_43, %c0_44, %c0_45] : memref<2x1x64xf32, #tpu.memory_space<vmem>>, vector<1x1x64xf32>
    %125 = vector.shape_cast %124 : vector<1x1x64xf32> to vector<1x64xf32>
    %cst_46 = arith.constant dense<0.000000e+00> : vector<18xf32>
    %126 = vector.multi_reduction <add>, %120, %cst_46 [1] : vector<18x64xf32> to vector<18xf32>
    %127 = vector.shape_cast %126 : vector<18xf32> to vector<18x1xf32>
    %cst_47 = arith.constant 6.400000e+01 : f32
    %128 = vector.broadcast %cst_47 : f32 to vector<18x1xf32>
    %129 = arith.divf %127, %128 : vector<18x1xf32>
    %130 = vector.broadcast %129 : vector<18x1xf32> to vector<18x64xf32>
    %131 = arith.subf %120, %130 : vector<18x64xf32>
    %132 = vector.broadcast %129 : vector<18x1xf32> to vector<18x64xf32>
    %133 = arith.subf %120, %132 : vector<18x64xf32>
    %134 = arith.mulf %131, %133 : vector<18x64xf32>
    %cst_48 = arith.constant dense<0.000000e+00> : vector<18xf32>
    %135 = vector.multi_reduction <add>, %134, %cst_48 [1] : vector<18x64xf32> to vector<18xf32>
    %136 = vector.shape_cast %135 : vector<18xf32> to vector<18x1xf32>
    %cst_49 = arith.constant 6.400000e+01 : f32
    %137 = vector.broadcast %cst_49 : f32 to vector<18x1xf32>
    %138 = arith.divf %136, %137 : vector<18x1xf32>
    %139 = vector.broadcast %129 : vector<18x1xf32> to vector<18x64xf32>
    %140 = arith.subf %120, %139 : vector<18x64xf32>
    %cst_50 = arith.constant 9.99999974E-6 : f32
    %141 = vector.broadcast %cst_50 : f32 to vector<18x1xf32>
    %142 = arith.addf %138, %141 : vector<18x1xf32>
    %143 = math.rsqrt %142 : vector<18x1xf32>
    %144 = vector.broadcast %143 : vector<18x1xf32> to vector<18x64xf32>
    %145 = arith.mulf %140, %144 : vector<18x64xf32>
    %146 = vector.broadcast %123 : vector<1x64xf32> to vector<18x64xf32>
    %147 = arith.mulf %145, %146 : vector<18x64xf32>
    %148 = vector.broadcast %125 : vector<1x64xf32> to vector<18x64xf32>
    %149 = arith.addf %147, %148 : vector<18x64xf32>
    %c0_51 = arith.constant 0 : index
    %c0_52 = arith.constant 0 : index
    %c0_53 = arith.constant 0 : index
    %150 = vector.load %arg18[%c0_51, %c0_52, %c0_53] : memref<2x64x192xf32, #tpu.memory_space<vmem>>, vector<1x64x192xf32>
    %151 = vector.shape_cast %150 : vector<1x64x192xf32> to vector<64x192xf32>
    %cst_54 = arith.constant dense<0.000000e+00> : vector<18x192xf32>
    %152 = tpu.matmul %149, %151, %cst_54 {dimension_numbers = #tpu.dot_dimension_numbers<[1], [0], [0], [1], [0, 0, 1, 1], [], []>} : vector<18x64xf32>, vector<64x192xf32>, vector<18x192xf32> -> vector<18x192xf32>
    %c0_55 = arith.constant 0 : index
    %c0_56 = arith.constant 0 : index
    %c0_57 = arith.constant 0 : index
    %153 = vector.load %arg19[%c0_55, %c0_56, %c0_57] : memref<2x1x192xf32, #tpu.memory_space<vmem>>, vector<1x1x192xf32>
    %154 = vector.shape_cast %153 : vector<1x1x192xf32> to vector<1x192xf32>
    %155 = vector.broadcast %154 : vector<1x192xf32> to vector<18x192xf32>
    %156 = arith.addf %152, %155 : vector<18x192xf32>
    %157 = vector.extract_strided_slice %156 {offsets = [0, 0], sizes = [18, 32], strides = [1, 1]} : vector<18x192xf32> to vector<18x32xf32>
    %158 = vector.extract_strided_slice %156 {offsets = [0, 32], sizes = [18, 32], strides = [1, 1]} : vector<18x192xf32> to vector<18x32xf32>
    %159 = tpu.concatenate %157, %158 in 0 : vector<18x32xf32>, vector<18x32xf32> -> vector<36x32xf32>
    %160 = vector.extract_strided_slice %156 {offsets = [0, 64], sizes = [18, 32], strides = [1, 1]} : vector<18x192xf32> to vector<18x32xf32>
    %161 = vector.extract_strided_slice %156 {offsets = [0, 96], sizes = [18, 32], strides = [1, 1]} : vector<18x192xf32> to vector<18x32xf32>
    %162 = tpu.concatenate %160, %161 in 0 : vector<18x32xf32>, vector<18x32xf32> -> vector<36x32xf32>
    %163 = vector.extract_strided_slice %156 {offsets = [0, 128], sizes = [18, 32], strides = [1, 1]} : vector<18x192xf32> to vector<18x32xf32>
    %164 = vector.extract_strided_slice %156 {offsets = [0, 160], sizes = [18, 32], strides = [1, 1]} : vector<18x192xf32> to vector<18x32xf32>
    %165 = tpu.concatenate %163, %164 in 0 : vector<18x32xf32>, vector<18x32xf32> -> vector<36x32xf32>
    %cst_58 = arith.constant dense<0.000000e+00> : vector<36x36xf32>
    %166 = tpu.matmul %159, %162, %cst_58 {dimension_numbers = #tpu.dot_dimension_numbers<[1], [1], [0], [0], [0, 0, 1, 0], [], []>} : vector<36x32xf32>, vector<36x32xf32>, vector<36x36xf32> -> vector<36x36xf32>
    %cst_59 = arith.constant 0.176776692 : f32
    %167 = vector.broadcast %cst_59 : f32 to vector<36x36xf32>
    %168 = arith.mulf %166, %167 : vector<36x36xf32>
    %169 = arith.addf %168, %121 : vector<36x36xf32>
    %cst_60 = arith.constant dense<0xFF800000> : vector<36xf32>
    %170 = vector.multi_reduction <maximumf>, %169, %cst_60 [1] : vector<36x36xf32> to vector<36xf32>
    %171 = vector.shape_cast %170 : vector<36xf32> to vector<36x1xf32>
    %172 = vector.broadcast %171 : vector<36x1xf32> to vector<36x36xf32>
    %173 = arith.subf %169, %172 : vector<36x36xf32>
    %174 = math.exp %173 : vector<36x36xf32>
    %cst_61 = arith.constant dense<0.000000e+00> : vector<36xf32>
    %175 = vector.multi_reduction <add>, %174, %cst_61 [1] : vector<36x36xf32> to vector<36xf32>
    %176 = vector.shape_cast %175 : vector<36xf32> to vector<36x1xf32>
    %177 = tpu.reciprocal %176 {approx = true} : vector<36x1xf32> -> vector<36x1xf32>
    %178 = vector.broadcast %177 : vector<36x1xf32> to vector<36x36xf32>
    %179 = arith.mulf %174, %178 : vector<36x36xf32>
    %cst_62 = arith.constant dense<0.000000e+00> : vector<36x32xf32>
    %180 = tpu.matmul %179, %165, %cst_62 {dimension_numbers = #tpu.dot_dimension_numbers<[1], [0], [0], [1], [0, 0, 1, 1], [], []>} : vector<36x36xf32>, vector<36x32xf32>, vector<36x32xf32> -> vector<36x32xf32>
    %181 = vector.extract_strided_slice %180 {offsets = [0, 0], sizes = [18, 32], strides = [1, 1]} : vector<36x32xf32> to vector<18x32xf32>
    %182 = vector.extract_strided_slice %180 {offsets = [18, 0], sizes = [18, 32], strides = [1, 1]} : vector<36x32xf32> to vector<18x32xf32>
    %183 = tpu.concatenate %181, %182 in 1 : vector<18x32xf32>, vector<18x32xf32> -> vector<18x64xf32>
    %c0_63 = arith.constant 0 : index
    %c0_64 = arith.constant 0 : index
    %c0_65 = arith.constant 0 : index
    %184 = vector.load %arg20[%c0_63, %c0_64, %c0_65] : memref<2x64x64xf32, #tpu.memory_space<vmem>>, vector<1x64x64xf32>
    %185 = vector.shape_cast %184 : vector<1x64x64xf32> to vector<64x64xf32>
    %cst_66 = arith.constant dense<0.000000e+00> : vector<18x64xf32>
    %186 = tpu.matmul %183, %185, %cst_66 {dimension_numbers = #tpu.dot_dimension_numbers<[1], [0], [0], [1], [0, 0, 1, 1], [], []>} : vector<18x64xf32>, vector<64x64xf32>, vector<18x64xf32> -> vector<18x64xf32>
    %187 = arith.addf %120, %186 : vector<18x64xf32>
    %c0_67 = arith.constant 0 : index
    %c0_68 = arith.constant 0 : index
    %c0_69 = arith.constant 0 : index
    %188 = vector.load %arg21[%c0_67, %c0_68, %c0_69] : memref<2x1x64xf32, #tpu.memory_space<vmem>>, vector<1x1x64xf32>
    %189 = vector.shape_cast %188 : vector<1x1x64xf32> to vector<1x64xf32>
    %190 = vector.broadcast %189 : vector<1x64xf32> to vector<18x64xf32>
    %191 = arith.addf %187, %190 : vector<18x64xf32>
    %c0_70 = arith.constant 0 : index
    %c0_71 = arith.constant 0 : index
    %c0_72 = arith.constant 0 : index
    %192 = vector.load %arg22[%c0_70, %c0_71, %c0_72] : memref<2x1x64xf32, #tpu.memory_space<vmem>>, vector<1x1x64xf32>
    %193 = vector.shape_cast %192 : vector<1x1x64xf32> to vector<1x64xf32>
    %c0_73 = arith.constant 0 : index
    %c0_74 = arith.constant 0 : index
    %c0_75 = arith.constant 0 : index
    %194 = vector.load %arg23[%c0_73, %c0_74, %c0_75] : memref<2x1x64xf32, #tpu.memory_space<vmem>>, vector<1x1x64xf32>
    %195 = vector.shape_cast %194 : vector<1x1x64xf32> to vector<1x64xf32>
    %cst_76 = arith.constant dense<0.000000e+00> : vector<18xf32>
    %196 = vector.multi_reduction <add>, %191, %cst_76 [1] : vector<18x64xf32> to vector<18xf32>
    %197 = vector.shape_cast %196 : vector<18xf32> to vector<18x1xf32>
    %cst_77 = arith.constant 6.400000e+01 : f32
    %198 = vector.broadcast %cst_77 : f32 to vector<18x1xf32>
    %199 = arith.divf %197, %198 : vector<18x1xf32>
    %200 = vector.broadcast %199 : vector<18x1xf32> to vector<18x64xf32>
    %201 = arith.subf %191, %200 : vector<18x64xf32>
    %202 = vector.broadcast %199 : vector<18x1xf32> to vector<18x64xf32>
    %203 = arith.subf %191, %202 : vector<18x64xf32>
    %204 = arith.mulf %201, %203 : vector<18x64xf32>
    %cst_78 = arith.constant dense<0.000000e+00> : vector<18xf32>
    %205 = vector.multi_reduction <add>, %204, %cst_78 [1] : vector<18x64xf32> to vector<18xf32>
    %206 = vector.shape_cast %205 : vector<18xf32> to vector<18x1xf32>
    %cst_79 = arith.constant 6.400000e+01 : f32
    %207 = vector.broadcast %cst_79 : f32 to vector<18x1xf32>
    %208 = arith.divf %206, %207 : vector<18x1xf32>
    %209 = vector.broadcast %199 : vector<18x1xf32> to vector<18x64xf32>
    %210 = arith.subf %191, %209 : vector<18x64xf32>
    %cst_80 = arith.constant 9.99999974E-6 : f32
    %211 = vector.broadcast %cst_80 : f32 to vector<18x1xf32>
    %212 = arith.addf %208, %211 : vector<18x1xf32>
    %213 = math.rsqrt %212 : vector<18x1xf32>
    %214 = vector.broadcast %213 : vector<18x1xf32> to vector<18x64xf32>
    %215 = arith.mulf %210, %214 : vector<18x64xf32>
    %216 = vector.broadcast %193 : vector<1x64xf32> to vector<18x64xf32>
    %217 = arith.mulf %215, %216 : vector<18x64xf32>
    %218 = vector.broadcast %195 : vector<1x64xf32> to vector<18x64xf32>
    %219 = arith.addf %217, %218 : vector<18x64xf32>
    %c0_81 = arith.constant 0 : index
    %c0_82 = arith.constant 0 : index
    %c0_83 = arith.constant 0 : index
    %220 = vector.load %arg24[%c0_81, %c0_82, %c0_83] : memref<2x64x256xf32, #tpu.memory_space<vmem>>, vector<1x64x256xf32>
    %221 = vector.shape_cast %220 : vector<1x64x256xf32> to vector<64x256xf32>
    %cst_84 = arith.constant dense<0.000000e+00> : vector<18x256xf32>
    %222 = tpu.matmul %219, %221, %cst_84 {dimension_numbers = #tpu.dot_dimension_numbers<[1], [0], [0], [1], [0, 0, 1, 1], [], []>} : vector<18x64xf32>, vector<64x256xf32>, vector<18x256xf32> -> vector<18x256xf32>
    %c0_85 = arith.constant 0 : index
    %c0_86 = arith.constant 0 : index
    %c0_87 = arith.constant 0 : index
    %223 = vector.load %arg25[%c0_85, %c0_86, %c0_87] : memref<2x1x256xf32, #tpu.memory_space<vmem>>, vector<1x1x256xf32>
    %224 = vector.shape_cast %223 : vector<1x1x256xf32> to vector<1x256xf32>
    %225 = vector.broadcast %224 : vector<1x256xf32> to vector<18x256xf32>
    %226 = arith.addf %222, %225 : vector<18x256xf32>
    %227 = arith.mulf %226, %226 : vector<18x256xf32>
    %228 = arith.mulf %226, %227 : vector<18x256xf32>
    %cst_88 = arith.constant 4.471500e-02 : f32
    %229 = vector.broadcast %cst_88 : f32 to vector<18x256xf32>
    %230 = arith.mulf %229, %228 : vector<18x256xf32>
    %231 = arith.addf %226, %230 : vector<18x256xf32>
    %cst_89 = arith.constant 0.797884583 : f32
    %232 = vector.broadcast %cst_89 : f32 to vector<18x256xf32>
    %233 = arith.mulf %232, %231 : vector<18x256xf32>
    %234 = math.tanh %233 : vector<18x256xf32>
    %cst_90 = arith.constant 1.000000e+00 : f32
    %235 = vector.broadcast %cst_90 : f32 to vector<18x256xf32>
    %236 = arith.addf %235, %234 : vector<18x256xf32>
    %cst_91 = arith.constant 5.000000e-01 : f32
    %237 = vector.broadcast %cst_91 : f32 to vector<18x256xf32>
    %238 = arith.mulf %237, %236 : vector<18x256xf32>
    %239 = arith.mulf %226, %238 : vector<18x256xf32>
    %c0_92 = arith.constant 0 : index
    %c0_93 = arith.constant 0 : index
    %c0_94 = arith.constant 0 : index
    %240 = vector.load %arg26[%c0_92, %c0_93, %c0_94] : memref<2x256x64xf32, #tpu.memory_space<vmem>>, vector<1x256x64xf32>
    %241 = vector.shape_cast %240 : vector<1x256x64xf32> to vector<256x64xf32>
    %cst_95 = arith.constant dense<0.000000e+00> : vector<18x64xf32>
    %242 = tpu.matmul %239, %241, %cst_95 {dimension_numbers = #tpu.dot_dimension_numbers<[1], [0], [0], [1], [0, 0, 1, 1], [], []>} : vector<18x256xf32>, vector<256x64xf32>, vector<18x64xf32> -> vector<18x64xf32>
    %243 = arith.addf %191, %242 : vector<18x64xf32>
    %c0_96 = arith.constant 0 : index
    %c0_97 = arith.constant 0 : index
    %c0_98 = arith.constant 0 : index
    %244 = vector.load %arg27[%c0_96, %c0_97, %c0_98] : memref<2x1x64xf32, #tpu.memory_space<vmem>>, vector<1x1x64xf32>
    %245 = vector.shape_cast %244 : vector<1x1x64xf32> to vector<1x64xf32>
    %246 = vector.broadcast %245 : vector<1x64xf32> to vector<18x64xf32>
    %247 = arith.addf %243, %246 : vector<18x64xf32>
    %c1 = arith.constant 1 : index
    %c0_99 = arith.constant 0 : index
    %c0_100 = arith.constant 0 : index
    %248 = vector.load %arg16[%c1, %c0_99, %c0_100] : memref<2x1x64xf32, #tpu.memory_space<vmem>>, vector<1x1x64xf32>
    %249 = vector.shape_cast %248 : vector<1x1x64xf32> to vector<1x64xf32>
    %c1_101 = arith.constant 1 : index
    %c0_102 = arith.constant 0 : index
    %c0_103 = arith.constant 0 : index
    %250 = vector.load %arg17[%c1_101, %c0_102, %c0_103] : memref<2x1x64xf32, #tpu.memory_space<vmem>>, vector<1x1x64xf32>
    %251 = vector.shape_cast %250 : vector<1x1x64xf32> to vector<1x64xf32>
    %cst_104 = arith.constant dense<0.000000e+00> : vector<18xf32>
    %252 = vector.multi_reduction <add>, %247, %cst_104 [1] : vector<18x64xf32> to vector<18xf32>
    %253 = vector.shape_cast %252 : vector<18xf32> to vector<18x1xf32>
    %cst_105 = arith.constant 6.400000e+01 : f32
    %254 = vector.broadcast %cst_105 : f32 to vector<18x1xf32>
    %255 = arith.divf %253, %254 : vector<18x1xf32>
    %256 = vector.broadcast %255 : vector<18x1xf32> to vector<18x64xf32>
    %257 = arith.subf %247, %256 : vector<18x64xf32>
    %258 = vector.broadcast %255 : vector<18x1xf32> to vector<18x64xf32>
    %259 = arith.subf %247, %258 : vector<18x64xf32>
    %260 = arith.mulf %257, %259 : vector<18x64xf32>
    %cst_106 = arith.constant dense<0.000000e+00> : vector<18xf32>
    %261 = vector.multi_reduction <add>, %260, %cst_106 [1] : vector<18x64xf32> to vector<18xf32>
    %262 = vector.shape_cast %261 : vector<18xf32> to vector<18x1xf32>
    %cst_107 = arith.constant 6.400000e+01 : f32
    %263 = vector.broadcast %cst_107 : f32 to vector<18x1xf32>
    %264 = arith.divf %262, %263 : vector<18x1xf32>
    %265 = vector.broadcast %255 : vector<18x1xf32> to vector<18x64xf32>
    %266 = arith.subf %247, %265 : vector<18x64xf32>
    %cst_108 = arith.constant 9.99999974E-6 : f32
    %267 = vector.broadcast %cst_108 : f32 to vector<18x1xf32>
    %268 = arith.addf %264, %267 : vector<18x1xf32>
    %269 = math.rsqrt %268 : vector<18x1xf32>
    %270 = vector.broadcast %269 : vector<18x1xf32> to vector<18x64xf32>
    %271 = arith.mulf %266, %270 : vector<18x64xf32>
    %272 = vector.broadcast %249 : vector<1x64xf32> to vector<18x64xf32>
    %273 = arith.mulf %271, %272 : vector<18x64xf32>
    %274 = vector.broadcast %251 : vector<1x64xf32> to vector<18x64xf32>
    %275 = arith.addf %273, %274 : vector<18x64xf32>
    %c1_109 = arith.constant 1 : index
    %c0_110 = arith.constant 0 : index
    %c0_111 = arith.constant 0 : index
    %276 = vector.load %arg18[%c1_109, %c0_110, %c0_111] : memref<2x64x192xf32, #tpu.memory_space<vmem>>, vector<1x64x192xf32>
    %277 = vector.shape_cast %276 : vector<1x64x192xf32> to vector<64x192xf32>
    %cst_112 = arith.constant dense<0.000000e+00> : vector<18x192xf32>
    %278 = tpu.matmul %275, %277, %cst_112 {dimension_numbers = #tpu.dot_dimension_numbers<[1], [0], [0], [1], [0, 0, 1, 1], [], []>} : vector<18x64xf32>, vector<64x192xf32>, vector<18x192xf32> -> vector<18x192xf32>
    %c1_113 = arith.constant 1 : index
    %c0_114 = arith.constant 0 : index
    %c0_115 = arith.constant 0 : index
    %279 = vector.load %arg19[%c1_113, %c0_114, %c0_115] : memref<2x1x192xf32, #tpu.memory_space<vmem>>, vector<1x1x192xf32>
    %280 = vector.shape_cast %279 : vector<1x1x192xf32> to vector<1x192xf32>
    %281 = vector.broadcast %280 : vector<1x192xf32> to vector<18x192xf32>
    %282 = arith.addf %278, %281 : vector<18x192xf32>
    %283 = vector.extract_strided_slice %282 {offsets = [0, 0], sizes = [18, 32], strides = [1, 1]} : vector<18x192xf32> to vector<18x32xf32>
    %284 = vector.extract_strided_slice %282 {offsets = [0, 32], sizes = [18, 32], strides = [1, 1]} : vector<18x192xf32> to vector<18x32xf32>
    %285 = tpu.concatenate %283, %284 in 0 : vector<18x32xf32>, vector<18x32xf32> -> vector<36x32xf32>
    %286 = vector.extract_strided_slice %282 {offsets = [0, 64], sizes = [18, 32], strides = [1, 1]} : vector<18x192xf32> to vector<18x32xf32>
    %287 = vector.extract_strided_slice %282 {offsets = [0, 96], sizes = [18, 32], strides = [1, 1]} : vector<18x192xf32> to vector<18x32xf32>
    %288 = tpu.concatenate %286, %287 in 0 : vector<18x32xf32>, vector<18x32xf32> -> vector<36x32xf32>
    %289 = vector.extract_strided_slice %282 {offsets = [0, 128], sizes = [18, 32], strides = [1, 1]} : vector<18x192xf32> to vector<18x32xf32>
    %290 = vector.extract_strided_slice %282 {offsets = [0, 160], sizes = [18, 32], strides = [1, 1]} : vector<18x192xf32> to vector<18x32xf32>
    %291 = tpu.concatenate %289, %290 in 0 : vector<18x32xf32>, vector<18x32xf32> -> vector<36x32xf32>
    %cst_116 = arith.constant dense<0.000000e+00> : vector<36x36xf32>
    %292 = tpu.matmul %285, %288, %cst_116 {dimension_numbers = #tpu.dot_dimension_numbers<[1], [1], [0], [0], [0, 0, 1, 0], [], []>} : vector<36x32xf32>, vector<36x32xf32>, vector<36x36xf32> -> vector<36x36xf32>
    %cst_117 = arith.constant 0.176776692 : f32
    %293 = vector.broadcast %cst_117 : f32 to vector<36x36xf32>
    %294 = arith.mulf %292, %293 : vector<36x36xf32>
    %295 = arith.addf %294, %121 : vector<36x36xf32>
    %cst_118 = arith.constant dense<0xFF800000> : vector<36xf32>
    %296 = vector.multi_reduction <maximumf>, %295, %cst_118 [1] : vector<36x36xf32> to vector<36xf32>
    %297 = vector.shape_cast %296 : vector<36xf32> to vector<36x1xf32>
    %298 = vector.broadcast %297 : vector<36x1xf32> to vector<36x36xf32>
    %299 = arith.subf %295, %298 : vector<36x36xf32>
    %300 = math.exp %299 : vector<36x36xf32>
    %cst_119 = arith.constant dense<0.000000e+00> : vector<36xf32>
    %301 = vector.multi_reduction <add>, %300, %cst_119 [1] : vector<36x36xf32> to vector<36xf32>
    %302 = vector.shape_cast %301 : vector<36xf32> to vector<36x1xf32>
    %303 = tpu.reciprocal %302 {approx = true} : vector<36x1xf32> -> vector<36x1xf32>
    %304 = vector.broadcast %303 : vector<36x1xf32> to vector<36x36xf32>
    %305 = arith.mulf %300, %304 : vector<36x36xf32>
    %cst_120 = arith.constant dense<0.000000e+00> : vector<36x32xf32>
    %306 = tpu.matmul %305, %291, %cst_120 {dimension_numbers = #tpu.dot_dimension_numbers<[1], [0], [0], [1], [0, 0, 1, 1], [], []>} : vector<36x36xf32>, vector<36x32xf32>, vector<36x32xf32> -> vector<36x32xf32>
    %307 = vector.extract_strided_slice %306 {offsets = [0, 0], sizes = [18, 32], strides = [1, 1]} : vector<36x32xf32> to vector<18x32xf32>
    %308 = vector.extract_strided_slice %306 {offsets = [18, 0], sizes = [18, 32], strides = [1, 1]} : vector<36x32xf32> to vector<18x32xf32>
    %309 = tpu.concatenate %307, %308 in 1 : vector<18x32xf32>, vector<18x32xf32> -> vector<18x64xf32>
    %c1_121 = arith.constant 1 : index
    %c0_122 = arith.constant 0 : index
    %c0_123 = arith.constant 0 : index
    %310 = vector.load %arg20[%c1_121, %c0_122, %c0_123] : memref<2x64x64xf32, #tpu.memory_space<vmem>>, vector<1x64x64xf32>
    %311 = vector.shape_cast %310 : vector<1x64x64xf32> to vector<64x64xf32>
    %cst_124 = arith.constant dense<0.000000e+00> : vector<18x64xf32>
    %312 = tpu.matmul %309, %311, %cst_124 {dimension_numbers = #tpu.dot_dimension_numbers<[1], [0], [0], [1], [0, 0, 1, 1], [], []>} : vector<18x64xf32>, vector<64x64xf32>, vector<18x64xf32> -> vector<18x64xf32>
    %313 = arith.addf %247, %312 : vector<18x64xf32>
    %c1_125 = arith.constant 1 : index
    %c0_126 = arith.constant 0 : index
    %c0_127 = arith.constant 0 : index
    %314 = vector.load %arg21[%c1_125, %c0_126, %c0_127] : memref<2x1x64xf32, #tpu.memory_space<vmem>>, vector<1x1x64xf32>
    %315 = vector.shape_cast %314 : vector<1x1x64xf32> to vector<1x64xf32>
    %316 = vector.broadcast %315 : vector<1x64xf32> to vector<18x64xf32>
    %317 = arith.addf %313, %316 : vector<18x64xf32>
    %c1_128 = arith.constant 1 : index
    %c0_129 = arith.constant 0 : index
    %c0_130 = arith.constant 0 : index
    %318 = vector.load %arg22[%c1_128, %c0_129, %c0_130] : memref<2x1x64xf32, #tpu.memory_space<vmem>>, vector<1x1x64xf32>
    %319 = vector.shape_cast %318 : vector<1x1x64xf32> to vector<1x64xf32>
    %c1_131 = arith.constant 1 : index
    %c0_132 = arith.constant 0 : index
    %c0_133 = arith.constant 0 : index
    %320 = vector.load %arg23[%c1_131, %c0_132, %c0_133] : memref<2x1x64xf32, #tpu.memory_space<vmem>>, vector<1x1x64xf32>
    %321 = vector.shape_cast %320 : vector<1x1x64xf32> to vector<1x64xf32>
    %cst_134 = arith.constant dense<0.000000e+00> : vector<18xf32>
    %322 = vector.multi_reduction <add>, %317, %cst_134 [1] : vector<18x64xf32> to vector<18xf32>
    %323 = vector.shape_cast %322 : vector<18xf32> to vector<18x1xf32>
    %cst_135 = arith.constant 6.400000e+01 : f32
    %324 = vector.broadcast %cst_135 : f32 to vector<18x1xf32>
    %325 = arith.divf %323, %324 : vector<18x1xf32>
    %326 = vector.broadcast %325 : vector<18x1xf32> to vector<18x64xf32>
    %327 = arith.subf %317, %326 : vector<18x64xf32>
    %328 = vector.broadcast %325 : vector<18x1xf32> to vector<18x64xf32>
    %329 = arith.subf %317, %328 : vector<18x64xf32>
    %330 = arith.mulf %327, %329 : vector<18x64xf32>
    %cst_136 = arith.constant dense<0.000000e+00> : vector<18xf32>
    %331 = vector.multi_reduction <add>, %330, %cst_136 [1] : vector<18x64xf32> to vector<18xf32>
    %332 = vector.shape_cast %331 : vector<18xf32> to vector<18x1xf32>
    %cst_137 = arith.constant 6.400000e+01 : f32
    %333 = vector.broadcast %cst_137 : f32 to vector<18x1xf32>
    %334 = arith.divf %332, %333 : vector<18x1xf32>
    %335 = vector.broadcast %325 : vector<18x1xf32> to vector<18x64xf32>
    %336 = arith.subf %317, %335 : vector<18x64xf32>
    %cst_138 = arith.constant 9.99999974E-6 : f32
    %337 = vector.broadcast %cst_138 : f32 to vector<18x1xf32>
    %338 = arith.addf %334, %337 : vector<18x1xf32>
    %339 = math.rsqrt %338 : vector<18x1xf32>
    %340 = vector.broadcast %339 : vector<18x1xf32> to vector<18x64xf32>
    %341 = arith.mulf %336, %340 : vector<18x64xf32>
    %342 = vector.broadcast %319 : vector<1x64xf32> to vector<18x64xf32>
    %343 = arith.mulf %341, %342 : vector<18x64xf32>
    %344 = vector.broadcast %321 : vector<1x64xf32> to vector<18x64xf32>
    %345 = arith.addf %343, %344 : vector<18x64xf32>
    %c1_139 = arith.constant 1 : index
    %c0_140 = arith.constant 0 : index
    %c0_141 = arith.constant 0 : index
    %346 = vector.load %arg24[%c1_139, %c0_140, %c0_141] : memref<2x64x256xf32, #tpu.memory_space<vmem>>, vector<1x64x256xf32>
    %347 = vector.shape_cast %346 : vector<1x64x256xf32> to vector<64x256xf32>
    %cst_142 = arith.constant dense<0.000000e+00> : vector<18x256xf32>
    %348 = tpu.matmul %345, %347, %cst_142 {dimension_numbers = #tpu.dot_dimension_numbers<[1], [0], [0], [1], [0, 0, 1, 1], [], []>} : vector<18x64xf32>, vector<64x256xf32>, vector<18x256xf32> -> vector<18x256xf32>
    %c1_143 = arith.constant 1 : index
    %c0_144 = arith.constant 0 : index
    %c0_145 = arith.constant 0 : index
    %349 = vector.load %arg25[%c1_143, %c0_144, %c0_145] : memref<2x1x256xf32, #tpu.memory_space<vmem>>, vector<1x1x256xf32>
    %350 = vector.shape_cast %349 : vector<1x1x256xf32> to vector<1x256xf32>
    %351 = vector.broadcast %350 : vector<1x256xf32> to vector<18x256xf32>
    %352 = arith.addf %348, %351 : vector<18x256xf32>
    %353 = arith.mulf %352, %352 : vector<18x256xf32>
    %354 = arith.mulf %352, %353 : vector<18x256xf32>
    %cst_146 = arith.constant 4.471500e-02 : f32
    %355 = vector.broadcast %cst_146 : f32 to vector<18x256xf32>
    %356 = arith.mulf %355, %354 : vector<18x256xf32>
    %357 = arith.addf %352, %356 : vector<18x256xf32>
    %cst_147 = arith.constant 0.797884583 : f32
    %358 = vector.broadcast %cst_147 : f32 to vector<18x256xf32>
    %359 = arith.mulf %358, %357 : vector<18x256xf32>
    %360 = math.tanh %359 : vector<18x256xf32>
    %cst_148 = arith.constant 1.000000e+00 : f32
    %361 = vector.broadcast %cst_148 : f32 to vector<18x256xf32>
    %362 = arith.addf %361, %360 : vector<18x256xf32>
    %cst_149 = arith.constant 5.000000e-01 : f32
    %363 = vector.broadcast %cst_149 : f32 to vector<18x256xf32>
    %364 = arith.mulf %363, %362 : vector<18x256xf32>
    %365 = arith.mulf %352, %364 : vector<18x256xf32>
    %c1_150 = arith.constant 1 : index
    %c0_151 = arith.constant 0 : index
    %c0_152 = arith.constant 0 : index
    %366 = vector.load %arg26[%c1_150, %c0_151, %c0_152] : memref<2x256x64xf32, #tpu.memory_space<vmem>>, vector<1x256x64xf32>
    %367 = vector.shape_cast %366 : vector<1x256x64xf32> to vector<256x64xf32>
    %cst_153 = arith.constant dense<0.000000e+00> : vector<18x64xf32>
    %368 = tpu.matmul %365, %367, %cst_153 {dimension_numbers = #tpu.dot_dimension_numbers<[1], [0], [0], [1], [0, 0, 1, 1], [], []>} : vector<18x256xf32>, vector<256x64xf32>, vector<18x64xf32> -> vector<18x64xf32>
    %369 = arith.addf %317, %368 : vector<18x64xf32>
    %c1_154 = arith.constant 1 : index
    %c0_155 = arith.constant 0 : index
    %c0_156 = arith.constant 0 : index
    %370 = vector.load %arg27[%c1_154, %c0_155, %c0_156] : memref<2x1x64xf32, #tpu.memory_space<vmem>>, vector<1x1x64xf32>
    %371 = vector.shape_cast %370 : vector<1x1x64xf32> to vector<1x64xf32>
    %372 = vector.broadcast %371 : vector<1x64xf32> to vector<18x64xf32>
    %373 = arith.addf %369, %372 : vector<18x64xf32>
    %c0_157 = arith.constant 0 : index
    %c0_158 = arith.constant 0 : index
    %374 = vector.load %arg28[%c0_157, %c0_158] : memref<64x6xf32, #tpu.memory_space<vmem>>, vector<64x6xf32>
    %cst_159 = arith.constant dense<0.000000e+00> : vector<18x6xf32>
    %375 = tpu.matmul %373, %374, %cst_159 {dimension_numbers = #tpu.dot_dimension_numbers<[1], [0], [0], [1], [0, 0, 1, 1], [], []>} : vector<18x64xf32>, vector<64x6xf32>, vector<18x6xf32> -> vector<18x6xf32>
    %c0_160 = arith.constant 0 : index
    %c0_161 = arith.constant 0 : index
    %376 = vector.load %arg29[%c0_160, %c0_161] : memref<1x6xf32, #tpu.memory_space<vmem>>, vector<1x6xf32>
    %377 = vector.broadcast %376 : vector<1x6xf32> to vector<18x6xf32>
    %378 = arith.addf %375, %377 : vector<18x6xf32>
    %379 = vector.extract_strided_slice %378 {offsets = [8, 0], sizes = [1, 6], strides = [1, 1]} : vector<18x6xf32> to vector<1x6xf32>
    %c0_162 = arith.constant 0 : index
    %c0_163 = arith.constant 0 : index
    %380 = vector.load %arg30[%c0_162, %c0_163] : memref<2x6xf32, #tpu.memory_space<vmem>>, vector<1x6xf32>
    tpu.vector_store %arg30[%c0_162, %c0_163], %379 {strides = array<i32>} : memref<2x6xf32, #tpu.memory_space<vmem>>, vector<1x6xf32>,
    %381 = vector.extract_strided_slice %378 {offsets = [17, 0], sizes = [1, 6], strides = [1, 1]} : vector<18x6xf32> to vector<1x6xf32>
    %c1_164 = arith.constant 1 : index
    %c0_165 = arith.constant 0 : index
    %382 = vector.load %arg30[%c1_164, %c0_165] : memref<2x6xf32, #tpu.memory_space<vmem>>, vector<1x6xf32>
    tpu.vector_store %arg30[%c1_164, %c0_165], %381 {strides = array<i32>} : memref<2x6xf32, #tpu.memory_space<vmem>>, vector<1x6xf32>,
    return
  }
}

</mosaic_0001>

<bundles_post_ra>
// kernel: model_forward.1
= control target key start
LH: loop header
LB: loop body
LE: loop exit
PB: predicated region body
PF: predicated region fallthrough
CT: control target
= control target key end

     0   :  { %s7925_s6 = smov 1   ;;  %s7926_s10 = smov 2   ;;  %s11930_s0 = inlined_call_operand.smem [shape: u32[31], index: -1, kind: input, shape index: {}] }
   0x1   :  { %s7971_s5 = sld [smem:[%s11930_s0]]   ;;  %s7927_s14 = smov 3  }
   0x2   :  { %s7976_s9 = sld [smem:[%s11930_s0 + %s7925_s6]]   ;;  %s7928_s18 = smov 4  }
   0x3   :  { %s7981_s13 = sld [smem:[%s11930_s0 + %s7926_s10]]   ;;  %s7929_s22 = smov 5  }
   0x4   :  { %s7986_s17 = sld [smem:[%s11930_s0 + %s7927_s14]]   ;;  %s7930_s26 = smov 6  }
   0x5   :  { %s7991_s21 = sld [smem:[%s11930_s0 + %s7928_s18]]   ;;  %s7931_s30 = smov 7  }
   0x6   :  { %s7996_s25 = sld [smem:[%s11930_s0 + %s7929_s22]]   ;;  %s7932_s4 = smov 8  }
   0x7   :  { %s8001_s29 = sld [smem:[%s11930_s0 + %s7930_s26]]   ;;  %s7933_s10 = smov 9  }
   0x8   :  { %s8006_s3 = sld [smem:[%s11930_s0 + %s7931_s30]]   ;;  %s7934_s15 = smov 10  }
   0x9   :  { %s8011_s8 = sld [smem:[%s11930_s0 + %s7932_s4]]   ;;  %s7935_s20 = smov 11  }
   0xa   :  { %12035 = sst [smem:[#allocation5_spill]] %s7986_s17  ;;  %s7936_s26 = smov 12  }
   0xb   :  { %s8016_s14 = sld [smem:[%s11930_s0 + %s7933_s10]]   ;;  %s7937_s1 = smov 13  }
   0xc   :  { %s8021_s19 = sld [smem:[%s11930_s0 + %s7934_s15]]   ;;  %s7938_s7 = smov 14  }
   0xd   :  { %s8026_s24 = sld [smem:[%s11930_s0 + %s7935_s20]]   ;;  %s7939_s15 = smov 15  }
   0xe   :  { %s8031_s30 = sld [smem:[%s11930_s0 + %s7936_s26]]   ;;  %s7940_s22 = smov 16  }
   0xf   :  { %s8036_s6 = sld [smem:[%s11930_s0 + %s7937_s1]]   ;;  %s7941_s28 = smov 17  }
  0x10   :  { %s8041_s12 = sld [smem:[%s11930_s0 + %s7938_s7]]   ;;  %s7942_s7 = smov 18  }
  0x11   :  { %s8046_s20 = sld [smem:[%s11930_s0 + %s7939_s15]]   ;;  %s7943_s15 = smov 19  }
  0x12   :  { %s8051_s27 = sld [smem:[%s11930_s0 + %s7940_s22]]   ;;  %s7944_s22 = smov 20  }
  0x13   :  { %s8056_s4 = sld [smem:[%s11930_s0 + %s7941_s28]]   ;;  %s7945_s28 = smov 21  }
  0x14   :  { %s8061_s17 = sld [smem:[%s11930_s0 + %s7942_s7]]   ;;  %s7946_s7 = smov 22  }
  0x17   :  { %12036 = sst [smem:[#allocation6_spill]] %s8046_s20 }
  0x18   :  { %12037 = sst [smem:[#allocation7_spill]] %s8051_s27 }
  0x19   :  { %12038 = sst [smem:[#allocation8_spill]] %s8056_s4 }
  0x1a   :  { %12039 = sst [smem:[#allocation9_spill]] %s8061_s17 }
  0x1b   :  { %s8066_s20 = sld [smem:[%s11930_s0 + %s7943_s15]]   ;;  %s7947_s15 = smov 23  }
  0x1c   :  { %s8071_s27 = sld [smem:[%s11930_s0 + %s7944_s22]]   ;;  %s7948_s22 = smov 24  }
  0x1d   :  { %s8076_s4 = sld [smem:[%s11930_s0 + %s7945_s28]]   ;;  %s7949_s28 = smov 25  }
  0x1e   :  { %s8081_s17 = sld [smem:[%s11930_s0 + %s7946_s7]]   ;;  %s7950_s7 = smov 26  }
  0x21   :  { %12040 = sst [smem:[#allocation10_spill]] %s8066_s20 }
  0x22   :  { %12041 = sst [smem:[#allocation11_spill]] %s8071_s27 }
  0x23   :  { %12042 = sst [smem:[#allocation12_spill]] %s8076_s4 }
  0x24   :  { %12043 = sst [smem:[#allocation13_spill]] %s8081_s17 }
  0x25   :  { %s8086_s20 = sld [smem:[%s11930_s0 + %s7947_s15]]   ;;  %s7951_s15 = smov 27  }
  0x26   :  { %s8091_s27 = sld [smem:[%s11930_s0 + %s7948_s22]]   ;;  %s7952_s22 = smov 28  }
  0x27   :  { %s8096_s4 = sld [smem:[%s11930_s0 + %s7949_s28]]   ;;  %s7953_s28 = smov 29  }
  0x28   :  { %s8101_s17 = sld [smem:[%s11930_s0 + %s7950_s7]]   ;;  %s7954_s7 = smov 30  }
  0x2b   :  { %12044 = sst [smem:[#allocation14_spill]] %s8086_s20 }
  0x2c   :  { %12045 = sst [smem:[#allocation15_spill]] %s8091_s27 }
  0x2d   :  { %12046 = sst [smem:[#allocation16_spill]] %s8096_s4 }
  0x2e   :  { %12047 = sst [smem:[#allocation17_spill]] %s8101_s17 }
  0x2f   :  { %s8106_s20 = sld [smem:[%s11930_s0 + %s7951_s15]]  }
  0x30   :  { %s8111_s27 = sld [smem:[%s11930_s0 + %s7952_s22]]  }
  0x31   :  { %s8116_s4 = sld [smem:[%s11930_s0 + %s7953_s28]]  }
  0x32   :  { %s8121_s17 = sld [smem:[%s11930_s0 + %s7954_s7]]  }
  0x33   :  { %v129_v0 = vld [vmem:[%s7971_s5 + $0x10] sm:$0xff]  ;;  %v128_v1 = vld [vmem:[%s7971_s5 + $0x8] sm:$0xff]  ;;  %v127_v2 = vld [vmem:[%s7971_s5] sm:$0xff]  ;;  %v11946_v3 = vmov 0  }
  0x34   :  { %7100 = vset.pattern.permute.xlu2 %v11946_v3  ;;  %7098 = vset.pattern.permute.xlu1 %v11946_v3  ;;  %v756_v4 = vadd.s32 16, %v129_v0  ;;  %v755_v5 = vadd.s32 16, %v128_v1  ;;  %v754_v6 = vadd.s32 16, %v127_v2 }
  0x35   :  { %7096 = vset.pattern.permute.xlu0 %v11946_v3  ;;  %261 = vperm.xlu2 %7100, %v129_v0  }
  0x36   :  { %258 = vperm.xlu1 %7098, %v128_v1   ;;  %255 = vperm.xlu0 %7096, %v127_v2  }
  0x37   :  { %66 = vsyncpa [#allocation3], 0  ;;  %v11944_v7 = vmov 1   ;;  %v130_v8 = vld [vmem:[%s7971_s5 + $0x18] sm:$0xff]  ;;  %v131_v10 = vld [vmem:[%s7971_s5 + $0x20] sm:$0xff]  ;;  %v11943_v53 = vlaneseq  ;;  %vm1758_vm2 = vcmask 261120  }
  0x38   :  { %v757_v9 = vadd.s32 16, %v130_v8  ;;  %v133_v11 = vld [vmem:[%s7971_s5 + $0x30] sm:$0xff]  ;;  %v132_v12 = vld [vmem:[%s7971_s5 + $0x28] sm:$0xff]  ;;  %v758_v13 = vadd.s32 16, %v131_v10  ;;  %v134_v17 = vld [vmem:[%s7971_s5 + $0x38] sm:$0xff]  ;;  %v11948_v60 = vmov 0.0  }
  0x39   :  { %v760_v14 = vadd.s32 16, %v133_v11  ;;  %v759_v15 = vadd.s32 16, %v132_v12  ;;  %v136_v16 = vld [vmem:[%s7971_s5 + $0x48] sm:$0xff]  ;;  %v761_v18 = vadd.s32 16, %v134_v17  ;;  %v138_v19 = vld [vmem:[%s7971_s5 + $0x58] sm:$0xff]  ;;  %v135_v21 = vld [vmem:[%s7971_s5 + $0x40] sm:$0xff] }
  0x3a   :  { %v765_v20 = vadd.s32 16, %v138_v19  ;;  %v762_v22 = vadd.s32 16, %v135_v21  ;;  %v137_v23 = vld [vmem:[%s7971_s5 + $0x50] sm:$0xff]  ;;  %v763_v24 = vadd.s32 16, %v136_v16  ;;  %v143_v26 = vld [vmem:[%s7971_s5 + $0x80] sm:$0xff]  ;;  %v140_v31 = vld [vmem:[%s7971_s5 + $0x68] sm:$0xff] }
  0x3b   :  { %v141_v25 = vld [vmem:[%s7971_s5 + $0x70] sm:$0xff]  ;;  %v764_v27 = vadd.s32 16, %v137_v23  ;;  %v770_v28 = vadd.s32 16, %v143_v26  ;;  %v139_v29 = vld [vmem:[%s7971_s5 + $0x60] sm:$0xff]  ;;  %v767_v32 = vadd.s32 16, %v140_v31  ;;  %v1757_v33 = vld [vmem:[%s7991_s21 + $0x18] sm:$0xff] }
  0x3c   :  { %v766_v30 = vadd.s32 16, %v139_v29  ;;  %2146 = vmatpush.msra.mxu0 %v1757_v33  ;;  %v1756_v34 = vld [vmem:[%s7991_s21 + $0x10] sm:$0xff]  ;;  %7047 = vmatpush.msra.mxu2 %v1757_v33  ;;  %v142_v36 = vld [vmem:[%s7971_s5 + $0x78] sm:$0xff]  ;;  %v768_v37 = vadd.s32 16, %v141_v25  ;;  %v1755_v38 = vld [vmem:[%s7991_s21 + $0x8] sm:$0xff]  ;;  %v8183_v54 = vand.u32 127, %v11943_v53 }
  0x3d   :  { %7101 = vset.pattern.permute.xlu2 %v11944_v7  ;;  %7046 = vmatpush.msra.mxu1 %v1757_v33  ;;  %v1754_v39 = vld [vmem:[%s7991_s21] sm:$0xff]  ;;  %v146_v40 = vld [vmem:[%s7971_s5 + $0x98] sm:$0xff]  ;;  %v769_v41 = vadd.s32 16, %v142_v36  ;;  %v148_v43 = vld [vmem:[%s7971_s5 + $0xa8] sm:$0xff]  ;;  %s7958_s0 = smov 64   ;;  %s7960_s21 = smov 96  }
  0x3e   :  { %7099 = vset.pattern.permute.xlu1 %v11944_v7  ;;  %7097 = vset.pattern.permute.xlu0 %v11944_v7  ;;  %v144_v44 = vld [vmem:[%s7971_s5 + $0x88] sm:$0xff]  ;;  %v775_v45 = vadd.s32 16, %v148_v43  ;;  %v145_v48 = vld [vmem:[%s7971_s5 + $0x90] sm:$0xff]  ;;  %12048 = vst [vmem:[#allocation18_spill] sm:$0xff] %v8183_v54  ;;  %v147_v58 = vld [vmem:[%s7971_s5 + $0xa0] sm:$0xff]  ;;  %v773_v59 = vadd.s32 16, %v146_v40 }
  0x3f   :  { %886 = vperm.xlu2 %7101, %v756_v4   ;;  %883 = vperm.xlu1 %7099, %v755_v5   ;;  %v771_v46 = vadd.s32 16, %v144_v44  ;;  %v772_v51 = vadd.s32 16, %v145_v48  ;;  %v151_v62 = vld [vmem:[%s7971_s5 + $0xc0] sm:$0xff]  ;;  %v774_v1 = vadd.s32 16, %v147_v58  ;;  %v153_v4 = vld [vmem:[%s7971_s5 + $0xd0] sm:$0xff]  ;;  %s12304_s15 = sld [smem:[#allocation16_spill]] }
  0x40   :  { %880 = vperm.xlu0 %7097, %v754_v6   ;;  %7048 = vmatpush.msra.mxu3 %v1757_v33  ;;  %v780_v5 = vadd.s32 16, %v153_v4  ;;  %v149_v6 = vld [vmem:[%s7971_s5 + $0xb0] sm:$0xff]  ;;  %s6594_s16 = sshll.u32 %s8121_s17, 4  ;;  %s6595_s16 = int_to_ptr.hbm [resolvable:$true] %s6594_s16 }
  0x41   :  { %2147 = vmatpush.msra.mxu0 %v1756_v34  ;;  %7050 = vmatpush.msra.mxu2 %v1756_v34  ;;  %s7911_s18 = sshra.s32 %s6595_s16, 4  ;;  %s7912_s18 = int_to_ptr.hbm [resolvable:$true] %s7911_s18 }
  0x42   :  { %7049 = vmatpush.msra.mxu1 %v1756_v34  ;;  %7051 = vmatpush.msra.mxu3 %v1756_v34  ;;  %s7913_s22 = scalar_lea.hbm %s7912_s18, 2  ;;  %p7916_p1 = scmp.lt.s32.totalorder %s7912_s18, %s8121_s17 }
  0x43   :  { %2148 = vmatpush.msra.mxu0 %v1755_v38  ;;  %7053 = vmatpush.msra.mxu2 %v1755_v38  ;;  %p7914_p0 = scmp.ne.s32.totalorder %s7912_s18, %s7913_s22 }
  0x44   :  { %7052 = vmatpush.msra.mxu1 %v1755_v38  ;;  %7054 = vmatpush.msra.mxu3 %v1755_v38 }
  0x45   :  { %2149 = vmatpush.msra.mxu0 %v1754_v39  ;;  %7056 = vmatpush.msra.mxu2 %v1754_v39 }
  0x46   :  { %7055 = vmatpush.msra.mxu1 %v1754_v39  ;;  %7057 = vmatpush.msra.mxu3 %v1754_v39 }
  0x47   :  { %889 = vperm.xlu2 %7101, %v757_v9   ;;  %7102 = vset.pattern.permute.xlu1 %v11946_v3  ;;  %v776_v9 = vadd.s32 16, %v149_v6 }
  0x48   :  { %264 = vperm.xlu1 %7102, %v130_v8   ;;  %7103 = vset.pattern.permute.xlu0 %v11946_v3 }
  0x49   :  { %267 = vperm.xlu0 %7103, %v131_v10  }
  0x4f   :  { %7105 = vset.pattern.permute.xlu2 %v11946_v3 }
  0x50   :  { %270 = vperm.xlu2 %7105, %v132_v12   ;;  %7104 = vset.pattern.permute.xlu1 %v11944_v7  ;;  %v150_v12 = vld [vmem:[%s7971_s5 + $0xb8] sm:$0xff] }
  0x51   :  { %892 = vperm.xlu1 %7104, %v758_v13   ;;  %7106 = vset.pattern.permute.xlu0 %v11944_v7 }
  0x52   :  { %898 = vperm.xlu0 %7106, %v760_v14   ;;  %v777_v14 = vadd.s32 16, %v150_v12 }
  0x58   :  { %273 = vperm.xlu2 %7105, %v133_v11  }
  0x59   :  { %895 = vperm.xlu1 %7104, %v759_v15  }
  0x5a   :  { %7109 = vset.pattern.permute.xlu0 %v11946_v3 }
  0x5b   :  { %282 = vperm.xlu0 %7109, %v136_v16  }
  0x60   :  { %7108 = vset.pattern.permute.xlu2 %v11944_v7 }
  0x61   :  { %901 = vperm.xlu2 %7108, %v761_v18   ;;  %7107 = vset.pattern.permute.xlu1 %v11946_v3 }
  0x62   :  { %276 = vperm.xlu1 %7107, %v134_v17  }
  0x63   :  { %7112 = vset.pattern.permute.xlu0 %v11944_v7 }
  0x64   :  { %913 = vperm.xlu0 %7112, %v765_v20  }
  0x69   :  { %904 = vperm.xlu2 %7108, %v762_v22   ;;  %v778_v22 = vadd.s32 16, %v151_v62 }
  0x6a   :  { %279 = vperm.xlu1 %7107, %v135_v21   ;;  %v152_v21 = vld [vmem:[%s7971_s5 + $0xc8] sm:$0xff] }
  0x6c   :  { %7115 = vset.pattern.permute.xlu0 %v11946_v3 }
  0x6d   :  { %297 = vperm.xlu0 %7115, %v141_v25  }
  0x71   :  { %7111 = vset.pattern.permute.xlu2 %v11946_v3 }
  0x72   :  { %285 = vperm.xlu2 %7111, %v137_v23   ;;  %7110 = vset.pattern.permute.xlu1 %v11944_v7  ;;  %v156_v23 = vld [vmem:[%s7971_s5 + $0xe8] sm:$0xff] }
  0x73   :  { %907 = vperm.xlu1 %7110, %v763_v24  }
  0x75   :  { %7118 = vset.pattern.permute.xlu0 %v11944_v7 }
  0x76   :  { %928 = vperm.xlu0 %7118, %v770_v28   ;;  %v779_v28 = vadd.s32 16, %v152_v21 }
  0x7a   :  { %288 = vperm.xlu2 %7111, %v138_v19  }
  0x7b   :  { %910 = vperm.xlu1 %7110, %v764_v27  }
  0x7e   :  { %7121 = vset.pattern.permute.xlu0 %v11946_v3 }
  0x7f   :  { %312 = vperm.xlu0 %7121, %v146_v40  }
  0x82   :  { %7114 = vset.pattern.permute.xlu2 %v11944_v7 }
  0x83   :  { %916 = vperm.xlu2 %7114, %v766_v30   ;;  %7113 = vset.pattern.permute.xlu1 %v11946_v3 }
  0x84   :  { %291 = vperm.xlu1 %7113, %v139_v29   ;;  %v158_v29 = vld [vmem:[%s7971_s5 + $0xf8] sm:$0xff] }
  0x85   :  { %v785_v30 = vadd.s32 16, %v158_v29 }
  0x87   :  { %7124 = vset.pattern.permute.xlu0 %v11944_v7 }
  0x88   :  { %943 = vperm.xlu0 %7124, %v775_v45  }
  0x8b   :  { %919 = vperm.xlu2 %7114, %v767_v32  }
  0x8c   :  { %294 = vperm.xlu1 %7113, %v140_v31   ;;  %v154_v31 = vld [vmem:[%s7971_s5 + $0xd8] sm:$0xff] }
  0x8d   :  { %v781_v34 = vadd.s32 16, %v154_v31 }
  0x8f   :  { %v8163_v35 = vpop.permute.xlu2 %261 }
  0x90   :  { %7127 = vset.pattern.permute.xlu0 %v11946_v3  ;;  %vm631_vm7 = vcmp.eq.s32.totalorder %v8183_v54, %v8163_v35 }
  0x91   :  { %327 = vperm.xlu0 %7127, %v151_v62  }
  0x93   :  { %7117 = vset.pattern.permute.xlu2 %v11946_v3 }
  0x94   :  { %300 = vperm.xlu2 %7117, %v142_v36   ;;  %7116 = vset.pattern.permute.xlu1 %v11944_v7  ;;  %v155_v36 = vld [vmem:[%s7971_s5 + $0xe0] sm:$0xff] }
  0x95   :  { %922 = vperm.xlu1 %7116, %v768_v37   ;;  %v782_v39 = vadd.s32 16, %v155_v36 }
  0x99   :  { %v887_v42 = vpop.permute.xlu2 %886  ;;  %7130 = vset.pattern.permute.xlu0 %v11944_v7 }
  0x9a   :  { %vm1256_vm8 = vcmp.eq.s32.totalorder %v8183_v54, %v887_v42  ;;  %958 = vperm.xlu0 %7130, %v780_v5  }
  0x9b   :  { %vm1381_vm9 = vmor %vm631_vm7, %vm1256_vm8 }
  0x9c   :  { %303 = vperm.xlu2 %7117, %v143_v26   ;;  %v6635_v11 = vsel %vm1381_vm9, 1.0, %v11948_v60 }
  0x9d   :  { %925 = vperm.xlu1 %7116, %v769_v41   ;;  %v8264_v41 = vld [vmem:[%s7971_s5 + $0x110] sm:$0xff] }
  0xa1   :  { %v8174_v47 = vpop.permute.xlu2 %889 }
  0xa2   :  { %vm1257_vm10 = vcmp.eq.s32.totalorder %v8183_v54, %v8174_v47  ;;  %7133 = vset.pattern.permute.xlu0 %v11946_v3  ;;  %v783_v47 = vadd.s32 16, %v156_v23 }
  0xa3   :  { %342 = vperm.xlu0 %7133, %v156_v23   ;;  %v164_v23 = vld [vmem:[%s7971_s5 + $0x128] sm:$0xff] }
  0xa4   :  { %7120 = vset.pattern.permute.xlu2 %v11944_v7 }
  0xa5   :  { %931 = vperm.xlu2 %7120, %v771_v46   ;;  %7119 = vset.pattern.permute.xlu1 %v11946_v3  ;;  %v157_v46 = vld [vmem:[%s7971_s5 + $0xf0] sm:$0xff] }
  0xa6   :  { %306 = vperm.xlu1 %7119, %v144_v44  }
  0xa8   :  { %v259_v49 = vpop.permute.xlu1 %258  ;;  %v256_v50 = vpop.permute.xlu0 %255 }
  0xa9   :  { %vm629_vm0 = vcmp.eq.s32.totalorder %v8183_v54, %v256_v50  ;;  %vm630_vm5 = vcmp.eq.s32.totalorder %v8183_v54, %v259_v49 }
  0xaa   :  { %v8180_v52 = vpop.permute.xlu2 %270 }
  0xab   :  { %7136 = vset.pattern.permute.xlu0 %v11944_v7 }
  0xac   :  { %973 = vperm.xlu0 %7136, %v785_v30   ;;  %v165_v30 = vld [vmem:[%s7971_s5 + $0x130] sm:$0xff] }
  0xad   :  { %934 = vperm.xlu2 %7120, %v772_v51  }
  0xae   :  { %309 = vperm.xlu1 %7119, %v145_v48   ;;  %v8276_v48 = vld [vmem:[%s7971_s5 + $0x120] sm:$0xff] }
  0xaf   :  { %v790_v49 = vadd.s32 16, %v8276_v48 }
  0xb1   :  { %v884_v55 = vpop.permute.xlu1 %883 }
  0xb2   :  { %v881_v56 = vpop.permute.xlu0 %880  ;;  %v8186_v57 = vpop.permute.xlu2 %273  ;;  %vm1255_vm4 = vcmp.eq.s32.totalorder %v8183_v54, %v884_v55  ;;  %v784_v55 = vadd.s32 16, %v157_v46 }
  0xb3   :  { %vm1254_vm1 = vcmp.eq.s32.totalorder %v8183_v54, %v881_v56  ;;  %vm1380_vm6 = vmor %vm630_vm5, %vm1255_vm4  ;;  %vm635_vm4 = vcmp.eq.s32.totalorder %v8183_v54, %v8186_v57  ;;  %v159_v57 = vld [vmem:[%s7971_s5 + $0x100] sm:$0xff] }
  0xb4   :  { %vm1379_vm3 = vmor %vm629_vm0, %vm1254_vm1  ;;  %v6634_v2 = vsel %vm1380_vm6, 1.0, %v11948_v60  ;;  %vm634_vm0 = vcmp.eq.s32.totalorder %v8183_v54, %v8180_v52  ;;  %7139 = vset.pattern.permute.xlu0 %v11946_v3  ;;  %v786_v62 = vadd.s32 16, %v159_v57 }
  0xb5   :  { %7123 = vset.pattern.permute.xlu2 %v11946_v3  ;;  %v6633_v61 = vsel %vm1379_vm3, 1.0, %v11948_v60  ;;  %357 = vperm.xlu0 %7139, %v8264_v41  }
  0xb6   :  { %6758 = vmatmul.msk.f32.vlgmr.msra.gmra.mxu0 %vm1758_vm2, %v6633_v61  ;;  %315 = vperm.xlu2 %7123, %v147_v58  }
  0xb7   :  { %7122 = vset.pattern.permute.xlu1 %v11944_v7 }
  0xb8   :  { %937 = vperm.xlu1 %7122, %v773_v59   ;;  %v8292_v59 = vld [vmem:[%s7971_s5 + $0x138] sm:$0xff] }
  0xba   :  { %v265_v63 = vpop.permute.xlu1 %264 }
  0xbb   :  { %v8197_v0 = vpop.permute.xlu2 %901  ;;  %vm632_vm11 = vcmp.eq.s32.totalorder %v8183_v54, %v265_v63  ;;  %v268_v15 = vpop.permute.xlu0 %267 }
  0xbc   :  { %vm1382_vm12 = vmor %vm632_vm11, %vm1257_vm10  ;;  %vm633_vm14 = vcmp.eq.s32.totalorder %v8183_v54, %v268_v15  ;;  %vm1261_vm7 = vcmp.eq.s32.totalorder %v8183_v54, %v8197_v0  ;;  %v160_v0 = vld [vmem:[%s7971_s5 + $0x108] sm:$0xff] }
  0xbd   :  { %v6636_v17 = vsel %vm1382_vm12, 1.0, %v11948_v60  ;;  %7142 = vset.pattern.permute.xlu0 %v11944_v7 }
  0xbe   :  { %6759 = vmatmul.msk.f32.gmra.mxu0 %vm1758_vm2, %v6634_v2  ;;  %318 = vperm.xlu2 %7123, %v148_v43  }
  0xbf   :  { %988 = vperm.xlu0 %7142, %v790_v49  }
  0xc0   :  { %940 = vperm.xlu1 %7122, %v774_v1   ;;  %v8305_v1 = vld [vmem:[%s7971_s5 + $0x148] sm:$0xff] }
  0xc3   :  { %v893_v8 = vpop.permute.xlu1 %892  ;;  %v8207_v10 = vpop.permute.xlu2 %904 }
  0xc4   :  { %vm1258_vm13 = vcmp.eq.s32.totalorder %v8183_v54, %v893_v8  ;;  %v899_v24 = vpop.permute.xlu0 %898  ;;  %vm1262_vm10 = vcmp.eq.s32.totalorder %v8183_v54, %v8207_v10  ;;  %v8323_v10 = vld [vmem:[%s7971_s5 + $0x160] sm:$0xff] }
  0xc5   :  { %vm1383_vm15 = vmor %vm633_vm14, %vm1258_vm13  ;;  %vm1260_vm5 = vcmp.eq.s32.totalorder %v8183_v54, %v899_v24  ;;  %v8351_v24 = vld [vmem:[%s7971_s5 + $0x188] sm:$0xff] }
  0xc6   :  { %6760 = vmatmul.msk.f32.gmra.mxu0 %vm1758_vm2, %v6635_v11  ;;  %7126 = vset.pattern.permute.xlu2 %v11944_v7  ;;  %v6637_v20 = vsel %vm1383_vm15, 1.0, %v11948_v60  ;;  %vm1385_vm6 = vmor %vm635_vm4, %vm1260_vm5 }
  0xc7   :  { %946 = vperm.xlu2 %7126, %v776_v9   ;;  %v6639_v33 = vsel %vm1385_vm6, 1.0, %v11948_v60  ;;  %7145 = vset.pattern.permute.xlu0 %v11946_v3 }
  0xc8   :  { %7125 = vset.pattern.permute.xlu1 %v11946_v3  ;;  %372 = vperm.xlu0 %7145, %v8292_v59  }
  0xc9   :  { %321 = vperm.xlu1 %7125, %v149_v6   ;;  %v787_v6 = vadd.s32 16, %v160_v0 }
  0xcb   :  { %v896_v13 = vpop.permute.xlu1 %895 }
  0xcc   :  { %v8218_v16 = vpop.permute.xlu2 %285  ;;  %vm1259_vm1 = vcmp.eq.s32.totalorder %v8183_v54, %v896_v13  ;;  %v162_v13 = vld [vmem:[%s7971_s5 + $0x118] sm:$0xff] }
  0xcd   :  { %vm1384_vm3 = vmor %vm634_vm0, %vm1259_vm1  ;;  %v283_v42 = vpop.permute.xlu0 %282  ;;  %vm639_vm0 = vcmp.eq.s32.totalorder %v8183_v54, %v8218_v16 }
  0xce   :  { %6761 = vmatmul.msk.f32.gmra.mxu0 %vm1758_vm2, %v6636_v17  ;;  %v6638_v26 = vsel %vm1384_vm3, 1.0, %v11948_v60  ;;  %vm638_vm14 = vcmp.eq.s32.totalorder %v8183_v54, %v283_v42  ;;  %v8335_v17 = vld [vmem:[%s7971_s5 + $0x170] sm:$0xff] }
  0xcf   :  { %949 = vperm.xlu2 %7126, %v777_v14   ;;  %v788_v14 = vadd.s32 16, %v8264_v41  ;;  %v167_v41 = vld [vmem:[%s7971_s5 + $0x140] sm:$0xff]  ;;  %v8390_v42 = vld [vmem:[%s7971_s5 + $0x1b0] sm:$0xff] }
  0xd0   :  { %7148 = vset.pattern.permute.xlu0 %v11944_v7 }
  0xd1   :  { %324 = vperm.xlu1 %7125, %v150_v12  }
  0xd4   :  { %v277_v18 = vpop.permute.xlu1 %276  ;;  %v8224_v19 = vpop.permute.xlu2 %288 }
  0xd5   :  { %vm636_vm8 = vcmp.eq.s32.totalorder %v8183_v54, %v277_v18  ;;  %vm640_vm4 = vcmp.eq.s32.totalorder %v8183_v54, %v8224_v19  ;;  %v800_v18 = vadd.s32 16, %v8335_v17 }
  0xd6   :  { %6762 = vmatmul.msk.f32.gmra.mxu0 %vm1758_vm2, %v6637_v20  ;;  %vm1386_vm9 = vmor %vm636_vm8, %vm1261_vm7  ;;  %v914_v56 = vpop.permute.xlu0 %913 }
  0xd7   :  { %7129 = vset.pattern.permute.xlu2 %v11946_v3  ;;  %v6640_v38 = vsel %vm1386_vm9, 1.0, %v11948_v60  ;;  %vm1265_vm5 = vcmp.eq.s32.totalorder %v8183_v54, %v914_v56  ;;  %v8419_v56 = vld [vmem:[%s7971_s5 + $0x390] sm:$0xff] }
  0xd8   :  { %330 = vperm.xlu2 %7129, %v152_v21   ;;  %vm1390_vm6 = vmor %vm640_vm4, %vm1265_vm5  ;;  %v789_v21 = vadd.s32 16, %v162_v13 }
  0xd9   :  { %7128 = vset.pattern.permute.xlu1 %v11944_v7  ;;  %v6644_v2 = vsel %vm1390_vm6, 1.0, %v11948_v60 }
  0xda   :  { %952 = vperm.xlu1 %7128, %v778_v22  }
  0xdc   :  { %v280_v25 = vpop.permute.xlu1 %279 }
  0xdd   :  { %v8236_v27 = vpop.permute.xlu2 %916  ;;  %vm637_vm11 = vcmp.eq.s32.totalorder %v8183_v54, %v280_v25  ;;  %v791_v25 = vadd.s32 16, %v164_v23 }
  0xde   :  { %6763 = vmatmul.msk.f32.gmra.mxu0 %vm1758_vm2, %v6638_v26  ;;  %vm1387_vm12 = vmor %vm637_vm11, %vm1262_vm10  ;;  %vm1266_vm7 = vcmp.eq.s32.totalorder %v8183_v54, %v8236_v27 }
  0xdf   :  { %v6641_v43 = vsel %vm1387_vm12, 1.0, %v11948_v60  ;;  %v298_v15 = vpop.permute.xlu0 %297 }
  0xe0   :  { %333 = vperm.xlu2 %7129, %v153_v4   ;;  %v795_v4 = vadd.s32 16, %v8305_v1 }
  0xe2   :  { %955 = vperm.xlu1 %7128, %v779_v28   ;;  %1003 = vperm.xlu0 %7148, %v795_v4  }
  0xe5   :  { %v908_v32 = vpop.permute.xlu1 %907  ;;  %v8246_v35 = vpop.permute.xlu2 %919 }
  0xe6   :  { %6764 = vmatmul.msk.f32.gmra.mxu0 %vm1758_vm2, %v6639_v33  ;;  %vm1263_vm13 = vcmp.eq.s32.totalorder %v8183_v54, %v908_v32  ;;  %vm1267_vm10 = vcmp.eq.s32.totalorder %v8183_v54, %v8246_v35  ;;  %v792_v32 = vadd.s32 16, %v165_v30 }
  0xe7   :  { %vm1388_vm15 = vmor %vm638_vm14, %vm1263_vm13  ;;  %vm643_vm14 = vcmp.eq.s32.totalorder %v8183_v54, %v298_v15 }
  0xe8   :  { %7132 = vset.pattern.permute.xlu2 %v11944_v7  ;;  %v6642_v50 = vsel %vm1388_vm15, 1.0, %v11948_v60  ;;  %v929_v28 = vpop.permute.xlu0 %928 }
  0xe9   :  { %961 = vperm.xlu2 %7132, %v781_v34   ;;  %vm1270_vm5 = vcmp.eq.s32.totalorder %v8183_v54, %v929_v28 }
  0xea   :  { %7131 = vset.pattern.permute.xlu1 %v11946_v3  ;;  %7151 = vset.pattern.permute.xlu0 %v11946_v3 }
  0xeb   :  { %336 = vperm.xlu1 %7131, %v154_v31   ;;  %387 = vperm.xlu0 %7151, %v8323_v10   ;;  %v8366_v31 = vld [vmem:[%s7971_s5 + $0x198] sm:$0xff] }
  0xec   :  { %v805_v33 = vadd.s32 16, %v8366_v31 }
  0xed   :  { %v911_v37 = vpop.permute.xlu1 %910 }
  0xee   :  { %6765 = vmatmul.msk.f32.gmra.mxu0 %vm1758_vm2, %v6640_v38  ;;  %v8258_v40 = vpop.permute.xlu2 %300  ;;  %vm1264_vm1 = vcmp.eq.s32.totalorder %v8183_v54, %v911_v37 }
  0xef   :  { %vm1389_vm3 = vmor %vm639_vm0, %vm1264_vm1  ;;  %vm644_vm0 = vcmp.eq.s32.totalorder %v8183_v54, %v8258_v40 }
  0xf0   :  { %v6643_v58 = vsel %vm1389_vm3, 1.0, %v11948_v60 }
  0xf1   :  { %964 = vperm.xlu2 %7132, %v782_v39   ;;  %v313_v49 = vpop.permute.xlu0 %312 }
  0xf3   :  { %339 = vperm.xlu1 %7131, %v155_v36   ;;  %7154 = vset.pattern.permute.xlu0 %v11944_v7 }
  0xf4   :  { %1018 = vperm.xlu0 %7154, %v800_v18   ;;  %v172_v18 = vld [vmem:[%s7971_s5 + $0x168] sm:$0xff] }
  0xf6   :  { %6766 = vmatmul.msk.f32.gmra.mxu0 %vm1758_vm2, %v6641_v43  ;;  %v292_v44 = vpop.permute.xlu1 %291  ;;  %v8269_v45 = vpop.permute.xlu2 %303  ;;  %v793_v43 = vadd.s32 16, %v8292_v59  ;;  %v868_v59 = vadd.s32 16, %v8419_v56 }
  0xf7   :  { %vm641_vm8 = vcmp.eq.s32.totalorder %v8183_v54, %v292_v44  ;;  %vm645_vm4 = vcmp.eq.s32.totalorder %v8183_v54, %v8269_v45  ;;  %v8402_v45 = vld [vmem:[%s7971_s5 + $0x1c0] sm:$0xff] }
  0xf8   :  { %vm1391_vm9 = vmor %vm641_vm8, %vm1266_vm7 }
  0xf9   :  { %7135 = vset.pattern.permute.xlu2 %v11946_v3  ;;  %v6645_v9 = vsel %vm1391_vm9, 1.0, %v11948_v60  ;;  %vm1395_vm6 = vmor %vm645_vm4, %vm1270_vm5 }
  0xfa   :  { %345 = vperm.xlu2 %7135, %v157_v46   ;;  %v6649_v37 = vsel %vm1395_vm6, 1.0, %v11948_v60 }
  0xfb   :  { %7134 = vset.pattern.permute.xlu1 %v11944_v7 }
  0xfc   :  { %967 = vperm.xlu1 %7134, %v783_v47   ;;  %7157 = vset.pattern.permute.xlu0 %v11946_v3 }
  0xfd   :  { %402 = vperm.xlu0 %7157, %v8351_v24  }
  0xfe   :  { %6767 = vmatmul.msk.f32.gmra.mxu0 %vm1758_vm2, %v6642_v50  ;;  %v295_v51 = vpop.permute.xlu1 %294  ;;  %v794_v50 = vadd.s32 16, %v167_v41 }
  0xff   :  { %v8286_v52 = vpop.permute.xlu2 %931  ;;  %vm642_vm11 = vcmp.eq.s32.totalorder %v8183_v54, %v295_v51 }
 0x100   :  { %vm1392_vm12 = vmor %vm642_vm11, %vm1267_vm10  ;;  %vm1271_vm7 = vcmp.eq.s32.totalorder %v8183_v54, %v8286_v52 }
 0x101   :  { %v6646_v16 = vsel %vm1392_vm12, 1.0, %v11948_v60 }
 0x102   :  { %348 = vperm.xlu2 %7135, %v158_v29  }
 0x104   :  { %970 = vperm.xlu1 %7134, %v784_v55   ;;  %v169_v55 = vld [vmem:[%s7971_s5 + $0x150] sm:$0xff] }
 0x105   :  { %7160 = vset.pattern.permute.xlu0 %v11944_v7 }
 0x106   :  { %6768 = vmatmul.msk.f32.gmra.mxu0 %vm1758_vm2, %v6643_v58  ;;  %1033 = vperm.xlu0 %7160, %v805_v33   ;;  %v796_v58 = vadd.s32 16, %v169_v55 }
 0x107   :  { %v923_v61 = vpop.permute.xlu1 %922  ;;  %v8299_v63 = vpop.permute.xlu2 %934 }
 0x108   :  { %vm1268_vm13 = vcmp.eq.s32.totalorder %v8183_v54, %v923_v61  ;;  %vm1272_vm10 = vcmp.eq.s32.totalorder %v8183_v54, %v8299_v63 }
 0x109   :  { %vm1393_vm15 = vmor %vm643_vm14, %vm1268_vm13  ;;  %vm648_vm14 = vcmp.eq.s32.totalorder %v8183_v54, %v313_v49 }
 0x10a   :  { %7138 = vset.pattern.permute.xlu2 %v11944_v7  ;;  %v6647_v22 = vsel %vm1393_vm15, 1.0, %v11948_v60 }
 0x10b   :  { %976 = vperm.xlu2 %7138, %v786_v62  }
 0x10c   :  { %7137 = vset.pattern.permute.xlu1 %v11946_v3 }
 0x10d   :  { %351 = vperm.xlu1 %7137, %v159_v57  }
 0x10e   :  { %6769 = vmatmul.msk.f32.gmra.mxu0 %vm1758_vm2, %v6644_v2  ;;  %7163 = vset.pattern.permute.xlu0 %v11946_v3 }
 0x10f   :  { %v926_v5 = vpop.permute.xlu1 %925  ;;  %417 = vperm.xlu0 %7163, %v8390_v42  }
 0x110   :  { %v8314_v8 = vpop.permute.xlu2 %315  ;;  %vm1269_vm1 = vcmp.eq.s32.totalorder %v8183_v54, %v926_v5 }
 0x111   :  { %vm1394_vm3 = vmor %vm644_vm0, %vm1269_vm1  ;;  %vm649_vm0 = vcmp.eq.s32.totalorder %v8183_v54, %v8314_v8 }
 0x112   :  { %v6648_v29 = vsel %vm1394_vm3, 1.0, %v11948_v60 }
 0x113   :  { %979 = vperm.xlu2 %7138, %v787_v6  }
 0x115   :  { %354 = vperm.xlu1 %7137, %v160_v0   ;;  %v170_v0 = vld [vmem:[%s7971_s5 + $0x158] sm:$0xff] }
 0x116   :  { %6770 = vmatmul.msk.f32.gmra.mxu0 %vm1758_vm2, %v6645_v9  ;;  %v797_v4 = vadd.s32 16, %v170_v0  ;;  %v8446_v9 = vld [vmem:[%s7971_s5 + $0x388] sm:$0xff] }
 0x117   :  { %7166 = vset.pattern.permute.xlu0 %v11944_v7 }
 0x118   :  { %v307_v11 = vpop.permute.xlu1 %306  ;;  %v8325_v12 = vpop.permute.xlu2 %318 }
 0x119   :  { %vm646_vm8 = vcmp.eq.s32.totalorder %v8183_v54, %v307_v11  ;;  %vm650_vm4 = vcmp.eq.s32.totalorder %v8183_v54, %v8325_v12 }
 0x11a   :  { %vm1396_vm9 = vmor %vm646_vm8, %vm1271_vm7 }
 0x11b   :  { %7141 = vset.pattern.permute.xlu2 %v11946_v3  ;;  %v6650_v44 = vsel %vm1396_vm9, 1.0, %v11948_v60 }
 0x11c   :  { %360 = vperm.xlu2 %7141, %v162_v13   ;;  %v8456_v13 = vld [vmem:[%s7971_s5 + $0x1e0] sm:$0xff] }
 0x11d   :  { %7140 = vset.pattern.permute.xlu1 %v11944_v7 }
 0x11e   :  { %982 = vperm.xlu1 %7140, %v788_v14   ;;  %6771 = vmatmul.msk.f32.gmra.mxu0 %vm1758_vm2, %v6646_v16 }
 0x120   :  { %v310_v19 = vpop.permute.xlu1 %309 }
 0x121   :  { %v8341_v20 = vpop.permute.xlu2 %946  ;;  %vm647_vm11 = vcmp.eq.s32.totalorder %v8183_v54, %v310_v19  ;;  %v798_v19 = vadd.s32 16, %v8323_v10  ;;  %v8476_v10 = vld [vmem:[%s7971_s5 + $0x1f0] sm:$0xff] }
 0x122   :  { %vm1397_vm12 = vmor %vm647_vm11, %vm1272_vm10  ;;  %vm1276_vm7 = vcmp.eq.s32.totalorder %v8183_v54, %v8341_v20 }
 0x123   :  { %v6651_v52 = vsel %vm1397_vm12, 1.0, %v11948_v60 }
 0x124   :  { %363 = vperm.xlu2 %7141, %v8276_v48   ;;  %v810_v48 = vadd.s32 16, %v8402_v45 }
 0x126   :  { %985 = vperm.xlu1 %7140, %v789_v21   ;;  %6772 = vmatmul.msk.f32.gmra.mxu0 %vm1758_vm2, %v6647_v22 }
 0x127   :  { %1048 = vperm.xlu0 %7166, %v810_v48  }
 0x129   :  { %v8353_v26 = vpop.permute.xlu2 %949 }
 0x12a   :  { %v938_v27 = vpop.permute.xlu1 %937  ;;  %vm1277_vm10 = vcmp.eq.s32.totalorder %v8183_v54, %v8353_v26 }
 0x12b   :  { %vm1273_vm13 = vcmp.eq.s32.totalorder %v8183_v54, %v938_v27 }
 0x12c   :  { %7144 = vset.pattern.permute.xlu2 %v11944_v7  ;;  %vm1398_vm15 = vmor %vm648_vm14, %vm1273_vm13 }
 0x12d   :  { %991 = vperm.xlu2 %7144, %v791_v25   ;;  %v6652_v63 = vsel %vm1398_vm15, 1.0, %v11948_v60  ;;  %v174_v25 = vld [vmem:[%s7971_s5 + $0x178] sm:$0xff] }
 0x12e   :  { %7143 = vset.pattern.permute.xlu1 %v11946_v3  ;;  %6773 = vmatmul.msk.f32.gmra.mxu0 %vm1758_vm2, %v6648_v29  ;;  %v8494_v29 = vld [vmem:[%s7971_s5 + $0x3b8] sm:$0xff] }
 0x12f   :  { %366 = vperm.xlu1 %7143, %v164_v23   ;;  %1222 = vperm.xlu0 %7166, %v868_v59   ;;  %v799_v23 = vadd.s32 16, %v172_v18  ;;  %v177_v59 = vld [vmem:[%s7971_s5 + $0x190] sm:$0xff] }
 0x132   :  { %v8369_v34 = vpop.permute.xlu1 %940  ;;  %v8371_v35 = vpop.permute.xlu2 %330 }
 0x133   :  { %v8374_v36 = vpop.f32.mrf.mxu0  ;;  %vm1274_vm1 = vcmp.eq.s32.totalorder %v8183_v54, %v8369_v34 }
 0x134   :  { %12049 = vst [vmem:[#allocation19_spill] sm:$0xff] %v8374_v36  ;;  %vm1399_vm3 = vmor %vm649_vm0, %vm1274_vm1  ;;  %vm654_vm0 = vcmp.eq.s32.totalorder %v8183_v54, %v8371_v35 }
 0x135   :  { %994 = vperm.xlu2 %7144, %v792_v32   ;;  %v6653_v8 = vsel %vm1399_vm3, 1.0, %v11948_v60  ;;  %v801_v32 = vadd.s32 16, %v174_v25 }
 0x136   :  { %6774 = vmatmul.msk.f32.gmra.mxu0 %vm1758_vm2, %v6649_v37  ;;  %v8512_v37 = vld [vmem:[%s7971_s5 + $0x1e8] sm:$0xff] }
 0x137   :  { %369 = vperm.xlu1 %7143, %v165_v30   ;;  %7171 = vset.pattern.permute.xlu0 %v11946_v3 }
 0x138   :  { %594 = vperm.xlu0 %7171, %v8446_v9  }
 0x13a   :  { %v8381_v38 = vpop.permute.xlu2 %333 }
 0x13b   :  { %v8383_v39 = vpop.permute.xlu1 %321  ;;  %v8385_v40 = vpop.f32.mrf.mxu0 }
 0x13c   :  { %12050 = vst [vmem:[#allocation20_spill] sm:$0xff] %v8385_v40  ;;  %vm651_vm8 = vcmp.eq.s32.totalorder %v8183_v54, %v8383_v39  ;;  %v8785_v40 = vld [vmem:[%s7971_s5 + $0x270] sm:$0xff] }
 0x13d   :  { %7147 = vset.pattern.permute.xlu2 %v11946_v3  ;;  %vm1401_vm9 = vmor %vm651_vm8, %vm1276_vm7 }
 0x13e   :  { %6775 = vmatmul.msk.f32.gmra.mxu0 %vm1758_vm2, %v6650_v44  ;;  %375 = vperm.xlu2 %7147, %v167_v41   ;;  %v6655_v20 = vsel %vm1401_vm9, 1.0, %v11948_v60 }
 0x13f   :  { %7146 = vset.pattern.permute.xlu1 %v11944_v7 }
 0x140   :  { %997 = vperm.xlu1 %7146, %v793_v43   ;;  %435 = vperm.xlu0 %7171, %v8456_v13   ;;  %v815_v43 = vadd.s32 16, %v8512_v37 }
 0x143   :  { %v8404_v46 = vpop.permute.xlu1 %324  ;;  %v8406_v47 = vpop.f32.mrf.mxu0 }
 0x144   :  { %12051 = vst [vmem:[#allocation21_spill] sm:$0xff] %v8406_v47  ;;  %v8409_v51 = vpop.permute.xlu2 %961  ;;  %vm652_vm11 = vcmp.eq.s32.totalorder %v8183_v54, %v8404_v46  ;;  %v12060_v47 = vmov 1  }
 0x145   :  { %vm1402_vm12 = vmor %vm652_vm11, %vm1277_vm10  ;;  %vm1281_vm7 = vcmp.eq.s32.totalorder %v8183_v54, %v8409_v51  ;;  %v8568_v51 = vld [vmem:[%s7971_s5 + $0x378] sm:$0xff] }
 0x146   :  { %6776 = vmatmul.msk.f32.gmra.mxu0 %vm1758_vm2, %v6651_v52  ;;  %378 = vperm.xlu2 %7147, %v8305_v1   ;;  %v944_v1 = vpop.permute.xlu0 %943  ;;  %v6656_v30 = vsel %vm1402_vm12, 1.0, %v11948_v60 }
 0x147   :  { %vm1275_vm5 = vcmp.eq.s32.totalorder %v8183_v54, %v944_v1 }
 0x148   :  { %1000 = vperm.xlu1 %7146, %v794_v50   ;;  %vm1400_vm6 = vmor %vm650_vm4, %vm1275_vm5  ;;  %441 = vperm.xlu0 %7171, %v8476_v10   ;;  %v8529_v50 = vld [vmem:[%s7971_s5 + $0x3b0] sm:$0xff]  ;;  %vm655_vm4 = vcmp.eq.s32.totalorder %v8183_v54, %v8381_v38 }
 0x149   :  { %v6654_v16 = vsel %vm1400_vm6, 1.0, %v11948_v60 }
 0x14b   :  { %v8421_v57 = vpop.f32.mrf.mxu0 }
 0x14c   :  { %12052 = vst [vmem:[#allocation22_spill] sm:$0xff] %v8421_v57  ;;  %v8424_v61 = vpop.permute.xlu1 %952  ;;  %v8426_v62 = vpop.permute.xlu2 %964  ;;  %v814_v57 = vadd.s32 16, %v8456_v13 }
 0x14d   :  { %vm1278_vm13 = vcmp.eq.s32.totalorder %v8183_v54, %v8424_v61  ;;  %v803_v61 = vadd.s32 16, %v8351_v24  ;;  %vm1282_vm10 = vcmp.eq.s32.totalorder %v8183_v54, %v8426_v62 }
 0x14e   :  { %6777 = vmatmul.msk.f32.gmra.mxu0 %vm1758_vm2, %v6652_v63  ;;  %7150 = vset.pattern.permute.xlu2 %v11944_v7  ;;  %v328_v28 = vpop.permute.xlu0 %327 }
 0x14f   :  { %1006 = vperm.xlu2 %7150, %v796_v58   ;;  %vm653_vm14 = vcmp.eq.s32.totalorder %v8183_v54, %v328_v28  ;;  %v8591_v28 = vld [vmem:[%s7971_s5 + $0x218] sm:$0xff] }
 0x150   :  { %7149 = vset.pattern.permute.xlu1 %v11946_v3  ;;  %612 = vperm.xlu0 %7171, %v8494_v29   ;;  %vm1403_vm15 = vmor %vm653_vm14, %vm1278_vm13 }
 0x151   :  { %381 = vperm.xlu1 %7149, %v169_v55   ;;  %v6657_v39 = vsel %vm1403_vm15, 1.0, %v11948_v60  ;;  %v872_v55 = vadd.s32 16, %v8529_v50 }
 0x153   :  { %v8437_v2 = vpop.f32.mrf.mxu0 }
 0x154   :  { %12053 = vst [vmem:[#allocation23_spill] sm:$0xff] %v8437_v2  ;;  %v8439_v5 = vpop.permute.xlu1 %955  ;;  %v8441_v6 = vpop.permute.xlu2 %345 }
 0x155   :  { %vm1279_vm1 = vcmp.eq.s32.totalorder %v8183_v54, %v8439_v5  ;;  %v804_v5 = vadd.s32 16, %v177_v59 }
 0x156   :  { %6778 = vmatmul.msk.f32.gmra.mxu0 %vm1758_vm2, %v6653_v8  ;;  %vm1404_vm3 = vmor %vm654_vm0, %vm1279_vm1  ;;  %v959_v49 = vpop.permute.xlu0 %958  ;;  %vm659_vm0 = vcmp.eq.s32.totalorder %v8183_v54, %v8441_v6 }
 0x157   :  { %1009 = vperm.xlu2 %7150, %v797_v4   ;;  %v6658_v52 = vsel %vm1404_vm3, 1.0, %v11948_v60  ;;  %vm1280_vm5 = vcmp.eq.s32.totalorder %v8183_v54, %v959_v49  ;;  %v182_v49 = vld [vmem:[%s7971_s5 + $0x1b8] sm:$0xff] }
 0x158   :  { %7182 = vset.pattern.permute.xlu0 %v11944_v7  ;;  %vm1405_vm6 = vmor %vm655_vm4, %vm1280_vm5 }
 0x159   :  { %384 = vperm.xlu1 %7149, %v170_v0   ;;  %1063 = vperm.xlu0 %7182, %v815_v43   ;;  %v8548_v0 = vld [vmem:[%s7971_s5 + $0x370] sm:$0xff]  ;;  %v6659_v38 = vsel %vm1405_vm6, 1.0, %v11948_v60 }
 0x15a   :  { %v864_v1 = vadd.s32 16, %v8548_v0 }
 0x15b   :  { %v8453_v11 = vpop.f32.mrf.mxu0 }
 0x15c   :  { %v8458_v14 = vpop.permute.xlu2 %348 }
 0x15d   :  { %v8460_v15 = vpop.permute.xlu1 %336  ;;  %vm660_vm4 = vcmp.eq.s32.totalorder %v8183_v54, %v8458_v14  ;;  %v239_v14 = vld [vmem:[%s7971_s5 + $0x380] sm:$0xff] }
 0x15e   :  { %6779 = vmatmul.msk.f32.gmra.mxu0 %vm1758_vm2, %v6654_v16  ;;  %vm656_vm8 = vcmp.eq.s32.totalorder %v8183_v54, %v8460_v15  ;;  %v179_v16 = vld [vmem:[%s7971_s5 + $0x1a0] sm:$0xff]  ;;  %v343_v62 = vpop.permute.xlu0 %342 }
 0x15f   :  { %7153 = vset.pattern.permute.xlu2 %v11946_v3  ;;  %vm1406_vm9 = vmor %vm656_vm8, %vm1281_vm7  ;;  %v806_v15 = vadd.s32 16, %v179_v16  ;;  %vm658_vm14 = vcmp.eq.s32.totalorder %v8183_v54, %v343_v62 }
 0x160   :  { %390 = vperm.xlu2 %7153, %v172_v18   ;;  %v6660_v18 = vsel %vm1406_vm9, 1.0, %v11948_v60 }
 0x161   :  { %7152 = vset.pattern.permute.xlu1 %v11944_v7  ;;  %1234 = vperm.xlu0 %7182, %v872_v55  }
 0x162   :  { %1012 = vperm.xlu1 %7152, %v798_v19  }
 0x163   :  { %v8473_v12 = vpop.f32.mrf.mxu0 }
 0x165   :  { %v8478_v21 = vpop.permute.xlu1 %339  ;;  %v8481_v22 = vpop.permute.xlu2 %976 }
 0x166   :  { %6780 = vmatmul.msk.f32.gmra.mxu0 %vm1758_vm2, %v6655_v20  ;;  %vm657_vm11 = vcmp.eq.s32.totalorder %v8183_v54, %v8478_v21  ;;  %v180_v21 = vld [vmem:[%s7971_s5 + $0x1a8] sm:$0xff]  ;;  %v974_v6 = vpop.permute.xlu0 %973  ;;  %vm1286_vm7 = vcmp.eq.s32.totalorder %v8183_v54, %v8481_v22 }
 0x167   :  { %vm1407_vm12 = vmor %vm657_vm11, %vm1282_vm10  ;;  %vm1285_vm5 = vcmp.eq.s32.totalorder %v8183_v54, %v974_v6 }
 0x168   :  { %393 = vperm.xlu2 %7153, %v8335_v17   ;;  %v175_v17 = vld [vmem:[%s7971_s5 + $0x180] sm:$0xff]  ;;  %vm1410_vm6 = vmor %vm660_vm4, %vm1285_vm5 }
 0x169   :  { %v802_v41 = vadd.s32 16, %v175_v17  ;;  %1210 = vperm.xlu0 %7182, %v864_v1  }
 0x16a   :  { %1015 = vperm.xlu1 %7152, %v799_v23   ;;  %v6661_v23 = vsel %vm1407_vm12, 1.0, %v11948_v60 }
 0x16b   :  { %v8491_v27 = vpop.f32.mrf.mxu0 }
 0x16d   :  { %v8497_v33 = vpop.permute.xlu2 %979 }
 0x16e   :  { %v8499_v26 = vpop.permute.xlu1 %967  ;;  %6781 = vmatmul.msk.f32.gmra.mxu0 %vm1758_vm2, %v6656_v30  ;;  %vm1287_vm10 = vcmp.eq.s32.totalorder %v8183_v54, %v8497_v33 }
 0x16f   :  { %vm1283_vm13 = vcmp.eq.s32.totalorder %v8183_v54, %v8499_v26  ;;  %v8607_v26 = vld [vmem:[%s7971_s5 + $0x220] sm:$0xff] }
 0x170   :  { %7156 = vset.pattern.permute.xlu2 %v11944_v7  ;;  %vm1408_vm15 = vmor %vm658_vm14, %vm1283_vm13 }
 0x171   :  { %1021 = vperm.xlu2 %7156, %v801_v32   ;;  %7187 = vset.pattern.permute.xlu0 %v11946_v3 }
 0x172   :  { %7155 = vset.pattern.permute.xlu1 %v11946_v3  ;;  %588 = vperm.xlu0 %7187, %v8568_v51  }
 0x173   :  { %396 = vperm.xlu1 %7155, %v174_v25   ;;  %v8509_v34 = vpop.f32.mrf.mxu0  ;;  %v807_v25 = vadd.s32 16, %v180_v21 }
 0x176   :  { %v8516_v44 = vpop.permute.xlu1 %970  ;;  %6782 = vmatmul.msk.f32.gmra.mxu0 %vm1758_vm2, %v6657_v39  ;;  %v8519_v46 = vpop.permute.xlu2 %360  ;;  %v6662_v39 = vsel %vm1408_vm15, 1.0, %v11948_v60 }
 0x177   :  { %vm1284_vm1 = vcmp.eq.s32.totalorder %v8183_v54, %v8516_v44 }
 0x178   :  { %vm1409_vm3 = vmor %vm659_vm0, %vm1284_vm1  ;;  %vm664_vm0 = vcmp.eq.s32.totalorder %v8183_v54, %v8519_v46 }
 0x179   :  { %1024 = vperm.xlu2 %7156, %v802_v41   ;;  %v6663_v44 = vsel %vm1409_vm3, 1.0, %v11948_v60 }
 0x17a   :  { %456 = vperm.xlu0 %7187, %v8591_v28  }
 0x17b   :  { %399 = vperm.xlu1 %7155, %v175_v17   ;;  %v8526_v48 = vpop.f32.mrf.mxu0 }
 0x17e   :  { %6783 = vmatmul.msk.f32.gmra.mxu0 %vm1758_vm2, %v6658_v52  ;;  %v8534_v35 = vpop.permute.xlu2 %363  ;;  %v808_v52 = vadd.s32 16, %v8390_v42  ;;  %v8626_v42 = vld [vmem:[%s7971_s5 + $0x228] sm:$0xff] }
 0x17f   :  { %v8539_v58 = vpop.permute.xlu1 %351  ;;  %vm665_vm4 = vcmp.eq.s32.totalorder %v8183_v54, %v8534_v35 }
 0x180   :  { %vm661_vm8 = vcmp.eq.s32.totalorder %v8183_v54, %v8539_v58  ;;  %v184_v58 = vld [vmem:[%s7971_s5 + $0x1c8] sm:$0xff] }
 0x181   :  { %7159 = vset.pattern.permute.xlu2 %v11946_v3  ;;  %vm1411_vm9 = vmor %vm661_vm8, %vm1286_vm7 }
 0x182   :  { %405 = vperm.xlu2 %7159, %v177_v59   ;;  %459 = vperm.xlu0 %7187, %v8607_v26   ;;  %v6665_v22 = vsel %vm1411_vm9, 1.0, %v11948_v60 }
 0x183   :  { %7158 = vset.pattern.permute.xlu1 %v11944_v7  ;;  %v8545_v63 = vpop.f32.mrf.mxu0 }
 0x184   :  { %1027 = vperm.xlu1 %7158, %v803_v61  }
 0x186   :  { %6784 = vmatmul.msk.f32.gmra.mxu0 %vm1758_vm2, %v6659_v38  ;;  %v809_v38 = vadd.s32 16, %v182_v49 }
 0x187   :  { %v8557_v24 = vpop.permute.xlu1 %354  ;;  %v8559_v4 = vpop.permute.xlu2 %991 }
 0x188   :  { %vm662_vm11 = vcmp.eq.s32.totalorder %v8183_v54, %v8557_v24  ;;  %v8678_v24 = vld [vmem:[%s7971_s5 + $0x240] sm:$0xff]  ;;  %vm1291_vm7 = vcmp.eq.s32.totalorder %v8183_v54, %v8559_v4 }
 0x189   :  { %vm1412_vm12 = vmor %vm662_vm11, %vm1287_vm10 }
 0x18a   :  { %408 = vperm.xlu2 %7159, %v8366_v31   ;;  %462 = vperm.xlu0 %7187, %v8626_v42   ;;  %v6666_v33 = vsel %vm1412_vm12, 1.0, %v11948_v60 }
 0x18b   :  { %v8562_v8 = vpop.f32.mrf.mxu0 }
 0x18c   :  { %1030 = vperm.xlu1 %7158, %v804_v5   ;;  %v6664_v5 = vsel %vm1410_vm6, 1.0, %v11948_v60 }
 0x18e   :  { %6785 = vmatmul.msk.f32.gmra.mxu0 %vm1758_vm2, %v6660_v18  ;;  %v866_v18 = vadd.s32 16, %v239_v14 }
 0x18f   :  { %v8574_v19 = vpop.permute.xlu2 %994 }
 0x190   :  { %v8577_v31 = vpop.permute.xlu1 %982  ;;  %vm1292_vm10 = vcmp.eq.s32.totalorder %v8183_v54, %v8574_v19  ;;  %v243_v19 = vld [vmem:[%s7971_s5 + $0x3a0] sm:$0xff] }
 0x191   :  { %vm1288_vm13 = vcmp.eq.s32.totalorder %v8183_v54, %v8577_v31 }
 0x192   :  { %7162 = vset.pattern.permute.xlu2 %v11944_v7 }
 0x193   :  { %v8581_v20 = vpop.f32.mrf.mxu0  ;;  %1036 = vperm.xlu2 %7162, %v806_v15  }
 0x194   :  { %7161 = vset.pattern.permute.xlu1 %v11946_v3 }
 0x195   :  { %411 = vperm.xlu1 %7161, %v179_v16   ;;  %v8644_v16 = vld [vmem:[%s7971_s5 + $0x230] sm:$0xff] }
 0x196   :  { %6786 = vmatmul.msk.f32.gmra.mxu0 %vm1758_vm2, %v6661_v23  ;;  %465 = vperm.xlu0 %7187, %v8644_v16   ;;  %v811_v23 = vadd.s32 16, %v184_v58 }
 0x198   :  { %v8593_v30 = vpop.permute.xlu1 %985  ;;  %v8595_v32 = vpop.permute.xlu2 %375 }
 0x199   :  { %vm1289_vm1 = vcmp.eq.s32.totalorder %v8183_v54, %v8593_v30 }
 0x19a   :  { %vm1414_vm3 = vmor %vm664_vm0, %vm1289_vm1  ;;  %vm669_vm0 = vcmp.eq.s32.totalorder %v8183_v54, %v8595_v32 }
 0x19b   :  { %v8598_v17 = vpop.f32.mrf.mxu0  ;;  %1039 = vperm.xlu2 %7162, %v807_v25   ;;  %v6668_v30 = vsel %vm1414_vm3, 1.0, %v11948_v60 }
 0x19d   :  { %414 = vperm.xlu1 %7161, %v180_v21   ;;  %v8663_v21 = vld [vmem:[%s7971_s5 + $0x238] sm:$0xff] }
 0x19e   :  { %6787 = vmatmul.msk.f32.gmra.mxu0 %vm1758_vm2, %v6662_v39  ;;  %468 = vperm.xlu0 %7187, %v8663_v21  }
 0x1a0   :  { %v8609_v41 = vpop.permute.xlu2 %378 }
 0x1a1   :  { %v8612_v43 = vpop.permute.xlu1 %366 }
 0x1a2   :  { %vm666_vm8 = vcmp.eq.s32.totalorder %v8183_v54, %v8612_v43 }
 0x1a3   :  { %v8616_v55 = vpop.f32.mrf.mxu0  ;;  %7165 = vset.pattern.permute.xlu2 %v11946_v3  ;;  %vm1416_vm9 = vmor %vm666_vm8, %vm1291_vm7 }
 0x1a4   :  { %420 = vperm.xlu2 %7165, %v182_v49   ;;  %v6670_v43 = vsel %vm1416_vm9, 1.0, %v11948_v60 }
 0x1a5   :  { %7164 = vset.pattern.permute.xlu1 %v11944_v7 }
 0x1a6   :  { %1042 = vperm.xlu1 %7164, %v808_v52   ;;  %6788 = vmatmul.msk.f32.gmra.mxu0 %vm1758_vm2, %v6663_v44  ;;  %v358_v52 = vpop.permute.xlu0 %357 }
 0x1a7   :  { %vm663_vm14 = vcmp.eq.s32.totalorder %v8183_v54, %v358_v52  ;;  %471 = vperm.xlu0 %7187, %v8678_v24   ;;  %v8714_v52 = vld [vmem:[%s7971_s5 + $0x250] sm:$0xff] }
 0x1a8   :  { %vm1413_vm15 = vmor %vm663_vm14, %vm1288_vm13 }
 0x1a9   :  { %v8629_v59 = vpop.permute.xlu1 %369  ;;  %v8631_v61 = vpop.permute.xlu2 %1006  ;;  %v6667_v31 = vsel %vm1413_vm15, 1.0, %v11948_v60 }
 0x1aa   :  { %vm667_vm11 = vcmp.eq.s32.totalorder %v8183_v54, %v8629_v59  ;;  %v12059_v59 = vmov 0   ;;  %vm1296_vm7 = vcmp.eq.s32.totalorder %v8183_v54, %v8631_v61 }
 0x1ab   :  { %v8633_v1 = vpop.f32.mrf.mxu0  ;;  %vm1417_vm12 = vmor %vm667_vm11, %vm1292_vm10 }
 0x1ac   :  { %423 = vperm.xlu2 %7165, %v8402_v45  }
 0x1ae   :  { %1045 = vperm.xlu1 %7164, %v809_v38   ;;  %6789 = vmatmul.msk.f32.gmra.mxu0 %vm1758_vm2, %v6664_v5  ;;  %v185_v5 = vld [vmem:[%s7971_s5 + $0x1d0] sm:$0xff] }
 0x1b1   :  { %v8647_v45 = vpop.permute.xlu2 %1009 }
 0x1b2   :  { %v8649_v15 = vpop.permute.xlu1 %997  ;;  %vm1297_vm10 = vcmp.eq.s32.totalorder %v8183_v54, %v8647_v45 }
 0x1b3   :  { %v8651_v62 = vpop.f32.mrf.mxu0  ;;  %vm1293_vm14 = vcmp.eq.s32.totalorder %v8183_v54, %v8649_v15 }
 0x1b4   :  { %7168 = vset.pattern.permute.xlu2 %v11944_v7 }
 0x1b5   :  { %1216 = vperm.xlu2 %7168, %v866_v18   ;;  %v8698_v18 = vld [vmem:[%s7971_s5 + $0x248] sm:$0xff] }
 0x1b6   :  { %7167 = vset.pattern.permute.xlu1 %v11946_v3  ;;  %6790 = vmatmul.msk.f32.gmra.mxu0 %vm1758_vm2, %v6665_v22 }
 0x1b7   :  { %591 = vperm.xlu1 %7167, %v239_v14   ;;  %v867_v14 = vadd.s32 16, %v8446_v9  ;;  %474 = vperm.xlu0 %7187, %v8698_v18  }
 0x1ba   :  { %v8666_v25 = vpop.permute.xlu1 %1000  ;;  %v8668_v39 = vpop.permute.xlu2 %390 }
 0x1bb   :  { %v8670_v49 = vpop.f32.mrf.mxu0  ;;  %vm1294_vm1 = vcmp.eq.s32.totalorder %v8183_v54, %v8666_v25 }
 0x1bc   :  { %vm1419_vm3 = vmor %vm669_vm0, %vm1294_vm1  ;;  %vm674_vm0 = vcmp.eq.s32.totalorder %v8183_v54, %v8668_v39  ;;  %v236_v39 = vld [vmem:[%s7971_s5 + $0x368] sm:$0xff] }
 0x1bd   :  { %1051 = vperm.xlu2 %7168, %v811_v23   ;;  %v812_v23 = vadd.s32 16, %v185_v5 }
 0x1be   :  { %6791 = vmatmul.msk.f32.gmra.mxu0 %vm1758_vm2, %v6666_v33  ;;  %v186_v33 = vld [vmem:[%s7971_s5 + $0x1d8] sm:$0xff] }
 0x1bf   :  { %426 = vperm.xlu1 %7167, %v184_v58   ;;  %v989_v58 = vpop.permute.xlu0 %988  ;;  %477 = vperm.xlu0 %7187, %v8714_v52  }
 0x1c0   :  { %vm1290_vm5 = vcmp.eq.s32.totalorder %v8183_v54, %v989_v58  ;;  %v8732_v58 = vld [vmem:[%s7971_s5 + $0x258] sm:$0xff] }
 0x1c1   :  { %vm1415_vm6 = vmor %vm665_vm4, %vm1290_vm5  ;;  %vm670_vm5 = vcmp.eq.s32.totalorder %v8183_v54, %v8609_v41 }
 0x1c2   :  { %v8681_v6 = vpop.permute.xlu2 %393  ;;  %v6669_v35 = vsel %vm1415_vm6, 1.0, %v11948_v60 }
 0x1c3   :  { %v8683_v44 = vpop.permute.xlu1 %381  ;;  %v8685_v38 = vpop.f32.mrf.mxu0 }
 0x1c4   :  { %vm671_vm8 = vcmp.eq.s32.totalorder %v8183_v54, %v8683_v44 }
 0x1c5   :  { %7170 = vset.pattern.permute.xlu2 %v11946_v3  ;;  %vm1421_vm9 = vmor %vm671_vm8, %vm1296_vm7 }
 0x1c6   :  { %6792 = vmatmul.msk.f32.gmra.mxu0 %vm1758_vm2, %v6667_v31  ;;  %429 = vperm.xlu2 %7170, %v185_v5  }
 0x1c7   :  { %7169 = vset.pattern.permute.xlu1 %v11944_v7  ;;  %480 = vperm.xlu0 %7187, %v8732_v58  }
 0x1c8   :  { %1219 = vperm.xlu1 %7169, %v867_v14   ;;  %v813_v14 = vadd.s32 16, %v186_v33 }
 0x1cb   :  { %v8701_v9 = vpop.permute.xlu1 %384  ;;  %v8703_v22 = vpop.f32.mrf.mxu0 }
 0x1cc   :  { %12054 = vst [vmem:[#allocation24_spill] sm:$0xff] %v8703_v22  ;;  %v8705_v46 = vpop.permute.xlu2 %1021  ;;  %vm672_vm11 = vcmp.eq.s32.totalorder %v8183_v54, %v8701_v9  ;;  %v8853_v9 = vld [vmem:[%s7971_s5 + $0x290] sm:$0xff] }
 0x1cd   :  { %12068 = vst [vmem:[#allocation35_spill] sm:$0xff] %v8853_v9  ;;  %vm1301_vm7 = vcmp.eq.s32.totalorder %v8183_v54, %v8705_v46 }
 0x1ce   :  { %6793 = vmatmul.msk.f32.gmra.mxu0 %vm1758_vm2, %v6668_v30  ;;  %597 = vperm.xlu2 %7170, %v8419_v56  }
 0x1d0   :  { %1054 = vperm.xlu1 %7169, %v812_v23   ;;  %v242_v23 = vld [vmem:[%s7971_s5 + $0x398] sm:$0xff] }
 0x1d3   :  { %v8718_v5 = vpop.f32.mrf.mxu0 }
 0x1d4   :  { %12055 = vst [vmem:[#allocation25_spill] sm:$0xff] %v8718_v5  ;;  %v8720_v31 = vpop.permute.xlu1 %1012  ;;  %v8722_v56 = vpop.permute.xlu2 %1024 }
 0x1d6   :  { %6794 = vmatmul.msk.f32.gmra.mxu0 %vm1758_vm2, %v6669_v35  ;;  %7173 = vset.pattern.permute.xlu2 %v11944_v7  ;;  %v869_v35 = vadd.s32 16, %v242_v23 }
 0x1d7   :  { %1057 = vperm.xlu2 %7173, %v813_v14   ;;  %v373_v14 = vpop.permute.xlu0 %372 }
 0x1d8   :  { %7172 = vset.pattern.permute.xlu1 %v11946_v3  ;;  %vm668_vm13 = vcmp.eq.s32.totalorder %v8183_v54, %v373_v14 }
 0x1d9   :  { %432 = vperm.xlu1 %7172, %v186_v33   ;;  %v8750_v33 = vld [vmem:[%s7971_s5 + $0x260] sm:$0xff]  ;;  %vm1418_vm15 = vmor %vm668_vm13, %vm1293_vm14  ;;  %vm1298_vm14 = vcmp.eq.s32.totalorder %v8183_v54, %v8720_v31  ;;  %v8870_v31 = vld [vmem:[%s7971_s5 + $0x298] sm:$0xff] }
 0x1da   :  { %483 = vperm.xlu0 %7187, %v8750_v33   ;;  %12070 = vst [vmem:[#allocation37_spill] sm:$0xff] %v8870_v31 }
 0x1db   :  { %v8737_v30 = vpop.f32.mrf.mxu0 }
 0x1dc   :  { %12056 = vst [vmem:[#allocation26_spill] sm:$0xff] %v8737_v30  ;;  %v8739_v53 = vpop.permute.xlu1 %1015  ;;  %v8741_v4 = vpop.permute.xlu2 %405 }
 0x1dd   :  { %vm1299_vm1 = vcmp.eq.s32.totalorder %v8183_v54, %v8739_v53 }
 0x1de   :  { %6795 = vmatmul.msk.f32.gmra.mxu0 %vm1758_vm2, %v6670_v43  ;;  %v12058_v43 = vmov 0.0  }
 0x1df   :  { %1225 = vperm.xlu2 %7173, %v869_v35   ;;  %v6671_v2 = vsel %vm1417_vm12, 1.0, %v12058_v43  ;;  %v1004_v35 = vpop.permute.xlu0 %1003  ;;  %v6672_v15 = vsel %vm1418_vm15, 1.0, %v12058_v43  ;;  %vm1422_vm12 = vmor %vm672_vm11, %vm1297_vm10 }
 0x1e0   :  { %vm1295_vm4 = vcmp.eq.s32.totalorder %v8183_v54, %v1004_v35  ;;  %v6676_v45 = vsel %vm1422_vm12, 1.0, %v12058_v43 }
 0x1e1   :  { %600 = vperm.xlu1 %7172, %v242_v23   ;;  %v8768_v23 = vld [vmem:[%s7971_s5 + $0x268] sm:$0xff]  ;;  %vm1420_vm6 = vmor %vm670_vm5, %vm1295_vm4  ;;  %vm675_vm5 = vcmp.eq.s32.totalorder %v8183_v54, %v8681_v6 }
 0x1e2   :  { %486 = vperm.xlu0 %7187, %v8768_v23   ;;  %v6674_v35 = vsel %vm1420_vm6, 1.0, %v12058_v43  ;;  %v8913_v6 = vld [vmem:[%s7971_s5 + $0x2a8] sm:$0xff] }
 0x1e3   :  { %v8753_v7 = vpop.f32.mrf.mxu0  ;;  %12073 = vst [vmem:[#allocation40_spill] sm:$0xff] %v8913_v6 }
 0x1e4   :  { %12057 = vst [vmem:[#allocation27_spill] sm:$0xff] %v8753_v7  ;;  %v8755_v3 = vpop.permute.xlu2 %408  ;;  %v870_v7 = vadd.s32 16, %v243_v19 }
 0x1e5   :  { %v8757_v60 = vpop.permute.xlu1 %396 }
 0x1e6   :  { %6796 = vmatmul.msk.f32.gmra.mxu0 %vm1758_vm2, %v6671_v2  ;;  %vm676_vm8 = vcmp.eq.s32.totalorder %v8183_v54, %v8757_v60 }
 0x1e7   :  { %7175 = vset.pattern.permute.xlu2 %v12059_v59  ;;  %vm1426_vm10 = vmor %vm676_vm8, %vm1301_vm7 }
 0x1e8   :  { %603 = vperm.xlu2 %7175, %v243_v19   ;;  %v234_v19 = vld [vmem:[%s7971_s5 + $0x358] sm:$0xff]  ;;  %v6680_v46 = vsel %vm1426_vm10, 1.0, %v12058_v43 }
 0x1e9   :  { %7174 = vset.pattern.permute.xlu1 %v12060_v47  ;;  %v861_v32 = vadd.s32 16, %v234_v19 }
 0x1ea   :  { %1060 = vperm.xlu1 %7174, %v814_v57   ;;  %489 = vperm.xlu0 %7187, %v8785_v40   ;;  %v388_v57 = vpop.permute.xlu0 %387 }
 0x1eb   :  { %v8772_v2 = vpop.f32.mrf.mxu0  ;;  %vm673_vm13 = vcmp.eq.s32.totalorder %v8183_v54, %v388_v57 }
 0x1ec   :  { %12061 = vst [vmem:[#allocation28_spill] sm:$0xff] %v8772_v2  ;;  %vm1423_vm15 = vmor %vm673_vm13, %vm1298_vm14  ;;  %vm1302_vm13 = vcmp.eq.s32.totalorder %v8183_v54, %v8722_v56 }
 0x1ed   :  { %v8774_v13 = vpop.permute.xlu1 %399  ;;  %v8777_v14 = vpop.permute.xlu2 %1036  ;;  %v6677_v57 = vsel %vm1423_vm15, 1.0, %v12058_v43 }
 0x1ee   :  { %6797 = vmatmul.msk.f32.gmra.mxu0 %vm1758_vm2, %v6672_v15  ;;  %v6673_v15 = vsel %vm1419_vm3, 1.0, %v12058_v43  ;;  %vm1424_vm3 = vmor %vm674_vm0, %vm1299_vm1  ;;  %vm677_vm14 = vcmp.eq.s32.totalorder %v8183_v54, %v8774_v13  ;;  %v247_v13 = vld [vmem:[%s7971_s5 + $0x3c0] sm:$0xff] }
 0x1ef   :  { %v6678_v53 = vsel %vm1424_vm3, 1.0, %v12058_v43  ;;  %vm1427_vm15 = vmor %vm677_vm14, %vm1302_vm13  ;;  %vm680_vm14 = vcmp.eq.s32.totalorder %v8183_v54, %v8755_v3 }
 0x1f0   :  { %438 = vperm.xlu2 %7175, %v8512_v37   ;;  %v8802_v37 = vld [vmem:[%s7971_s5 + $0x278] sm:$0xff]  ;;  %v6681_v56 = vsel %vm1427_vm15, 1.0, %v12058_v43 }
 0x1f2   :  { %1228 = vperm.xlu1 %7174, %v870_v7   ;;  %492 = vperm.xlu0 %7187, %v8802_v37   ;;  %v244_v7 = vld [vmem:[%s7971_s5 + $0x3a8] sm:$0xff] }
 0x1f3   :  { %v8790_v2 = vpop.f32.mrf.mxu0  ;;  %v871_v41 = vadd.s32 16, %v244_v7 }
 0x1f4   :  { %12062 = vst [vmem:[#allocation29_spill] sm:$0xff] %v8790_v2 }
 0x1f5   :  { %v8793_v30 = vpop.permute.xlu2 %1039 }
 0x1f6   :  { %v8795_v25 = vpop.permute.xlu1 %1027  ;;  %6798 = vmatmul.msk.f32.gmra.mxu0 %vm1758_vm2, %v6673_v15  ;;  %v8810_v15 = vpop.permute.xlu0 %1018 }
 0x1f7   :  { %vm1300_vm4 = vcmp.eq.s32.totalorder %v8183_v54, %v8810_v15  ;;  %vm1303_vm1 = vcmp.eq.s32.totalorder %v8183_v54, %v8795_v25 }
 0x1f8   :  { %7177 = vset.pattern.permute.xlu2 %v12060_v47  ;;  %vm1425_vm6 = vmor %vm675_vm5, %vm1300_vm4 }
 0x1f9   :  { %1201 = vperm.xlu2 %7177, %v861_v32   ;;  %v6679_v15 = vsel %vm1425_vm6, 1.0, %v12058_v43 }
 0x1fa   :  { %7176 = vset.pattern.permute.xlu1 %v12059_v59 }
 0x1fb   :  { %576 = vperm.xlu1 %7176, %v234_v19   ;;  %v8808_v2 = vpop.f32.mrf.mxu0  ;;  %v8823_v19 = vld [vmem:[%s7971_s5 + $0x280] sm:$0xff] }
 0x1fc   :  { %12063 = vst [vmem:[#allocation30_spill] sm:$0xff] %v8808_v2  ;;  %495 = vperm.xlu0 %7187, %v8823_v19   ;;  %v8835_v2 = vld [vmem:[%s7971_s5 + $0x288] sm:$0xff] }
 0x1fd   :  { %12064 = vst [vmem:[#allocation31_spill] sm:$0xff] %v8823_v19  ;;  %v191_v19 = vld [vmem:[%s7971_s5 + $0x200] sm:$0xff] }
 0x1fe   :  { %v8813_v36 = vpop.permute.xlu1 %1030  ;;  %6799 = vmatmul.msk.f32.gmra.mxu0 %vm1758_vm2, %v6674_v35  ;;  %v8816_v5 = vpop.permute.xlu2 %420  ;;  %v6675_v35 = vsel %vm1421_vm9, 1.0, %v12058_v43  ;;  %12066 = vst [vmem:[#allocation33_spill] sm:$0xff] %v8835_v2 }
 0x1ff   :  { %v8829_v22 = vpop.permute.xlu0 %402  ;;  %vm1304_vm10 = vcmp.eq.s32.totalorder %v8183_v54, %v8813_v36 }
 0x200   :  { %vm678_vm0 = vcmp.eq.s32.totalorder %v8183_v54, %v8829_v22 }
 0x201   :  { %1231 = vperm.xlu2 %7177, %v871_v41   ;;  %v816_v41 = vadd.s32 16, %v8476_v10  ;;  %vm1428_vm4 = vmor %vm678_vm0, %vm1303_vm1  ;;  %vm1306_vm0 = vcmp.eq.s32.totalorder %v8183_v54, %v8777_v14 }
 0x202   :  { %v6682_v22 = vsel %vm1428_vm4, 1.0, %v12058_v43 }
 0x203   :  { %606 = vperm.xlu1 %7176, %v244_v7   ;;  %v8826_v32 = vpop.f32.mrf.mxu0  ;;  %v235_v7 = vld [vmem:[%s7971_s5 + $0x360] sm:$0xff] }
 0x204   :  { %12065 = vst [vmem:[#allocation32_spill] sm:$0xff] %v8826_v32  ;;  %498 = vperm.xlu0 %7187, %v8835_v2  }
 0x206   :  { %6800 = vmatmul.msk.f32.gmra.mxu0 %vm1758_vm2, %v6675_v35  ;;  %v8832_v61 = vpop.permute.xlu2 %423 }
 0x207   :  { %v8841_v44 = vpop.permute.xlu1 %411  ;;  %v8860_v32 = vpop.permute.xlu0 %1033 }
 0x208   :  { %vm1305_vm13 = vcmp.eq.s32.totalorder %v8183_v54, %v8860_v32  ;;  %vm681_vm1 = vcmp.eq.s32.totalorder %v8183_v54, %v8841_v44 }
 0x209   :  { %7179 = vset.pattern.permute.xlu2 %v12059_v59  ;;  %vm1430_vm15 = vmor %vm680_vm14, %vm1305_vm13 }
 0x20a   :  { %579 = vperm.xlu2 %7179, %v235_v7   ;;  %v6684_v32 = vsel %vm1430_vm15, 1.0, %v12058_v43 }
 0x20b   :  { %7178 = vset.pattern.permute.xlu1 %v12060_v47  ;;  %v8848_v35 = vpop.f32.mrf.mxu0 }
 0x20c   :  { %12067 = vst [vmem:[#allocation34_spill] sm:$0xff] %v8848_v35  ;;  %1066 = vperm.xlu1 %7178, %v816_v41   ;;  %v862_v35 = vadd.s32 16, %v235_v7  ;;  %501 = vperm.xlu0 %7187, %v8853_v9  }
 0x20e   :  { %6801 = vmatmul.msk.f32.gmra.mxu0 %vm1758_vm2, %v6676_v45  ;;  %v190_v45 = vld [vmem:[%s7971_s5 + $0x1f8] sm:$0xff] }
 0x20f   :  { %v8858_v10 = vpop.permute.xlu1 %414  ;;  %v1217_v2 = vpop.permute.xlu2 %1216  ;;  %v817_v7 = vadd.s32 16, %v190_v45 }
 0x210   :  { %vm1366_vm9 = vcmp.eq.s32.totalorder %v8183_v54, %v1217_v2 }
 0x212   :  { %609 = vperm.xlu2 %7179, %v8529_v50  }
 0x213   :  { %v8864_v41 = vpop.f32.mrf.mxu0 }
 0x214   :  { %12069 = vst [vmem:[#allocation36_spill] sm:$0xff] %v8864_v41  ;;  %1204 = vperm.xlu1 %7178, %v862_v35   ;;  %504 = vperm.xlu0 %7187, %v8870_v31   ;;  %v8881_v35 = vpop.permute.xlu0 %417  ;;  %v863_v31 = vadd.s32 16, %v236_v39  ;;  %v8895_v41 = vld [vmem:[%s7971_s5 + $0x2a0] sm:$0xff] }
 0x215   :  { %12072 = vst [vmem:[#allocation39_spill] sm:$0xff] %v8895_v41 }
 0x216   :  { %6802 = vmatmul.msk.f32.gmra.mxu0 %vm1758_vm2, %v6677_v57 }
 0x217   :  { %v8876_v9 = vpop.permute.xlu2 %1051 }
 0x218   :  { %v8878_v50 = vpop.permute.xlu1 %1042 }
 0x21a   :  { %7181 = vset.pattern.permute.xlu2 %v12060_v47 }
 0x21b   :  { %v8884_v57 = vpop.f32.mrf.mxu0  ;;  %1069 = vperm.xlu2 %7181, %v817_v7  }
 0x21c   :  { %12071 = vst [vmem:[#allocation38_spill] sm:$0xff] %v8884_v57  ;;  %7180 = vset.pattern.permute.xlu1 %v12059_v59  ;;  %507 = vperm.xlu0 %7187, %v8895_v41  }
 0x21d   :  { %444 = vperm.xlu1 %7180, %v190_v45  }
 0x21e   :  { %6803 = vmatmul.msk.f32.gmra.mxu0 %vm1758_vm2, %v6678_v53  ;;  %v8904_v53 = vpop.permute.xlu0 %1048 }
 0x220   :  { %v8897_v57 = vpop.permute.xlu1 %1045  ;;  %v8899_v7 = vpop.permute.xlu2 %429 }
 0x223   :  { %v8902_v45 = vpop.f32.mrf.mxu0  ;;  %1207 = vperm.xlu2 %7181, %v863_v31  }
 0x224   :  { %510 = vperm.xlu0 %7187, %v8913_v6  }
 0x225   :  { %582 = vperm.xlu1 %7180, %v236_v39   ;;  %v873_v39 = vadd.s32 16, %v8494_v29  ;;  %v8933_v29 = vld [vmem:[%s7971_s5 + $0x2b0] sm:$0xff] }
 0x226   :  { %6804 = vmatmul.msk.f32.gmra.mxu0 %vm1758_vm2, %v6679_v15  ;;  %v1223_v2 = vpop.permute.xlu0 %1222  ;;  %12074 = vst [vmem:[#allocation41_spill] sm:$0xff] %v8933_v29 }
 0x227   :  { %vm1368_vm7 = vcmp.eq.s32.totalorder %v8183_v54, %v1223_v2 }
 0x228   :  { %v598_v41 = vpop.permute.xlu2 %597 }
 0x229   :  { %v592_v31 = vpop.permute.xlu1 %591  ;;  %vm743_vm8 = vcmp.eq.s32.totalorder %v8183_v54, %v598_v41 }
 0x22a   :  { %vm741_vm11 = vcmp.eq.s32.totalorder %v8183_v54, %v592_v31 }
 0x22b   :  { %v8920_v15 = vpop.f32.mrf.mxu0  ;;  %7184 = vset.pattern.permute.xlu2 %v12059_v59  ;;  %vm1491_vm12 = vmor %vm741_vm11, %vm1366_vm9  ;;  %vm679_vm9 = vcmp.eq.s32.totalorder %v8183_v54, %v8741_v4 }
 0x22c   :  { %447 = vperm.xlu2 %7184, %v191_v19   ;;  %v6745_v60 = vsel %vm1491_vm12, 1.0, %v12058_v43  ;;  %513 = vperm.xlu0 %7187, %v8933_v29   ;;  %v8951_v29 = vld [vmem:[%s7971_s5 + $0x2b8] sm:$0xff]  ;;  %vm1493_vm11 = vmor %vm743_vm8, %vm1368_vm7  ;;  %vm1307_vm7 = vcmp.eq.s32.totalorder %v8183_v54, %v8793_v30  ;;  %vm682_vm8 = vcmp.eq.s32.totalorder %v8183_v54, %v8858_v10 }
 0x22d   :  { %7183 = vset.pattern.permute.xlu1 %v12060_v47  ;;  %6870 = vmatmul.msk.f32.vlgmr.msra.gmra.mxu2 %vm1758_vm2, %v6745_v60  ;;  %v818_v60 = vadd.s32 16, %v191_v19  ;;  %12075 = vst [vmem:[#allocation42_spill] sm:$0xff] %v8951_v29  ;;  %v874_v19 = vadd.s32 16, %v247_v13  ;;  %vm1429_vm12 = vmor %vm679_vm9, %vm1304_vm10  ;;  %v6747_v4 = vsel %vm1493_vm11, 1.0, %v12058_v43  ;;  %vm683_vm10 = vcmp.eq.s32.totalorder %v8183_v54, %v8881_v35 }
 0x22e   :  { %1237 = vperm.xlu1 %7183, %v873_v39   ;;  %6805 = vmatmul.msk.f32.gmra.mxu0 %vm1758_vm2, %v6680_v46  ;;  %v595_v46 = vpop.permute.xlu0 %594  ;;  %v6683_v36 = vsel %vm1429_vm12, 1.0, %v12058_v43  ;;  %vm1432_vm9 = vmor %vm682_vm8, %vm1307_vm7  ;;  %vm1308_vm11 = vcmp.eq.s32.totalorder %v8183_v54, %v8878_v50  ;;  %vm685_vm7 = vcmp.eq.s32.totalorder %v8183_v54, %v8832_v61 }
 0x22f   :  { %vm742_vm3 = vcmp.eq.s32.totalorder %v8183_v54, %v595_v46  ;;  %v192_v46 = vld [vmem:[%s7971_s5 + $0x208] sm:$0xff]  ;;  %v6686_v30 = vsel %vm1432_vm9, 1.0, %v12058_v43  ;;  %vm1433_vm12 = vmor %vm683_vm10, %vm1308_vm11 }
 0x230   :  { %v6687_v50 = vsel %vm1433_vm12, 1.0, %v12058_v43  ;;  %vm1311_vm12 = vcmp.eq.s32.totalorder %v8183_v54, %v8876_v9  ;;  %v825_v9 = vadd.s32 16, %v8663_v21  ;;  %v3057_v21 = vld [vmem:[%s7996_s25 + $0xf0] sm:$0xff] }
 0x231   :  { %v8935_v31 = vpop.permute.xlu1 %426  ;;  %v8937_v6 = vpop.permute.xlu2 %1057 }
 0x233   :  { %v8940_v39 = vpop.f32.mrf.mxu0 }
 0x234   :  { %585 = vperm.xlu2 %7184, %v8548_v0   ;;  %516 = vperm.xlu0 %7187, %v8951_v29   ;;  %v865_v29 = vadd.s32 16, %v8568_v51 }
 0x236   :  { %1072 = vperm.xlu1 %7183, %v818_v60   ;;  %6806 = vmatmul.msk.f32.gmra.mxu0 %vm1758_vm2, %v6681_v56  ;;  %v8997_v3 = vpop.permute.xlu0 %435 }
 0x239   :  { %v1226_v0 = vpop.permute.xlu2 %1225 }
 0x23a   :  { %v1220_v60 = vpop.permute.xlu1 %1219  ;;  %vm1369_vm4 = vcmp.eq.s32.totalorder %v8183_v54, %v1226_v0 }
 0x23b   :  { %vm1367_vm5 = vcmp.eq.s32.totalorder %v8183_v54, %v1220_v60  ;;  %v8956_v56 = vpop.f32.mrf.mxu0 }
 0x23c   :  { %7186 = vset.pattern.permute.xlu2 %v12060_v47  ;;  %vm1492_vm6 = vmor %vm742_vm3, %vm1367_vm5  ;;  %7295 = vset.pattern.permute.xlu0 %v12060_v47 }
 0x23d   :  { %1240 = vperm.xlu2 %7186, %v874_v19   ;;  %v6746_v25 = vsel %vm1492_vm6, 1.0, %v12058_v43  ;;  %v819_v19 = vadd.s32 16, %v192_v46  ;;  %vm1431_vm3 = vmor %vm681_vm1, %vm1306_vm0  ;;  %vm684_vm0 = vcmp.eq.s32.totalorder %v8183_v54, %v8816_v5  ;;  %vm1309_vm1 = vcmp.eq.s32.totalorder %v8183_v54, %v8897_v57 }
 0x23e   :  { %7185 = vset.pattern.permute.xlu1 %v12059_v59  ;;  %6807 = vmatmul.msk.f32.gmra.mxu0 %vm1758_vm2, %v6682_v22  ;;  %v6685_v14 = vsel %vm1431_vm3, 1.0, %v12058_v43  ;;  %vm1434_vm3 = vmor %vm684_vm0, %vm1309_vm1 }
 0x23f   :  { %6871 = vmatmul.msk.f32.gmra.mxu2 %vm1758_vm2, %v6746_v25  ;;  %615 = vperm.xlu1 %7185, %v247_v13   ;;  %v6688_v57 = vsel %vm1434_vm3, 1.0, %v12058_v43 }
 0x242   :  { %v8972_v41 = vpop.permute.xlu1 %1054  ;;  %v8974_v2 = vpop.permute.xlu2 %603 }
 0x243   :  { %v8976_v60 = vpop.f32.mrf.mxu0  ;;  %vm745_vm13 = vcmp.eq.s32.totalorder %v8183_v54, %v8974_v2  ;;  %v823_v2 = vadd.s32 16, %v8626_v42 }
 0x245   :  { %1075 = vperm.xlu2 %7186, %v819_v19   ;;  %v193_v19 = vld [vmem:[%s7971_s5 + $0x210] sm:$0xff] }
 0x246   :  { %6808 = vmatmul.msk.f32.gmra.mxu0 %vm1758_vm2, %v6683_v36  ;;  %v820_v36 = vadd.s32 16, %v193_v19 }
 0x247   :  { %6872 = vmatmul.msk.f32.gmra.mxu2 %vm1758_vm2, %v6747_v4  ;;  %450 = vperm.xlu1 %7185, %v192_v46   ;;  %v7190_v4 = vpack.i.bf16 %v8453_v11, %v8902_v45 }
 0x24a   :  { %v8986_v13 = vpop.permute.xlu2 %438 }
 0x24b   :  { %v8988_v22 = vpop.permute.xlu1 %432  ;;  %v8990_v25 = vpop.f32.mrf.mxu0 }
 0x24d   :  { %7189 = vset.pattern.permute.xlu2 %v12059_v59 }
 0x24e   :  { %6809 = vmatmul.msk.f32.gmra.mxu0 %vm1758_vm2, %v6684_v32  ;;  %453 = vperm.xlu2 %7189, %v193_v19   ;;  %v821_v19 = vadd.s32 16, %v8591_v28 }
 0x24f   :  { %7188 = vset.pattern.permute.xlu1 %v12060_v47 }
 0x250   :  { %1213 = vperm.xlu1 %7188, %v865_v29   ;;  %v9019_v29 = vpop.permute.xlu0 %441 }
 0x253   :  { %v601_v51 = vpop.permute.xlu1 %600  ;;  %v9005_v46 = vpop.f32.mrf.mxu0 }
 0x254   :  { %vm744_vm5 = vcmp.eq.s32.totalorder %v8183_v54, %v601_v51  ;;  %v1202_v32 = vpop.permute.xlu2 %1201  ;;  %v7195_v51 = vpack.i.bf16 %v8473_v12, %v8920_v15 }
 0x255   :  { %vm1494_vm6 = vmor %vm744_vm5, %vm1369_vm4  ;;  %vm1361_vm4 = vcmp.eq.s32.totalorder %v8183_v54, %v1202_v32 }
 0x256   :  { %6810 = vmatmul.msk.f32.gmra.mxu0 %vm1758_vm2, %v6685_v14  ;;  %7191 = vrot.lane.b32.xlu2 %v7190_v4, %s7958_s0  ;;  %v6748_v44 = vsel %vm1494_vm6, 1.0, %v12058_v43  ;;  %vm1310_vm6 = vcmp.eq.s32.totalorder %v8183_v54, %v8904_v53 }
 0x257   :  { %6873 = vmatmul.msk.f32.gmra.mxu2 %vm1758_vm2, %v6748_v44  ;;  %v7200_v44 = vpack.i.bf16 %v8491_v27, %v8940_v39  ;;  %vm1435_vm9 = vmor %vm685_vm7, %vm1310_vm6 }
 0x258   :  { %1078 = vperm.xlu1 %7188, %v820_v36   ;;  %v9035_v28 = vpop.permute.xlu0 %612  ;;  %v822_v36 = vadd.s32 16, %v8607_v26 }
 0x25b   :  { %v9021_v0 = vpop.f32.mrf.mxu0 }
 0x25c   :  { %v9026_v4 = vpop.permute.xlu1 %1060  ;;  %v1232_v14 = vpop.permute.xlu2 %1231 }
 0x25d   :  { %vm1371_vm10 = vcmp.eq.s32.totalorder %v8183_v54, %v1232_v14 }
 0x25e   :  { %6811 = vmatmul.msk.f32.gmra.mxu0 %vm1758_vm2, %v6686_v30  ;;  %7196 = vrot.lane.b32.xlu2 %v7195_v51, %s7958_s0 }
 0x260   :  { %1081 = vperm.xlu1 %7188, %v821_v19   ;;  %v7205_v19 = vpack.i.bf16 %v8509_v34, %v8956_v56  ;;  %v9062_v5 = vpop.permute.xlu0 %1063 }
 0x263   :  { %v9039_v10 = vpop.f32.mrf.mxu0 }
 0x264   :  { %v1229_v51 = vpop.permute.xlu1 %1228  ;;  %v9044_v30 = vpop.permute.xlu2 %579 }
 0x265   :  { %vm1370_vm14 = vcmp.eq.s32.totalorder %v8183_v54, %v1229_v51  ;;  %vm737_vm7 = vcmp.eq.s32.totalorder %v8183_v54, %v9044_v30  ;;  %v3053_v30 = vld [vmem:[%s7996_s25 + $0xd0] sm:$0xff] }
 0x266   :  { %6812 = vmatmul.msk.f32.gmra.mxu0 %vm1758_vm2, %v6687_v50  ;;  %7201 = vrot.lane.b32.xlu2 %v7200_v44, %s7958_s0  ;;  %vm1495_vm15 = vmor %vm745_vm13, %vm1370_vm14  ;;  %v7210_v50 = vpack.i.bf16 %v8526_v48, %v8976_v60  ;;  %vm686_vm13 = vcmp.eq.s32.totalorder %v8183_v54, %v8935_v31  ;;  %v7215_v31 = vpack.i.bf16 %v8545_v63, %v8990_v25 }
 0x267   :  { %v6749_v26 = vsel %vm1495_vm15, 1.0, %v12058_v43  ;;  %vm1436_vm1 = vmor %vm686_vm13, %vm1311_vm12  ;;  %vm689_vm13 = vcmp.eq.s32.totalorder %v8183_v54, %v8997_v3 }
 0x268   :  { %1084 = vperm.xlu1 %7188, %v822_v36   ;;  %6874 = vmatmul.msk.f32.gmra.mxu2 %vm1758_vm2, %v6749_v26  ;;  %v824_v36 = vadd.s32 16, %v8644_v16  ;;  %v6689_v26 = vsel %vm1435_vm9, 1.0, %v12058_v43  ;;  %vm688_vm9 = vcmp.eq.s32.totalorder %v8183_v54, %v8988_v22  ;;  %v827_v22 = vadd.s32 16, %v8698_v18 }
 0x26b   :  { %v9056_v35 = vpop.f32.mrf.mxu0 }
 0x26c   :  { %v610_v44 = vpop.permute.xlu2 %609 }
 0x26d   :  { %v577_v51 = vpop.permute.xlu1 %576  ;;  %vm747_vm0 = vcmp.eq.s32.totalorder %v8183_v54, %v610_v44 }
 0x26e   :  { %vm736_vm5 = vcmp.eq.s32.totalorder %v8183_v54, %v577_v51  ;;  %6813 = vmatmul.msk.f32.gmra.mxu0 %vm1758_vm2, %v6688_v57  ;;  %7206 = vrot.lane.b32.xlu2 %v7205_v19, %s7958_s0  ;;  %v6690_v19 = vsel %vm1436_vm1, 1.0, %v12058_v43  ;;  %vm1315_vm1 = vcmp.eq.s32.totalorder %v8183_v54, %v9062_v5  ;;  %v3044_v5 = vld [vmem:[%s7996_s25 + $0x88] sm:$0xff] }
 0x26f   :  { %vm1486_vm8 = vmor %vm736_vm5, %vm1361_vm4  ;;  %vm687_vm4 = vcmp.eq.s32.totalorder %v8183_v54, %v8899_v7  ;;  %vm1312_vm5 = vcmp.eq.s32.totalorder %v8183_v54, %v8972_v41  ;;  %v3055_v7 = vld [vmem:[%s7996_s25 + $0xe0] sm:$0xff] }
 0x270   :  { %1087 = vperm.xlu1 %7188, %v823_v2   ;;  %v6740_v42 = vsel %vm1486_vm8, 1.0, %v12058_v43  ;;  %v1235_v2 = vpop.permute.xlu0 %1234  ;;  %vm1437_vm6 = vmor %vm687_vm4, %vm1312_vm5  ;;  %vm1313_vm8 = vcmp.eq.s32.totalorder %v8183_v54, %v8937_v6 }
 0x271   :  { %6865 = vmatmul.msk.f32.vlgmr.msra.gmra.mxu1 %vm1758_vm2, %v6740_v42  ;;  %vm1372_vm15 = vcmp.eq.s32.totalorder %v8183_v54, %v1235_v2  ;;  %v3058_v42 = vld [vmem:[%s7996_s25 + $0xf8] sm:$0xff]  ;;  %v6691_v41 = vsel %vm1437_vm6, 1.0, %v12058_v43  ;;  %vm1438_vm12 = vmor %vm688_vm9, %vm1313_vm8 }
 0x272   :  { %vm1497_vm3 = vmor %vm747_vm0, %vm1372_vm15  ;;  %3320 = vmatpush.msrb.mxu2 %v3058_v42  ;;  %v6692_v42 = vsel %vm1438_vm12, 1.0, %v12058_v43  ;;  %vm748_vm12 = vcmp.eq.s32.totalorder %v8183_v54, %v9035_v28  ;;  %v3033_v28 = vld [vmem:[%s7996_s25 + $0x30] sm:$0xff] }
 0x273   :  { %v9074_v32 = vpop.f32.mrf.mxu0  ;;  %v6751_v57 = vsel %vm1497_vm3, 1.0, %v12058_v43  ;;  %vm690_vm3 = vcmp.eq.s32.totalorder %v8183_v54, %v8986_v13 }
 0x274   :  { %3321 = vmatpush.msrb.mxu2 %v3057_v21 }
 0x275   :  { %v607_v53 = vpop.permute.xlu1 %606  ;;  %v9081_v61 = vpop.permute.xlu2 %1069 }
 0x276   :  { %vm746_vm11 = vcmp.eq.s32.totalorder %v8183_v54, %v607_v53  ;;  %6814 = vmatmul.msk.f32.gmra.mxu0 %vm1758_vm2, %v6689_v26  ;;  %7211 = vrot.lane.b32.xlu2 %v7210_v50, %s7958_s0  ;;  %v826_v53 = vadd.s32 16, %v8678_v24  ;;  %v7220_v26 = vpack.i.bf16 %v8562_v8, %v9005_v46  ;;  %v3054_v24 = vld [vmem:[%s7996_s25 + $0xd8] sm:$0xff] }
 0x277   :  { %vm1496_vm14 = vmor %vm746_vm11, %vm1371_vm10 }
 0x278   :  { %1090 = vperm.xlu1 %7188, %v824_v36   ;;  %v6750_v16 = vsel %vm1496_vm14, 1.0, %v12058_v43  ;;  %v3056_v36 = vld [vmem:[%s7996_s25 + $0xe8] sm:$0xff]  ;;  %vm1314_vm14 = vcmp.eq.s32.totalorder %v8183_v54, %v9026_v4 }
 0x279   :  { %6875 = vmatmul.msk.f32.gmra.mxu2 %vm1758_vm2, %v6750_v16  ;;  %vm1439_vm15 = vmor %vm689_vm13, %vm1314_vm14  ;;  %v3040_v4 = vld [vmem:[%s7996_s25 + $0x68] sm:$0xff] }
 0x27a   :  { %3322 = vmatpush.msrb.mxu2 %v3056_v36  ;;  %v3050_v36 = vld [vmem:[%s7996_s25 + $0xb8] sm:$0xff] }
 0x27b   :  { %v9094_v14 = vpop.f32.mrf.mxu0 }
 0x27c   :  { %3323 = vmatpush.msrb.mxu2 %v3055_v7  ;;  %v3041_v7 = vld [vmem:[%s7996_s25 + $0x70] sm:$0xff] }
 0x27d   :  { %v9100_v51 = vpop.permute.xlu2 %1207 }
 0x27e   :  { %v9102_v44 = vpop.permute.xlu1 %1066  ;;  %6815 = vmatmul.msk.f32.gmra.mxu0 %vm1758_vm2, %v6690_v19  ;;  %7216 = vrot.lane.b32.xlu2 %v7215_v31, %s7958_s0  ;;  %v3052_v31 = vld [vmem:[%s7996_s25 + $0xc8] sm:$0xff]  ;;  %v7225_v19 = vpack.i.bf16 %v8581_v20, %v9021_v0  ;;  %vm1363_vm0 = vcmp.eq.s32.totalorder %v8183_v54, %v9100_v51  ;;  %v3045_v51 = vld [vmem:[%s7996_s25 + $0x90] sm:$0xff] }
 0x27f   :  { %3324 = vmatpush.msrb.mxu2 %v3054_v24  ;;  %v828_v24 = vadd.s32 16, %v8714_v52  ;;  %v3038_v52 = vld [vmem:[%s7996_s25 + $0x58] sm:$0xff] }
 0x280   :  { %1093 = vperm.xlu1 %7188, %v825_v9  }
 0x281   :  { %6876 = vmatmul.msk.f32.gmra.mxu2 %vm1758_vm2, %v6751_v57  ;;  %v3051_v57 = vld [vmem:[%s7996_s25 + $0xc0] sm:$0xff] }
 0x282   :  { %3325 = vmatpush.msrb.mxu2 %v3053_v30  ;;  %v7230_v30 = vpack.i.bf16 %v8598_v17, %v9039_v10 }
 0x283   :  { %v9115_v50 = vpop.f32.mrf.mxu0 }
 0x284   :  { %3326 = vmatpush.msrb.mxu2 %v3052_v31  ;;  %v6693_v31 = vsel %vm1439_vm15, 1.0, %v12058_v43 }
 0x286   :  { %v1205_v2 = vpop.permute.xlu1 %1204  ;;  %6816 = vmatmul.msk.f32.gmra.mxu0 %vm1758_vm2, %v6691_v41  ;;  %7221 = vrot.lane.b32.xlu2 %v7220_v26, %s7958_s0  ;;  %v9126_v16 = vpop.permute.xlu2 %447  ;;  %v3049_v26 = vld [vmem:[%s7996_s25 + $0xb0] sm:$0xff] }
 0x287   :  { %vm1362_vm10 = vcmp.eq.s32.totalorder %v8183_v54, %v1205_v2  ;;  %3327 = vmatpush.msrb.mxu2 %v3051_v57  ;;  %v1211_v41 = vpop.permute.xlu0 %1210  ;;  %v3048_v2 = vld [vmem:[%s7996_s25 + $0xa8] sm:$0xff] }
 0x288   :  { %1096 = vperm.xlu1 %7188, %v826_v53   ;;  %vm1487_vm11 = vmor %vm737_vm7, %vm1362_vm10  ;;  %v3042_v53 = vld [vmem:[%s7996_s25 + $0x78] sm:$0xff]  ;;  %vm1364_vm6 = vcmp.eq.s32.totalorder %v8183_v54, %v1211_v41  ;;  %vm691_vm10 = vcmp.eq.s32.totalorder %v8183_v54, %v9019_v29 }
 0x289   :  { %v6741_v9 = vsel %vm1487_vm11, 1.0, %v12058_v43  ;;  %3063 = vmatpush.msrb.mxu1 %v3042_v53  ;;  %3328 = vmatpush.msrb.mxu2 %v3050_v36  ;;  %v3037_v36 = vld [vmem:[%s7996_s25 + $0x50] sm:$0xff]  ;;  %vm1440_vm7 = vmor %vm690_vm3, %vm1315_vm1  ;;  %vm1316_vm11 = vcmp.eq.s32.totalorder %v8183_v54, %v9102_v44  ;;  %v3034_v29 = vld [vmem:[%s7996_s25 + $0x38] sm:$0xff] }
 0x28a   :  { %6866 = vmatmul.msk.f32.gmra.mxu1 %vm1758_vm2, %v6741_v9  ;;  %v3047_v9 = vld [vmem:[%s7996_s25 + $0xa0] sm:$0xff]  ;;  %vm1441_vm13 = vmor %vm691_vm10, %vm1316_vm11  ;;  %vm2926_vm11 = vcmask 523264  }
 0x28b   :  { %v9138_v6 = vpop.f32.mrf.mxu0  ;;  %3064 = vmatpush.msrb.mxu1 %v3041_v7  ;;  %3329 = vmatpush.msrb.mxu2 %v3049_v26  ;;  %v829_v26 = vadd.s32 16, %v8732_v58  ;;  %v3035_v58 = vld [vmem:[%s7996_s25 + $0x40] sm:$0xff] }
 0x28d   :  { %3065 = vmatpush.msrb.mxu1 %v3040_v4  ;;  %3330 = vmatpush.msrb.mxu2 %v3048_v2  ;;  %v7235_v2 = vpack.i.bf16 %v8616_v55, %v9056_v35  ;;  %v3036_v4 = vld [vmem:[%s7996_s25 + $0x48] sm:$0xff] }
 0x28e   :  { %6817 = vmatmul.msk.f32.gmra.mxu0 %vm1758_vm2, %v6692_v42  ;;  %7226 = vrot.lane.b32.xlu2 %v7225_v19, %s7958_s0  ;;  %v586_v21 = vpop.permute.xlu2 %585  ;;  %v3046_v19 = vld [vmem:[%s7996_s25 + $0x98] sm:$0xff] }
 0x28f   :  { %v9153_v18 = vpop.permute.xlu1 %444  ;;  %3331 = vmatpush.msrb.mxu2 %v3047_v9  ;;  %vm739_vm8 = vcmp.eq.s32.totalorder %v8183_v54, %v586_v21  ;;  %v9190_v7 = vpop.permute.xlu0 %588  ;;  %v6694_v21 = vsel %vm1440_vm7, 1.0, %v12058_v43 }
 0x290   :  { %1099 = vperm.xlu1 %7188, %v827_v22   ;;  %v3039_v22 = vld [vmem:[%s7996_s25 + $0x60] sm:$0xff]  ;;  %vm1489_vm9 = vmor %vm739_vm8, %vm1364_vm6  ;;  %vm692_vm1 = vcmp.eq.s32.totalorder %v8183_v54, %v9153_v18  ;;  %v3029_v18 = vld [vmem:[%s7996_s25 + $0x10] sm:$0xff] }
 0x291   :  { %3066 = vmatpush.msrb.mxu1 %v3039_v22  ;;  %3332 = vmatpush.msrb.mxu2 %v3046_v19  ;;  %v6743_v9 = vsel %vm1489_vm9, 1.0, %v12058_v43  ;;  %v830_v22 = vadd.s32 16, %v8750_v33  ;;  %v7240_v19 = vpack.i.bf16 %v8633_v1, %v9074_v32 }
 0x293   :  { %v9158_v3 = vpop.f32.mrf.mxu0  ;;  %3067 = vmatpush.msrb.mxu1 %v3038_v52  ;;  %3333 = vmatpush.msrb.mxu2 %v3045_v51  ;;  %v6695_v52 = vsel %vm1441_vm13, 1.0, %v12058_v43  ;;  %v3032_v51 = vld [vmem:[%s7996_s25 + $0x28] sm:$0xff] }
 0x295   :  { %3068 = vmatpush.msrb.mxu1 %v3037_v36  ;;  %3334 = vmatpush.msrb.mxu2 %v3044_v5  ;;  %v3030_v5 = vld [vmem:[%s7996_s25 + $0x18] sm:$0xff] }
 0x296   :  { %6818 = vmatmul.msk.f32.gmra.mxu0 %vm1758_vm2, %v6693_v31  ;;  %7231 = vrot.lane.b32.xlu2 %v7230_v30, %s7958_s0 }
 0x297   :  { %v583_v57 = vpop.permute.xlu1 %582  ;;  %v9177_v42 = vpop.permute.xlu2 %1240  ;;  %3069 = vmatpush.msrb.mxu1 %v3036_v4 }
 0x298   :  { %vm738_vm4 = vcmp.eq.s32.totalorder %v8183_v54, %v583_v57  ;;  %1102 = vperm.xlu1 %7188, %v828_v24   ;;  %v3043_v24 = vld [vmem:[%s7996_s25 + $0x80] sm:$0xff]  ;;  %v9223_v57 = vpop.permute.xlu0 %456  ;;  %vm1374_vm6 = vcmp.eq.s32.totalorder %v8183_v54, %v9177_v42 }
 0x299   :  { %vm1488_vm5 = vmor %vm738_vm4, %vm1363_vm0  ;;  %3335 = vmatpush.msrb.mxu2 %v3043_v24  ;;  %3070 = vmatpush.msrb.mxu1 %v3035_v58  ;;  %vm1317_vm0 = vcmp.eq.s32.totalorder %v8183_v54, %v9081_v61  ;;  %v7245_v61 = vpack.i.bf16 %v8651_v62, %v9094_v14  ;;  %v3028_v24 = vld [vmem:[%s7996_s25 + $0x8] sm:$0xff]  ;;  %vm693_vm4 = vcmp.eq.s32.totalorder %v8183_v54, %v9126_v16  ;;  %v3027_v58 = vld [vmem:[%s7996_s25] sm:$0xff]  ;;  %v832_v16 = vadd.s32 16, %v8785_v40 }
 0x29a   :  { %v6742_v13 = vsel %vm1488_vm5, 1.0, %v12058_v43  ;;  %vm1442_vm3 = vmor %vm692_vm1, %vm1317_vm0 }
 0x29b   :  { %v9186_v53 = vpop.f32.mrf.mxu0  ;;  %6867 = vmatmul.msk.f32.gmra.mxu1 %vm1758_vm2, %v6742_v13  ;;  %v3031_v13 = vld [vmem:[%s7996_s25 + $0x20] sm:$0xff]  ;;  %v6696_v4 = vsel %vm1442_vm3, 1.0, %v12058_v43  ;;  %s12294_s25 = sld [smem:[#allocation7_spill]] }
 0x29c   :  { %3071 = vmatpush.msrb.mxu1 %v3034_v29  ;;  %v7250_v29 = vpack.i.bf16 %v8670_v49, %v9115_v50 }
 0x29e   :  { %6819 = vmatmul.msk.f32.gmra.mxu0 %vm1758_vm2, %v6694_v21  ;;  %7236 = vrot.lane.b32.xlu2 %v7235_v2, %s7958_s0  ;;  %v831_v2 = vadd.s32 16, %v8768_v23 }
 0x29f   :  { %v9206_v30 = vpop.permute.xlu2 %1075  ;;  %3072 = vmatpush.msrb.mxu1 %v3033_v28 }
 0x2a0   :  { %1105 = vperm.xlu1 %7188, %v829_v26   ;;  %v1238_v41 = vpop.permute.xlu1 %1237  ;;  %v9249_v21 = vpop.permute.xlu0 %459  ;;  %vm1319_vm10 = vcmp.eq.s32.totalorder %v8183_v54, %v9206_v30  ;;  %v12076_v30 = vld [vmem:[#allocation30_spill] sm:$0xff] }
 0x2a1   :  { %vm1373_vm14 = vcmp.eq.s32.totalorder %v8183_v54, %v1238_v41  ;;  %3073 = vmatpush.msrb.mxu1 %v3032_v51  ;;  %v833_v51 = vadd.s32 16, %v8802_v37 }
 0x2a2   :  { %vm1498_vm15 = vmor %vm748_vm12, %vm1373_vm14  ;;  %vm740_vm14 = vcmp.eq.s32.totalorder %v8183_v54, %v9190_v7 }
 0x2a3   :  { %v9213_v44 = vpop.f32.mrf.mxu0  ;;  %v6752_v31 = vsel %vm1498_vm15, 1.0, %v12058_v43  ;;  %6868 = vmatmul.msk.f32.gmra.mxu1 %vm1758_vm2, %v6743_v9 }
 0x2a4   :  { %6877 = vmatmul.msk.f32.gmra.mxu2 %vm1758_vm2, %v6752_v31  ;;  %3074 = vmatpush.msrb.mxu1 %v3031_v13 }
 0x2a6   :  { %6820 = vmatmul.msk.f32.gmra.mxu0 %vm1758_vm2, %v6695_v52  ;;  %7241 = vrot.lane.b32.xlu2 %v7240_v19, %s7958_s0 }
 0x2a7   :  { %3075 = vmatpush.msrb.mxu1 %v3030_v5 }
 0x2a8   :  { %1108 = vperm.xlu1 %7188, %v830_v22   ;;  %v1073_v33 = vpop.permute.xlu1 %1072  ;;  %v9232_v36 = vpop.permute.xlu2 %453 }
 0x2a9   :  { %vm1318_vm5 = vcmp.eq.s32.totalorder %v8183_v54, %v1073_v33  ;;  %3076 = vmatpush.msrb.mxu1 %v3029_v18  ;;  %v9272_v28 = vpop.permute.xlu0 %462  ;;  %v7255_v33 = vpack.i.bf16 %v8685_v38, %v9138_v6  ;;  %vm695_vm1 = vcmp.eq.s32.totalorder %v8183_v54, %v9232_v36 }
 0x2aa   :  { %vm1443_vm7 = vmor %vm693_vm4, %vm1318_vm5  ;;  %vm696_vm5 = vcmp.eq.s32.totalorder %v8183_v54, %v9223_v57 }
 0x2ab   :  { %v9236_v26 = vpop.f32.mrf.mxu0  ;;  %3077 = vmatpush.msrb.mxu1 %v3028_v24  ;;  %v6697_v31 = vsel %vm1443_vm7, 1.0, %v12058_v43 }
 0x2ad   :  { %3078 = vmatpush.msrb.mxu1 %v3027_v58 }
 0x2ae   :  { %6821 = vmatmul.msk.f32.gmra.mxu0 %vm1758_vm2, %v6696_v4  ;;  %7246 = vrot.lane.b32.xlu2 %v7245_v61, %s7958_s0  ;;  %v12077_v4 = vld [vmem:[#allocation31_spill] sm:$0xff] }
 0x2af   :  { %v834_v24 = vadd.s32 16, %v12077_v4  ;;  %v12081_v4 = vld [vmem:[#allocation34_spill] sm:$0xff] }
 0x2b0   :  { %1111 = vperm.xlu1 %7188, %v831_v2   ;;  %v9253_v23 = vpop.permute.xlu2 %7191 }
 0x2b1   :  { %v616_v41 = vpop.permute.xlu1 %615  ;;  %v7193_v22 = vunpack.i.l.bf16 %v9253_v23  ;;  %v9297_v58 = vpop.permute.xlu0 %465 }
 0x2b2   :  { %vm749_vm8 = vcmp.eq.s32.totalorder %v8183_v54, %v616_v41  ;;  %v12078_v41 = vld [vmem:[#allocation24_spill] sm:$0xff] }
 0x2b3   :  { %v9257_v9 = vpop.f32.mrf.mxu0  ;;  %vm1499_vm9 = vmor %vm749_vm8, %vm1374_vm6  ;;  %v9282_v13 = vsel %vm2926_vm11, %v12076_v30, %v7193_v22  ;;  %vm697_vm8 = vcmp.eq.s32.totalorder %v8183_v54, %v9249_v21 }
 0x2b4   :  { %v6753_v42 = vsel %vm1499_vm9, 1.0, %v12058_v43 }
 0x2b5   :  { %6878 = vmatmul.msk.f32.gmra.mxu2 %vm1758_vm2, %v6753_v42 }
 0x2b6   :  { %6822 = vmatmul.msk.f32.gmra.mxu0 %vm1758_vm2, %v6697_v31  ;;  %7251 = vrot.lane.b32.xlu2 %v7250_v29, %s7958_s0  ;;  %v12079_v29 = vld [vmem:[#allocation32_spill] sm:$0xff]  ;;  %v9308_v31 = vld [vmem:[%s7971_s5 + $0x2c0] sm:$0xff] }
 0x2b7   :  { %v842_v22 = vadd.s32 16, %v9308_v31 }
 0x2b8   :  { %1114 = vperm.xlu1 %7188, %v832_v16   ;;  %v9270_v40 = vpop.permute.xlu2 %7196  ;;  %v7260_v16 = vpack.i.bf16 %v12078_v41, %v9158_v3 }
 0x2b9   :  { %v451_v19 = vpop.permute.xlu1 %450  ;;  %v7198_v2 = vunpack.i.l.bf16 %v9270_v40  ;;  %1144 = vperm.xlu0 %7295, %v842_v22   ;;  %v9333_v22 = vpop.permute.xlu0 %468 }
 0x2ba   :  { %vm694_vm12 = vcmp.eq.s32.totalorder %v8183_v54, %v451_v19 }
 0x2bb   :  { %vm1444_vm13 = vmor %vm694_vm12, %vm1319_vm10  ;;  %v9275_v52 = vpop.f32.mrf.mxu0  ;;  %v9303_v42 = vsel %vm2926_vm11, %v12079_v29, %v7198_v2  ;;  %v12080_v2 = vld [vmem:[#allocation33_spill] sm:$0xff]  ;;  %vm698_vm12 = vcmp.eq.s32.totalorder %v8183_v54, %v9272_v28 }
 0x2bc   :  { %v6698_v5 = vsel %vm1444_vm13, 1.0, %v12058_v43 }
 0x2bd   :  { %3336 = vmatmul.f32.vlgmr.msrb.gmra.mxu2 %v9282_v13 }
 0x2be   :  { %6823 = vmatmul.msk.f32.gmra.mxu0 %vm1758_vm2, %v6698_v5  ;;  %7256 = vrot.lane.b32.xlu2 %v7255_v33, %s7958_s0  ;;  %v7194_v33 = vunpack.i.h.bf16 %v9253_v23  ;;  %v12084_v23 = vld [vmem:[#allocation19_spill] sm:$0xff] }
 0x2c0   :  { %1117 = vperm.xlu1 %7188, %v833_v51   ;;  %v9289_v37 = vpop.permute.xlu2 %7201 }
 0x2c1   :  { %v7203_v19 = vunpack.i.l.bf16 %v9289_v37 }
 0x2c2   :  { %v1214_v61 = vpop.permute.xlu1 %1213 }
 0x2c3   :  { %vm1365_vm15 = vcmp.eq.s32.totalorder %v8183_v54, %v1214_v61  ;;  %v9294_v18 = vpop.f32.mrf.mxu0  ;;  %v835_v61 = vadd.s32 16, %v12080_v2 }
 0x2c4   :  { %vm1490_vm0 = vmor %vm740_vm14, %vm1365_vm15  ;;  %vm699_vm15 = vcmp.eq.s32.totalorder %v8183_v54, %v9297_v58 }
 0x2c5   :  { %3339 = vmatmul.f32.gmra.mxu2 %v9303_v42  ;;  %v6744_v7 = vsel %vm1490_vm0, 1.0, %v12058_v43 }
 0x2c6   :  { %6869 = vmatmul.msk.f32.gmra.mxu1 %vm1758_vm2, %v6744_v7  ;;  %7261 = vrot.lane.b32.xlu2 %v7260_v16, %s7958_s0  ;;  %v9325_v16 = vsel %vm2926_vm11, %v12081_v4, %v7203_v19  ;;  %v2927_v7 = vsel %vm2926_vm11, %v12084_v23, %v7194_v33  ;;  %v12085_v4 = vld [vmem:[#allocation35_spill] sm:$0xff] }
 0x2c7   :  { %12082 = vst [vmem:[#allocation30_spill] sm:$0xff] %v9325_v16 }
 0x2c8   :  { %1120 = vperm.xlu1 %7188, %v834_v24   ;;  %v9314_v51 = vpop.permute.xlu2 %7206  ;;  %v12083_v24 = vld [vmem:[#allocation25_spill] sm:$0xff] }
 0x2c9   :  { %v7265_v29 = vpack.i.bf16 %v12083_v24, %v9186_v53  ;;  %v7208_v19 = vunpack.i.l.bf16 %v9314_v51  ;;  %v7199_v53 = vunpack.i.h.bf16 %v9270_v40  ;;  %v836_v24 = vadd.s32 16, %v12085_v4 }
 0x2ca   :  { %v1079_v30 = vpop.permute.xlu1 %1078 }
 0x2cb   :  { %vm1320_vm3 = vcmp.eq.s32.totalorder %v8183_v54, %v1079_v30  ;;  %v9320_v5 = vpop.f32.mrf.mxu0 }
 0x2cc   :  { %vm1445_vm4 = vmor %vm695_vm1, %vm1320_vm3  ;;  %vm700_vm3 = vcmp.eq.s32.totalorder %v8183_v54, %v9333_v22 }
 0x2cd   :  { %3342 = vmatmul.f32.gmra.mxu2 %v9325_v16  ;;  %v6699_v36 = vsel %vm1445_vm4, 1.0, %v12058_v43  ;;  %v12094_v16 = vld [vmem:[#allocation21_spill] sm:$0xff] }
 0x2ce   :  { %6824 = vmatmul.msk.f32.gmra.mxu0 %vm1758_vm2, %v6699_v36  ;;  %3079 = vmatmul.f32.vlgmr.msrb.gmra.mxu1 %v2927_v7  ;;  %v12089_v7 = vld [vmem:[#allocation20_spill] sm:$0xff] }
 0x2cf   :  { %7266 = vrot.lane.b32.xlu2 %v7265_v29, %s7958_s0  ;;  %v12086_v29 = vld [vmem:[#allocation36_spill] sm:$0xff]  ;;  %v2928_v57 = vsel %vm2926_vm11, %v12089_v7, %v7199_v53  ;;  %v7204_v53 = vunpack.i.h.bf16 %v9289_v37 }
 0x2d0   :  { %1123 = vperm.xlu1 %7188, %v835_v61   ;;  %v9338_v30 = vpop.permute.xlu2 %7211  ;;  %v9349_v36 = vsel %vm2926_vm11, %v12086_v29, %v7208_v19  ;;  %v12088_v61 = vld [vmem:[#allocation26_spill] sm:$0xff]  ;;  %v9363_v19 = vpop.permute.xlu0 %471 }
 0x2d1   :  { %12087 = vst [vmem:[#allocation31_spill] sm:$0xff] %v9349_v36  ;;  %v7270_v23 = vpack.i.bf16 %v12088_v61, %v9213_v44  ;;  %v7213_v44 = vunpack.i.l.bf16 %v9338_v30  ;;  %v2929_v21 = vsel %vm2926_vm11, %v12094_v16, %v7204_v53 }
 0x2d2   :  { %v1082_v2 = vpop.permute.xlu1 %1081 }
 0x2d3   :  { %vm1321_vm6 = vcmp.eq.s32.totalorder %v8183_v54, %v1082_v2  ;;  %v9344_v33 = vpop.f32.mrf.mxu0  ;;  %v9358_v2 = vld [vmem:[%s7971_s5 + $0x2d0] sm:$0xff] }
 0x2d4   :  { %vm1446_vm7 = vmor %vm696_vm5, %vm1321_vm6  ;;  %v844_v4 = vadd.s32 16, %v9358_v2  ;;  %vm701_vm6 = vcmp.eq.s32.totalorder %v8183_v54, %v9363_v19 }
 0x2d5   :  { %3345 = vmatmul.f32.gmra.mxu2 %v9349_v36  ;;  %v6700_v40 = vsel %vm1446_vm7, 1.0, %v12058_v43 }
 0x2d6   :  { %6825 = vmatmul.msk.f32.gmra.mxu0 %vm1758_vm2, %v6700_v40  ;;  %3082 = vmatmul.f32.gmra.mxu1 %v2928_v57  ;;  %v12091_v57 = vld [vmem:[#allocation38_spill] sm:$0xff] }
 0x2d7   :  { %7271 = vrot.lane.b32.xlu2 %v7270_v23, %s7958_s0  ;;  %1150 = vperm.xlu0 %7295, %v844_v4   ;;  %v12090_v23 = vld [vmem:[#allocation37_spill] sm:$0xff]  ;;  %v9377_v36 = vsel %vm2926_vm11, %v12091_v57, %v7213_v44  ;;  %v7209_v57 = vunpack.i.h.bf16 %v9314_v51 }
 0x2d8   :  { %1126 = vperm.xlu1 %7188, %v836_v24   ;;  %v9366_v29 = vpop.permute.xlu2 %7216  ;;  %v837_v7 = vadd.s32 16, %v12090_v23  ;;  %12092 = vst [vmem:[#allocation24_spill] sm:$0xff] %v9377_v36  ;;  %v12093_v24 = vld [vmem:[#allocation27_spill] sm:$0xff] }
 0x2d9   :  { %v7275_v4 = vpack.i.bf16 %v12093_v24, %v9236_v26  ;;  %v7218_v44 = vunpack.i.l.bf16 %v9366_v29  ;;  %v9395_v24 = vpop.permute.xlu0 %474 }
 0x2da   :  { %v1085_v61 = vpop.permute.xlu1 %1084 }
 0x2db   :  { %vm1322_vm9 = vcmp.eq.s32.totalorder %v8183_v54, %v1085_v61  ;;  %v9372_v40 = vpop.f32.mrf.mxu0  ;;  %v9386_v61 = vld [vmem:[%s7971_s5 + $0x2d8] sm:$0xff] }
 0x2dc   :  { %vm1447_vm10 = vmor %vm697_vm8, %vm1322_vm9  ;;  %v845_v23 = vadd.s32 16, %v9386_v61  ;;  %vm702_vm9 = vcmp.eq.s32.totalorder %v8183_v54, %v9395_v24 }
 0x2dd   :  { %3348 = vmatmul.f32.gmra.mxu2 %v9377_v36  ;;  %v6701_v37 = vsel %vm1447_vm10, 1.0, %v12058_v43  ;;  %v12097_v36 = vld [vmem:[#allocation22_spill] sm:$0xff] }
 0x2de   :  { %6826 = vmatmul.msk.f32.gmra.mxu0 %vm1758_vm2, %v6701_v37  ;;  %3085 = vmatmul.f32.gmra.mxu1 %v2929_v21  ;;  %v12095_v37 = vld [vmem:[#allocation39_spill] sm:$0xff]  ;;  %v12096_v21 = vld [vmem:[#allocation28_spill] sm:$0xff]  ;;  %v2930_v28 = vsel %vm2926_vm11, %v12097_v36, %v7209_v57 }
 0x2df   :  { %7276 = vrot.lane.b32.xlu2 %v7275_v4, %s7958_s0  ;;  %1153 = vperm.xlu0 %7295, %v845_v23   ;;  %v838_v4 = vadd.s32 16, %v12095_v37  ;;  %v7280_v51 = vpack.i.bf16 %v12096_v21, %v9257_v9  ;;  %v7214_v9 = vunpack.i.h.bf16 %v9338_v30  ;;  %v12098_v57 = vld [vmem:[#allocation40_spill] sm:$0xff] }
 0x2e0   :  { %1129 = vperm.xlu1 %7188, %v837_v7   ;;  %v9392_v26 = vpop.permute.xlu2 %7221  ;;  %v9405_v7 = vsel %vm2926_vm11, %v8902_v45, %v7218_v44  ;;  %v839_v37 = vadd.s32 16, %v12098_v57 }
 0x2e1   :  { %v9426_v21 = vpop.permute.xlu0 %477 }
 0x2e2   :  { %v1088_v16 = vpop.permute.xlu1 %1087 }
 0x2e3   :  { %vm1323_vm13 = vcmp.eq.s32.totalorder %v8183_v54, %v1088_v16  ;;  %v9400_v53 = vpop.f32.mrf.mxu0  ;;  %v7223_v16 = vunpack.i.l.bf16 %v9392_v26 }
 0x2e4   :  { %vm1448_vm14 = vmor %vm698_vm12, %vm1323_vm13  ;;  %vm703_vm13 = vcmp.eq.s32.totalorder %v8183_v54, %v9426_v21 }
 0x2e5   :  { %3351 = vmatmul.f32.gmra.mxu2 %v9405_v7  ;;  %v6702_v23 = vsel %vm1448_vm14, 1.0, %v12058_v43 }
 0x2e6   :  { %6827 = vmatmul.msk.f32.gmra.mxu0 %vm1758_vm2, %v6702_v23  ;;  %3088 = vmatmul.f32.gmra.mxu1 %v2930_v28  ;;  %v12100_v23 = vld [vmem:[#allocation23_spill] sm:$0xff] }
 0x2e7   :  { %7281 = vrot.lane.b32.xlu2 %v7280_v51, %s7958_s0  ;;  %7313 = vset.pattern.permute.xlu0 %v12059_v59  ;;  %v12099_v51 = vld [vmem:[#allocation29_spill] sm:$0xff]  ;;  %v2931_v28 = vsel %vm2926_vm11, %v12100_v23, %v7214_v9  ;;  %v9462_v23 = vpop.f32.mrf.mxu2 }
 0x2e8   :  { %1132 = vperm.xlu1 %7188, %v838_v4   ;;  %v9416_v45 = vpop.permute.xlu2 %7226  ;;  %v9430_v4 = vsel %vm2926_vm11, %v8920_v15, %v7223_v16  ;;  %v7285_v30 = vpack.i.bf16 %v12099_v51, %v9275_v52  ;;  %v7219_v16 = vunpack.i.h.bf16 %v9366_v29  ;;  %v12101_v9 = vld [vmem:[#allocation41_spill] sm:$0xff]  ;;  %12102 = vst [vmem:[#allocation32_spill] sm:$0xff] %v9462_v23  ;;  %v221_v23 = vld [vmem:[%s7971_s5 + $0x2f0] sm:$0xff] }
 0x2e9   :  { %v840_v51 = vadd.s32 16, %v12101_v9 }
 0x2ea   :  { %v1091_v44 = vpop.permute.xlu1 %1090  ;;  %v2932_v22 = vsel %vm2926_vm11, %v8453_v11, %v7219_v16  ;;  %v12103_v16 = vld [vmem:[#allocation42_spill] sm:$0xff] }
 0x2eb   :  { %vm1324_vm0 = vcmp.eq.s32.totalorder %v8183_v54, %v1091_v44  ;;  %v9423_v36 = vpop.f32.mrf.mxu0  ;;  %v7228_v44 = vunpack.i.l.bf16 %v9416_v45  ;;  %v841_v9 = vadd.s32 16, %v12103_v16 }
 0x2ec   :  { %vm1449_vm1 = vmor %vm699_vm15, %vm1324_vm0 }
 0x2ed   :  { %3354 = vmatmul.f32.gmra.mxu2 %v9430_v4  ;;  %v6703_v58 = vsel %vm1449_vm1, 1.0, %v12058_v43 }
 0x2ee   :  { %6828 = vmatmul.msk.f32.gmra.mxu0 %vm1758_vm2, %v6703_v58  ;;  %3091 = vmatmul.f32.gmra.mxu1 %v2931_v28  ;;  %v9460_v58 = vpop.permute.xlu0 %480 }
 0x2ef   :  { %7286 = vrot.lane.b32.xlu2 %v7285_v30, %s7958_s0  ;;  %v9484_v19 = vpop.f32.mrf.mxu2  ;;  %vm704_vm0 = vcmp.eq.s32.totalorder %v8183_v54, %v9460_v58 }
 0x2f0   :  { %1135 = vperm.xlu1 %7188, %v839_v37   ;;  %v9441_v15 = vpop.permute.xlu2 %7231  ;;  %v9454_v37 = vsel %vm2926_vm11, %v8940_v39, %v7228_v44  ;;  %v7224_v44 = vunpack.i.h.bf16 %v9392_v26  ;;  %12104 = vst [vmem:[#allocation33_spill] sm:$0xff] %v9484_v19 }
 0x2f1   :  { %v7233_v28 = vunpack.i.l.bf16 %v9441_v15 }
 0x2f2   :  { %v1094_v52 = vpop.permute.xlu1 %1093  ;;  %v2933_v26 = vsel %vm2926_vm11, %v8473_v12, %v7224_v44  ;;  %v216_v44 = vld [vmem:[%s7971_s5 + $0x2c8] sm:$0xff] }
 0x2f3   :  { %vm1325_vm4 = vcmp.eq.s32.totalorder %v8183_v54, %v1094_v52  ;;  %v9447_v57 = vpop.f32.mrf.mxu0 }
 0x2f4   :  { %vm1450_vm5 = vmor %vm700_vm3, %vm1325_vm4  ;;  %v7290_v30 = vpack.i.bf16 %v9447_v57, %v9423_v36 }
 0x2f5   :  { %3357 = vmatmul.f32.gmra.mxu2 %v9454_v37  ;;  %v6704_v29 = vsel %vm1450_vm5, 1.0, %v12058_v43 }
 0x2f6   :  { %6829 = vmatmul.msk.f32.gmra.mxu0 %vm1758_vm2, %v6704_v29  ;;  %3094 = vmatmul.f32.gmra.mxu1 %v2932_v22  ;;  %v9488_v29 = vpop.permute.xlu0 %483 }
 0x2f7   :  { %7291 = vrot.lane.b32.xlu2 %v7290_v30, %s7958_s0  ;;  %v9478_v30 = vsel %vm2926_vm11, %v8956_v56, %v7233_v28  ;;  %v7229_v28 = vunpack.i.h.bf16 %v9416_v45  ;;  %vm705_vm4 = vcmp.eq.s32.totalorder %v8183_v54, %v9488_v29 }
 0x2f8   :  { %1138 = vperm.xlu1 %7188, %v840_v51   ;;  %v9467_v39 = vpop.permute.xlu2 %7236 }
 0x2f9   :  { %v7238_v56 = vunpack.i.l.bf16 %v9467_v39  ;;  %v2934_v45 = vsel %vm2926_vm11, %v8491_v27, %v7229_v28 }
 0x2fa   :  { %v1097_v52 = vpop.permute.xlu1 %1096 }
 0x2fb   :  { %vm1326_vm7 = vcmp.eq.s32.totalorder %v8183_v54, %v1097_v52  ;;  %v9473_v11 = vpop.f32.mrf.mxu0 }
 0x2fc   :  { %vm1451_vm8 = vmor %vm701_vm6, %vm1326_vm7 }
 0x2fd   :  { %3360 = vmatmul.f32.gmra.mxu2 %v9478_v30  ;;  %v6705_v51 = vsel %vm1451_vm8, 1.0, %v12058_v43 }
 0x2fe   :  { %6830 = vmatmul.msk.f32.gmra.mxu0 %vm1758_vm2, %v6705_v51  ;;  %3097 = vmatmul.f32.gmra.mxu1 %v2933_v26  ;;  %v7234_v26 = vunpack.i.h.bf16 %v9441_v15 }
 0x2ff   :  { %519 = vperm.xlu2 %7189, %v9308_v31   ;;  %v9501_v31 = vsel %vm2926_vm11, %v8976_v60, %v7238_v56  ;;  %v9518_v56 = vpop.permute.xlu0 %486 }
 0x300   :  { %1141 = vperm.xlu1 %7188, %v841_v9   ;;  %v9491_v22 = vpop.permute.xlu2 %7241  ;;  %v9511_v9 = vpop.f32.mrf.mxu2  ;;  %vm706_vm7 = vcmp.eq.s32.totalorder %v8183_v54, %v9518_v56 }
 0x301   :  { %12105 = vst [vmem:[#allocation34_spill] sm:$0xff] %v9511_v9  ;;  %v7243_v60 = vunpack.i.l.bf16 %v9491_v22 }
 0x302   :  { %v1100_v52 = vpop.permute.xlu1 %1099 }
 0x303   :  { %vm1327_vm10 = vcmp.eq.s32.totalorder %v8183_v54, %v1100_v52  ;;  %v9497_v12 = vpop.f32.mrf.mxu0  ;;  %v843_v52 = vadd.s32 16, %v216_v44 }
 0x304   :  { %vm1452_vm12 = vmor %vm702_vm9, %vm1327_vm10  ;;  %v7296_v24 = vpack.i.bf16 %v9497_v12, %v9473_v11 }
 0x305   :  { %3363 = vmatmul.f32.gmra.mxu2 %v9501_v31  ;;  %v6706_v16 = vsel %vm1452_vm12, 1.0, %v12058_v43 }
 0x306   :  { %6831 = vmatmul.msk.f32.gmra.mxu0 %vm1758_vm2, %v6706_v16  ;;  %3100 = vmatmul.f32.gmra.mxu1 %v2934_v45  ;;  %v9527_v16 = vsel %vm2926_vm11, %v8990_v25, %v7243_v60  ;;  %v2935_v45 = vsel %vm2926_vm11, %v8509_v34, %v7234_v26  ;;  %v7239_v25 = vunpack.i.h.bf16 %v9467_v39 }
 0x307   :  { %522 = vperm.xlu2 %7189, %v216_v44   ;;  %v9546_v26 = vpop.permute.xlu0 %489 }
 0x308   :  { %7297 = vrot.lane.b32.xlu1 %v7296_v24, %s7958_s0  ;;  %v9515_v51 = vpop.permute.xlu2 %7246  ;;  %v9535_v21 = vpop.f32.mrf.mxu2  ;;  %v2936_v39 = vsel %vm2926_vm11, %v8526_v48, %v7239_v25  ;;  %vm707_vm10 = vcmp.eq.s32.totalorder %v8183_v54, %v9546_v26 }
 0x309   :  { %12106 = vst [vmem:[#allocation25_spill] sm:$0xff] %v9535_v21  ;;  %v7248_v44 = vunpack.i.l.bf16 %v9515_v51 }
 0x30a   :  { %v1103_v27 = vpop.permute.xlu1 %1102 }
 0x30b   :  { %vm1328_vm14 = vcmp.eq.s32.totalorder %v8183_v54, %v1103_v27  ;;  %v9523_v28 = vpop.f32.mrf.mxu0 }
 0x30c   :  { %vm1453_vm15 = vmor %vm703_vm13, %vm1328_vm14 }
 0x30d   :  { %3366 = vmatmul.f32.gmra.mxu2 %v9527_v16  ;;  %v6707_v15 = vsel %vm1453_vm15, 1.0, %v12058_v43 }
 0x30e   :  { %6832 = vmatmul.msk.f32.gmra.mxu0 %vm1758_vm2, %v6707_v15  ;;  %3103 = vmatmul.f32.gmra.mxu1 %v2935_v45  ;;  %v7244_v45 = vunpack.i.h.bf16 %v9491_v22 }
 0x30f   :  { %525 = vperm.xlu2 %7189, %v9358_v2   ;;  %v9550_v2 = vsel %vm2926_vm11, %v9005_v46, %v7248_v44  ;;  %v493_v29 = vpop.permute.xlu0 %492 }
 0x310   :  { %1147 = vperm.xlu1 %7188, %v843_v52   ;;  %v9538_v24 = vpop.permute.xlu2 %7251  ;;  %v9560_v52 = vpop.f32.mrf.mxu2  ;;  %vm708_vm14 = vcmp.eq.s32.totalorder %v8183_v54, %v493_v29 }
 0x311   :  { %12107 = vst [vmem:[#allocation19_spill] sm:$0xff] %v9560_v52  ;;  %v7253_v46 = vunpack.i.l.bf16 %v9538_v24  ;;  %v7254_v21 = vunpack.i.h.bf16 %v9538_v24 }
 0x312   :  { %v1106_v60 = vpop.permute.xlu1 %1105 }
 0x313   :  { %vm1329_vm1 = vcmp.eq.s32.totalorder %v8183_v54, %v1106_v60  ;;  %v9544_v34 = vpop.f32.mrf.mxu0  ;;  %v9576_v25 = vsel %vm2926_vm11, %v9021_v0, %v7253_v46  ;;  %v7249_v46 = vunpack.i.h.bf16 %v9515_v51  ;;  %v2939_v26 = vsel %vm2926_vm11, %v8581_v20, %v7254_v21  ;;  %v223_v21 = vld [vmem:[%s7971_s5 + $0x300] sm:$0xff] }
 0x314   :  { %vm1454_vm3 = vmor %vm704_vm0, %vm1329_vm1  ;;  %v7301_v58 = vpack.i.bf16 %v9544_v34, %v9523_v28 }
 0x315   :  { %3369 = vmatmul.f32.gmra.mxu2 %v9550_v2  ;;  %v6708_v27 = vsel %vm1454_vm3, 1.0, %v12058_v43 }
 0x316   :  { %6833 = vmatmul.msk.f32.gmra.mxu0 %vm1758_vm2, %v6708_v27  ;;  %3106 = vmatmul.f32.gmra.mxu1 %v2936_v39  ;;  %v2937_v27 = vsel %vm2926_vm11, %v8545_v63, %v7244_v45  ;;  %v9592_v63 = vpop.f32.mrf.mxu1 }
 0x317   :  { %528 = vperm.xlu2 %7189, %v9386_v61   ;;  %v219_v61 = vld [vmem:[%s7971_s5 + $0x2e0] sm:$0xff] }
 0x318   :  { %7302 = vrot.lane.b32.xlu1 %v7301_v58, %s7958_s0  ;;  %v9564_v15 = vpop.permute.xlu2 %7256  ;;  %v846_v60 = vadd.s32 16, %v219_v61  ;;  %v9584_v39 = vpop.f32.mrf.mxu2 }
 0x319   :  { %7306 = vset.pattern.permute.xlu1 %v12059_v59  ;;  %12108 = vst [vmem:[#allocation35_spill] sm:$0xff] %v9584_v39  ;;  %v7258_v0 = vunpack.i.l.bf16 %v9564_v15 }
 0x31a   :  { %v1109_v48 = vpop.permute.xlu1 %1108 }
 0x31b   :  { %vm1330_vm5 = vcmp.eq.s32.totalorder %v8183_v54, %v1109_v48  ;;  %v9571_v44 = vpop.f32.mrf.mxu0 }
 0x31c   :  { %vm1455_vm6 = vmor %vm705_vm4, %vm1330_vm5 }
 0x31d   :  { %3372 = vmatmul.f32.gmra.mxu2 %v9576_v25  ;;  %v6709_v22 = vsel %vm1455_vm6, 1.0, %v12058_v43 }
 0x31e   :  { %6834 = vmatmul.msk.f32.gmra.mxu0 %vm1758_vm2, %v6709_v22  ;;  %3109 = vmatmul.f32.gmra.mxu1 %v2937_v27  ;;  %v220_v22 = vld [vmem:[%s7971_s5 + $0x2e8] sm:$0xff]  ;;  %v2938_v27 = vsel %vm2926_vm11, %v8562_v8, %v7249_v46 }
 0x31f   :  { %7307 = vset.pattern.permute.xlu2 %v12060_v47  ;;  %v847_v51 = vadd.s32 16, %v220_v22 }
 0x320   :  { %531 = vperm.xlu1 %7306, %v219_v61   ;;  %v9587_v58 = vpop.permute.xlu2 %7261  ;;  %1156 = vperm.xlu2 %7307, %v846_v60   ;;  %v9602_v60 = vsel %vm2926_vm11, %v9039_v10, %v7258_v0  ;;  %v9610_v39 = vpop.f32.mrf.mxu2 }
 0x321   :  { %12109 = vst [vmem:[#allocation36_spill] sm:$0xff] %v9610_v39  ;;  %v7263_v10 = vunpack.i.l.bf16 %v9587_v58 }
 0x322   :  { %v1112_v48 = vpop.permute.xlu1 %1111 }
 0x323   :  { %vm1331_vm8 = vcmp.eq.s32.totalorder %v8183_v54, %v1112_v48  ;;  %v9595_v45 = vpop.f32.mrf.mxu0  ;;  %v496_v48 = vpop.permute.xlu0 %495  ;;  %v9626_v46 = vsel %vm2926_vm11, %v9056_v35, %v7263_v10 }
 0x324   :  { %vm1456_vm9 = vmor %vm706_vm7, %vm1331_vm8  ;;  %v7308_v61 = vpack.i.bf16 %v9595_v45, %v9571_v44  ;;  %vm709_vm1 = vcmp.eq.s32.totalorder %v8183_v54, %v496_v48 }
 0x325   :  { %3375 = vmatmul.f32.gmra.mxu2 %v9602_v60  ;;  %v6710_v56 = vsel %vm1456_vm9, 1.0, %v12058_v43 }
 0x326   :  { %7309 = vrot.lane.b32.xlu0 %v7308_v61, %s7958_s0  ;;  %6835 = vmatmul.msk.f32.gmra.mxu0 %vm1758_vm2, %v6710_v56  ;;  %v9619_v61 = vpop.f32.mrf.mxu1 }
 0x327   :  { %3112 = vmatmul.f32.gmra.mxu1 %v2938_v27  ;;  %12110 = vst [vmem:[#allocation26_spill] sm:$0xff] %v9619_v61  ;;  %v7259_v27 = vunpack.i.h.bf16 %v9564_v15  ;;  %v233_v61 = vld [vmem:[%s7971_s5 + $0x350] sm:$0xff] }
 0x328   :  { %534 = vperm.xlu1 %7306, %v220_v22   ;;  %1159 = vperm.xlu2 %7307, %v847_v51   ;;  %v848_v22 = vadd.s32 16, %v221_v23  ;;  %v860_v19 = vadd.s32 16, %v233_v61 }
 0x329   :  { %v9613_v0 = vpop.permute.xlu2 %7266  ;;  %v2940_v29 = vsel %vm2926_vm11, %v8598_v17, %v7259_v27  ;;  %v224_v27 = vld [vmem:[%s7971_s5 + $0x308] sm:$0xff] }
 0x32a   :  { %v1115_v9 = vpop.permute.xlu1 %1114  ;;  %v7268_v51 = vunpack.i.l.bf16 %v9613_v0 }
 0x32b   :  { %vm1332_vm12 = vcmp.eq.s32.totalorder %v8183_v54, %v1115_v9  ;;  %v9622_v8 = vpop.f32.mrf.mxu0  ;;  %v9633_v9 = vpop.f32.mrf.mxu2 }
 0x32c   :  { %vm1457_vm13 = vmor %vm707_vm10, %vm1332_vm12  ;;  %12111 = vst [vmem:[#allocation20_spill] sm:$0xff] %v9633_v9  ;;  %v499_v56 = vpop.permute.xlu0 %498 }
 0x32d   :  { %3378 = vmatmul.f32.gmra.mxu2 %v9626_v46  ;;  %v6711_v24 = vsel %vm1457_vm13, 1.0, %v12058_v43  ;;  %vm710_vm5 = vcmp.eq.s32.totalorder %v8183_v54, %v499_v56 }
 0x32e   :  { %537 = vperm.xlu0 %7313, %v221_v23   ;;  %6836 = vmatmul.msk.f32.gmra.mxu0 %vm1758_vm2, %v6711_v24  ;;  %v9641_v10 = vpop.f32.mrf.mxu1 }
 0x32f   :  { %3115 = vmatmul.f32.gmra.mxu1 %v2939_v26  ;;  %12112 = vst [vmem:[#allocation37_spill] sm:$0xff] %v9641_v10  ;;  %v222_v26 = vld [vmem:[%s7971_s5 + $0x2f8] sm:$0xff] }
 0x330   :  { %7314 = vset.pattern.permute.xlu1 %v12060_v47 }
 0x331   :  { %v9637_v35 = vpop.permute.xlu2 %7271  ;;  %1162 = vperm.xlu1 %7314, %v848_v22   ;;  %v9651_v22 = vsel %vm2926_vm11, %v9074_v32, %v7268_v51  ;;  %v7264_v51 = vunpack.i.h.bf16 %v9587_v58 }
 0x332   :  { %v1118_v23 = vpop.permute.xlu1 %1117 }
 0x333   :  { %vm1333_vm15 = vcmp.eq.s32.totalorder %v8183_v54, %v1118_v23  ;;  %v9644_v20 = vpop.f32.mrf.mxu0  ;;  %v7273_v23 = vunpack.i.l.bf16 %v9637_v35  ;;  %v2941_v48 = vsel %vm2926_vm11, %v8616_v55, %v7264_v51 }
 0x334   :  { %vm1458_vm0 = vmor %vm708_vm14, %vm1333_vm15  ;;  %v7316_v24 = vpack.i.bf16 %v9644_v20, %v9622_v8 }
 0x335   :  { %3381 = vmatmul.f32.gmra.mxu2 %v9651_v22  ;;  %v6712_v15 = vsel %vm1458_vm0, 1.0, %v12058_v43 }
 0x336   :  { %543 = vperm.xlu0 %7313, %v223_v21   ;;  %7317 = vrot.lane.b32.xlu2 %v7316_v24, %s7958_s0  ;;  %v849_v24 = vadd.s32 16, %v222_v26  ;;  %v9668_v17 = vpop.f32.mrf.mxu1 }
 0x337   :  { %6837 = vmatmul.msk.f32.gmra.mxu0 %vm1758_vm2, %v6712_v15  ;;  %3118 = vmatmul.f32.gmra.mxu1 %v2940_v29  ;;  %12114 = vst [vmem:[#allocation27_spill] sm:$0xff] %v9668_v17  ;;  %v502_v15 = vpop.permute.xlu0 %501  ;;  %v9674_v29 = vsel %vm2926_vm11, %v9094_v14, %v7273_v23  ;;  %v225_v14 = vld [vmem:[%s7971_s5 + $0x310] sm:$0xff]  ;;  %v7269_v23 = vunpack.i.h.bf16 %v9613_v0 }
 0x338   :  { %v9661_v39 = vpop.f32.mrf.mxu2  ;;  %vm711_vm8 = vcmp.eq.s32.totalorder %v8183_v54, %v502_v15 }
 0x339   :  { %12113 = vst [vmem:[#allocation38_spill] sm:$0xff] %v9661_v39  ;;  %v9663_v32 = vpop.permute.xlu2 %7276  ;;  %7315 = vset.pattern.permute.xlu1 %v12059_v59  ;;  %v2942_v56 = vsel %vm2926_vm11, %v8633_v1, %v7269_v23 }
 0x33a   :  { %v1121_v9 = vpop.permute.xlu1 %1120  ;;  %540 = vperm.xlu1 %7315, %v222_v26   ;;  %v850_v26 = vadd.s32 16, %v223_v21 }
 0x33b   :  { %vm1334_vm3 = vcmp.eq.s32.totalorder %v8183_v54, %v1121_v9  ;;  %v7278_v9 = vunpack.i.l.bf16 %v9663_v32  ;;  %v9690_v55 = vpop.f32.mrf.mxu0 }
 0x33c   :  { %vm1459_vm4 = vmor %vm709_vm1, %vm1334_vm3 }
 0x33d   :  { %3384 = vmatmul.f32.gmra.mxu2 %v9674_v29  ;;  %v6713_v58 = vsel %vm1459_vm4, 1.0, %v12058_v43  ;;  %v9697_v51 = vsel %vm2926_vm11, %v9115_v50, %v7278_v9  ;;  %v7274_v9 = vunpack.i.h.bf16 %v9637_v35 }
 0x33e   :  { %546 = vperm.xlu0 %7313, %v224_v27   ;;  %1165 = vperm.xlu2 %7307, %v849_v24   ;;  %v852_v24 = vadd.s32 16, %v225_v14 }
 0x33f   :  { %6838 = vmatmul.msk.f32.gmra.mxu0 %vm1758_vm2, %v6713_v58  ;;  %3121 = vmatmul.f32.gmra.mxu1 %v2941_v48  ;;  %v505_v58 = vpop.permute.xlu0 %504 }
 0x340   :  { %v9682_v39 = vpop.f32.mrf.mxu2  ;;  %vm712_vm12 = vcmp.eq.s32.totalorder %v8183_v54, %v505_v58 }
 0x341   :  { %12115 = vst [vmem:[#allocation21_spill] sm:$0xff] %v9682_v39  ;;  %v9684_v52 = vpop.permute.xlu2 %7281 }
 0x342   :  { %v1124_v10 = vpop.permute.xlu1 %1123  ;;  %7321 = vset.pattern.permute.xlu1 %v12060_v47  ;;  %v7283_v50 = vunpack.i.l.bf16 %v9684_v52 }
 0x343   :  { %vm1335_vm6 = vcmp.eq.s32.totalorder %v8183_v54, %v1124_v10  ;;  %1168 = vperm.xlu1 %7321, %v850_v26   ;;  %v9693_v21 = vpop.f32.mrf.mxu1  ;;  %v851_v10 = vadd.s32 16, %v224_v27  ;;  %v9710_v26 = vld [vmem:[%s7971_s5 + $0x320] sm:$0xff] }
 0x344   :  { %12116 = vst [vmem:[#allocation39_spill] sm:$0xff] %v9693_v21  ;;  %vm1460_vm7 = vmor %vm710_vm5, %vm1335_vm6  ;;  %v9725_v35 = vsel %vm2926_vm11, %v9138_v6, %v7283_v50  ;;  %v9738_v6 = vld [vmem:[%s7971_s5 + $0x328] sm:$0xff]  ;;  %v7279_v50 = vunpack.i.h.bf16 %v9663_v32 }
 0x345   :  { %3387 = vmatmul.f32.gmra.mxu2 %v9697_v51  ;;  %v6714_v0 = vsel %vm1460_vm7, 1.0, %v12058_v43 }
 0x346   :  { %7328 = vset.pattern.permute.xlu0 %v12060_v47  ;;  %7327 = vset.pattern.permute.xlu2 %v12059_v59  ;;  %v2944_v58 = vsel %vm2926_vm11, %v8670_v49, %v7279_v50  ;;  %v226_v49 = vld [vmem:[%s7971_s5 + $0x318] sm:$0xff] }
 0x347   :  { %6839 = vmatmul.msk.f32.gmra.mxu0 %vm1758_vm2, %v6714_v0  ;;  %3124 = vmatmul.f32.gmra.mxu1 %v2942_v56  ;;  %v854_v0 = vadd.s32 16, %v9710_v26  ;;  %v2943_v56 = vsel %vm2926_vm11, %v8651_v62, %v7274_v9 }
 0x348   :  { %v9707_v48 = vpop.f32.mrf.mxu2  ;;  %1174 = vperm.xlu0 %7328, %v852_v24  }
 0x349   :  { %12117 = vst [vmem:[#allocation28_spill] sm:$0xff] %v9707_v48  ;;  %v9713_v39 = vpop.permute.xlu2 %7286 }
 0x34a   :  { %v1127_v1 = vpop.permute.xlu1 %1126 }
 0x34b   :  { %vm1336_vm9 = vcmp.eq.s32.totalorder %v8183_v54, %v1127_v1  ;;  %1171 = vperm.xlu1 %7321, %v851_v10   ;;  %v9717_v27 = vpop.f32.mrf.mxu0  ;;  %v9719_v23 = vpop.f32.mrf.mxu1  ;;  %v7288_v1 = vunpack.i.l.bf16 %v9713_v39 }
 0x34c   :  { %12118 = vst [vmem:[#allocation22_spill] sm:$0xff] %v9719_v23  ;;  %vm1461_vm10 = vmor %vm711_vm8, %vm1336_vm9  ;;  %v7322_v24 = vpack.i.bf16 %v9717_v27, %v9690_v55  ;;  %v508_v10 = vpop.permute.xlu0 %507 }
 0x34d   :  { %3390 = vmatmul.f32.gmra.mxu2 %v9725_v35  ;;  %v6715_v15 = vsel %vm1461_vm10, 1.0, %v12058_v43  ;;  %v9749_v9 = vsel %vm2926_vm11, %v9158_v3, %v7288_v1  ;;  %v7284_v1 = vunpack.i.h.bf16 %v9684_v52  ;;  %vm713_vm15 = vcmp.eq.s32.totalorder %v8183_v54, %v508_v10 }
 0x34e   :  { %7323 = vrot.lane.b32.xlu2 %v7322_v24, %s7958_s0 }
 0x34f   :  { %6840 = vmatmul.msk.f32.gmra.mxu0 %vm1758_vm2, %v6715_v15  ;;  %3127 = vmatmul.f32.gmra.mxu1 %v2943_v56 }
 0x350   :  { %v9735_v48 = vpop.f32.mrf.mxu2  ;;  %1180 = vperm.xlu0 %7328, %v854_v0   ;;  %v855_v0 = vadd.s32 16, %v9738_v6 }
 0x351   :  { %12119 = vst [vmem:[#allocation40_spill] sm:$0xff] %v9735_v48  ;;  %v7292_v15 = vpop.permute.xlu2 %7291 }
 0x352   :  { %v1130_v23 = vpop.permute.xlu1 %1129  ;;  %v7294_v10 = vunpack.i.h.bf16 %v7292_v15 }
 0x353   :  { %vm1337_vm13 = vcmp.eq.s32.totalorder %v8183_v54, %v1130_v23  ;;  %v9743_v24 = vpop.f32.mrf.mxu0  ;;  %v9745_v62 = vpop.f32.mrf.mxu1  ;;  %v7293_v23 = vunpack.i.l.bf16 %v7292_v15 }
 0x354   :  { %12120 = vst [vmem:[#allocation29_spill] sm:$0xff] %v9745_v62  ;;  %vm1462_vm14 = vmor %vm712_vm12, %vm1337_vm13  ;;  %v511_v3 = vpop.permute.xlu0 %510  ;;  %v9791_v15 = vsel %vm2926_vm11, %v9320_v5, %v7294_v10 }
 0x355   :  { %3393 = vmatmul.f32.gmra.mxu2 %v9749_v9  ;;  %v6716_v32 = vsel %vm1462_vm14, 1.0, %v12058_v43  ;;  %v9771_v50 = vsel %vm2926_vm11, %v9294_v18, %v7293_v23  ;;  %v7289_v18 = vunpack.i.h.bf16 %v9713_v39  ;;  %vm714_vm3 = vcmp.eq.s32.totalorder %v8183_v54, %v511_v3 }
 0x356   :  { %549 = vperm.xlu2 %7327, %v225_v14  }
 0x357   :  { %6841 = vmatmul.msk.f32.gmra.mxu0 %vm1758_vm2, %v6716_v32  ;;  %3130 = vmatmul.f32.gmra.mxu1 %v2944_v58  ;;  %v853_v58 = vadd.s32 16, %v226_v49  ;;  %v2946_v3 = vsel %vm2926_vm11, %v12078_v41, %v7289_v18 }
 0x358   :  { %v9757_v56 = vpop.f32.mrf.mxu2  ;;  %1183 = vperm.xlu0 %7328, %v855_v0  }
 0x359   :  { %12121 = vst [vmem:[#allocation23_spill] sm:$0xff] %v9757_v56 }
 0x35a   :  { %v1133_v48 = vpop.permute.xlu1 %1132 }
 0x35b   :  { %vm1338_vm0 = vcmp.eq.s32.totalorder %v8183_v54, %v1133_v48  ;;  %v9762_v62 = vpop.f32.mrf.mxu0  ;;  %v9764_v21 = vpop.f32.mrf.mxu1  ;;  %v2945_v48 = vsel %vm2926_vm11, %v8685_v38, %v7284_v1 }
 0x35c   :  { %12122 = vst [vmem:[#allocation41_spill] sm:$0xff] %v9764_v21  ;;  %vm1463_vm1 = vmor %vm713_vm15, %vm1338_vm0  ;;  %v7329_v14 = vpack.i.bf16 %v9762_v62, %v9743_v24  ;;  %v514_v1 = vpop.permute.xlu0 %513 }
 0x35d   :  { %3396 = vmatmul.f32.gmra.mxu2 %v9771_v50  ;;  %v6717_v52 = vsel %vm1463_vm1, 1.0, %v12058_v43  ;;  %vm715_vm6 = vcmp.eq.s32.totalorder %v8183_v54, %v514_v1 }
 0x35e   :  { %7330 = vrot.lane.b32.xlu1 %v7329_v14, %s7958_s0  ;;  %552 = vperm.xlu2 %7327, %v226_v49   ;;  %v520_v14 = vpop.permute.xlu2 %519 }
 0x35f   :  { %3133 = vmatmul.f32.gmra.mxu1 %v2945_v48  ;;  %6842 = vmatmul.msk.f32.gmra.mxu0 %vm1758_vm2, %v6717_v52  ;;  %vm717_vm13 = vcmp.eq.s32.totalorder %v8183_v54, %v520_v14  ;;  %v12126_v14 = vld [vmem:[#allocation30_spill] sm:$0xff] }
 0x360   :  { %v9779_v0 = vpop.f32.mrf.mxu2  ;;  %7346 = vset.pattern.permute.xlu0 %v12059_v59 }
 0x361   :  { %12123 = vst [vmem:[#allocation42_spill] sm:$0xff] %v9779_v0 }
 0x362   :  { %v1136_v32 = vpop.permute.xlu1 %1135 }
 0x363   :  { %vm1339_vm4 = vcmp.eq.s32.totalorder %v8183_v54, %v1136_v32  ;;  %v9785_v38 = vpop.f32.mrf.mxu0  ;;  %v9787_v23 = vpop.f32.mrf.mxu1 }
 0x364   :  { %12124 = vst [vmem:[#allocation43_spill] sm:$0xff] %v9787_v23  ;;  %vm1464_vm5 = vmor %vm714_vm3, %vm1339_vm4 }
 0x365   :  { %3399 = vmatmul.f32.gmra.mxu2 %v9791_v15  ;;  %v6718_v39 = vsel %vm1464_vm5, 1.0, %v12058_v43 }
 0x366   :  { %1177 = vperm.xlu1 %7321, %v853_v58   ;;  %555 = vperm.xlu2 %7327, %v9710_v26   ;;  %v517_v26 = vpop.permute.xlu0 %516  ;;  %v523_v18 = vpop.permute.xlu2 %522 }
 0x367   :  { %3136 = vmatmul.f32.gmra.mxu1 %v2946_v3  ;;  %6843 = vmatmul.msk.f32.gmra.mxu0 %vm1758_vm2, %v6718_v39  ;;  %vm716_vm9 = vcmp.eq.s32.totalorder %v8183_v54, %v517_v26  ;;  %v229_v3 = vld [vmem:[%s7971_s5 + $0x330] sm:$0xff]  ;;  %vm718_vm0 = vcmp.eq.s32.totalorder %v8183_v54, %v523_v18 }
 0x368   :  { %v9799_v49 = vpop.f32.mrf.mxu2  ;;  %v12127_v18 = vld [vmem:[#allocation31_spill] sm:$0xff] }
 0x36a   :  { %v1139_v52 = vpop.permute.xlu1 %1138 }
 0x36b   :  { %vm1340_vm7 = vcmp.eq.s32.totalorder %v8183_v54, %v1139_v52  ;;  %v2361_v5 = vpop.f32.mrf.mxu0  ;;  %v9803_v48 = vpop.f32.mrf.mxu1 }
 0x36c   :  { %12125 = vst [vmem:[#allocation44_spill] sm:$0xff] %v9803_v48  ;;  %vm1465_vm8 = vmor %vm715_vm6, %vm1340_vm7  ;;  %v7334_v41 = vpack.i.bf16 %v2361_v5, %v9785_v38 }
 0x36d   :  { %v6719_v10 = vsel %vm1465_vm8, 1.0, %v12058_v43 }
 0x36e   :  { %7335 = vrot.lane.b32.xlu1 %v7334_v41, %s7958_s0  ;;  %558 = vperm.xlu2 %7327, %v9738_v6   ;;  %v856_v6 = vadd.s32 16, %v229_v3  ;;  %v1145_v52 = vpop.permute.xlu0 %1144  ;;  %v526_v41 = vpop.permute.xlu2 %525 }
 0x36f   :  { %3139 = vmatmul.f32.gmra.mxu1 %v9282_v13  ;;  %6844 = vmatmul.msk.f32.gmra.mxu0 %vm1758_vm2, %v6719_v10  ;;  %vm1342_vm14 = vcmp.eq.s32.totalorder %v8183_v54, %v1145_v52  ;;  %vm719_vm4 = vcmp.eq.s32.totalorder %v8183_v54, %v526_v41  ;;  %v232_v41 = vld [vmem:[%s7971_s5 + $0x348] sm:$0xff] }
 0x370   :  { %v9811_v32 = vpop.f32.mrf.mxu2  ;;  %7339 = vset.pattern.permute.xlu1 %v12059_v59  ;;  %vm1467_vm15 = vmor %vm717_vm13, %vm1342_vm14 }
 0x372   :  { %v1142_v58 = vpop.permute.xlu1 %1141 }
 0x373   :  { %vm1341_vm10 = vcmp.eq.s32.totalorder %v8183_v54, %v1142_v58  ;;  %v2364_v1 = vpop.f32.mrf.mxu0  ;;  %v9816_v39 = vpop.f32.mrf.mxu1 }
 0x374   :  { %vm1466_vm12 = vmor %vm716_vm9, %vm1341_vm10 }
 0x375   :  { %v6720_v13 = vsel %vm1466_vm12, 1.0, %v12058_v43 }
 0x376   :  { %561 = vperm.xlu1 %7339, %v229_v3   ;;  %7340 = vset.pattern.permute.xlu2 %v12060_v47  ;;  %v230_v3 = vld [vmem:[%s7971_s5 + $0x338] sm:$0xff] }
 0x377   :  { %3142 = vmatmul.f32.gmra.mxu1 %v9303_v42  ;;  %6845 = vmatmul.msk.f32.gmra.mxu0 %vm1758_vm2, %v6720_v13  ;;  %v857_v42 = vadd.s32 16, %v230_v3 }
 0x378   :  { %v9823_v5 = vpop.f32.mrf.mxu2  ;;  %1186 = vperm.xlu2 %7340, %v856_v6   ;;  %v6721_v6 = vsel %vm1467_vm15, 1.0, %v12058_v43 }
 0x37a   :  { %v7298_v10 = vpop.permute.xlu1 %7297 }
 0x37b   :  { %v7299_v26 = vunpack.i.l.bf16 %v7298_v10  ;;  %v2367_v58 = vpop.f32.mrf.mxu0  ;;  %v9827_v0 = vpop.f32.mrf.mxu1 }
 0x37c   :  { %v7341_v48 = vpack.i.bf16 %v2367_v58, %v2364_v1  ;;  %v7300_v1 = vunpack.i.h.bf16 %v7298_v10  ;;  %v231_v58 = vld [vmem:[%s7971_s5 + $0x340] sm:$0xff] }
 0x37d   :  { %v9832_v13 = vsel %vm2926_vm11, %v9344_v33, %v7299_v26 }
 0x37e   :  { %3402 = vmatmul.f32.gmra.mxu2 %v9832_v13  ;;  %564 = vperm.xlu1 %7339, %v230_v3   ;;  %v1151_v3 = vpop.permute.xlu0 %1150 }
 0x37f   :  { %3145 = vmatmul.f32.gmra.mxu1 %v12126_v14  ;;  %7342 = vrot.lane.b32.xlu0 %v7341_v48, %s7958_s0  ;;  %v858_v48 = vadd.s32 16, %v231_v58  ;;  %v529_v14 = vpop.permute.xlu2 %528  ;;  %vm1344_vm5 = vcmp.eq.s32.totalorder %v8183_v54, %v1151_v3  ;;  %v12128_v3 = vld [vmem:[#allocation24_spill] sm:$0xff] }
 0x380   :  { %6846 = vmatmul.msk.f32.gmra.mxu0 %vm1758_vm2, %v6721_v6  ;;  %v9839_v52 = vpop.f32.mrf.mxu2  ;;  %1189 = vperm.xlu2 %7340, %v857_v42   ;;  %v9848_v6 = vsel %vm2926_vm11, %v9372_v40, %v7300_v1  ;;  %vm1469_vm6 = vmor %vm719_vm4, %vm1344_vm5  ;;  %vm720_vm7 = vcmp.eq.s32.totalorder %v8183_v54, %v529_v14 }
 0x382   :  { %v1148_v56 = vpop.permute.xlu1 %1147 }
 0x383   :  { %vm1343_vm1 = vcmp.eq.s32.totalorder %v8183_v54, %v1148_v56  ;;  %v2370_v33 = vpop.f32.mrf.mxu0  ;;  %v9844_v26 = vpop.f32.mrf.mxu1 }
 0x384   :  { %vm1468_vm3 = vmor %vm718_vm0, %vm1343_vm1 }
 0x385   :  { %v6722_v42 = vsel %vm1468_vm3, 1.0, %v12058_v43 }
 0x386   :  { %3405 = vmatmul.f32.gmra.mxu2 %v9848_v6  ;;  %7347 = vset.pattern.permute.xlu1 %v12060_v47 }
 0x387   :  { %3148 = vmatmul.f32.gmra.mxu1 %v12127_v18  ;;  %567 = vperm.xlu0 %7346, %v231_v58   ;;  %v1157_v18 = vpop.permute.xlu2 %1156 }
 0x388   :  { %6847 = vmatmul.msk.f32.gmra.mxu0 %vm1758_vm2, %v6722_v42  ;;  %1192 = vperm.xlu1 %7347, %v858_v48   ;;  %v9855_v56 = vpop.f32.mrf.mxu2  ;;  %v1154_v48 = vpop.permute.xlu0 %1153  ;;  %v6723_v42 = vsel %vm1469_vm6, 1.0, %v12058_v43  ;;  %vm1346_vm10 = vcmp.eq.s32.totalorder %v8183_v54, %v1157_v18 }
 0x389   :  { %vm1345_vm8 = vcmp.eq.s32.totalorder %v8183_v54, %v1154_v48 }
 0x38a   :  { %v7303_v40 = vpop.permute.xlu1 %7302  ;;  %vm1470_vm9 = vmor %vm720_vm7, %vm1345_vm8 }
 0x38b   :  { %v7304_v10 = vunpack.i.l.bf16 %v7303_v40  ;;  %v2373_v1 = vpop.f32.mrf.mxu0  ;;  %v9859_v23 = vpop.f32.mrf.mxu1 }
 0x38c   :  { %v7349_v21 = vpack.i.bf16 %v2373_v1, %v2370_v33 }
 0x38d   :  { %v9864_v58 = vsel %vm2926_vm11, %v9400_v53, %v7304_v10  ;;  %v7305_v53 = vunpack.i.h.bf16 %v7303_v40  ;;  %v859_v10 = vadd.s32 16, %v232_v41  ;;  %v6724_v40 = vsel %vm1470_vm9, 1.0, %v12058_v43 }
 0x38e   :  { %3408 = vmatmul.f32.gmra.mxu2 %v9864_v58  ;;  %7350 = vrot.lane.b32.xlu2 %v7349_v21, %s7958_s0 }
 0x38f   :  { %3151 = vmatmul.f32.gmra.mxu1 %v12128_v3  ;;  %573 = vperm.xlu0 %7346, %v233_v61   ;;  %v1160_v14 = vpop.permute.xlu2 %1159 }
 0x390   :  { %6848 = vmatmul.msk.f32.gmra.mxu0 %vm1758_vm2, %v6723_v42  ;;  %7348 = vset.pattern.permute.xlu1 %v12059_v59  ;;  %v9873_v33 = vpop.f32.mrf.mxu2  ;;  %v9883_v42 = vsel %vm2926_vm11, %v9423_v36, %v7305_v53  ;;  %vm1347_vm14 = vcmp.eq.s32.totalorder %v8183_v54, %v1160_v14 }
 0x391   :  { %570 = vperm.xlu1 %7348, %v232_v41  }
 0x392   :  { %v532_v21 = vpop.permute.xlu1 %531 }
 0x393   :  { %v9877_v1 = vpop.f32.mrf.mxu0  ;;  %v9879_v3 = vpop.f32.mrf.mxu1  ;;  %vm721_vm12 = vcmp.eq.s32.totalorder %v8183_v54, %v532_v21 }
 0x394   :  { %vm1471_vm13 = vmor %vm721_vm12, %vm1346_vm10 }
 0x396   :  { %3411 = vmatmul.f32.gmra.mxu2 %v9883_v42  ;;  %1195 = vperm.xlu2 %7340, %v859_v10   ;;  %v6725_v10 = vsel %vm1471_vm13, 1.0, %v12058_v43 }
 0x397   :  { %3154 = vmatmul.f32.gmra.mxu1 %v9405_v7 }
 0x398   :  { %6849 = vmatmul.msk.f32.gmra.mxu0 %vm1758_vm2, %v6724_v40  ;;  %v9891_v48 = vpop.f32.mrf.mxu2  ;;  %v7310_v41 = vpop.permute.xlu0 %7309 }
 0x399   :  { %12129 = vst [vmem:[#allocation30_spill] sm:$0xff] %v9891_v48  ;;  %7354 = vset.pattern.permute.xlu1 %v12060_v47  ;;  %v7311_v36 = vunpack.i.l.bf16 %v7310_v41  ;;  %v7312_v21 = vunpack.i.h.bf16 %v7310_v41  ;;  %v7318_v40 = vpop.permute.xlu2 %7317 }
 0x39a   :  { %1198 = vperm.xlu1 %7354, %v860_v19   ;;  %v535_v61 = vpop.permute.xlu1 %534  ;;  %v7319_v41 = vunpack.i.l.bf16 %v7318_v40 }
 0x39b   :  { %v9894_v53 = vpop.f32.mrf.mxu0  ;;  %v9896_v18 = vpop.f32.mrf.mxu1  ;;  %v9901_v7 = vsel %vm2926_vm11, %v9447_v57, %v7311_v36  ;;  %vm722_vm15 = vcmp.eq.s32.totalorder %v8183_v54, %v535_v61  ;;  %v9917_v17 = vsel %vm2926_vm11, %v9473_v11, %v7312_v21 }
 0x39c   :  { %vm1472_vm0 = vmor %vm722_vm15, %vm1347_vm14 }
 0x39d   :  { %v6726_v14 = vsel %vm1472_vm0, 1.0, %v12058_v43 }
 0x39e   :  { %3414 = vmatmul.f32.gmra.mxu2 %v9901_v7  ;;  %7390 = vset.pattern.permute.xlu2 %v12059_v59 }
 0x39f   :  { %3157 = vmatmul.f32.gmra.mxu1 %v9430_v4 }
 0x3a0   :  { %6850 = vmatmul.msk.f32.gmra.mxu0 %vm1758_vm2, %v6725_v10  ;;  %v9907_v19 = vpop.f32.mrf.mxu2  ;;  %v538_v4 = vpop.permute.xlu0 %537 }
 0x3a1   :  { %12130 = vst [vmem:[#allocation31_spill] sm:$0xff] %v9907_v19  ;;  %vm723_vm1 = vcmp.eq.s32.totalorder %v8183_v54, %v538_v4  ;;  %v1166_v10 = vpop.permute.xlu2 %1165 }
 0x3a2   :  { %vm1349_vm6 = vcmp.eq.s32.totalorder %v8183_v54, %v1166_v10 }
 0x3a3   :  { %v9911_v48 = vpop.f32.mrf.mxu0  ;;  %v1163_v57 = vpop.permute.xlu1 %1162 }
 0x3a4   :  { %v9913_v36 = vpop.f32.mrf.mxu1  ;;  %vm1348_vm3 = vcmp.eq.s32.totalorder %v8183_v54, %v1163_v57  ;;  %v9934_v57 = vsel %vm2926_vm11, %v9497_v12, %v7319_v41 }
 0x3a5   :  { %12131 = vst [vmem:[#allocation24_spill] sm:$0xff] %v9913_v36  ;;  %vm1473_vm4 = vmor %vm723_vm1, %vm1348_vm3 }
 0x3a6   :  { %3417 = vmatmul.f32.gmra.mxu2 %v9917_v17  ;;  %v6727_v4 = vsel %vm1473_vm4, 1.0, %v12058_v43 }
 0x3a7   :  { %3160 = vmatmul.f32.gmra.mxu1 %v9454_v37  ;;  %v7320_v37 = vunpack.i.h.bf16 %v7318_v40 }
 0x3a8   :  { %6851 = vmatmul.msk.f32.gmra.mxu0 %vm1758_vm2, %v6726_v14  ;;  %v9925_v61 = vpop.f32.mrf.mxu2  ;;  %v544_v14 = vpop.permute.xlu0 %543 }
 0x3a9   :  { %12132 = vst [vmem:[#allocation45_spill] sm:$0xff] %v9925_v61  ;;  %v7324_v12 = vpop.permute.xlu2 %7323  ;;  %vm725_vm9 = vcmp.eq.s32.totalorder %v8183_v54, %v544_v14 }
 0x3aa   :  { %v7325_v40 = vunpack.i.l.bf16 %v7324_v12  ;;  %v7326_v14 = vunpack.i.h.bf16 %v7324_v12 }
 0x3ab   :  { %v9927_v11 = vpop.f32.mrf.mxu0 }
 0x3ac   :  { %v9929_v21 = vpop.f32.mrf.mxu1  ;;  %v541_v19 = vpop.permute.xlu1 %540 }
 0x3ad   :  { %12133 = vst [vmem:[#allocation46_spill] sm:$0xff] %v9929_v21  ;;  %vm724_vm5 = vcmp.eq.s32.totalorder %v8183_v54, %v541_v19 }
 0x3ae   :  { %3420 = vmatmul.f32.gmra.mxu2 %v9934_v57  ;;  %vm1474_vm7 = vmor %vm724_vm5, %vm1349_vm6 }
 0x3af   :  { %3163 = vmatmul.f32.gmra.mxu1 %v9478_v30  ;;  %v9949_v30 = vsel %vm2926_vm11, %v9523_v28, %v7320_v37  ;;  %v6728_v19 = vsel %vm1474_vm7, 1.0, %v12058_v43 }
 0x3b0   :  { %6852 = vmatmul.msk.f32.gmra.mxu0 %vm1758_vm2, %v6727_v4  ;;  %v9941_v61 = vpop.f32.mrf.mxu2 }
 0x3b1   :  { %12134 = vst [vmem:[#allocation47_spill] sm:$0xff] %v9941_v61  ;;  %v550_v28 = vpop.permute.xlu2 %549  ;;  %v9965_v61 = vsel %vm2926_vm11, %v9544_v34, %v7325_v40 }
 0x3b2   :  { %vm727_vm15 = vcmp.eq.s32.totalorder %v8183_v54, %v550_v28 }
 0x3b4   :  { %v9943_v36 = vpop.f32.mrf.mxu0  ;;  %v9945_v21 = vpop.f32.mrf.mxu1 }
 0x3b5   :  { %12135 = vst [vmem:[#allocation48_spill] sm:$0xff] %v9945_v21  ;;  %v1169_v41 = vpop.permute.xlu1 %1168 }
 0x3b6   :  { %3423 = vmatmul.f32.gmra.mxu2 %v9949_v30  ;;  %vm1350_vm8 = vcmp.eq.s32.totalorder %v8183_v54, %v1169_v41 }
 0x3b7   :  { %3166 = vmatmul.f32.gmra.mxu1 %v9501_v31  ;;  %vm1475_vm10 = vmor %vm725_vm9, %vm1350_vm8  ;;  %v547_v31 = vpop.permute.xlu0 %546 }
 0x3b8   :  { %6853 = vmatmul.msk.f32.gmra.mxu0 %vm1758_vm2, %v6728_v19  ;;  %v9961_v37 = vpop.f32.mrf.mxu2  ;;  %v6729_v41 = vsel %vm1475_vm10, 1.0, %v12058_v43  ;;  %vm726_vm13 = vcmp.eq.s32.totalorder %v8183_v54, %v547_v31 }
 0x3b9   :  { %12137 = vst [vmem:[#allocation50_spill] sm:$0xff] %v9961_v37 }
 0x3bc   :  { %v9957_v10 = vpop.f32.mrf.mxu0  ;;  %v9959_v4 = vpop.f32.mrf.mxu1 }
 0x3bd   :  { %12136 = vst [vmem:[#allocation49_spill] sm:$0xff] %v9959_v4  ;;  %v1172_v21 = vpop.permute.xlu1 %1171  ;;  %v9981_v4 = vsel %vm2926_vm11, %v9571_v44, %v7326_v14 }
 0x3be   :  { %3426 = vmatmul.f32.gmra.mxu2 %v9965_v61  ;;  %vm1351_vm12 = vcmp.eq.s32.totalorder %v8183_v54, %v1172_v21  ;;  %v553_v21 = vpop.permute.xlu2 %552 }
 0x3bf   :  { %3169 = vmatmul.f32.gmra.mxu1 %v9527_v16  ;;  %vm1476_vm14 = vmor %vm726_vm13, %vm1351_vm12  ;;  %v1175_v16 = vpop.permute.xlu0 %1174  ;;  %vm728_vm3 = vcmp.eq.s32.totalorder %v8183_v54, %v553_v21 }
 0x3c0   :  { %6854 = vmatmul.msk.f32.gmra.mxu0 %vm1758_vm2, %v6729_v41  ;;  %vm1352_vm0 = vcmp.eq.s32.totalorder %v8183_v54, %v1175_v16  ;;  %v9986_v12 = vpop.f32.mrf.mxu2  ;;  %v6730_v31 = vsel %vm1476_vm14, 1.0, %v12058_v43 }
 0x3c1   :  { %12139 = vst [vmem:[#allocation52_spill] sm:$0xff] %v9986_v12  ;;  %vm1477_vm1 = vmor %vm727_vm15, %vm1352_vm0 }
 0x3c2   :  { %v6731_v28 = vsel %vm1477_vm1, 1.0, %v12058_v43 }
 0x3c4   :  { %v9973_v19 = vpop.f32.mrf.mxu0  ;;  %v9975_v34 = vpop.f32.mrf.mxu1 }
 0x3c5   :  { %12138 = vst [vmem:[#allocation51_spill] sm:$0xff] %v9975_v34  ;;  %v7355_v40 = vpack.i.bf16 %v9973_v19, %v9957_v10 }
 0x3c6   :  { %3429 = vmatmul.f32.gmra.mxu2 %v9981_v4  ;;  %v556_v16 = vpop.permute.xlu2 %555 }
 0x3c7   :  { %3172 = vmatmul.f32.gmra.mxu1 %v9550_v2  ;;  %7356 = vrot.lane.b32.xlu2 %v7355_v40, %s7958_s0  ;;  %vm729_vm6 = vcmp.eq.s32.totalorder %v8183_v54, %v556_v16 }
 0x3c8   :  { %6855 = vmatmul.msk.f32.gmra.mxu0 %vm1758_vm2, %v6730_v31  ;;  %v9999_v2 = vpop.f32.mrf.mxu2 }
 0x3c9   :  { %12140 = vst [vmem:[#allocation53_spill] sm:$0xff] %v9999_v2 }
 0x3cc   :  { %v9992_v44 = vpop.f32.mrf.mxu0  ;;  %v9994_v41 = vpop.f32.mrf.mxu1 }
 0x3cf   :  { %3175 = vmatmul.f32.gmra.mxu1 %v9576_v25 }
 0x3d0   :  { %6856 = vmatmul.msk.f32.gmra.mxu0 %vm1758_vm2, %v6731_v28  ;;  %v7331_v14 = vpop.permute.xlu1 %7330  ;;  %v1181_v28 = vpop.permute.xlu0 %1180 }
 0x3d1   :  { %v7332_v40 = vunpack.i.l.bf16 %v7331_v14  ;;  %v7333_v34 = vunpack.i.h.bf16 %v7331_v14  ;;  %vm1354_vm7 = vcmp.eq.s32.totalorder %v8183_v54, %v1181_v28 }
 0x3d2   :  { %vm1479_vm8 = vmor %vm729_vm6, %vm1354_vm7 }
 0x3d3   :  { %v10003_v37 = vsel %vm2926_vm11, %v9595_v45, %v7332_v40  ;;  %v559_v45 = vpop.permute.xlu2 %558  ;;  %v10016_v40 = vpop.f32.mrf.mxu2 }
 0x3d4   :  { %v10005_v31 = vpop.f32.mrf.mxu0  ;;  %v10007_v12 = vpop.f32.mrf.mxu1  ;;  %3432 = vmatmul.f32.gmra.mxu2 %v10003_v37  ;;  %12143 = vst [vmem:[#allocation56_spill] sm:$0xff] %v10016_v40  ;;  %vm730_vm9 = vcmp.eq.s32.totalorder %v8183_v54, %v559_v45 }
 0x3d5   :  { %12141 = vst [vmem:[#allocation54_spill] sm:$0xff] %v10005_v31  ;;  %v7360_v25 = vpack.i.bf16 %v10005_v31, %v9992_v44  ;;  %v10021_v31 = vsel %vm2926_vm11, %v9622_v8, %v7333_v34  ;;  %v6733_v8 = vsel %vm1479_vm8, 1.0, %v12058_v43 }
 0x3d6   :  { %12142 = vst [vmem:[#allocation55_spill] sm:$0xff] %v10007_v12 }
 0x3d7   :  { %3178 = vmatmul.f32.gmra.mxu1 %v9602_v60  ;;  %7361 = vrot.lane.b32.xlu0 %v7360_v25, %s7958_s0 }
 0x3d8   :  { %v1178_v2 = vpop.permute.xlu1 %1177  ;;  %v1184_v25 = vpop.permute.xlu0 %1183 }
 0x3d9   :  { %vm1353_vm4 = vcmp.eq.s32.totalorder %v8183_v54, %v1178_v2  ;;  %vm1355_vm10 = vcmp.eq.s32.totalorder %v8183_v54, %v1184_v25 }
 0x3da   :  { %vm1478_vm5 = vmor %vm728_vm3, %vm1353_vm4 }
 0x3db   :  { %v6732_v12 = vsel %vm1478_vm5, 1.0, %v12058_v43  ;;  %v10045_v16 = vpop.f32.mrf.mxu2  ;;  %vm1480_vm12 = vmor %vm730_vm9, %vm1355_vm10 }
 0x3dc   :  { %v10023_v14 = vpop.f32.mrf.mxu0  ;;  %v10025_v60 = vpop.f32.mrf.mxu1  ;;  %6857 = vmatmul.msk.f32.gmra.mxu0 %vm1758_vm2, %v6732_v12  ;;  %3435 = vmatmul.f32.gmra.mxu2 %v10021_v31  ;;  %12147 = vst [vmem:[#allocation60_spill] sm:$0xff] %v10045_v16 }
 0x3dd   :  { %12144 = vst [vmem:[#allocation57_spill] sm:$0xff] %v10025_v60 }
 0x3df   :  { %3181 = vmatmul.f32.gmra.mxu1 %v9626_v46  ;;  %v1187_v46 = vpop.permute.xlu2 %1186 }
 0x3e0   :  { %v7336_v21 = vpop.permute.xlu1 %7335  ;;  %vm1356_vm13 = vcmp.eq.s32.totalorder %v8183_v54, %v1187_v46 }
 0x3e1   :  { %v7337_v2 = vunpack.i.l.bf16 %v7336_v21 }
 0x3e3   :  { %v10035_v34 = vsel %vm2926_vm11, %v9644_v20, %v7337_v2  ;;  %v7338_v20 = vunpack.i.h.bf16 %v7336_v21  ;;  %v10064_v21 = vpop.f32.mrf.mxu2 }
 0x3e4   :  { %v10037_v40 = vpop.f32.mrf.mxu0  ;;  %v10039_v12 = vpop.f32.mrf.mxu1  ;;  %6858 = vmatmul.msk.f32.gmra.mxu0 %vm1758_vm2, %v6733_v8  ;;  %3438 = vmatmul.f32.gmra.mxu2 %v10035_v34  ;;  %v6734_v8 = vsel %vm1480_vm12, 1.0, %v12058_v43 }
 0x3e5   :  { %12145 = vst [vmem:[#allocation58_spill] sm:$0xff] %v10037_v40  ;;  %v7365_v28 = vpack.i.bf16 %v10037_v40, %v10023_v14  ;;  %v10054_v45 = vsel %vm2926_vm11, %v9690_v55, %v7338_v20 }
 0x3e6   :  { %12146 = vst [vmem:[#allocation59_spill] sm:$0xff] %v10039_v12 }
 0x3e7   :  { %3184 = vmatmul.f32.gmra.mxu1 %v9651_v22  ;;  %7366 = vrot.lane.b32.xlu1 %v7365_v28, %s7958_s0  ;;  %v1190_v22 = vpop.permute.xlu2 %1189 }
 0x3e8   :  { %v562_v2 = vpop.permute.xlu1 %561  ;;  %vm1357_vm0 = vcmp.eq.s32.totalorder %v8183_v54, %v1190_v22 }
 0x3e9   :  { %vm731_vm14 = vcmp.eq.s32.totalorder %v8183_v54, %v562_v2 }
 0x3ea   :  { %vm1481_vm15 = vmor %vm731_vm14, %vm1356_vm13 }
 0x3eb   :  { %v6735_v16 = vsel %vm1481_vm15, 1.0, %v12058_v43 }
 0x3ec   :  { %v10056_v25 = vpop.f32.mrf.mxu0  ;;  %v10058_v12 = vpop.f32.mrf.mxu1  ;;  %6859 = vmatmul.msk.f32.gmra.mxu0 %vm1758_vm2, %v6734_v8  ;;  %3441 = vmatmul.f32.gmra.mxu2 %v10054_v45 }
 0x3ed   :  { %12148 = vst [vmem:[#allocation61_spill] sm:$0xff] %v10056_v25 }
 0x3ef   :  { %3187 = vmatmul.f32.gmra.mxu1 %v9674_v29  ;;  %v7351_v40 = vpop.permute.xlu2 %7350 }
 0x3f0   :  { %v565_v28 = vpop.permute.xlu1 %564 }
 0x3f1   :  { %v7343_v55 = vpop.permute.xlu0 %7342  ;;  %vm732_vm1 = vcmp.eq.s32.totalorder %v8183_v54, %v565_v28 }
 0x3f2   :  { %v7344_v20 = vunpack.i.l.bf16 %v7343_v55  ;;  %vm1482_vm3 = vmor %vm732_vm1, %vm1357_vm0  ;;  %v7345_v2 = vunpack.i.h.bf16 %v7343_v55 }
 0x3f3   :  { %v6736_v22 = vsel %vm1482_vm3, 1.0, %v12058_v43 }
 0x3f4   :  { %v10068_v60 = vpop.f32.mrf.mxu0  ;;  %v10070_v8 = vpop.f32.mrf.mxu1  ;;  %6860 = vmatmul.msk.f32.gmra.mxu0 %vm1758_vm2, %v6735_v16  ;;  %v10075_v46 = vsel %vm2926_vm11, %v9717_v27, %v7344_v20 }
 0x3f5   :  { %12149 = vst [vmem:[#allocation62_spill] sm:$0xff] %v10068_v60  ;;  %v7370_v29 = vpack.i.bf16 %v10068_v60, %v10056_v25  ;;  %3444 = vmatmul.f32.gmra.mxu2 %v10075_v46  ;;  %v10084_v16 = vpop.f32.mrf.mxu2 }
 0x3f6   :  { %12150 = vst [vmem:[#allocation63_spill] sm:$0xff] %v10075_v46 }
 0x3f7   :  { %3190 = vmatmul.f32.gmra.mxu1 %v9697_v51  ;;  %7371 = vrot.lane.b32.xlu2 %v7370_v29, %s7958_s0  ;;  %v10094_v51 = vsel %vm2926_vm11, %v9743_v24, %v7345_v2  ;;  %v7352_v29 = vunpack.i.l.bf16 %v7351_v40  ;;  %v1196_v25 = vpop.permute.xlu2 %1195 }
 0x3f8   :  { %12151 = vst [vmem:[#allocation64_spill] sm:$0xff] %v10094_v51  ;;  %vm1359_vm8 = vcmp.eq.s32.totalorder %v8183_v54, %v1196_v25 }
 0x3f9   :  { %v568_v27 = vpop.permute.xlu0 %567  ;;  %v10108_v24 = vsel %vm2926_vm11, %v9762_v62, %v7352_v29 }
 0x3fa   :  { %v1193_v20 = vpop.permute.xlu1 %1192  ;;  %vm733_vm4 = vcmp.eq.s32.totalorder %v8183_v54, %v568_v27  ;;  %12153 = vst [vmem:[#allocation66_spill] sm:$0xff] %v10108_v24 }
 0x3fb   :  { %vm1358_vm5 = vcmp.eq.s32.totalorder %v8183_v54, %v1193_v20 }
 0x3fc   :  { %v10089_v28 = vpop.f32.mrf.mxu1  ;;  %6861 = vmatmul.msk.f32.gmra.mxu0 %vm1758_vm2, %v6736_v22  ;;  %vm1483_vm6 = vmor %vm733_vm4, %vm1358_vm5  ;;  %v7353_v22 = vunpack.i.h.bf16 %v7351_v40  ;;  %v248_v40 = vld [vmem:[%s7971_s5 + $0x3c8] sm:$0xff] }
 0x3fd   :  { %v10096_v55 = vpop.f32.mrf.mxu0  ;;  %3447 = vmatmul.f32.gmra.mxu2 %v10094_v51  ;;  %v6737_v20 = vsel %vm1483_vm6, 1.0, %v12058_v43 }
 0x3fe   :  { %12152 = vst [vmem:[#allocation65_spill] sm:$0xff] %v10096_v55  ;;  %v10127_v25 = vsel %vm2926_vm11, %v9785_v38, %v7353_v22 }
 0x3ff   :  { %3193 = vmatmul.f32.gmra.mxu1 %v9725_v35  ;;  %12155 = vst [vmem:[#allocation68_spill] sm:$0xff] %v10127_v25 }
 0x401   :  { %v10100_v27 = vpop.f32.mrf.mxu2 }
 0x403   :  { %v571_v60 = vpop.permute.xlu1 %570 }
 0x404   :  { %v10103_v46 = vpop.f32.mrf.mxu1  ;;  %6862 = vmatmul.msk.f32.gmra.mxu0 %vm1758_vm2, %v6737_v20  ;;  %vm734_vm7 = vcmp.eq.s32.totalorder %v8183_v54, %v571_v60  ;;  %v574_v60 = vpop.permute.xlu0 %573 }
 0x405   :  { %v10111_v2 = vpop.f32.mrf.mxu0  ;;  %3450 = vmatmul.f32.gmra.mxu2 %v10108_v24  ;;  %vm1484_vm9 = vmor %vm734_vm7, %vm1359_vm8  ;;  %vm735_vm12 = vcmp.eq.s32.totalorder %v8183_v54, %v574_v60 }
 0x406   :  { %12154 = vst [vmem:[#allocation67_spill] sm:$0xff] %v10111_v2  ;;  %v7375_v35 = vpack.i.bf16 %v10111_v2, %v10096_v55  ;;  %v6738_v29 = vsel %vm1484_vm9, 1.0, %v12058_v43 }
 0x407   :  { %3196 = vmatmul.f32.gmra.mxu1 %v9749_v9 }
 0x408   :  { %7376 = vrot.lane.b32.xlu0 %v7375_v35, %s7958_s0 }
 0x409   :  { %v10119_v62 = vpop.f32.mrf.mxu2 }
 0x40c   :  { %v10122_v20 = vpop.f32.mrf.mxu1  ;;  %v1199_v24 = vpop.permute.xlu1 %1198  ;;  %6863 = vmatmul.msk.f32.gmra.mxu0 %vm1758_vm2, %v6738_v29  ;;  %v249_v29 = vld [vmem:[%s7971_s5 + $0x3d0] sm:$0xff] }
 0x40d   :  { %vm1360_vm10 = vcmp.eq.s32.totalorder %v8183_v54, %v1199_v24  ;;  %v10130_v9 = vpop.f32.mrf.mxu0  ;;  %3453 = vmatmul.f32.gmra.mxu2 %v10127_v25  ;;  %v876_v2 = vadd.s32 16, %v249_v29  ;;  %v875_v25 = vadd.s32 16, %v248_v40 }
 0x40e   :  { %12156 = vst [vmem:[#allocation69_spill] sm:$0xff] %v10130_v9  ;;  %vm1485_vm13 = vmor %vm735_vm12, %vm1360_vm10  ;;  %vm4227_vm12 = vcmask 785408  }
 0x40f   :  { %3199 = vmatmul.f32.gmra.mxu1 %v9771_v50  ;;  %v6739_v38 = vsel %vm1485_vm13, 1.0, %v12058_v43  ;;  %vm4852_vm13 = vcmask 1045504  }
 0x410   :  { %618 = vperm.xlu0 %7346, %v248_v40  }
 0x411   :  { %v10136_v35 = vpop.f32.mrf.mxu2 }
 0x414   :  { %v10140_v22 = vpop.f32.mrf.mxu1  ;;  %6864 = vmatmul.msk.f32.gmra.mxu0 %vm1758_vm2, %v6739_v38  ;;  %v251_v38 = vld [vmem:[%s7971_s5 + $0x3e0] sm:$0xff] }
 0x415   :  { %v10143_v24 = vpop.f32.mrf.mxu0  ;;  %v878_v43 = vadd.s32 16, %v251_v38 }
 0x416   :  { %12157 = vst [vmem:[#allocation70_spill] sm:$0xff] %v10143_v24  ;;  %v7380_v60 = vpack.i.bf16 %v10143_v24, %v10130_v9 }
 0x417   :  { %3202 = vmatmul.f32.gmra.mxu1 %v9791_v15 }
 0x418   :  { %7381 = vrot.lane.b32.xlu1 %v7380_v60, %s7958_s0  ;;  %7391 = vset.pattern.permute.xlu0 %v12060_v47 }
 0x419   :  { %v10150_v50 = vpop.f32.mrf.mxu2  ;;  %1246 = vperm.xlu0 %7391, %v876_v2  }
 0x41c   :  { %v3158_v55 = vpop.f32.mrf.mxu1 }
 0x41d   :  { %v10152_v51 = vpop.f32.mrf.mxu0 }
 0x41e   :  { %12158 = vst [vmem:[#allocation71_spill] sm:$0xff] %v10152_v51 }
 0x41f   :  { %3205 = vmatmul.f32.gmra.mxu1 %v9832_v13 }
 0x420   :  { %1243 = vperm.xlu1 %7354, %v875_v25  }
 0x421   :  { %v7357_v54 = vpop.permute.xlu2 %7356  ;;  %v3415_v24 = vpop.f32.mrf.mxu2  ;;  %1252 = vperm.xlu0 %7391, %v878_v43  }
 0x422   :  { %v7358_v15 = vunpack.i.l.bf16 %v7357_v54  ;;  %v7359_v13 = vunpack.i.h.bf16 %v7357_v54 }
 0x424   :  { %v10156_v9 = vpop.f32.mrf.mxu1  ;;  %v10160_v47 = vsel %vm2926_vm11, %v9877_v1, %v7358_v15  ;;  %v10174_v25 = vsel %vm2926_vm11, %v9894_v53, %v7359_v13 }
 0x425   :  { %v10162_v2 = vpop.f32.mrf.mxu0  ;;  %3456 = vmatmul.f32.gmra.mxu2 %v10160_v47  ;;  %12160 = vst [vmem:[#allocation73_spill] sm:$0xff] %v10174_v25 }
 0x426   :  { %12159 = vst [vmem:[#allocation72_spill] sm:$0xff] %v10162_v2  ;;  %v7385_v40 = vpack.i.bf16 %v10162_v2, %v10152_v51  ;;  %v10187_v51 = vld [vmem:[%s8001_s29] ss:$0 sm:$0xff] }
 0x427   :  { %3208 = vmatmul.f32.gmra.mxu1 %v9848_v6  ;;  %v3099_v53 = vadd.f32 %v10187_v51, %v9827_v0  ;;  %v3141_v13 = vadd.f32 %v10187_v51, %v10058_v12 }
 0x428   :  { %7386 = vrot.lane.b32.xlu2 %v7385_v40, %s7958_s0  ;;  %v250_v40 = vld [vmem:[%s7971_s5 + $0x3d8] sm:$0xff]  ;;  %s7959_s5 = smov 32  }
 0x429   :  { %v10169_v43 = vpop.f32.mrf.mxu2  ;;  %7773 = vset.pattern.permute.xlu0 %v12059_v59 }
 0x42c   :  { %v3164_v1 = vpop.f32.mrf.mxu1 }
 0x42d   :  { %v10176_v60 = vpop.f32.mrf.mxu0  ;;  %3459 = vmatmul.f32.gmra.mxu2 %v10174_v25 }
 0x42e   :  { %12161 = vst [vmem:[#allocation74_spill] sm:$0xff] %v10176_v60 }
 0x42f   :  { %3211 = vmatmul.f32.gmra.mxu1 %v9864_v58  ;;  %v3096_v58 = vadd.f32 %v10187_v51, %v9816_v39  ;;  %v10211_v39 = vadd.f32 %v10064_v21, %v3141_v13 }
 0x430   :  { %621 = vperm.xlu2 %7390, %v249_v29  }
 0x431   :  { %v10180_v6 = vpop.f32.mrf.mxu2  ;;  %v10207_v0 = vadd.f32 %v9799_v49, %v3096_v58  ;;  %12163 = vst [vmem:[#allocation76_spill] sm:$0xff] %v10211_v39  ;;  %v3159_v49 = vadd.f32 %v10187_v51, %v3158_v55  ;;  %v3156_v58 = vadd.f32 %v10187_v51, %v10140_v22 }
 0x433   :  { %v3416_v13 = vadd.f32 %v3415_v24, %v3159_v49 }
 0x434   :  { %v10182_v54 = vpop.f32.mrf.mxu1 }
 0x435   :  { %v2436_v15 = vpop.f32.mrf.mxu0 }
 0x436   :  { %v7392_v2 = vpack.i.bf16 %v2436_v15, %v10176_v60  ;;  %v3144_v15 = vadd.f32 %v10187_v51, %v10070_v8  ;;  %v877_v60 = vadd.s32 16, %v250_v40 }
 0x437   :  { %3214 = vmatmul.f32.gmra.mxu1 %v9883_v42  ;;  %v10204_v42 = vadd.f32 %v9811_v32, %v3099_v53  ;;  %v3105_v32 = vadd.f32 %v10187_v51, %v9859_v23  ;;  %v11998_v53 = vmax.f32 %v10211_v39, 0.0  ;;  %v4278_v39 = vld [vmem:[%s8006_s3 + $0x28] sm:$0xff] }
 0x438   :  { %624 = vperm.xlu2 %7390, %v250_v40   ;;  %7393 = vrot.lane.b32.xlu1 %v7392_v2, %s7958_s0  ;;  %v10214_v12 = vadd.f32 %v10084_v16, %v3144_v15  ;;  %v12004_v40 = vmax.f32 %v10207_v0, 0.0 }
 0x439   :  { %v10195_v29 = vpop.f32.mrf.mxu2  ;;  %12162 = vst [vmem:[#allocation75_spill] sm:$0xff] %v10204_v42  ;;  %v11994_v8 = vmax.f32 %v10204_v42, 0.0 }
 0x43a   :  { %12164 = vst [vmem:[#allocation77_spill] sm:$0xff] %v10214_v12 }
 0x43b   :  { %v7397_v16 = vpack.i.bf16 %v11994_v8, %v12004_v40  ;;  %v10242_v8 = vadd.f32 %v9839_v52, %v3105_v32  ;;  %v10256_v52 = vmax.f32 %v3416_v13, 0.0  ;;  %v3165_v32 = vadd.f32 %v10187_v51, %v3164_v1 }
 0x43c   :  { %v10201_v25 = vpop.f32.mrf.mxu1 }
 0x43d   :  { %v2439_v2 = vpop.f32.mrf.mxu0  ;;  %12166 = vst [vmem:[#allocation79_spill] sm:$0xff] %v10256_v52 }
 0x43e   :  { %v7402_v15 = vpack.i.bf16 %v11998_v53, %v2439_v2 }
 0x43f   :  { %3217 = vmatmul.f32.gmra.mxu1 %v9901_v7  ;;  %v11997_v7 = vmax.f32 %v10214_v12, 0.0 }
 0x440   :  { %627 = vperm.xlu2 %7390, %v251_v38   ;;  %1249 = vperm.xlu1 %7354, %v877_v60   ;;  %v3102_v38 = vadd.f32 %v10187_v51, %v9844_v26  ;;  %v3147_v60 = vadd.f32 %v10187_v51, %v10089_v28  ;;  %v3413_v28 = vadd.f32 %v10150_v50, %v3156_v58 }
 0x441   :  { %v10233_v23 = vpop.f32.mrf.mxu2 }
 0x442   :  { %v10246_v26 = vadd.f32 %v10100_v27, %v3147_v60  ;;  %v10252_v22 = vadd.f32 %v9823_v5, %v3102_v38  ;;  %v12001_v27 = vmax.f32 %v10242_v8, 0.0  ;;  %v10260_v2 = vmax.f32 %v3413_v28, 0.0 }
 0x443   :  { %v3422_v38 = vadd.f32 %v10180_v6, %v3165_v32 }
 0x444   :  { %v10223_v21 = vpop.f32.mrf.mxu1  ;;  %12165 = vst [vmem:[#allocation78_spill] sm:$0xff] %v10246_v26  ;;  %v11996_v50 = vmax.f32 %v10246_v26, 0.0  ;;  %v7412_v1 = vpack.i.bf16 %v10256_v52, %v10260_v2 }
 0x445   :  { %v2442_v55 = vpop.f32.mrf.mxu0  ;;  %12167 = vst [vmem:[#allocation80_spill] sm:$0xff] %v10260_v2  ;;  %v10287_v6 = vmax.f32 %v3422_v38, 0.0 }
 0x446   :  { %v7407_v42 = vpack.i.bf16 %v11997_v7, %v2442_v55  ;;  %v12173_v7 = vld [vmem:[#allocation50_spill] sm:$0xff] }
 0x447   :  { %3220 = vmatmul.f32.gmra.mxu1 %v9917_v17 }
 0x448   :  { %7398 = vrot.lane.b32.xlu2 %v7397_v16, %s7959_s5  ;;  %7403 = vrot.lane.b32.xlu1 %v7402_v15, %s7958_s0 }
 0x449   :  { %7408 = vrot.lane.b32.xlu0 %v7407_v42, %s7958_s0  ;;  %v7362_v24 = vpop.permute.xlu0 %7361  ;;  %7772 = vset.pattern.permute.xlu1 %v12059_v59  ;;  %v12003_v42 = vmax.f32 %v10252_v22, 0.0  ;;  %v3162_v59 = vadd.f32 %v10187_v51, %v10156_v9  ;;  %v3430_v55 = vpop.f32.mrf.mxu2  ;;  %v3150_v9 = vadd.f32 %v10187_v51, %v10103_v46 }
 0x44a   :  { %v7363_v17 = vunpack.i.l.bf16 %v7362_v24  ;;  %v7364_v13 = vunpack.i.h.bf16 %v7362_v24  ;;  %v3111_v24 = vadd.f32 %v10187_v51, %v9896_v18 }
 0x44b   :  { %v3419_v58 = vadd.f32 %v10169_v43, %v3162_v59  ;;  %v10290_v15 = vadd.f32 %v10119_v62, %v3150_v9 }
 0x44c   :  { %v3176_v49 = vpop.f32.mrf.mxu1  ;;  %v10265_v5 = vsel %vm2926_vm11, %v9911_v48, %v7363_v17  ;;  %v7417_v48 = vpack.i.bf16 %v12001_v27, %v12003_v42  ;;  %v10298_v43 = vsel %vm2926_vm11, %v9927_v11, %v7364_v13  ;;  %v3108_v17 = vadd.f32 %v10187_v51, %v9879_v3  ;;  %v12180_v42 = vld [vmem:[#allocation46_spill] sm:$0xff] }
 0x44d   :  { %v2445_v16 = vpop.f32.mrf.mxu0  ;;  %3462 = vmatmul.f32.gmra.mxu2 %v10265_v5  ;;  %12168 = vst [vmem:[#allocation81_spill] sm:$0xff] %v10290_v15  ;;  %v10292_v28 = vmax.f32 %v3419_v58, 0.0  ;;  %v11995_v32 = vmax.f32 %v10290_v15, 0.0  ;;  %v10311_v59 = vadd.f32 %v9873_v33, %v3111_v24 }
 0x44e   :  { %v7422_v60 = vpack.i.bf16 %v11996_v50, %v2445_v16 }
 0x44f   :  { %3223 = vmatmul.f32.gmra.mxu1 %v9934_v57  ;;  %12169 = vst [vmem:[#allocation82_spill] sm:$0xff] %v10292_v28  ;;  %v7432_v46 = vpack.i.bf16 %v10287_v6, %v10292_v28  ;;  %v11999_v33 = vmax.f32 %v10311_v59, 0.0 }
 0x450   :  { %7423 = vrot.lane.b32.xlu2 %v7422_v60, %s7958_s0  ;;  %7413 = vrot.lane.b32.xlu1 %v7412_v1, %s7960_s21  ;;  %v10316_v60 = vadd.f32 %v9855_v56, %v3108_v17 }
 0x451   :  { %7418 = vrot.lane.b32.xlu0 %v7417_v48, %s7959_s5 }
 0x452   :  { %v12000_v48 = vmax.f32 %v10316_v60, 0.0 }
 0x454   :  { %v10294_v57 = vpop.f32.mrf.mxu1 }
 0x455   :  { %3465 = vmatmul.f32.gmra.mxu2 %v10298_v43 }
 0x457   :  { %3226 = vmatmul.f32.gmra.mxu1 %v9949_v30  ;;  %v3433_v62 = vpop.f32.mrf.mxu2 }
 0x458   :  { %7433 = vrot.lane.b32.xlu2 %v7432_v46, %s7960_s21  ;;  %v3177_v46 = vadd.f32 %v10187_v51, %v3176_v49 }
 0x459   :  { %v7367_v11 = vpop.permute.xlu1 %7366  ;;  %v2448_v16 = vpop.f32.mrf.mxu0 }
 0x45a   :  { %v7368_v38 = vunpack.i.l.bf16 %v7367_v11  ;;  %v7427_v18 = vpack.i.bf16 %v11995_v32, %v2448_v16  ;;  %v7369_v56 = vunpack.i.h.bf16 %v7367_v11  ;;  %v3174_v16 = vadd.f32 %v10187_v51, %v10223_v21 }
 0x45b   :  { %v3168_v21 = vadd.f32 %v10187_v51, %v10182_v54 }
 0x45c   :  { %v10318_v30 = vpop.f32.mrf.mxu1  ;;  %v10322_v3 = vsel %vm2926_vm11, %v9943_v36, %v7368_v38  ;;  %7428 = vrot.lane.b32.xlu1 %v7427_v18, %s7958_s0  ;;  %v7437_v36 = vpack.i.bf16 %v11999_v33, %v12000_v48  ;;  %v10341_v9 = vsel %vm2926_vm11, %v9957_v10, %v7369_v56  ;;  %v3434_v38 = vadd.f32 %v3433_v62, %v3177_v46 }
 0x45d   :  { %3468 = vmatmul.f32.gmra.mxu2 %v10322_v3  ;;  %v7457_v10 = vpack.i.bf16 %v10256_v52, %v9592_v63  ;;  %v3431_v18 = vadd.f32 %v3430_v55, %v3174_v16 }
 0x45f   :  { %3229 = vmatmul.f32.gmra.mxu1 %v9965_v61  ;;  %v10328_v1 = vpop.f32.mrf.mxu2  ;;  %v7372_v61 = vpop.permute.xlu2 %7371  ;;  %v10368_v62 = vmax.f32 %v3431_v18, 0.0 }
 0x460   :  { %v7373_v17 = vunpack.i.l.bf16 %v7372_v61  ;;  %v7374_v55 = vunpack.i.h.bf16 %v7372_v61  ;;  %v12170_v61 = vld [vmem:[#allocation51_spill] sm:$0xff] }
 0x461   :  { %v10331_v58 = vpop.f32.mrf.mxu0 }
 0x462   :  { %v10357_v56 = vsel %vm2926_vm11, %v9973_v19, %v7373_v17  ;;  %v3425_v19 = vadd.f32 %v10195_v29, %v3168_v21  ;;  %v10377_v16 = vsel %vm2926_vm11, %v9992_v44, %v7374_v55  ;;  %v3126_v29 = vadd.f32 %v10187_v51, %v12170_v61  ;;  %v12171_v44 = vld [vmem:[#allocation52_spill] sm:$0xff] }
 0x464   :  { %v10337_v13 = vpop.f32.mrf.mxu1  ;;  %7438 = vrot.lane.b32.xlu1 %v7437_v36, %s7959_s5  ;;  %v10383_v54 = vmax.f32 %v3425_v19, 0.0  ;;  %v12174_v19 = vld [vmem:[#allocation54_spill] sm:$0xff] }
 0x465   :  { %3471 = vmatmul.f32.gmra.mxu2 %v10341_v9 }
 0x467   :  { %3232 = vmatmul.f32.gmra.mxu1 %v9981_v4  ;;  %v10346_v24 = vpop.f32.mrf.mxu2  ;;  %v10361_v4 = vmax.f32 %v3434_v38, 0.0 }
 0x469   :  { %v10349_v11 = vpop.f32.mrf.mxu0  ;;  %v7472_v17 = vpack.i.bf16 %v10361_v4, %v10368_v62 }
 0x46c   :  { %7458 = vrot.lane.b32.xlu1 %v7457_v10, %s7958_s0  ;;  %v3188_v49 = vpop.f32.mrf.mxu1 }
 0x46d   :  { %3474 = vmatmul.f32.gmra.mxu2 %v10357_v56 }
 0x46f   :  { %3235 = vmatmul.f32.gmra.mxu1 %v10003_v37  ;;  %v10364_v36 = vpop.f32.mrf.mxu2  ;;  %v3129_v37 = vadd.f32 %v10187_v51, %v9994_v41  ;;  %v3383_v41 = vadd.f32 %v12173_v7, %v3126_v29 }
 0x471   :  { %v10370_v46 = vpop.f32.mrf.mxu0  ;;  %v3386_v21 = vadd.f32 %v12171_v44, %v3129_v37  ;;  %v3592_v33 = vmax.f32 %v3383_v41, 0.0 }
 0x473   :  { %v3593_v53 = vmax.f32 %v3386_v21, 0.0 }
 0x474   :  { %7473 = vrot.lane.b32.xlu1 %v7472_v17, %s7960_s21  ;;  %v3191_v38 = vpop.f32.mrf.mxu1  ;;  %v12172_v17 = vld [vmem:[#allocation27_spill] sm:$0xff] }
 0x475   :  { %3477 = vmatmul.f32.gmra.mxu2 %v10377_v16  ;;  %v7487_v32 = vpack.i.bf16 %v10383_v54, %v12172_v17  ;;  %v3192_v37 = vadd.f32 %v10187_v51, %v3191_v38  ;;  %v12197_v17 = vld [vmem:[#allocation45_spill] sm:$0xff] }
 0x477   :  { %3238 = vmatmul.f32.gmra.mxu1 %v10021_v31  ;;  %v3189_v31 = vadd.f32 %v10187_v51, %v3188_v49  ;;  %v7502_v49 = vpack.i.bf16 %v3593_v53, %v3592_v33  ;;  %v3171_v33 = vadd.f32 %v10187_v51, %v10201_v25 }
 0x478   :  { %v3445_v10 = vpop.f32.mrf.mxu2 }
 0x479   :  { %v10388_v18 = vpop.f32.mrf.mxu0  ;;  %v10402_v44 = vadd.f32 %v3445_v10, %v3189_v31 }
 0x47a   :  { %v7377_v55 = vpop.permute.xlu0 %7376 }
 0x47b   :  { %v7378_v50 = vunpack.i.l.bf16 %v7377_v55  ;;  %v7379_v29 = vunpack.i.h.bf16 %v7377_v55 }
 0x47c   :  { %7488 = vrot.lane.b32.xlu1 %v7487_v32, %s7958_s0  ;;  %v3194_v21 = vpop.f32.mrf.mxu1 }
 0x47d   :  { %v10398_v61 = vsel %vm2926_vm11, %v12174_v19, %v7378_v50  ;;  %v3153_v50 = vadd.f32 %v10187_v51, %v10122_v20  ;;  %v12005_v19 = vmax.f32 %v10402_v44, 0.0  ;;  %v10420_v53 = vsel %vm2926_vm11, %v10023_v14, %v7379_v29  ;;  %v4288_v20 = vld [vmem:[%s8006_s3 + $0x78] sm:$0xff]  ;;  %v4287_v14 = vld [vmem:[%s8006_s3 + $0x70] sm:$0xff] }
 0x47e   :  { %3480 = vmatmul.f32.gmra.mxu2 %v10398_v61  ;;  %4293 = vmatpush.msrb.mxu3 %v4288_v20  ;;  %v3195_v41 = vadd.f32 %v10187_v51, %v3194_v21  ;;  %v4286_v20 = vld [vmem:[%s8006_s3 + $0x68] sm:$0xff] }
 0x47f   :  { %3241 = vmatmul.f32.gmra.mxu1 %v10035_v34  ;;  %v10411_v10 = vadd.f32 %v10136_v35, %v3153_v50 }
 0x480   :  { %v3448_v7 = vpop.f32.mrf.mxu2  ;;  %4294 = vmatpush.msrb.mxu3 %v4287_v14  ;;  %v3117_v14 = vadd.f32 %v10187_v51, %v12180_v42  ;;  %v12183_v42 = vld [vmem:[#allocation31_spill] sm:$0xff] }
 0x481   :  { %v3449_v32 = vadd.f32 %v3448_v7, %v3192_v37  ;;  %v10405_v48 = vpop.f32.mrf.mxu0  ;;  %12175 = vst [vmem:[#allocation51_spill] sm:$0xff] %v10411_v10  ;;  %v12002_v35 = vmax.f32 %v10411_v10, 0.0  ;;  %v3428_v7 = vadd.f32 %v10233_v23, %v3171_v33  ;;  %v12179_v23 = vld [vmem:[#allocation58_spill] sm:$0xff] }
 0x482   :  { %v10429_v31 = vpop.permute.xlu2 %7386  ;;  %v619_v29 = vpop.permute.xlu0 %618  ;;  %4295 = vmatpush.msrb.mxu3 %v4286_v20 }
 0x483   :  { %v3614_v38 = vmax.f32 %v3449_v32, 0.0 }
 0x484   :  { %7503 = vrot.lane.b32.xlu1 %v7502_v49, %s7959_s5  ;;  %v12177_v49 = vld [vmem:[#allocation33_spill] sm:$0xff]  ;;  %v10443_v27 = vpop.f32.mrf.mxu1 }
 0x485   :  { %v10416_v34 = vpack.i.bf16 %v3614_v38, %v12005_v19  ;;  %v7517_v25 = vpack.i.bf16 %v10361_v4, %v12177_v49  ;;  %v4283_v19 = vld [vmem:[%s8006_s3 + $0x50] sm:$0xff]  ;;  %v12190_v49 = vld [vmem:[#allocation61_spill] sm:$0xff] }
 0x486   :  { %3483 = vmatmul.f32.gmra.mxu2 %v10420_v53 }
 0x487   :  { %12176 = vst [vmem:[#allocation52_spill] sm:$0xff] %v10416_v34  ;;  %3244 = vmatmul.f32.gmra.mxu1 %v10054_v45 }
 0x488   :  { %v3451_v55 = vpop.f32.mrf.mxu2 }
 0x489   :  { %v10431_v37 = vpop.f32.mrf.mxu0  ;;  %v10440_v50 = vadd.f32 %v3451_v55, %v3195_v41  ;;  %v10454_v55 = vmax.f32 %v3428_v7, 0.0  ;;  %v4284_v41 = vld [vmem:[%s8006_s3 + $0x58] sm:$0xff]  ;;  %v10466_v7 = vadd.f32 %v12183_v42, %v3117_v14  ;;  %v12187_v14 = vld [vmem:[#allocation30_spill] sm:$0xff] }
 0x48a   :  { %v7382_v45 = vpop.permute.xlu1 %7381  ;;  %v7442_v32 = vpack.i.bf16 %v12002_v35, %v10431_v37  ;;  %v4285_v35 = vld [vmem:[%s8006_s3 + $0x60] sm:$0xff]  ;;  %v622_v26 = vpop.permute.xlu2 %621 }
 0x48b   :  { %12178 = vst [vmem:[#allocation50_spill] sm:$0xff] %v10440_v50  ;;  %v7383_v21 = vunpack.i.l.bf16 %v7382_v45  ;;  %4296 = vmatpush.msrb.mxu3 %v4285_v35  ;;  %v1247_v40 = vpop.permute.xlu0 %1246  ;;  %v12185_v35 = vld [vmem:[#allocation18_spill] sm:$0xff] }
 0x48c   :  { %7443 = vrot.lane.b32.xlu0 %v7442_v32, %s7958_s0  ;;  %7518 = vrot.lane.b32.xlu1 %v7517_v25, %s7958_s0  ;;  %v12181_v32 = vld [vmem:[#allocation63_spill] sm:$0xff]  ;;  %v12182_v25 = vld [vmem:[#allocation24_spill] sm:$0xff]  ;;  %12184 = vst [vmem:[#allocation54_spill] sm:$0xff] %v10466_v7  ;;  %vm750_vm14 = vcmp.eq.s32.totalorder %v12185_v35, %v619_v29  ;;  %vm751_vm1 = vcmp.eq.s32.totalorder %v12185_v35, %v622_v26  ;;  %v12189_v29 = vmov 0.0  }
 0x48d   :  { %v10449_v33 = vsel %vm2926_vm11, %v12179_v23, %v7383_v21  ;;  %v3114_v21 = vadd.f32 %v10187_v51, %v12182_v25  ;;  %v7384_v23 = vunpack.i.h.bf16 %v7382_v45  ;;  %4297 = vmatpush.msrb.mxu3 %v4284_v41  ;;  %v12186_v25 = vmax.f32 %v10440_v50, 0.0  ;;  %v4282_v41 = vld [vmem:[%s8006_s3 + $0x48] sm:$0xff] }
 0x48e   :  { %3486 = vmatmul.f32.gmra.mxu2 %v10449_v33  ;;  %vm1376_vm3 = vcmp.eq.s32.totalorder %v12185_v35, %v1247_v40  ;;  %v12193_v40 = vld [vmem:[#allocation48_spill] sm:$0xff] }
 0x48f   :  { %3247 = vmatmul.f32.gmra.mxu1 %v12181_v32  ;;  %v7452_v32 = vpack.i.bf16 %v10454_v55, %v10383_v54  ;;  %v7532_v45 = vpack.i.bf16 %v12186_v25, %v3614_v38  ;;  %4298 = vmatpush.msrb.mxu3 %v4283_v19  ;;  %v10478_v42 = vadd.f32 %v12187_v14, %v3114_v21  ;;  %v4281_v19 = vld [vmem:[%s8006_s3 + $0x40] sm:$0xff]  ;;  %vm1501_vm4 = vmor %vm751_vm1, %vm1376_vm3  ;;  %v7388_v14 = vunpack.i.l.bf16 %v10429_v31 }
 0x490   :  { %v10486_v38 = vsel %vm2926_vm11, %v12190_v49, %v7384_v23  ;;  %v12191_v21 = vld [vmem:[#allocation49_spill] sm:$0xff]  ;;  %v12192_v23 = vld [vmem:[#allocation64_spill] sm:$0xff]  ;;  %v6755_v26 = vsel %vm1501_vm4, 1.0, %v12189_v29  ;;  %vm4791_vm3 = vcmask 1040384  }
 0x491   :  { %v10462_v20 = vpop.f32.mrf.mxu0  ;;  %12188 = vst [vmem:[#allocation58_spill] sm:$0xff] %v10478_v42  ;;  %4299 = vmatpush.msrb.mxu3 %v4282_v41  ;;  %v4280_v49 = vld [vmem:[%s8006_s3 + $0x38] sm:$0xff]  ;;  %v12013_v25 = vmax.f32 %v10478_v42, 0.0  ;;  %v4279_v41 = vld [vmem:[%s8006_s3 + $0x30] sm:$0xff] }
 0x492   :  { %v1244_v10 = vpop.permute.xlu1 %1243  ;;  %v7447_v15 = vpack.i.bf16 %v10260_v2, %v10462_v20 }
 0x493   :  { %vm1375_vm15 = vcmp.eq.s32.totalorder %v12185_v35, %v1244_v10  ;;  %v12012_v10 = vmax.f32 %v10466_v7, 0.0  ;;  %4300 = vmatpush.msrb.mxu3 %v4281_v19  ;;  %v12194_v19 = vld [vmem:[#allocation47_spill] sm:$0xff] }
 0x494   :  { %vm1500_vm0 = vmor %vm750_vm14, %vm1375_vm15  ;;  %7453 = vrot.lane.b32.xlu0 %v7452_v32, %s7960_s21  ;;  %7448 = vrot.lane.b32.xlu2 %v7447_v15, %s7958_s0  ;;  %v3123_v15 = vadd.f32 %v10187_v51, %v12191_v21  ;;  %v3200_v32 = vpop.f32.mrf.mxu1  ;;  %v4274_v7 = vld [vmem:[%s8006_s3 + $0x8] sm:$0xff]  ;;  %vm4842_vm15 = vcmask 48128  }
 0x495   :  { %v6754_v12 = vsel %vm1500_vm0, 1.0, %v12189_v29  ;;  %7533 = vrot.lane.b32.xlu1 %v7532_v45, %s7960_s21  ;;  %v3120_v45 = vadd.f32 %v10187_v51, %v12193_v40  ;;  %4301 = vmatpush.msrb.mxu3 %v4280_v49  ;;  %v12199_v49 = vld [vmem:[#allocation62_spill] sm:$0xff] }
 0x496   :  { %6879 = vmatmul.msk.f32.vlgmr.msra.gmra.mxu3 %vm1758_vm2, %v6754_v12  ;;  %3489 = vmatmul.f32.gmra.mxu2 %v10486_v38  ;;  %v7462_v12 = vpack.i.bf16 %v12012_v10, %v12013_v25  ;;  %v10510_v21 = vadd.f32 %v12194_v19, %v3123_v15  ;;  %v10523_v10 = vsel %vm2926_vm11, %v12199_v49, %v7388_v14  ;;  %v4277_v15 = vld [vmem:[%s8006_s3 + $0x20] sm:$0xff]  ;;  %v10534_v14 = vpop.f32.mrf.mxu2 }
 0x497   :  { %3250 = vmatmul.f32.gmra.mxu1 %v12192_v23  ;;  %v12196_v23 = vld [vmem:[#allocation26_spill] sm:$0xff]  ;;  %4302 = vmatpush.msrb.mxu3 %v4279_v41  ;;  %v10517_v50 = vadd.f32 %v12197_v17, %v3120_v45  ;;  %v4276_v17 = vld [vmem:[%s8006_s3 + $0x18] sm:$0xff] }
 0x498   :  { %12195 = vst [vmem:[#allocation46_spill] sm:$0xff] %v10510_v21  ;;  %v7467_v40 = vpack.i.bf16 %v10292_v28, %v12196_v23  ;;  %v12015_v19 = vmax.f32 %v10510_v21, 0.0  ;;  %v12200_v45 = vld [vmem:[#allocation66_spill] sm:$0xff] }
 0x499   :  { %12198 = vst [vmem:[#allocation63_spill] sm:$0xff] %v10517_v50  ;;  %4303 = vmatpush.msrb.mxu3 %v4278_v39  ;;  %v12016_v41 = vmax.f32 %v10517_v50, 0.0 }
 0x49b   :  { %4304 = vmatpush.msrb.mxu3 %v4277_v15  ;;  %v7482_v49 = vpack.i.bf16 %v12015_v19, %v12016_v41  ;;  %v3180_v15 = vadd.f32 %v10187_v51, %v10294_v57  ;;  %v4273_v19 = vld [vmem:[%s8006_s3] sm:$0xff] }
 0x49c   :  { %7468 = vrot.lane.b32.xlu0 %v7467_v40, %s7958_s0  ;;  %7463 = vrot.lane.b32.xlu2 %v7462_v12, %s7959_s5  ;;  %v3183_v12 = vadd.f32 %v10187_v51, %v10318_v30  ;;  %v10536_v39 = vpop.f32.mrf.mxu1  ;;  %v4275_v40 = vld [vmem:[%s8006_s3 + $0x10] sm:$0xff]  ;;  %v12201_v30 = vld [vmem:[#allocation37_spill] sm:$0xff]  ;;  %s12296_s3 = sld [smem:[#allocation10_spill]] }
 0x49d   :  { %4305 = vmatpush.msrb.mxu3 %v4276_v17  ;;  %v7477_v25 = vpack.i.bf16 %v10287_v6, %v12201_v30  ;;  %v3437_v23 = vadd.f32 %v10328_v1, %v3180_v15 }
 0x49e   :  { %6880 = vmatmul.msk.f32.gmra.mxu3 %vm1758_vm2, %v6755_v26  ;;  %3492 = vmatmul.f32.gmra.mxu2 %v10523_v10  ;;  %v7389_v26 = vunpack.i.h.bf16 %v10429_v31  ;;  %v12202_v31 = vld [vmem:[#allocation65_spill] sm:$0xff] }
 0x49f   :  { %3253 = vmatmul.f32.gmra.mxu1 %v12200_v45  ;;  %v3440_v45 = vadd.f32 %v10346_v24, %v3183_v12  ;;  %4306 = vmatpush.msrb.mxu3 %v4275_v40  ;;  %v3201_v24 = vadd.f32 %v10187_v51, %v3200_v32  ;;  %v12203_v12 = vld [vmem:[#allocation68_spill] sm:$0xff]  ;;  %v10563_v1 = vmax.f32 %v3437_v23, 0.0  ;;  %v625_v40 = vpop.permute.xlu2 %624 }
 0x4a0   :  { %v10555_v17 = vsel %vm2926_vm11, %v12202_v31, %v7389_v26  ;;  %v3186_v26 = vadd.f32 %v10187_v51, %v10337_v13  ;;  %v12206_v13 = vld [vmem:[#allocation19_spill] sm:$0xff]  ;;  %vm752_vm5 = vcmp.eq.s32.totalorder %v12185_v35, %v625_v40  ;;  %v1253_v40 = vpop.permute.xlu0 %1252 }
 0x4a1   :  { %4307 = vmatpush.msrb.mxu3 %v4274_v7  ;;  %v10558_v57 = vmax.f32 %v3440_v45, 0.0  ;;  %v12205_v45 = vld [vmem:[#allocation39_spill] sm:$0xff]  ;;  %vm1378_vm9 = vcmp.eq.s32.totalorder %v12185_v35, %v1253_v40 }
 0x4a2   :  { %v7497_v31 = vpack.i.bf16 %v10454_v55, %v12205_v45  ;;  %v12208_v45 = vld [vmem:[#allocation57_spill] sm:$0xff] }
 0x4a3   :  { %4308 = vmatpush.msrb.mxu3 %v4273_v19  ;;  %v7492_v32 = vpack.i.bf16 %v10558_v57, %v10563_v1  ;;  %v3135_v21 = vadd.f32 %v10187_v51, %v12208_v45  ;;  %v12211_v45 = vmax.f32 %v10402_v44, 0.0  ;;  %v7562_v44 = vpack.i.bf16 %v10292_v28, %v10256_v52 }
 0x4a4   :  { %7483 = vrot.lane.b32.xlu0 %v7482_v49, %s7959_s5  ;;  %7478 = vrot.lane.b32.xlu2 %v7477_v25, %s7958_s0  ;;  %v10569_v7 = vpop.f32.mrf.mxu1 }
 0x4a6   :  { %3495 = vmatmul.f32.gmra.mxu2 %v10555_v17 }
 0x4a7   :  { %3256 = vmatmul.f32.gmra.mxu1 %v12203_v12  ;;  %v10577_v12 = vadd.f32 %v10364_v36, %v3186_v26  ;;  %v12209_v36 = vld [vmem:[#allocation55_spill] sm:$0xff] }
 0x4a8   :  { %v3457_v49 = vpop.f32.mrf.mxu2  ;;  %v3132_v26 = vadd.f32 %v10187_v51, %v12209_v36  ;;  %v12213_v36 = vld [vmem:[#allocation53_spill] sm:$0xff] }
 0x4a9   :  { %v10565_v25 = vadd.f32 %v3457_v49, %v3201_v24  ;;  %v12207_v49 = vld [vmem:[#allocation67_spill] sm:$0xff] }
 0x4aa   :  { %v7394_v15 = vpop.permute.xlu1 %7393  ;;  %v3389_v50 = vadd.f32 %v12213_v36, %v3132_v26  ;;  %v12215_v26 = vld [vmem:[#allocation73_spill] sm:$0xff] }
 0x4ab   :  { %12204 = vst [vmem:[#allocation24_spill] sm:$0xff] %v10565_v25  ;;  %v12018_v19 = vmax.f32 %v10565_v25, 0.0  ;;  %v7395_v23 = vunpack.i.l.bf16 %v7394_v15  ;;  %v628_v25 = vpop.permute.xlu2 %627 }
 0x4ac   :  { %7498 = vrot.lane.b32.xlu0 %v7497_v31, %s7958_s0  ;;  %7493 = vrot.lane.b32.xlu2 %v7492_v32, %s7960_s21  ;;  %v12021_v31 = vmax.f32 %v10577_v12, 0.0  ;;  %v7396_v32 = vunpack.i.h.bf16 %v7394_v15  ;;  %v10606_v30 = vpop.f32.mrf.mxu1  ;;  %vm753_vm8 = vcmp.eq.s32.totalorder %v12185_v35, %v628_v25  ;;  %v12214_v15 = vld [vmem:[#allocation69_spill] sm:$0xff] }
 0x4ad   :  { %v7547_v24 = vpack.i.bf16 %v12018_v19, %v12206_v13  ;;  %v10586_v41 = vsel %vm2926_vm11, %v12207_v49, %v7395_v23  ;;  %v12210_v19 = vld [vmem:[#allocation56_spill] sm:$0xff]  ;;  %vm1503_vm10 = vmor %vm753_vm8, %vm1378_vm9 }
 0x4ae   :  { %3498 = vmatmul.f32.gmra.mxu2 %v10586_v41  ;;  %v3392_v23 = vadd.f32 %v12210_v19, %v3135_v21  ;;  %v7512_v49 = vpack.i.bf16 %v12211_v45, %v12021_v31  ;;  %v10617_v19 = vsel %vm2926_vm11, %v12214_v15, %v7396_v32  ;;  %v3594_v45 = vmax.f32 %v3389_v50, 0.0  ;;  %v12218_v15 = vld [vmem:[#allocation34_spill] sm:$0xff]  ;;  %v12220_v50 = vld [vmem:[#allocation21_spill] sm:$0xff] }
 0x4af   :  { %7548 = vrot.lane.b32.xlu1 %v7547_v24, %s7958_s0  ;;  %3259 = vmatmul.f32.gmra.mxu1 %v10160_v47  ;;  %v12212_v24 = vld [vmem:[#allocation32_spill] sm:$0xff]  ;;  %v6757_v31 = vsel %vm1503_vm10, 1.0, %v12189_v29 }
 0x4b0   :  { %v7507_v47 = vpack.i.bf16 %v10368_v62, %v12212_v24  ;;  %v12224_v24 = vld [vmem:[#allocation25_spill] sm:$0xff] }
 0x4b1   :  { %v7537_v34 = vpack.i.bf16 %v10558_v57, %v12224_v24 }
 0x4b2   :  { %v1250_v13 = vpop.permute.xlu1 %1249 }
 0x4b3   :  { %vm1377_vm6 = vcmp.eq.s32.totalorder %v12185_v35, %v1250_v13  ;;  %v3595_v13 = vmax.f32 %v3392_v23, 0.0  ;;  %v7527_v23 = vpack.i.bf16 %v10563_v1, %v12218_v15  ;;  %v12219_v35 = vld [vmem:[#allocation60_spill] sm:$0xff]  ;;  %v7399_v28 = vpop.permute.xlu2 %7398 }
 0x4b4   :  { %vm1502_vm7 = vmor %vm752_vm5, %vm1377_vm6  ;;  %7513 = vrot.lane.b32.xlu0 %v7512_v49, %s7960_s21  ;;  %7508 = vrot.lane.b32.xlu2 %v7507_v47, %s7958_s0  ;;  %v12216_v49 = vld [vmem:[#allocation59_spill] sm:$0xff]  ;;  %v12217_v47 = vld [vmem:[#allocation22_spill] sm:$0xff]  ;;  %vm5007_vm6 = vcmask 517120  }
 0x4b5   :  { %v6756_v21 = vsel %vm1502_vm7, 1.0, %v12189_v29  ;;  %v3138_v25 = vadd.f32 %v10187_v51, %v12216_v49  ;;  %v3081_v36 = vadd.f32 %v10187_v51, %v12217_v47  ;;  %v7522_v40 = vpack.i.bf16 %v3595_v13, %v3594_v45  ;;  %v12221_v49 = vld [vmem:[#allocation70_spill] sm:$0xff]  ;;  %v10638_v13 = vpop.f32.mrf.mxu1 }
 0x4b6   :  { %6881 = vmatmul.msk.f32.gmra.mxu3 %vm1758_vm2, %v6756_v21  ;;  %3501 = vmatmul.f32.gmra.mxu2 %v10617_v19  ;;  %v7400_v29 = vunpack.i.l.bf16 %v7399_v28 }
 0x4b7   :  { %7563 = vrot.lane.b32.xlu1 %v7562_v44, %s7959_s5  ;;  %3262 = vmatmul.f32.gmra.mxu1 %v12215_v26  ;;  %v3395_v44 = vadd.f32 %v12219_v35, %v3138_v25  ;;  %v3338_v26 = vadd.f32 %v12220_v50, %v3081_v36  ;;  %v3460_v35 = vpop.f32.mrf.mxu2  ;;  %v12222_v50 = vld [vmem:[#allocation29_spill] sm:$0xff] }
 0x4b9   :  { %v3596_v25 = vmax.f32 %v3395_v44, 0.0 }
 0x4ba   :  { %v7404_v32 = vpop.permute.xlu1 %7403 }
 0x4bb   :  { %v7405_v21 = vunpack.i.l.bf16 %v7404_v32  ;;  %v7409_v45 = vpop.permute.xlu0 %7408  ;;  %v7406_v36 = vunpack.i.h.bf16 %v7404_v32  ;;  %v12225_v32 = vld [vmem:[#allocation28_spill] sm:$0xff]  ;;  %v7424_v24 = vpop.permute.xlu2 %7423 }
 0x4bc   :  { %7528 = vrot.lane.b32.xlu0 %v7527_v23, %s7958_s0  ;;  %7523 = vrot.lane.b32.xlu2 %v7522_v40, %s7959_s5  ;;  %v3204_v40 = vadd.f32 %v10187_v51, %v10536_v39  ;;  %v3577_v23 = vmax.f32 %v3338_v26, 0.0 }
 0x4bd   :  { %v10636_v47 = vsel %vm2926_vm11, %v12221_v49, %v7405_v21  ;;  %v3084_v21 = vadd.f32 %v10187_v51, %v12222_v50  ;;  %v7410_v49 = vunpack.i.l.bf16 %v7409_v45  ;;  %v12227_v50 = vld [vmem:[#allocation71_spill] sm:$0xff] }
 0x4be   :  { %6882 = vmatmul.msk.f32.gmra.mxu3 %vm1758_vm2, %v6757_v31  ;;  %3504 = vmatmul.f32.gmra.mxu2 %v10636_v47  ;;  %v10647_v52 = vadd.f32 %v3460_v35, %v3204_v40  ;;  %v7542_v31 = vpack.i.bf16 %v10260_v2, %v3596_v25  ;;  %v4137_v44 = vsel %vm1758_vm2, %v3577_v23, %v7400_v29  ;;  %v12226_v35 = vld [vmem:[#allocation41_spill] sm:$0xff]  ;;  %v7411_v23 = vunpack.i.h.bf16 %v7409_v45 }
 0x4bf   :  { %3265 = vmatmul.f32.gmra.mxu1 %v10265_v5  ;;  %v4182_v39 = vsel %vm2926_vm11, %v4137_v44, %v7406_v36  ;;  %v3341_v26 = vadd.f32 %v12225_v32, %v3084_v21  ;;  %v3087_v40 = vadd.f32 %v10187_v51, %v12226_v35  ;;  %v10661_v25 = vsel %vm2926_vm11, %v12227_v50, %v7410_v49  ;;  %v3215_v36 = vpop.f32.mrf.mxu1  ;;  %v12228_v44 = vld [vmem:[#allocation40_spill] sm:$0xff]  ;;  %v12229_v50 = vld [vmem:[#allocation35_spill] sm:$0xff] }
 0x4c0   :  { %12223 = vst [vmem:[#allocation31_spill] sm:$0xff] %v10647_v52  ;;  %v12028_v29 = vmax.f32 %v10647_v52, 0.0  ;;  %v7425_v35 = vunpack.i.l.bf16 %v7424_v24 }
 0x4c1   :  { %v3344_v32 = vadd.f32 %v12228_v44, %v3087_v40  ;;  %v12231_v40 = vld [vmem:[#allocation43_spill] sm:$0xff] }
 0x4c2   :  { %v7414_v15 = vpop.permute.xlu1 %7413  ;;  %v3090_v44 = vadd.f32 %v10187_v51, %v12231_v40 }
 0x4c3   :  { %v7415_v5 = vunpack.i.l.bf16 %v7414_v15  ;;  %v7419_v21 = vpop.permute.xlu0 %7418  ;;  %v7416_v49 = vunpack.i.h.bf16 %v7414_v15 }
 0x4c4   :  { %7543 = vrot.lane.b32.xlu0 %v7542_v31, %s7959_s5  ;;  %7538 = vrot.lane.b32.xlu2 %v7537_v34, %s7958_s0  ;;  %v7401_v34 = vunpack.i.h.bf16 %v7399_v28  ;;  %v3578_v31 = vmax.f32 %v3341_v26, 0.0  ;;  %v3579_v28 = vmax.f32 %v3344_v32, 0.0 }
 0x4c5   :  { %v4228_v2 = vsel %vm4227_vm12, %v4182_v39, %v7415_v5  ;;  %v7557_v5 = vpack.i.bf16 %v12028_v29, %v12229_v50  ;;  %v7420_v39 = vunpack.i.l.bf16 %v7419_v21  ;;  %v7421_v29 = vunpack.i.h.bf16 %v7419_v21 }
 0x4c6   :  { %3507 = vmatmul.f32.gmra.mxu2 %v10661_v25  ;;  %4309 = vmatmul.f32.vlgmr.msrb.gmra.mxu3 %v4228_v2  ;;  %v4138_v42 = vsel %vm1758_vm2, %v3578_v31, %v7401_v34  ;;  %v7426_v31 = vunpack.i.h.bf16 %v7424_v24 }
 0x4c7   :  { %3268 = vmatmul.f32.gmra.mxu1 %v10298_v43  ;;  %v4183_v2 = vsel %vm2926_vm11, %v4138_v42, %v7411_v23  ;;  %v12230_v43 = vld [vmem:[#allocation72_spill] sm:$0xff]  ;;  %v4139_v34 = vsel %vm1758_vm2, %v3579_v28, %v7420_v39  ;;  %v7434_v42 = vpop.permute.xlu2 %7433  ;;  %v3210_v39 = vadd.f32 %v10187_v51, %v10606_v30  ;;  %v3198_v30 = vadd.f32 %v10187_v51, %v10443_v27 }
 0x4c8   :  { %v10676_v45 = vsel %vm2926_vm11, %v12230_v43, %v7425_v35  ;;  %v4229_v26 = vsel %vm4227_vm12, %v4183_v2, %v7416_v49  ;;  %v4184_v35 = vsel %vm2926_vm11, %v4139_v34, %v7426_v31  ;;  %v12232_v43 = vld [vmem:[#allocation23_spill] sm:$0xff]  ;;  %v7435_v2 = vunpack.i.l.bf16 %v7434_v42 }
 0x4c9   :  { %v3347_v49 = vadd.f32 %v12232_v43, %v3090_v44  ;;  %v7436_v31 = vunpack.i.h.bf16 %v7434_v42  ;;  %v3207_v27 = vadd.f32 %v10187_v51, %v10569_v7 }
 0x4ca   :  { %v4230_v40 = vsel %vm4227_vm12, %v4184_v35, %v7435_v2  ;;  %v12234_v35 = vld [vmem:[#allocation20_spill] sm:$0xff]  ;;  %v10711_v2 = vadd.f32 %v10534_v14, %v3198_v30 }
 0x4cb   :  { %v3580_v24 = vmax.f32 %v3347_v49, 0.0 }
 0x4cc   :  { %7558 = vrot.lane.b32.xlu0 %v7557_v5, %s7958_s0  ;;  %v3218_v5 = vpop.f32.mrf.mxu1 }
 0x4cd   :  { %v4140_v21 = vsel %vm1758_vm2, %v3580_v24, %v7421_v29  ;;  %v3213_v29 = vadd.f32 %v10187_v51, %v10638_v13 }
 0x4ce   :  { %3510 = vmatmul.f32.gmra.mxu2 %v10676_v45  ;;  %4312 = vmatmul.f32.gmra.mxu3 %v4229_v26  ;;  %v7429_v15 = vpop.permute.xlu1 %7428  ;;  %v12233_v26 = vld [vmem:[#allocation74_spill] sm:$0xff] }
 0x4cf   :  { %3271 = vmatmul.f32.gmra.mxu1 %v10322_v3  ;;  %v7430_v32 = vunpack.i.l.bf16 %v7429_v15  ;;  %v7431_v3 = vunpack.i.h.bf16 %v7429_v15 }
 0x4d0   :  { %v3463_v23 = vpop.f32.mrf.mxu2 }
 0x4d1   :  { %v10688_v52 = vsel %vm2926_vm11, %v12233_v26, %v7430_v32  ;;  %v4185_v34 = vsel %vm2926_vm11, %v4140_v21, %v7431_v3  ;;  %v3216_v26 = vadd.f32 %v10187_v51, %v3215_v36 }
 0x4d2   :  { %v4231_v49 = vsel %vm4227_vm12, %v4185_v34, %v7436_v31  ;;  %v12235_v34 = vld [vmem:[#allocation36_spill] sm:$0xff] }
 0x4d4   :  { %v3221_v15 = vpop.f32.mrf.mxu1 }
 0x4d6   :  { %3513 = vmatmul.f32.gmra.mxu2 %v10688_v52  ;;  %4315 = vmatmul.f32.gmra.mxu3 %v4230_v40 }
 0x4d7   :  { %3274 = vmatmul.f32.gmra.mxu1 %v10341_v9 }
 0x4d8   :  { %v3466_v28 = vpop.f32.mrf.mxu2 }
 0x4d9   :  { %v10695_v44 = vadd.f32 %v3466_v28, %v3210_v39  ;;  %v10723_v28 = vadd.f32 %v3463_v23, %v3207_v27  ;;  %v3219_v23 = vadd.f32 %v10187_v51, %v3218_v5  ;;  %v12236_v5 = vld [vmem:[#allocation44_spill] sm:$0xff] }
 0x4db   :  { %v12031_v32 = vmax.f32 %v10695_v44, 0.0  ;;  %v12032_v21 = vmax.f32 %v10723_v28, 0.0 }
 0x4dc   :  { %v3224_v42 = vpop.f32.mrf.mxu1 }
 0x4dd   :  { %v7577_v43 = vpack.i.bf16 %v12031_v32, %v12234_v35  ;;  %v7567_v31 = vpack.i.bf16 %v12032_v21, %v12235_v34 }
 0x4de   :  { %4318 = vmatmul.f32.gmra.mxu3 %v4231_v49 }
 0x4df   :  { %7578 = vrot.lane.b32.xlu1 %v7577_v43, %s7958_s0  ;;  %3277 = vmatmul.f32.gmra.mxu1 %v10357_v56  ;;  %v3616_v56 = vmax.f32 %v10711_v2, 0.0  ;;  %v3222_v43 = vadd.f32 %v10187_v51, %v3221_v15 }
 0x4e0   :  { %v3469_v9 = vpop.f32.mrf.mxu2 }
 0x4e1   :  { %v10714_v40 = vadd.f32 %v3469_v9, %v3213_v29 }
 0x4e3   :  { %v12030_v39 = vmax.f32 %v10714_v40, 0.0 }
 0x4e4   :  { %v3227_v36 = vpop.f32.mrf.mxu1 }
 0x4e7   :  { %3280 = vmatmul.f32.gmra.mxu1 %v10377_v16 }
 0x4e8   :  { %v3472_v3 = vpop.f32.mrf.mxu2 }
 0x4e9   :  { %v3473_v24 = vadd.f32 %v3472_v3, %v3216_v26  ;;  %v3093_v3 = vadd.f32 %v10187_v51, %v12236_v5 }
 0x4eb   :  { %v10721_v13 = vmax.f32 %v3473_v24, 0.0  ;;  %v7582_v24 = vpack.i.bf16 %v10383_v54, %v10287_v6 }
 0x4ec   :  { %v10742_v29 = vpop.f32.mrf.mxu1 }
 0x4ed   :  { %v7552_v14 = vpack.i.bf16 %v10721_v13, %v3616_v56  ;;  %v7592_v16 = vpack.i.bf16 %v10721_v13, %v12030_v39 }
 0x4ef   :  { %7553 = vrot.lane.b32.xlu2 %v7552_v14, %s7960_s21  ;;  %7593 = vrot.lane.b32.xlu1 %v7592_v16, %s7958_s0  ;;  %v7439_v16 = vpop.permute.xlu1 %7438 }
 0x4f0   :  { %3283 = vmatmul.f32.gmra.mxu1 %v10398_v61  ;;  %v3475_v7 = vpop.f32.mrf.mxu2 }
 0x4f1   :  { %v3476_v49 = vadd.f32 %v3475_v7, %v3219_v23  ;;  %v12237_v7 = vld [vmem:[#allocation42_spill] sm:$0xff] }
 0x4f2   :  { %v3350_v23 = vadd.f32 %v12237_v7, %v3093_v3  ;;  %v12238_v3 = vld [vmem:[#allocation38_spill] sm:$0xff] }
 0x4f3   :  { %v10744_v61 = vmax.f32 %v3476_v49, 0.0  ;;  %v7449_v49 = vpop.permute.xlu2 %7448 }
 0x4f4   :  { %v3233_v5 = vpop.f32.mrf.mxu1  ;;  %v7450_v32 = vunpack.i.l.bf16 %v7449_v49 }
 0x4f7   :  { %7568 = vrot.lane.b32.xlu2 %v7567_v31, %s7958_s0 }
 0x4f8   :  { %3286 = vmatmul.f32.gmra.mxu1 %v10420_v53  ;;  %v3478_v9 = vpop.f32.mrf.mxu2  ;;  %v3225_v53 = vadd.f32 %v10187_v51, %v3224_v42  ;;  %v3581_v42 = vmax.f32 %v3350_v23, 0.0  ;;  %v3008_v23 = vsel %vm2926_vm11, %v10349_v11, %v7450_v32 }
 0x4f9   :  { %v3479_v30 = vadd.f32 %v3478_v9, %v3222_v43 }
 0x4fb   :  { %v10746_v26 = vmax.f32 %v3479_v30, 0.0  ;;  %v7440_v30 = vunpack.i.l.bf16 %v7439_v16 }
 0x4fd   :  { %v7607_v15 = vpack.i.bf16 %v10746_v26, %v10744_v61 }
 0x4fe   :  { %v7444_v27 = vpop.permute.xlu0 %7443 }
 0x4ff   :  { %v7445_v14 = vunpack.i.l.bf16 %v7444_v27  ;;  %7583 = vrot.lane.b32.xlu2 %v7582_v24, %s7959_s5  ;;  %7608 = vrot.lane.b32.xlu1 %v7607_v15, %s7958_s0  ;;  %v7446_v24 = vunpack.i.h.bf16 %v7444_v27 }
 0x500   :  { %3289 = vmatmul.f32.gmra.mxu1 %v10449_v33  ;;  %7573 = vrot.lane.b32.xlu0 %v7607_v15, %s7960_s21  ;;  %v7597_v33 = vpack.i.bf16 %v10368_v62, %v10454_v55 }
 0x501   :  { %v3481_v31 = vpop.f32.mrf.mxu2  ;;  %v3007_v43 = vsel %vm2926_vm11, %v10331_v58, %v7445_v14  ;;  %v4141_v58 = vsel %vm1758_vm2, %v3581_v42, %v7440_v30  ;;  %v3228_v14 = vadd.f32 %v10187_v51, %v3227_v36  ;;  %v7451_v30 = vunpack.i.h.bf16 %v7449_v49  ;;  %v7464_v42 = vpop.permute.xlu2 %7463 }
 0x502   :  { %v3482_v9 = vadd.f32 %v3481_v31, %v3225_v53  ;;  %3516 = vmatmul.f32.gmra.mxu2 %v3007_v43  ;;  %v4186_v27 = vsel %vm2926_vm11, %v4141_v58, %v7446_v24  ;;  %v7459_v43 = vpop.permute.xlu1 %7458  ;;  %v7612_v24 = vpack.i.bf16 %v10563_v1, %v10361_v4  ;;  %v7465_v32 = vunpack.i.l.bf16 %v7464_v42 }
 0x504   :  { %v10762_v39 = vmax.f32 %v3482_v9, 0.0 }
 0x506   :  { %v7454_v15 = vpop.permute.xlu0 %7453  ;;  %v7622_v7 = vpack.i.bf16 %v12238_v3, %v10762_v39  ;;  %v10781_v3 = vpop.f32.mrf.mxu1 }
 0x507   :  { %v7455_v21 = vunpack.i.l.bf16 %v7454_v15  ;;  %7598 = vrot.lane.b32.xlu2 %v7597_v33, %s7959_s5  ;;  %v7441_v33 = vunpack.i.h.bf16 %v7439_v16  ;;  %v7456_v36 = vunpack.i.h.bf16 %v7454_v15 }
 0x508   :  { %3292 = vmatmul.f32.gmra.mxu1 %v10486_v38  ;;  %7623 = vrot.lane.b32.xlu1 %v7622_v7, %s7958_s0  ;;  %v7460_v38 = vunpack.i.l.bf16 %v7459_v43 }
 0x509   :  { %v3484_v53 = vpop.f32.mrf.mxu2  ;;  %v4232_v31 = vsel %vm4227_vm12, %v4186_v27, %v7455_v21  ;;  %v12239_v21 = vmax.f32 %v10207_v0, 0.0  ;;  %v12240_v27 = vld [vmem:[#allocation75_spill] sm:$0xff] }
 0x50a   :  { %v3485_v9 = vadd.f32 %v3484_v53, %v3228_v14  ;;  %3519 = vmatmul.f32.gmra.mxu2 %v3008_v23  ;;  %4321 = vmatmul.f32.gmra.mxu3 %v4232_v31  ;;  %v3009_v7 = vsel %vm2926_vm11, %v10370_v46, %v7460_v38  ;;  %v12241_v0 = vmax.f32 %v12240_v27, 0.0  ;;  %v7461_v23 = vunpack.i.h.bf16 %v7459_v43  ;;  %v7474_v31 = vpop.permute.xlu1 %7473 }
 0x50b   :  { %v4142_v16 = vsel %vm1758_vm2, %v12239_v21, %v7441_v33 }
 0x50c   :  { %v10777_v51 = vmax.f32 %v3485_v9, 0.0  ;;  %v4187_v49 = vsel %vm2926_vm11, %v4142_v16, %v7451_v30  ;;  %v4143_v53 = vsel %vm1758_vm2, %v12241_v0, %v7465_v32  ;;  %v10802_v30 = vld [vmem:[%s8001_s29] ss:$0 sm:$0xff]  ;;  %v7466_v32 = vunpack.i.h.bf16 %v7464_v42 }
 0x50d   :  { %v4233_v58 = vsel %vm4227_vm12, %v4187_v49, %v7456_v36  ;;  %v3231_v46 = vadd.f32 %v10802_v30, %v10742_v29  ;;  %v4188_v38 = vsel %vm2926_vm11, %v4143_v53, %v7461_v23  ;;  %v7475_v36 = vunpack.i.l.bf16 %v7474_v31  ;;  %v7479_v49 = vpop.permute.xlu2 %7478 }
 0x50e   :  { %v7587_v11 = vpack.i.bf16 %v10777_v51, %v10762_v39  ;;  %v7469_v14 = vpop.permute.xlu0 %7468  ;;  %v12243_v42 = vmax.f32 %v10252_v22, 0.0  ;;  %v7476_v23 = vunpack.i.h.bf16 %v7474_v31  ;;  %v12244_v31 = vmax.f32 %v10242_v8, 0.0 }
 0x50f   :  { %7613 = vrot.lane.b32.xlu2 %v7612_v24, %s7959_s5  ;;  %v7470_v33 = vunpack.i.l.bf16 %v7469_v14  ;;  %v3234_v24 = vadd.f32 %v10802_v30, %v3233_v5  ;;  %v4234_v29 = vsel %vm4227_vm12, %v4188_v38, %v7475_v36 }
 0x510   :  { %3295 = vmatmul.f32.gmra.mxu1 %v10523_v10  ;;  %7588 = vrot.lane.b32.xlu0 %v7587_v11, %s7960_s21  ;;  %v12242_v10 = vmax.f32 %v10577_v12, 0.0  ;;  %v3239_v11 = vpop.f32.mrf.mxu1  ;;  %v4144_v0 = vsel %vm1758_vm2, %v12243_v42, %v7466_v32 }
 0x511   :  { %v3487_v15 = vpop.f32.mrf.mxu2  ;;  %v3010_v16 = vsel %vm2926_vm11, %v10388_v18, %v7470_v33 }
 0x512   :  { %3522 = vmatmul.f32.gmra.mxu2 %v3009_v7  ;;  %4324 = vmatmul.f32.gmra.mxu3 %v4233_v58  ;;  %v7627_v9 = vpack.i.bf16 %v12242_v10, %v10558_v57  ;;  %v3488_v43 = vadd.f32 %v3487_v15, %v3231_v46  ;;  %v7471_v7 = vunpack.i.h.bf16 %v7469_v14  ;;  %v7489_v46 = vpop.permute.xlu1 %7488 }
 0x513   :  { %v7490_v32 = vunpack.i.l.bf16 %v7489_v46 }
 0x514   :  { %v10815_v27 = vmax.f32 %v3488_v43, 0.0  ;;  %v4189_v53 = vsel %vm2926_vm11, %v4144_v0, %v7471_v7  ;;  %v3240_v7 = vadd.f32 %v10802_v30, %v3239_v11 }
 0x515   :  { %v4235_v22 = vsel %vm4227_vm12, %v4189_v53, %v7476_v23  ;;  %v7494_v43 = vpop.permute.xlu2 %7493 }
 0x516   :  { %v7484_v5 = vpop.permute.xlu0 %7483 }
 0x517   :  { %7628 = vrot.lane.b32.xlu2 %v7627_v9, %s7959_s5  ;;  %v7485_v14 = vunpack.i.l.bf16 %v7484_v5 }
 0x518   :  { %3298 = vmatmul.f32.gmra.mxu1 %v10555_v17  ;;  %v7480_v17 = vunpack.i.l.bf16 %v7479_v49  ;;  %v3242_v36 = vpop.f32.mrf.mxu1 }
 0x519   :  { %v10810_v12 = vpop.f32.mrf.mxu3  ;;  %v3490_v21 = vpop.f32.mrf.mxu2 }
 0x51a   :  { %v3491_v58 = vadd.f32 %v3490_v21, %v3234_v24  ;;  %3525 = vmatmul.f32.gmra.mxu2 %v3010_v16  ;;  %4327 = vmatmul.f32.gmra.mxu3 %v4234_v29  ;;  %v3011_v33 = vsel %vm2926_vm11, %v10405_v48, %v7480_v17  ;;  %v4145_v24 = vsel %vm1758_vm2, %v12244_v31, %v7485_v14  ;;  %v7495_v16 = vunpack.i.l.bf16 %v7494_v43 }
 0x51b   :  { %v3237_v48 = vadd.f32 %v10802_v30, %v10781_v3  ;;  %v7486_v29 = vunpack.i.h.bf16 %v7484_v5  ;;  %v12245_v3 = vmax.f32 %v10316_v60, 0.0  ;;  %v7491_v5 = vunpack.i.h.bf16 %v7489_v46 }
 0x51c   :  { %v10817_v15 = vmax.f32 %v3491_v58, 0.0 }
 0x51d   :  { %v7509_v46 = vpop.permute.xlu2 %7508 }
 0x51e   :  { %v7602_v18 = vpack.i.bf16 %v10817_v15, %v10815_v27  ;;  %v7499_v58 = vpop.permute.xlu0 %7498 }
 0x520   :  { %3301 = vmatmul.f32.gmra.mxu1 %v10586_v41  ;;  %7603 = vrot.lane.b32.xlu0 %v7602_v18, %s7960_s21  ;;  %v7481_v41 = vunpack.i.h.bf16 %v7479_v49  ;;  %v3012_v49 = vsel %vm2926_vm11, %v10431_v37, %v7490_v32  ;;  %v4146_v18 = vsel %vm1758_vm2, %v12245_v3, %v7486_v29  ;;  %v3245_v23 = vpop.f32.mrf.mxu1  ;;  %v3243_v32 = vadd.f32 %v10802_v30, %v3242_v36 }
 0x521   :  { %v2517_v10 = vpop.f32.mrf.mxu3  ;;  %v3493_v9 = vpop.f32.mrf.mxu2  ;;  %v4191_v37 = vsel %vm2926_vm11, %v4146_v18, %v7491_v5 }
 0x522   :  { %v7642_v38 = vpack.i.bf16 %v2517_v10, %v10815_v27  ;;  %3528 = vmatmul.f32.gmra.mxu2 %v3011_v33  ;;  %4330 = vmatmul.f32.gmra.mxu3 %v4235_v22  ;;  %v4190_v21 = vsel %vm2926_vm11, %v4145_v24, %v7481_v41  ;;  %v3494_v17 = vadd.f32 %v3493_v9, %v3237_v48  ;;  %v7496_v10 = vunpack.i.h.bf16 %v7494_v43  ;;  %v7504_v9 = vpop.permute.xlu1 %7503 }
 0x523   :  { %v4236_v42 = vsel %vm4227_vm12, %v4190_v21, %v7495_v16  ;;  %v7505_v31 = vunpack.i.l.bf16 %v7504_v9  ;;  %v7501_v24 = vunpack.i.h.bf16 %v7499_v58  ;;  %v7510_v41 = vunpack.i.l.bf16 %v7509_v46 }
 0x524   :  { %7643 = vrot.lane.b32.xlu2 %v7642_v38, %s7958_s0  ;;  %v10846_v53 = vmax.f32 %v3494_v17, 0.0  ;;  %v4237_v22 = vsel %vm4227_vm12, %v4191_v37, %v7496_v10  ;;  %v12246_v21 = vmax.f32 %v10311_v59, 0.0  ;;  %v3246_v16 = vadd.f32 %v10802_v30, %v3245_v23  ;;  %v12247_v23 = vld [vmem:[#allocation58_spill] sm:$0xff] }
 0x525   :  { %v3014_v36 = vsel %vm2926_vm11, %v9592_v63, %v7510_v41  ;;  %v7506_v59 = vunpack.i.h.bf16 %v7504_v9  ;;  %v12251_v41 = vld [vmem:[#allocation54_spill] sm:$0xff] }
 0x526   :  { %v7514_v38 = vpop.permute.xlu0 %7513 }
 0x527   :  { %v7515_v43 = vunpack.i.l.bf16 %v7514_v38  ;;  %v7516_v18 = vunpack.i.h.bf16 %v7514_v38 }
 0x528   :  { %3304 = vmatmul.f32.gmra.mxu1 %v10617_v19  ;;  %v7500_v19 = vunpack.i.l.bf16 %v7499_v58  ;;  %v3248_v48 = vpop.f32.mrf.mxu1 }
 0x529   :  { %v3496_v8 = vpop.f32.mrf.mxu2 }
 0x52a   :  { %v3497_v0 = vadd.f32 %v3496_v8, %v3240_v7  ;;  %3531 = vmatmul.f32.gmra.mxu2 %v3012_v49  ;;  %4333 = vmatmul.f32.gmra.mxu3 %v4236_v42  ;;  %v3013_v33 = vsel %vm2926_vm11, %v10462_v20, %v7500_v19  ;;  %v4147_v20 = vsel %vm1758_vm2, %v12246_v21, %v7505_v31  ;;  %v7519_v17 = vpop.permute.xlu1 %7518  ;;  %v7511_v49 = vunpack.i.h.bf16 %v7509_v46  ;;  %v7524_v42 = vpop.permute.xlu2 %7523 }
 0x52b   :  { %v4192_v7 = vsel %vm2926_vm11, %v4147_v20, %v7501_v24  ;;  %v7520_v3 = vunpack.i.l.bf16 %v7519_v17  ;;  %v7525_v5 = vunpack.i.l.bf16 %v7524_v42  ;;  %v12248_v19 = vmax.f32 %v12247_v23, 0.0 }
 0x52c   :  { %v10848_v11 = vmax.f32 %v3497_v0, 0.0  ;;  %v3249_v20 = vadd.f32 %v10802_v30, %v3248_v48 }
 0x52d   :  { %v4148_v37 = vsel %vm1758_vm2, %v12248_v19, %v7506_v59  ;;  %v12253_v59 = vld [vmem:[#allocation37_spill] sm:$0xff] }
 0x52e   :  { %v10852_v14 = vpack.i.bf16 %v10848_v11, %v10846_v53  ;;  %v4193_v10 = vsel %vm2926_vm11, %v4148_v37, %v7511_v49  ;;  %v7529_v31 = vpop.permute.xlu0 %7528 }
 0x52f   :  { %v4239_v38 = vsel %vm4227_vm12, %v4193_v10, %v7516_v18  ;;  %v7530_v21 = vunpack.i.l.bf16 %v7529_v31  ;;  %v7531_v18 = vunpack.i.h.bf16 %v7529_v31 }
 0x530   :  { %3307 = vmatmul.f32.gmra.mxu1 %v10636_v47  ;;  %7618 = vrot.lane.b32.xlu0 %v10852_v14, %s7960_s21  ;;  %v7632_v47 = vpack.i.bf16 %v10810_v12, %v10777_v51  ;;  %v4238_v12 = vsel %vm4227_vm12, %v4192_v7, %v7515_v43  ;;  %v3251_v9 = vpop.f32.mrf.mxu1 }
 0x531   :  { %v3499_v60 = vpop.f32.mrf.mxu2  ;;  %v3016_v48 = vsel %vm2926_vm11, %v12253_v59, %v7530_v21  ;;  %v7682_v59 = vpack.i.bf16 %v10744_v61, %v10721_v13 }
 0x532   :  { %3534 = vmatmul.f32.gmra.mxu2 %v3013_v33  ;;  %4336 = vmatmul.f32.gmra.mxu3 %v4237_v22  ;;  %v3500_v29 = vadd.f32 %v3499_v60, %v3243_v32  ;;  %v12249_v60 = vld [vmem:[#allocation52_spill] sm:$0xff]  ;;  %v12250_v22 = vld [vmem:[#allocation26_spill] sm:$0xff]  ;;  %v7521_v32 = vunpack.i.h.bf16 %v7519_v17 }
 0x533   :  { %v3015_v46 = vsel %vm2926_vm11, %v12250_v22, %v7520_v3  ;;  %v7539_v3 = vpop.permute.xlu2 %7538 }
 0x534   :  { %v10876_v0 = vmax.f32 %v3500_v29, 0.0  ;;  %v7540_v19 = vunpack.i.l.bf16 %v7539_v3 }
 0x536   :  { %v7544_v22 = vpop.permute.xlu0 %7543 }
 0x538   :  { %3310 = vmatmul.f32.gmra.mxu1 %v10661_v25  ;;  %7633 = vrot.lane.b32.xlu0 %v7632_v47, %s7958_s0  ;;  %v7534_v47 = vpop.permute.xlu1 %7533 }
 0x539   :  { %v3502_v58 = vpop.f32.mrf.mxu2  ;;  %v2520_v24 = vpop.f32.mrf.mxu3  ;;  %v7535_v7 = vunpack.i.l.bf16 %v7534_v47  ;;  %v7536_v31 = vunpack.i.h.bf16 %v7534_v47 }
 0x53a   :  { %v10874_v8 = vadd.f32 %v3502_v58, %v3246_v16  ;;  %3537 = vmatmul.f32.gmra.mxu2 %v3014_v36  ;;  %4339 = vmatmul.f32.gmra.mxu3 %v4238_v12  ;;  %v7652_v16 = vpack.i.bf16 %v2520_v24, %v10817_v15  ;;  %v3252_v58 = vadd.f32 %v10802_v30, %v3251_v9  ;;  %v7526_v12 = vunpack.i.h.bf16 %v7524_v42  ;;  %v12256_v9 = vld [vmem:[#allocation50_spill] sm:$0xff] }
 0x53c   :  { %v3632_v25 = vmax.f32 %v10874_v8, 0.0 }
 0x53e   :  { %v7637_v63 = vpack.i.bf16 %v3632_v25, %v10876_v0 }
 0x540   :  { %3313 = vmatmul.f32.gmra.mxu1 %v10676_v45  ;;  %7638 = vrot.lane.b32.xlu1 %v7637_v63, %s7960_s21  ;;  %v12252_v45 = vmax.f32 %v12251_v41, 0.0  ;;  %v7549_v24 = vpop.permute.xlu1 %7548 }
 0x541   :  { %7648 = vrot.lane.b32.xlu0 %v12249_v60, %s7959_s5  ;;  %v3505_v33 = vpop.f32.mrf.mxu2  ;;  %v12257_v60 = vmax.f32 %v12256_v9, 0.0  ;;  %v7550_v47 = vunpack.i.l.bf16 %v7549_v24 }
 0x542   :  { %3540 = vmatmul.f32.gmra.mxu2 %v3015_v46  ;;  %4342 = vmatmul.f32.gmra.mxu3 %v4239_v38  ;;  %v4149_v43 = vsel %vm1758_vm2, %v12252_v45, %v7525_v5  ;;  %v10900_v36 = vadd.f32 %v3505_v33, %v3249_v20  ;;  %v3254_v5 = vpop.f32.mrf.mxu1  ;;  %v7545_v45 = vunpack.i.l.bf16 %v7544_v22 }
 0x543   :  { %v4194_v29 = vsel %vm2926_vm11, %v4149_v43, %v7521_v32  ;;  %v7667_v33 = vpack.i.bf16 %v3616_v56, %v12257_v60  ;;  %v12258_v56 = vld [vmem:[#allocation27_spill] sm:$0xff] }
 0x544   :  { %v4240_v49 = vsel %vm4227_vm12, %v4194_v29, %v7535_v7  ;;  %v3633_v23 = vmax.f32 %v10900_v36, 0.0  ;;  %v3017_v43 = vsel %vm2926_vm11, %v12258_v56, %v7540_v19  ;;  %v12259_v29 = vld [vmem:[#allocation46_spill] sm:$0xff]  ;;  %v7546_v19 = vunpack.i.h.bf16 %v7544_v22 }
 0x545   :  { %v12260_v7 = vmax.f32 %v12259_v29, 0.0  ;;  %v7697_v56 = vpack.i.bf16 %v10762_v39, %v10746_v26 }
 0x548   :  { %3316 = vmatmul.f32.gmra.mxu1 %v10688_v52  ;;  %7653 = vrot.lane.b32.xlu1 %v7652_v16, %s7958_s0  ;;  %v2523_v52 = vpop.f32.mrf.mxu3 }
 0x549   :  { %7663 = vrot.lane.b32.xlu0 %v10852_v14, %s7958_s0  ;;  %v3508_v17 = vpop.f32.mrf.mxu2  ;;  %v12254_v14 = vld [vmem:[#allocation63_spill] sm:$0xff]  ;;  %v7677_v41 = vpack.i.bf16 %v2523_v52, %v10876_v0  ;;  %v7554_v21 = vpop.permute.xlu2 %7553 }
 0x54a   :  { %v10909_v63 = vadd.f32 %v3508_v17, %v3252_v58  ;;  %3543 = vmatmul.f32.gmra.mxu2 %v3016_v48  ;;  %4345 = vmatmul.f32.gmra.mxu3 %v4240_v49  ;;  %v12255_v37 = vmax.f32 %v12254_v14, 0.0  ;;  %v3257_v20 = vpop.f32.mrf.mxu1  ;;  %v7555_v16 = vunpack.i.l.bf16 %v7554_v21  ;;  %v4151_v58 = vsel %vm1758_vm2, %v12260_v7, %v7545_v45  ;;  %v7564_v52 = vpop.permute.xlu1 %7563 }
 0x54b   :  { %v7541_v17 = vunpack.i.h.bf16 %v7539_v3  ;;  %v3258_v48 = vadd.f32 %v10802_v30, %v3257_v20  ;;  %v7559_v3 = vpop.permute.xlu0 %7558  ;;  %v7551_v45 = vunpack.i.h.bf16 %v7549_v24  ;;  %v7712_v7 = vpack.i.bf16 %v10815_v27, %v10777_v51 }
 0x54c   :  { %v3634_v42 = vmax.f32 %v10909_v63, 0.0  ;;  %v4150_v10 = vsel %vm1758_vm2, %v12255_v37, %v7526_v12  ;;  %v3255_v12 = vadd.f32 %v10802_v30, %v3254_v5  ;;  %v12261_v37 = vld [vmem:[#allocation39_spill] sm:$0xff] }
 0x54d   :  { %v4195_v38 = vsel %vm2926_vm11, %v4150_v10, %v7531_v18  ;;  %v4196_v18 = vsel %vm2926_vm11, %v4151_v58, %v7541_v17  ;;  %v3018_v10 = vsel %vm2926_vm11, %v12261_v37, %v7550_v47  ;;  %v12265_v17 = vld [vmem:[#allocation33_spill] sm:$0xff] }
 0x54e   :  { %v7657_v46 = vpack.i.bf16 %v3634_v42, %v3633_v23  ;;  %v4241_v32 = vsel %vm4227_vm12, %v4195_v38, %v7536_v31  ;;  %v4242_v5 = vsel %vm4227_vm12, %v4196_v18, %v7555_v16  ;;  %v7556_v38 = vunpack.i.h.bf16 %v7554_v21  ;;  %v12262_v31 = vld [vmem:[#allocation76_spill] sm:$0xff] }
 0x54f   :  { %v12264_v21 = vld [vmem:[#allocation32_spill] sm:$0xff] }
 0x550   :  { %7658 = vrot.lane.b32.xlu2 %v7657_v46, %s7960_s21  ;;  %7668 = vrot.lane.b32.xlu1 %v7667_v33, %s7959_s5  ;;  %v7560_v46 = vunpack.i.l.bf16 %v7559_v3  ;;  %v10967_v58 = vpop.f32.mrf.mxu3 }
 0x551   :  { %7678 = vrot.lane.b32.xlu0 %v7677_v41, %s7958_s0  ;;  %v3511_v2 = vpop.f32.mrf.mxu2  ;;  %v12263_v41 = vmax.f32 %v12262_v31, 0.0  ;;  %v7569_v20 = vpop.permute.xlu2 %7568 }
 0x552   :  { %3546 = vmatmul.f32.gmra.mxu2 %v3017_v43  ;;  %4348 = vmatmul.f32.gmra.mxu3 %v4241_v32  ;;  %v10939_v49 = vadd.f32 %v3511_v2, %v3255_v12  ;;  %v7579_v32 = vpop.permute.xlu1 %7578  ;;  %v3019_v47 = vsel %vm2926_vm11, %v12264_v21, %v7560_v46  ;;  %v3260_v16 = vpop.f32.mrf.mxu1  ;;  %v7570_v29 = vunpack.i.l.bf16 %v7569_v20  ;;  %v7571_v21 = vunpack.i.h.bf16 %v7569_v20 }
 0x553   :  { %v4152_v22 = vsel %vm1758_vm2, %v12263_v41, %v7546_v19  ;;  %v7565_v19 = vunpack.i.l.bf16 %v7564_v52  ;;  %v12267_v41 = vld [vmem:[#allocation77_spill] sm:$0xff] }
 0x554   :  { %v12034_v60 = vmax.f32 %v10939_v49, 0.0  ;;  %v4197_v43 = vsel %vm2926_vm11, %v4152_v22, %v7551_v45  ;;  %v12268_v22 = vmax.f32 %v12267_v41, 0.0 }
 0x555   :  { %v4243_v24 = vsel %vm4227_vm12, %v4197_v43, %v7556_v38 }
 0x556   :  { %v4153_v45 = vsel %vm1758_vm2, %v12268_v22, %v7565_v19 }
 0x558   :  { %7683 = vrot.lane.b32.xlu1 %v7682_v59, %s7959_s5  ;;  %v3020_v59 = vsel %vm2926_vm11, %v12265_v17, %v7570_v29  ;;  %v10978_v46 = vpop.f32.mrf.mxu3  ;;  %v12269_v17 = vld [vmem:[#allocation78_spill] sm:$0xff] }
 0x559   :  { %v3514_v14 = vpop.f32.mrf.mxu2 }
 0x55a   :  { %v10946_v9 = vadd.f32 %v3514_v14, %v3258_v48  ;;  %3549 = vmatmul.f32.gmra.mxu2 %v3018_v10  ;;  %4351 = vmatmul.f32.gmra.mxu3 %v4242_v5  ;;  %v7580_v48 = vunpack.i.l.bf16 %v7579_v32  ;;  %v3263_v18 = vpop.f32.mrf.mxu1  ;;  %v7561_v14 = vunpack.i.h.bf16 %v7559_v3  ;;  %v12266_v10 = vld [vmem:[#allocation34_spill] sm:$0xff]  ;;  %v7566_v3 = vunpack.i.h.bf16 %v7564_v52 }
 0x55c   :  { %v12033_v33 = vmax.f32 %v10946_v9, 0.0  ;;  %v3021_v5 = vsel %vm2926_vm11, %v12266_v10, %v7580_v48 }
 0x55e   :  { %v7672_v2 = vpack.i.bf16 %v12033_v33, %v12034_v60  ;;  %v12276_v33 = vld [vmem:[#allocation80_spill] sm:$0xff]  ;;  %v12278_v60 = vld [vmem:[#allocation82_spill] sm:$0xff] }
 0x560   :  { %7673 = vrot.lane.b32.xlu2 %v7672_v2, %s7960_s21  ;;  %7698 = vrot.lane.b32.xlu1 %v7697_v56, %s7959_s5  ;;  %v4198_v2 = vsel %vm2926_vm11, %v4153_v45, %v7561_v14  ;;  %v10991_v10 = vpop.f32.mrf.mxu3  ;;  %v7581_v45 = vunpack.i.h.bf16 %v7579_v32 }
 0x561   :  { %v10970_v12 = vpop.permute.xlu1 %7593 }
 0x562   :  { %3552 = vmatmul.f32.gmra.mxu2 %v3019_v47  ;;  %4354 = vmatmul.f32.gmra.mxu3 %v4243_v24  ;;  %v3266_v43 = vpop.f32.mrf.mxu1  ;;  %v7584_v24 = vpop.permute.xlu2 %7583 }
 0x563   :  { %v7585_v14 = vunpack.i.l.bf16 %v7584_v24 }
 0x568   :  { %7713 = vrot.lane.b32.xlu1 %v7712_v7, %s7959_s5 }
 0x56a   :  { %3555 = vmatmul.f32.gmra.mxu2 %v3020_v59  ;;  %v12270_v59 = vmax.f32 %v12269_v17, 0.0  ;;  %v3269_v22 = vpop.f32.mrf.mxu1 }
 0x56c   :  { %v4154_v48 = vsel %vm1758_vm2, %v12270_v59, %v7566_v3  ;;  %v11002_v59 = vpop.f32.mrf.mxu3 }
 0x56d   :  { %v4199_v19 = vsel %vm2926_vm11, %v4154_v48, %v7571_v21 }
 0x571   :  { %v10974_v37 = vpop.permute.xlu1 %7608 }
 0x572   :  { %v7574_v38 = vpop.permute.xlu0 %7573  ;;  %3558 = vmatmul.f32.gmra.mxu2 %v3021_v5  ;;  %v12271_v5 = vld [vmem:[#allocation25_spill] sm:$0xff] }
 0x573   :  { %v7575_v31 = vunpack.i.l.bf16 %v7574_v38  ;;  %v7576_v47 = vunpack.i.h.bf16 %v7574_v38  ;;  %v12272_v38 = vld [vmem:[#allocation81_spill] sm:$0xff] }
 0x575   :  { %v4244_v56 = vsel %vm4227_vm12, %v4198_v2, %v7575_v31  ;;  %v4245_v20 = vsel %vm4227_vm12, %v4199_v19, %v7576_v47  ;;  %v12273_v31 = vmax.f32 %v12272_v38, 0.0  ;;  %v7595_v47 = vunpack.i.l.bf16 %v10970_v12  ;;  %v3272_v38 = vpop.f32.mrf.mxu1 }
 0x576   :  { %4357 = vmatmul.f32.gmra.mxu3 %v4244_v56  ;;  %v3261_v19 = vadd.f32 %v10802_v30, %v3260_v16  ;;  %v7596_v16 = vunpack.i.h.bf16 %v10970_v12 }
 0x577   :  { %v4155_v41 = vsel %vm1758_vm2, %v12273_v31, %v7585_v14  ;;  %v12274_v14 = vld [vmem:[#allocation51_spill] sm:$0xff] }
 0x578   :  { %v4200_v3 = vsel %vm2926_vm11, %v4155_v41, %v7581_v45 }
 0x57a   :  { %v10985_v29 = vpop.permute.xlu1 %7623 }
 0x57b   :  { %v7626_v7 = vunpack.i.h.bf16 %v10985_v29 }
 0x57d   :  { %v3022_v52 = vsel %vm2926_vm11, %v12271_v5, %v7626_v7  ;;  %v7586_v7 = vunpack.i.h.bf16 %v7584_v24  ;;  %v7599_v5 = vpop.permute.xlu2 %7598 }
 0x57e   :  { %3561 = vmatmul.f32.gmra.mxu2 %v3022_v52  ;;  %4360 = vmatmul.f32.gmra.mxu3 %v4245_v20  ;;  %v12275_v52 = vmax.f32 %v12274_v14, 0.0  ;;  %v3264_v20 = vadd.f32 %v10802_v30, %v3263_v18  ;;  %v7600_v45 = vunpack.i.l.bf16 %v7599_v5  ;;  %v7601_v12 = vunpack.i.h.bf16 %v7599_v5 }
 0x580   :  { %v4156_v32 = vsel %vm1758_vm2, %v12275_v52, %v7586_v7  ;;  %v4157_v7 = vsel %vm1758_vm2, %v12276_v33, %v7600_v45  ;;  %v3267_v33 = vadd.f32 %v10802_v30, %v3266_v43  ;;  %v12277_v45 = vld [vmem:[#allocation79_spill] sm:$0xff]  ;;  %v7611_v43 = vunpack.i.h.bf16 %v10974_v37 }
 0x581   :  { %v4201_v41 = vsel %vm2926_vm11, %v4156_v32, %v7595_v47  ;;  %v4202_v47 = vsel %vm2926_vm11, %v4157_v7, %v7596_v16  ;;  %v3275_v32 = vpop.f32.mrf.mxu1 }
 0x582   :  { %v7589_v2 = vpop.permute.xlu0 %7588 }
 0x583   :  { %v7590_v56 = vunpack.i.l.bf16 %v7589_v2  ;;  %v7591_v48 = vunpack.i.h.bf16 %v7589_v2 }
 0x585   :  { %v4246_v21 = vsel %vm4227_vm12, %v4200_v3, %v7590_v56  ;;  %v3517_v17 = vpop.f32.mrf.mxu2  ;;  %v4247_v56 = vsel %vm4227_vm12, %v4201_v41, %v7591_v48 }
 0x586   :  { %4363 = vmatmul.f32.gmra.mxu3 %v4246_v21  ;;  %v3518_v31 = vadd.f32 %v3517_v17, %v3261_v19 }
 0x588   :  { %v3637_v21 = vmax.f32 %v3518_v31, 0.0  ;;  %v7610_v31 = vunpack.i.l.bf16 %v10974_v37 }
 0x58d   :  { %v3520_v24 = vpop.f32.mrf.mxu2  ;;  %v11012_v2 = vpop.f32.mrf.mxu3 }
 0x58e   :  { %4366 = vmatmul.f32.gmra.mxu3 %v4247_v56  ;;  %v3521_v3 = vadd.f32 %v3520_v24, %v3264_v20  ;;  %v4158_v56 = vsel %vm1758_vm2, %v12277_v45, %v7601_v12  ;;  %v3270_v24 = vadd.f32 %v10802_v30, %v3269_v22 }
 0x590   :  { %v3638_v14 = vmax.f32 %v3521_v3, 0.0  ;;  %v7614_v3 = vpop.permute.xlu2 %7613 }
 0x591   :  { %v7616_v37 = vunpack.i.h.bf16 %v7614_v3 }
 0x592   :  { %v7687_v18 = vpack.i.bf16 %v3638_v14, %v3637_v21  ;;  %v7604_v52 = vpop.permute.xlu0 %7603  ;;  %v4203_v21 = vsel %vm2926_vm11, %v4158_v56, %v7610_v31 }
 0x593   :  { %v7605_v17 = vunpack.i.l.bf16 %v7604_v52  ;;  %v7606_v41 = vunpack.i.h.bf16 %v7604_v52  ;;  %v3278_v52 = vpop.f32.mrf.mxu1 }
 0x594   :  { %7688 = vrot.lane.b32.xlu2 %v7687_v18, %s7958_s0 }
 0x595   :  { %v4248_v48 = vsel %vm4227_vm12, %v4202_v47, %v7605_v17  ;;  %v3523_v19 = vpop.f32.mrf.mxu2  ;;  %v11020_v20 = vpop.f32.mrf.mxu3  ;;  %v4249_v14 = vsel %vm4227_vm12, %v4203_v21, %v7606_v41  ;;  %v7615_v17 = vunpack.i.l.bf16 %v7614_v3 }
 0x596   :  { %4369 = vmatmul.f32.gmra.mxu3 %v4248_v48  ;;  %v3524_v16 = vadd.f32 %v3523_v19, %v3267_v33 }
 0x597   :  { %v4159_v19 = vsel %vm1758_vm2, %v12278_v60, %v7615_v17  ;;  %v4160_v17 = vsel %vm1758_vm2, %v10287_v6, %v7616_v37 }
 0x598   :  { %v3639_v47 = vmax.f32 %v3524_v16, 0.0  ;;  %v4204_v31 = vsel %vm2926_vm11, %v4159_v19, %v7611_v43  ;;  %v7629_v56 = vpop.permute.xlu2 %7628  ;;  %v7625_v16 = vunpack.i.l.bf16 %v10985_v29  ;;  %v3276_v43 = vadd.f32 %v10802_v30, %v3275_v32 }
 0x59d   :  { %v3526_v7 = vpop.f32.mrf.mxu2  ;;  %v11029_v5 = vpop.f32.mrf.mxu3 }
 0x59e   :  { %4372 = vmatmul.f32.gmra.mxu3 %v4249_v14  ;;  %v3527_v18 = vadd.f32 %v3526_v7, %v3270_v24  ;;  %v3273_v14 = vadd.f32 %v10802_v30, %v3272_v38  ;;  %v3281_v7 = vpop.f32.mrf.mxu1 }
 0x5a0   :  { %v3640_v48 = vmax.f32 %v3527_v18, 0.0 }
 0x5a2   :  { %v7702_v12 = vpack.i.bf16 %v3640_v48, %v3639_v47  ;;  %v7619_v45 = vpop.permute.xlu0 %7618  ;;  %v4205_v48 = vsel %vm2926_vm11, %v4160_v17, %v7625_v16 }
 0x5a3   :  { %v7620_v22 = vunpack.i.l.bf16 %v7619_v45  ;;  %v7621_v21 = vunpack.i.h.bf16 %v7619_v45  ;;  %v7644_v45 = vpop.permute.xlu2 %7643 }
 0x5a4   :  { %7703 = vrot.lane.b32.xlu2 %v7702_v12, %s7958_s0  ;;  %v12279_v12 = vld [vmem:[#allocation19_spill] sm:$0xff]  ;;  %v7646_v32 = vunpack.i.h.bf16 %v7644_v45 }
 0x5a5   :  { %v4250_v41 = vsel %vm4227_vm12, %v4204_v31, %v7620_v22  ;;  %v3529_v33 = vpop.f32.mrf.mxu2  ;;  %v11037_v24 = vpop.f32.mrf.mxu3  ;;  %v4251_v3 = vsel %vm4227_vm12, %v4205_v48, %v7621_v21  ;;  %v7630_v31 = vunpack.i.l.bf16 %v7629_v56  ;;  %v3279_v21 = vadd.f32 %v10802_v30, %v3278_v52 }
 0x5a6   :  { %4375 = vmatmul.f32.gmra.mxu3 %v4250_v41  ;;  %v3530_v47 = vadd.f32 %v3529_v33, %v3273_v14  ;;  %v3284_v48 = vpop.f32.mrf.mxu1 }
 0x5a8   :  { %v3641_v41 = vmax.f32 %v3530_v47, 0.0  ;;  %v3024_v47 = vsel %vm2926_vm11, %v12229_v50, %v7646_v32  ;;  %v7722_v50 = vpack.i.bf16 %v10846_v53, %v10817_v15 }
 0x5aa   :  { %v7634_v18 = vpop.permute.xlu0 %7633 }
 0x5ab   :  { %v7636_v60 = vunpack.i.h.bf16 %v7634_v18  ;;  %v7635_v6 = vunpack.i.l.bf16 %v7634_v18 }
 0x5ad   :  { %v3023_v22 = vsel %vm2926_vm11, %v12279_v12, %v7636_v60  ;;  %v3532_v29 = vpop.f32.mrf.mxu2  ;;  %v11048_v19 = vpop.f32.mrf.mxu3  ;;  %v4161_v60 = vsel %vm1758_vm2, %v10383_v54, %v7630_v31  ;;  %v7631_v54 = vunpack.i.h.bf16 %v7629_v56 }
 0x5ae   :  { %3564 = vmatmul.f32.gmra.mxu2 %v3023_v22  ;;  %4378 = vmatmul.f32.gmra.mxu3 %v4251_v3  ;;  %v3533_v38 = vadd.f32 %v3532_v29, %v3276_v43  ;;  %v4206_v43 = vsel %vm2926_vm11, %v4161_v60, %v7635_v6  ;;  %v7645_v29 = vunpack.i.l.bf16 %v7644_v45 }
 0x5b0   :  { %v3642_v37 = vmax.f32 %v3533_v38, 0.0 }
 0x5b2   :  { %v7717_v33 = vpack.i.bf16 %v3642_v37, %v3641_v41  ;;  %v7639_v14 = vpop.permute.xlu1 %7638 }
 0x5b3   :  { %v7640_v16 = vunpack.i.l.bf16 %v7639_v14  ;;  %v7649_v17 = vpop.permute.xlu0 %7648  ;;  %v7641_v38 = vunpack.i.h.bf16 %v7639_v14 }
 0x5b4   :  { %7718 = vrot.lane.b32.xlu2 %v7717_v33, %s7958_s0  ;;  %v4162_v33 = vsel %vm1758_vm2, %v10454_v55, %v7631_v54  ;;  %v7650_v45 = vunpack.i.l.bf16 %v7649_v17 }
 0x5b5   :  { %v4252_v18 = vsel %vm4227_vm12, %v4206_v43, %v7640_v16  ;;  %v3535_v12 = vpop.f32.mrf.mxu2  ;;  %v11060_v3 = vpop.f32.mrf.mxu3  ;;  %v3282_v16 = vadd.f32 %v10802_v30, %v3281_v7  ;;  %v4207_v56 = vsel %vm2926_vm11, %v4162_v33, %v7645_v29 }
 0x5b6   :  { %3567 = vmatmul.f32.gmra.mxu2 %v3024_v47  ;;  %4381 = vmatmul.f32.gmra.mxu3 %v4252_v18  ;;  %v11058_v22 = vadd.f32 %v3535_v12, %v3279_v21  ;;  %v4253_v14 = vsel %vm4227_vm12, %v4207_v56, %v7641_v38  ;;  %v3287_v21 = vpop.f32.mrf.mxu1  ;;  %v7659_v7 = vpop.permute.xlu2 %7658  ;;  %v4163_v18 = vsel %vm1758_vm2, %v10368_v62, %v7650_v45 }
 0x5b7   :  { %v7660_v29 = vunpack.i.l.bf16 %v7659_v7 }
 0x5b8   :  { %v3643_v52 = vmax.f32 %v11058_v22, 0.0 }
 0x5ba   :  { %v7692_v31 = vpack.i.bf16 %v3643_v52, %v3642_v37  ;;  %v7654_v41 = vpop.permute.xlu1 %7653 }
 0x5bb   :  { %v7656_v6 = vunpack.i.h.bf16 %v7654_v41  ;;  %v7664_v32 = vpop.permute.xlu0 %7663  ;;  %v7655_v43 = vunpack.i.l.bf16 %v7654_v41  ;;  %v7651_v41 = vunpack.i.h.bf16 %v7649_v17 }
 0x5bc   :  { %7723 = vrot.lane.b32.xlu2 %v7722_v50, %s7959_s5  ;;  %7693 = vrot.lane.b32.xlu0 %v7692_v31, %s7960_s21  ;;  %v7665_v33 = vunpack.i.l.bf16 %v7664_v32 }
 0x5bd   :  { %v3025_v37 = vsel %vm2926_vm11, %v12235_v34, %v7656_v6  ;;  %v3538_v60 = vpop.f32.mrf.mxu2  ;;  %v11076_v47 = vpop.f32.mrf.mxu3  ;;  %v4208_v54 = vsel %vm2926_vm11, %v4163_v18, %v7655_v43  ;;  %v3285_v34 = vadd.f32 %v10802_v30, %v3284_v48  ;;  %v4164_v48 = vsel %vm1758_vm2, %v10361_v4, %v7651_v41 }
 0x5be   :  { %3570 = vmatmul.f32.gmra.mxu2 %v3025_v37  ;;  %4384 = vmatmul.f32.gmra.mxu3 %v4253_v14  ;;  %v3539_v55 = vadd.f32 %v3538_v60, %v3282_v16  ;;  %v4254_v50 = vsel %vm4227_vm12, %v4208_v54, %v7660_v29  ;;  %v3290_v56 = vpop.f32.mrf.mxu1  ;;  %v4209_v17 = vsel %vm2926_vm11, %v4164_v48, %v7665_v33  ;;  %v7661_v43 = vunpack.i.h.bf16 %v7659_v7  ;;  %v7674_v4 = vpop.permute.xlu2 %7673 }
 0x5bf   :  { %v3288_v18 = vadd.f32 %v10802_v30, %v3287_v21  ;;  %v3291_v33 = vadd.f32 %v10802_v30, %v3290_v56 }
 0x5c0   :  { %v3644_v12 = vmax.f32 %v3539_v55, 0.0 }
 0x5c2   :  { %v7669_v45 = vpop.permute.xlu1 %7668 }
 0x5c3   :  { %v7679_v31 = vpop.permute.xlu0 %7678  ;;  %v7670_v55 = vunpack.i.l.bf16 %v7669_v45  ;;  %v7671_v21 = vunpack.i.h.bf16 %v7669_v45 }
 0x5c4   :  { %v7681_v38 = vunpack.i.h.bf16 %v7679_v31  ;;  %3936 = vrot.lane.b32.xlu2 %v3644_v12, %s7958_s0 }
 0x5c5   :  { %v3541_v6 = vpop.f32.mrf.mxu2  ;;  %v11086_v14 = vpop.f32.mrf.mxu3 }
 0x5c6   :  { %v3026_v16 = vsel %vm2926_vm11, %v12234_v35, %v7681_v38  ;;  %4387 = vmatmul.f32.gmra.mxu3 %v4254_v50  ;;  %v3542_v62 = vadd.f32 %v3541_v6, %v3285_v34  ;;  %v4255_v35 = vsel %vm4227_vm12, %v4209_v17, %v7661_v43  ;;  %v4165_v34 = vsel %vm1758_vm2, %v10563_v1, %v7670_v55  ;;  %v3293_v38 = vpop.f32.mrf.mxu1 }
 0x5c7   :  { %3573 = vmatmul.f32.gmra.mxu2 %v3026_v16  ;;  %v7675_v50 = vunpack.i.l.bf16 %v7674_v4  ;;  %v3294_v56 = vadd.f32 %v10802_v30, %v3293_v38 }
 0x5c8   :  { %v3645_v37 = vmax.f32 %v3542_v62, 0.0 }
 0x5ca   :  { %v7707_v60 = vpack.i.bf16 %v3645_v37, %v3644_v12  ;;  %v7666_v12 = vunpack.i.h.bf16 %v7664_v32  ;;  %v4166_v32 = vsel %vm1758_vm2, %v10558_v57, %v7671_v21  ;;  %v11123_v21 = vld [vmem:[%s8011_s8] ss:$0 sm:$0xff]  ;;  %s12297_s8 = sld [smem:[#allocation5_spill]] }
 0x5cb   :  { %v4326_v36 = vadd.f32 %v11123_v21, %v11020_v20  ;;  %v4329_v63 = vadd.f32 %v11123_v21, %v11029_v5 }
 0x5cc   :  { %3938 = vrot.lane.b32.xlu2 %v3645_v37, %s7958_s0  ;;  %7708 = vrot.lane.b32.xlu0 %v7707_v60, %s7960_s21  ;;  %v4210_v7 = vsel %vm2926_vm11, %v4165_v34, %v7666_v12  ;;  %v7680_v37 = vunpack.i.l.bf16 %v7679_v31  ;;  %v7676_v60 = vunpack.i.h.bf16 %v7674_v4 }
 0x5cd   :  { %v3544_v54 = vpop.f32.mrf.mxu2  ;;  %v4346_v6 = vpop.f32.mrf.mxu3  ;;  %v4256_v16 = vsel %vm4227_vm12, %v4210_v7, %v7675_v50  ;;  %v4451_v20 = vmax.f32 %v4329_v63, 0.0 }
 0x5ce   :  { %4390 = vmatmul.f32.gmra.mxu3 %v4255_v35  ;;  %v3545_v29 = vadd.f32 %v3544_v54, %v3288_v18  ;;  %v4211_v45 = vsel %vm2926_vm11, %v4166_v32, %v7680_v37  ;;  %v3296_v17 = vpop.f32.mrf.mxu1 }
 0x5cf   :  { %v4257_v43 = vsel %vm4227_vm12, %v4211_v45, %v7676_v60  ;;  %v3297_v35 = vadd.f32 %v10802_v30, %v3296_v17  ;;  %v4347_v45 = vadd.f32 %v11123_v21, %v4346_v6 }
 0x5d0   :  { %v3646_v41 = vmax.f32 %v3545_v29, 0.0 }
 0x5d1   :  { %v4457_v17 = vmax.f32 %v4347_v45, 0.0 }
 0x5d4   :  { %3940 = vrot.lane.b32.xlu2 %v3646_v41, %s7958_s0  ;;  %4070 = vrot.lane.b32.xlu0 %v3646_v41, %s7960_s21 }
 0x5d5   :  { %v3547_v62 = vpop.f32.mrf.mxu2  ;;  %v4349_v31 = vpop.f32.mrf.mxu3 }
 0x5d6   :  { %4393 = vmatmul.f32.gmra.mxu3 %v4256_v16  ;;  %v3548_v1 = vadd.f32 %v3547_v62, %v3291_v33  ;;  %v3299_v34 = vpop.f32.mrf.mxu1  ;;  %v4341_v16 = vadd.f32 %v11123_v21, %v11076_v47  ;;  %v4344_v47 = vadd.f32 %v11123_v21, %v11086_v14 }
 0x5d8   :  { %v3647_v48 = vmax.f32 %v3548_v1, 0.0  ;;  %v4455_v1 = vmax.f32 %v4341_v16, 0.0 }
 0x5da   :  { %4072 = vrot.lane.b32.xlu1 %v3647_v48, %s7960_s21 }
 0x5dc   :  { %3942 = vrot.lane.b32.xlu2 %v3647_v48, %s7958_s0  ;;  %3934 = vrot.lane.b32.xlu0 %v3643_v52, %s7958_s0  ;;  %v3300_v52 = vadd.f32 %v10802_v30, %v3299_v34 }
 0x5dd   :  { %v3550_v55 = vpop.f32.mrf.mxu2  ;;  %v4352_v4 = vpop.f32.mrf.mxu3 }
 0x5de   :  { %4396 = vmatmul.f32.gmra.mxu3 %v4257_v43  ;;  %v3551_v57 = vadd.f32 %v3550_v55, %v3294_v56  ;;  %v3302_v7 = vpop.f32.mrf.mxu1  ;;  %v4456_v55 = vmax.f32 %v4344_v47, 0.0 }
 0x5df   :  { %v3303_v33 = vadd.f32 %v10802_v30, %v3302_v7 }
 0x5e0   :  { %v3648_v18 = vmax.f32 %v3551_v57, 0.0  ;;  %v7747_v6 = vpack.i.bf16 %v4457_v17, %v4456_v55 }
 0x5e2   :  { %4074 = vrot.lane.b32.xlu1 %v3648_v18, %s7960_s21 }
 0x5e4   :  { %3944 = vrot.lane.b32.xlu2 %v3648_v18, %s7958_s0 }
 0x5e5   :  { %v3553_v54 = vpop.f32.mrf.mxu2  ;;  %v11120_v50 = vpop.f32.mrf.mxu3 }
 0x5e6   :  { %v3554_v29 = vadd.f32 %v3553_v54, %v3297_v35  ;;  %v3305_v56 = vpop.f32.mrf.mxu1  ;;  %v4353_v35 = vadd.f32 %v11123_v21, %v4352_v4  ;;  %v4450_v4 = vmax.f32 %v4326_v36, 0.0 }
 0x5e7   :  { %v3306_v43 = vadd.f32 %v10802_v30, %v3305_v56 }
 0x5e8   :  { %v3649_v22 = vmax.f32 %v3554_v29, 0.0  ;;  %v4459_v54 = vmax.f32 %v4353_v35, 0.0 }
 0x5ea   :  { %3778 = vrot.lane.b32.xlu1 %v10848_v11, %s7959_s5  ;;  %4076 = vrot.lane.b32.xlu0 %v3649_v22, %s7960_s21 }
 0x5ec   :  { %3946 = vrot.lane.b32.xlu2 %v3649_v22, %s7958_s0  ;;  %v12281_v22 = vmax.f32 %v10946_v9, 0.0  ;;  %v4335_v9 = vadd.f32 %v11123_v21, %v11048_v19  ;;  %v12282_v19 = vld [vmem:[#allocation24_spill] sm:$0xff] }
 0x5ed   :  { %v3556_v12 = vpop.f32.mrf.mxu2  ;;  %v12283_v56 = vmax.f32 %v12282_v19, 0.0 }
 0x5ee   :  { %v3557_v38 = vadd.f32 %v3556_v12, %v3300_v52  ;;  %v7727_v52 = vpack.i.bf16 %v4450_v4, %v12281_v22  ;;  %v4332_v12 = vadd.f32 %v11123_v21, %v11037_v24  ;;  %v3308_v16 = vpop.f32.mrf.mxu1 }
 0x5f0   :  { %v3650_v41 = vmax.f32 %v3557_v38, 0.0 }
 0x5f2   :  { %3780 = vrot.lane.b32.xlu1 %v10876_v0, %s7959_s5  ;;  %4078 = vrot.lane.b32.xlu0 %v3650_v41, %s7960_s21 }
 0x5f4   :  { %3948 = vrot.lane.b32.xlu2 %v3650_v41, %s7958_s0 }
 0x5f5   :  { %v3559_v62 = vpop.f32.mrf.mxu2 }
 0x5f6   :  { %v3560_v37 = vadd.f32 %v3559_v62, %v3303_v33  ;;  %v4453_v33 = vmax.f32 %v4335_v9, 0.0  ;;  %v7684_v62 = vpop.permute.xlu1 %7683 }
 0x5f8   :  { %v3651_v32 = vmax.f32 %v3560_v37, 0.0  ;;  %v7689_v37 = vpop.permute.xlu2 %7688 }
 0x5f9   :  { %v11132_v48 = vpop.f32.mrf.mxu3 }
 0x5fa   :  { %v7732_v60 = vpack.i.bf16 %v4455_v1, %v3651_v32  ;;  %3782 = vrot.lane.b32.xlu1 %v3632_v25, %s7959_s5  ;;  %4080 = vrot.lane.b32.xlu0 %v3651_v32, %s7960_s21  ;;  %v4350_v25 = vadd.f32 %v11123_v21, %v4349_v31  ;;  %v12280_v31 = vmax.f32 %v10939_v49, 0.0  ;;  %v4338_v49 = vadd.f32 %v11123_v21, %v11060_v3 }
 0x5fb   :  { %v7685_v32 = vunpack.i.l.bf16 %v7684_v62  ;;  %v7690_v3 = vunpack.i.l.bf16 %v7689_v37 }
 0x5fc   :  { %7733 = vrot.lane.b32.xlu2 %v7732_v60, %s7958_s0  ;;  %v4458_v30 = vmax.f32 %v4350_v25, 0.0  ;;  %v4454_v24 = vmax.f32 %v4338_v49, 0.0 }
 0x5fd   :  { %v4167_v17 = vsel %vm1758_vm2, %v12283_v56, %v7685_v32  ;;  %v12286_v32 = vmax.f32 %v10723_v28, 0.0  ;;  %v12287_v28 = vmax.f32 %v10695_v44, 0.0 }
 0x5fe   :  { %v7762_v34 = vpack.i.bf16 %v4459_v54, %v4458_v30  ;;  %v7757_v5 = vpack.i.bf16 %v4454_v24, %v4453_v33  ;;  %v7686_v30 = vunpack.i.h.bf16 %v7684_v62 }
 0x600   :  { %v7704_v63 = vpop.permute.xlu2 %7703 }
 0x601   :  { %v3562_v57 = vpop.f32.mrf.mxu2  ;;  %v11143_v18 = vpop.f32.mrf.mxu3 }
 0x602   :  { %v3563_v8 = vadd.f32 %v3562_v57, %v3306_v43  ;;  %3784 = vrot.lane.b32.xlu1 %v3633_v23, %s7959_s5  ;;  %v7893_v43 = vld [vmem:[%s8001_s29] ss:$0 sm:$0xff]  ;;  %s12295_s29 = sld [smem:[#allocation8_spill]] }
 0x603   :  { %v3309_v55 = vadd.f32 %v7893_v43, %v3308_v16  ;;  %v7705_v16 = vunpack.i.l.bf16 %v7704_v63 }
 0x604   :  { %v3652_v14 = vmax.f32 %v3563_v8, 0.0  ;;  %7748 = vrot.lane.b32.xlu2 %v7747_v6, %s7958_s0  ;;  %v4212_v6 = vsel %vm2926_vm11, %v4167_v17, %v7690_v3 }
 0x606   :  { %4082 = vrot.lane.b32.xlu0 %v3652_v14, %s7960_s21  ;;  %v3311_v14 = vpop.f32.mrf.mxu1 }
 0x609   :  { %v11152_v29 = vpop.f32.mrf.mxu3 }
 0x60a   :  { %3786 = vrot.lane.b32.xlu1 %v3634_v42, %s7959_s5  ;;  %v4452_v42 = vmax.f32 %v4332_v12, 0.0  ;;  %v7699_v12 = vpop.permute.xlu1 %7698 }
 0x60b   :  { %v7700_v24 = vunpack.i.l.bf16 %v7699_v12 }
 0x60c   :  { %7763 = vrot.lane.b32.xlu2 %v7762_v34, %s7958_s0  ;;  %v7742_v41 = vpack.i.bf16 %v4452_v42, %v4451_v20  ;;  %v7691_v34 = vunpack.i.h.bf16 %v7689_v37 }
 0x60d   :  { %v4169_v3 = vsel %vm1758_vm2, %v12286_v32, %v7700_v24  ;;  %v4359_v32 = vadd.f32 %v11123_v21, %v11132_v48 }
 0x60e   :  { %v3314_v33 = vpop.f32.mrf.mxu1 }
 0x611   :  { %v4367_v23 = vpop.f32.mrf.mxu3 }
 0x612   :  { %3788 = vrot.lane.b32.xlu1 %v12280_v31, %s7959_s5  ;;  %v4368_v45 = vadd.f32 %v11123_v21, %v4367_v23  ;;  %v12284_v31 = vld [vmem:[#allocation31_spill] sm:$0xff] }
 0x613   :  { %v12285_v4 = vmax.f32 %v12284_v31, 0.0  ;;  %v7719_v31 = vpop.permute.xlu2 %7718 }
 0x614   :  { %v4464_v57 = vmax.f32 %v4368_v45, 0.0  ;;  %v3315_v45 = vadd.f32 %v7893_v43, %v3314_v33 }
 0x615   :  { %v4168_v22 = vsel %vm1758_vm2, %v12285_v4, %v7686_v30 }
 0x616   :  { %v4213_v42 = vsel %vm2926_vm11, %v4168_v22, %v7691_v34 }
 0x619   :  { %v11167_v38 = vpop.f32.mrf.mxu3 }
 0x61a   :  { %7728 = vrot.lane.b32.xlu1 %v7727_v52, %s7959_s5  ;;  %v3312_v52 = vadd.f32 %v7893_v43, %v3311_v14 }
 0x621   :  { %v11174_v7 = vpop.f32.mrf.mxu3 }
 0x622   :  { %7743 = vrot.lane.b32.xlu1 %v7742_v41, %s7959_s5 }
 0x629   :  { %v11179_v1 = vpop.f32.mrf.mxu3 }
 0x62a   :  { %7758 = vrot.lane.b32.xlu1 %v7757_v5, %s7959_s5 }
 0x62e   :  { %v7694_v60 = vpop.permute.xlu0 %7693 }
 0x62f   :  { %v7695_v47 = vunpack.i.l.bf16 %v7694_v60  ;;  %v7696_v23 = vunpack.i.h.bf16 %v7694_v60  ;;  %v4214_v60 = vsel %vm2926_vm11, %v4169_v3, %v7705_v16 }
 0x631   :  { %v3565_v35 = vpop.f32.mrf.mxu2  ;;  %v11188_v8 = vpop.f32.mrf.mxu3  ;;  %v4258_v25 = vsel %vm4227_vm12, %v4212_v6, %v7695_v47  ;;  %v4259_v49 = vsel %vm4227_vm12, %v4213_v42, %v7696_v23  ;;  %v4356_v23 = vadd.f32 %v11123_v21, %v11120_v50  ;;  %v7720_v42 = vunpack.i.l.bf16 %v7719_v31 }
 0x632   :  { %v3566_v54 = vadd.f32 %v3565_v35, %v3309_v55  ;;  %4399 = vmatmul.f32.gmra.mxu3 %v4258_v25  ;;  %4543 = vrot.lane.b32.xlu1 %v4464_v57, %s7960_s21  ;;  %v7701_v55 = vunpack.i.h.bf16 %v7699_v12  ;;  %v7706_v57 = vunpack.i.h.bf16 %v7704_v63  ;;  %v3317_v25 = vpop.f32.mrf.mxu1  ;;  %v4362_v50 = vadd.f32 %v11123_v21, %v11143_v18 }
 0x634   :  { %v3653_v36 = vmax.f32 %v3566_v54, 0.0  ;;  %v4170_v14 = vsel %vm1758_vm2, %v12287_v28, %v7701_v55  ;;  %v7714_v54 = vpop.permute.xlu1 %7713  ;;  %v4462_v18 = vmax.f32 %v4362_v50, 0.0 }
 0x635   :  { %v4215_v34 = vsel %vm2926_vm11, %v4170_v14, %v7706_v57  ;;  %v7715_v44 = vunpack.i.l.bf16 %v7714_v54 }
 0x636   :  { %4084 = vrot.lane.b32.xlu0 %v3653_v36, %s7960_s21  ;;  %v3318_v36 = vadd.f32 %v7893_v43, %v3317_v25 }
 0x639   :  { %v3568_v20 = vpop.f32.mrf.mxu2  ;;  %v11197_v41 = vpop.f32.mrf.mxu3 }
 0x63a   :  { %v3569_v9 = vadd.f32 %v3568_v20, %v3312_v52  ;;  %4402 = vmatmul.f32.gmra.mxu3 %v4259_v49 }
 0x63c   :  { %v3654_v5 = vmax.f32 %v3569_v9, 0.0  ;;  %v4460_v9 = vmax.f32 %v4356_v23, 0.0 }
 0x63e   :  { %4086 = vrot.lane.b32.xlu0 %v3654_v5, %s7960_s21  ;;  %v7709_v62 = vpop.permute.xlu0 %7708  ;;  %v12288_v5 = vmax.f32 %v10714_v40, 0.0 }
 0x63f   :  { %v7710_v37 = vunpack.i.l.bf16 %v7709_v62  ;;  %v7711_v35 = vunpack.i.h.bf16 %v7709_v62 }
 0x640   :  { %v4171_v62 = vsel %vm1758_vm2, %v12288_v5, %v7715_v44  ;;  %v4654_v5 = vld [vmem:[%s8016_s14 + $0x70] sm:$0xff] }
 0x641   :  { %v3571_v47 = vpop.f32.mrf.mxu2  ;;  %v4385_v19 = vpop.f32.mrf.mxu3  ;;  %v4260_v56 = vsel %vm4227_vm12, %v4214_v60, %v7710_v37  ;;  %v4261_v22 = vsel %vm4227_vm12, %v4215_v34, %v7711_v35  ;;  %v4216_v37 = vsel %vm2926_vm11, %v4171_v62, %v7720_v42  ;;  %v7716_v60 = vunpack.i.h.bf16 %v7714_v54  ;;  %v4653_v62 = vld [vmem:[%s8016_s14 + $0x68] sm:$0xff] }
 0x642   :  { %v3572_v17 = vadd.f32 %v3571_v47, %v3315_v45  ;;  %4405 = vmatmul.f32.gmra.mxu3 %v4260_v56  ;;  %v4386_v30 = vadd.f32 %v11123_v21, %v4385_v19  ;;  %v7721_v47 = vunpack.i.h.bf16 %v7719_v31  ;;  %v4461_v19 = vmax.f32 %v4359_v32, 0.0  ;;  %v7724_v56 = vpop.permute.xlu2 %7723  ;;  %v4650_v32 = vld [vmem:[%s8016_s14 + $0x50] sm:$0xff] }
 0x643   :  { %v7725_v35 = vunpack.i.l.bf16 %v7724_v56 }
 0x644   :  { %v3655_v6 = vmax.f32 %v3572_v17, 0.0  ;;  %v4470_v20 = vmax.f32 %v4386_v30, 0.0  ;;  %v7752_v40 = vpack.i.bf16 %v4462_v18, %v4461_v19  ;;  %v4172_v17 = vsel %vm1758_vm2, %v10721_v13, %v7716_v60  ;;  %v4648_v60 = vld [vmem:[%s8016_s14 + $0x40] sm:$0xff]  ;;  %v4646_v19 = vld [vmem:[%s8016_s14 + $0x30] sm:$0xff] }
 0x645   :  { %v4217_v55 = vsel %vm2926_vm11, %v4172_v17, %v7721_v47  ;;  %v4173_v14 = vsel %vm1758_vm2, %v10744_v61, %v7725_v35  ;;  %v4647_v47 = vld [vmem:[%s8016_s14 + $0x38] sm:$0xff]  ;;  %v4645_v17 = vld [vmem:[%s8016_s14 + $0x28] sm:$0xff] }
 0x646   :  { %4088 = vrot.lane.b32.xlu0 %v3655_v6, %s7960_s21  ;;  %v4071_v33 = vpop.permute.xlu0 %4070  ;;  %v4365_v6 = vadd.f32 %v11123_v21, %v11152_v29 }
 0x647   :  { %v4262_v3 = vsel %vm4227_vm12, %v4216_v37, %v4071_v33  ;;  %v4652_v37 = vld [vmem:[%s8016_s14 + $0x60] sm:$0xff] }
 0x648   :  { %v4463_v28 = vmax.f32 %v4365_v6, 0.0 }
 0x649   :  { %v4388_v4 = vpop.f32.mrf.mxu3 }
 0x64a   :  { %v3574_v52 = vpop.f32.mrf.mxu2  ;;  %v4389_v12 = vadd.f32 %v11123_v21, %v4388_v4  ;;  %4408 = vmatmul.f32.gmra.mxu3 %v4261_v22  ;;  %v3937_v13 = vpop.permute.xlu2 %3936 }
 0x64b   :  { %v3575_v63 = vadd.f32 %v3574_v52, %v3318_v36  ;;  %v7726_v36 = vunpack.i.h.bf16 %v7724_v56 }
 0x64c   :  { %v4471_v49 = vmax.f32 %v4389_v12, 0.0  ;;  %v4073_v45 = vpop.permute.xlu1 %4072 }
 0x64d   :  { %v3656_v24 = vmax.f32 %v3575_v63, 0.0  ;;  %v4263_v48 = vsel %vm4227_vm12, %v4217_v55, %v4073_v45  ;;  %v4174_v29 = vsel %vm1758_vm2, %v10746_v26, %v7726_v36  ;;  %v4649_v45 = vld [vmem:[%s8016_s14 + $0x48] sm:$0xff]  ;;  %v4644_v55 = vld [vmem:[%s8016_s14 + $0x20] sm:$0xff] }
 0x64e   :  { %v7767_v43 = vpack.i.bf16 %v4471_v49, %v4470_v20  ;;  %v3935_v57 = vpop.permute.xlu0 %3934  ;;  %v4219_v31 = vsel %vm2926_vm11, %v4174_v29, %v3937_v13  ;;  %v4641_v13 = vld [vmem:[%s8016_s14 + $0x8] sm:$0xff] }
 0x64f   :  { %v7737_v16 = vpack.i.bf16 %v4460_v9, %v3656_v24  ;;  %v4218_v54 = vsel %vm2926_vm11, %v4173_v14, %v3935_v57 }
 0x650   :  { %7768 = vrot.lane.b32.xlu2 %v7767_v43, %s7959_s5 }
 0x651   :  { %7738 = vrot.lane.b32.xlu0 %v7737_v16, %s7960_s21  ;;  %v4655_v16 = vld [vmem:[%s8016_s14 + $0x78] sm:$0xff] }
 0x652   :  { %4411 = vmatmul.f32.gmra.mxu3 %v4262_v3  ;;  %v3939_v61 = vpop.permute.xlu2 %3938  ;;  %v11261_v3 = vpop.f32.mrf.mxu3 }
 0x653   :  { %4695 = vmatpush.msra.mxu3 %v4655_v16 }
 0x654   :  { %v4075_v25 = vpop.permute.xlu1 %4074 }
 0x655   :  { %v4264_v30 = vsel %vm4227_vm12, %v4218_v54, %v4075_v25  ;;  %4696 = vmatpush.msra.mxu3 %v4654_v5  ;;  %v4643_v25 = vld [vmem:[%s8016_s14 + $0x18] sm:$0xff] }
 0x657   :  { %4697 = vmatpush.msra.mxu3 %v4653_v62 }
 0x659   :  { %7753 = vrot.lane.b32.xlu0 %v7752_v40, %s7960_s21  ;;  %4698 = vmatpush.msra.mxu3 %v4652_v37 }
 0x65a   :  { %4414 = vmatmul.f32.gmra.mxu3 %v4263_v48  ;;  %v3941_v42 = vpop.permute.xlu2 %3940  ;;  %v11267_v56 = vpop.f32.mrf.mxu3 }
 0x65c   :  { %v4077_v34 = vpop.permute.xlu0 %4076  ;;  %v3779_v23 = vpop.permute.xlu1 %3778 }
 0x65d   :  { %v4265_v4 = vsel %vm4227_vm12, %v4219_v31, %v4077_v34  ;;  %v4175_v52 = vsel %vm1758_vm2, %v10762_v39, %v3779_v23 }
 0x65e   :  { %v4220_v44 = vsel %vm2926_vm11, %v4175_v52, %v3939_v61 }
 0x661   :  { %4541 = vrot.lane.b32.xlu0 %v4463_v28, %s7960_s21  ;;  %v4642_v28 = vld [vmem:[%s8016_s14 + $0x10] sm:$0xff] }
 0x662   :  { %4417 = vmatmul.f32.gmra.mxu3 %v4264_v30  ;;  %v3943_v43 = vpop.permute.xlu2 %3942  ;;  %v4640_v30 = vld [vmem:[%s8016_s14] sm:$0xff]  ;;  %v11279_v34 = vpop.f32.mrf.mxu3 }
 0x664   :  { %v4079_v22 = vpop.permute.xlu0 %4078  ;;  %v3781_v12 = vpop.permute.xlu1 %3780 }
 0x665   :  { %v4266_v63 = vsel %vm4227_vm12, %v4220_v44, %v4079_v22  ;;  %v4176_v26 = vsel %vm1758_vm2, %v10777_v51, %v3781_v12 }
 0x666   :  { %v4221_v49 = vsel %vm2926_vm11, %v4176_v26, %v3941_v42 }
 0x66a   :  { %4420 = vmatmul.f32.gmra.mxu3 %v4265_v4  ;;  %v3945_v40 = vpop.permute.xlu2 %3944 }
 0x66c   :  { %v4081_v20 = vpop.permute.xlu0 %4080  ;;  %v3783_v39 = vpop.permute.xlu1 %3782 }
 0x66d   :  { %v4267_v9 = vsel %vm4227_vm12, %v4221_v49, %v4081_v20  ;;  %v4177_v24 = vsel %vm1758_vm2, %v10815_v27, %v3783_v39  ;;  %v4651_v27 = vld [vmem:[%s8016_s14 + $0x58] sm:$0xff] }
 0x66e   :  { %v4222_v50 = vsel %vm2926_vm11, %v4177_v24, %v3943_v43  ;;  %4699 = vmatpush.msra.mxu3 %v4651_v27  ;;  %v4311_v43 = vadd.f32 %v11123_v21, %v10967_v58  ;;  %v4314_v58 = vadd.f32 %v11123_v21, %v10978_v46  ;;  %v4317_v46 = vadd.f32 %v11123_v21, %v10991_v10 }
 0x66f   :  { %v4320_v10 = vadd.f32 %v11123_v21, %v11002_v59 }
 0x670   :  { %4700 = vmatpush.msra.mxu3 %v4650_v32  ;;  %v4445_v27 = vmax.f32 %v4311_v43, 0.0 }
 0x672   :  { %4423 = vmatmul.f32.gmra.mxu3 %v4266_v63  ;;  %v3947_v54 = vpop.permute.xlu2 %3946 }
 0x673   :  { %4701 = vmatpush.msra.mxu3 %v4649_v45 }
 0x674   :  { %v3785_v18 = vpop.permute.xlu1 %3784 }
 0x675   :  { %4702 = vmatpush.msra.mxu3 %v4648_v60  ;;  %v4178_v48 = vsel %vm1758_vm2, %v10817_v15, %v3785_v18 }
 0x676   :  { %v4223_v35 = vsel %vm2926_vm11, %v4178_v48, %v3945_v40 }
 0x677   :  { %4703 = vmatpush.msra.mxu3 %v4647_v47 }
 0x678   :  { %v4083_v33 = vpop.permute.xlu0 %4082 }
 0x679   :  { %v4268_v51 = vsel %vm4227_vm12, %v4222_v50, %v4083_v33  ;;  %4704 = vmatpush.msra.mxu3 %v4646_v19 }
 0x67a   :  { %4426 = vmatmul.f32.gmra.mxu3 %v4267_v9  ;;  %v3949_v22 = vpop.permute.xlu2 %3948 }
 0x67b   :  { %4705 = vmatpush.msra.mxu3 %v4645_v17 }
 0x67c   :  { %v3787_v57 = vpop.permute.xlu1 %3786 }
 0x67d   :  { %4706 = vmatpush.msra.mxu3 %v4644_v55  ;;  %v4179_v15 = vsel %vm1758_vm2, %v10846_v53, %v3787_v57  ;;  %v4446_v57 = vmax.f32 %v4314_v58, 0.0 }
 0x67e   :  { %v4224_v23 = vsel %vm2926_vm11, %v4179_v15, %v3947_v54 }
 0x67f   :  { %4707 = vmatpush.msra.mxu3 %v4643_v25 }
 0x681   :  { %4708 = vmatpush.msra.mxu3 %v4642_v28 }
 0x682   :  { %4429 = vmatmul.f32.gmra.mxu3 %v4268_v51  ;;  %v7734_v9 = vpop.permute.xlu2 %7733 }
 0x683   :  { %4709 = vmatpush.msra.mxu3 %v4641_v13  ;;  %v7735_v24 = vunpack.i.l.bf16 %v7734_v9  ;;  %v7736_v60 = vunpack.i.h.bf16 %v7734_v9 }
 0x684   :  { %v3789_v29 = vpop.permute.xlu1 %3788 }
 0x685   :  { %4710 = vmatpush.msra.mxu3 %v4640_v30  ;;  %v4180_v4 = vsel %vm1758_vm2, %v10848_v11, %v3789_v29 }
 0x686   :  { %v4225_v53 = vsel %vm2926_vm11, %v4180_v4, %v3949_v22 }
 0x68c   :  { %v7729_v42 = vpop.permute.xlu1 %7728 }
 0x68d   :  { %v7730_v20 = vunpack.i.l.bf16 %v7729_v42  ;;  %v7731_v5 = vunpack.i.h.bf16 %v7729_v42  ;;  %v4817_v42 = vld [vmem:[%s7976_s9 + $0x8] sm:$0xff] }
 0x68f   :  { %v4181_v39 = vsel %vm1758_vm2, %v10876_v0, %v7730_v20  ;;  %v4610_v45 = vsel %vm1758_vm2, %v4445_v27, %v7731_v5  ;;  %v4960_v5 = vld [vmem:[%s7981_s13 + $0x8] sm:$0xff] }
 0x690   :  { %v4226_v51 = vsel %vm2926_vm11, %v4181_v39, %v7735_v24  ;;  %v4615_v47 = vsel %vm2926_vm11, %v4610_v45, %v7736_v60  ;;  %v4323_v39 = vadd.f32 %v11123_v21, %v11012_v2  ;;  %v4392_v24 = vadd.f32 %v11123_v21, %v11261_v3 }
 0x691   :  { %v4395_v45 = vadd.f32 %v11123_v21, %v11267_v56  ;;  %v4398_v56 = vadd.f32 %v11123_v21, %v11279_v34  ;;  %v4816_v34 = vld [vmem:[%s7976_s9] sm:$0xff] }
 0x694   :  { %v7744_v18 = vpop.permute.xlu1 %7743 }
 0x695   :  { %v7745_v40 = vunpack.i.l.bf16 %v7744_v18  ;;  %v7746_v30 = vunpack.i.h.bf16 %v7744_v18 }
 0x697   :  { %v4611_v28 = vsel %vm1758_vm2, %v4446_v57, %v7745_v40 }
 0x69c   :  { %v7759_v22 = vpop.permute.xlu1 %7758 }
 0x6a4   :  { %v4544_v3 = vpop.permute.xlu1 %4543 }
 0x6a8   :  { %v4085_v6 = vpop.permute.xlu0 %4084 }
 0x6a9   :  { %v4269_v14 = vsel %vm4227_vm12, %v4223_v35, %v4085_v6  ;;  %v7749_v6 = vpop.permute.xlu2 %7748 }
 0x6aa   :  { %4432 = vmatmul.f32.gmra.mxu3 %v4269_v14  ;;  %v7750_v14 = vunpack.i.l.bf16 %v7749_v6 }
 0x6ac   :  { %v4616_v54 = vsel %vm2926_vm11, %v4611_v28, %v7750_v14  ;;  %v4670_v28 = vld [vmem:[%s8016_s14 + $0xf0] sm:$0xff]  ;;  %v4669_v14 = vld [vmem:[%s8016_s14 + $0xe8] sm:$0xff] }
 0x6b0   :  { %v4087_v36 = vpop.permute.xlu0 %4086 }
 0x6b1   :  { %v4270_v31 = vsel %vm4227_vm12, %v4224_v23, %v4087_v36  ;;  %v4447_v23 = vmax.f32 %v4317_v46, 0.0  ;;  %v7764_v20 = vpop.permute.xlu2 %7763  ;;  %v4668_v46 = vld [vmem:[%s8016_s14 + $0xe0] sm:$0xff] }
 0x6b2   :  { %4435 = vmatmul.f32.gmra.mxu3 %v4270_v31  ;;  %v7765_v59 = vunpack.i.l.bf16 %v7764_v20 }
 0x6b3   :  { %v4612_v4 = vsel %vm1758_vm2, %v4447_v23, %v7746_v30  ;;  %v4665_v30 = vld [vmem:[%s8016_s14 + $0xc8] sm:$0xff]  ;;  %v4662_v23 = vld [vmem:[%s8016_s14 + $0xb0] sm:$0xff] }
 0x6b5   :  { %v4400_v61 = vpop.f32.mrf.mxu3 }
 0x6b6   :  { %v4401_v52 = vadd.f32 %v11123_v21, %v4400_v61  ;;  %v7751_v61 = vunpack.i.h.bf16 %v7749_v6 }
 0x6b8   :  { %v4475_v12 = vmax.f32 %v4401_v52, 0.0  ;;  %v4089_v44 = vpop.permute.xlu0 %4088  ;;  %v4617_v52 = vsel %vm2926_vm11, %v4612_v4, %v7751_v61  ;;  %v4659_v4 = vld [vmem:[%s8016_s14 + $0x98] sm:$0xff]  ;;  %v4658_v61 = vld [vmem:[%s8016_s14 + $0x90] sm:$0xff] }
 0x6b9   :  { %v4271_v63 = vsel %vm4227_vm12, %v4225_v53, %v4089_v44  ;;  %v7760_v44 = vunpack.i.l.bf16 %v7759_v22 }
 0x6ba   :  { %4438 = vmatmul.f32.gmra.mxu3 %v4271_v63  ;;  %4575 = vrot.lane.b32.xlu0 %v4475_v12, %s7958_s0 }
 0x6bd   :  { %v4403_v26 = vpop.f32.mrf.mxu3 }
 0x6be   :  { %v4404_v49 = vadd.f32 %v11123_v21, %v4403_v26  ;;  %v4448_v26 = vmax.f32 %v4320_v10, 0.0  ;;  %v4656_v10 = vld [vmem:[%s8016_s14 + $0x80] sm:$0xff] }
 0x6c0   :  { %v4476_v11 = vmax.f32 %v4404_v49, 0.0  ;;  %v4613_v9 = vsel %vm1758_vm2, %v4448_v26, %v7760_v44 }
 0x6c2   :  { %4577 = vrot.lane.b32.xlu2 %v4476_v11, %s7958_s0 }
 0x6c3   :  { %v7739_v33 = vpop.permute.xlu0 %7738 }
 0x6c4   :  { %v7740_v50 = vunpack.i.l.bf16 %v7739_v33  ;;  %v7741_v0 = vunpack.i.h.bf16 %v7739_v33  ;;  %v4618_v33 = vsel %vm2926_vm11, %v4613_v9, %v7765_v59  ;;  %v4374_v9 = vadd.f32 %v11123_v21, %v11174_v7 }
 0x6c5   :  { %v4406_v16 = vpop.f32.mrf.mxu3 }
 0x6c6   :  { %v4272_v62 = vsel %vm4227_vm12, %v4226_v51, %v7740_v50  ;;  %v4407_v37 = vadd.f32 %v11123_v21, %v4406_v16  ;;  %v4620_v17 = vsel %vm4227_vm12, %v4615_v47, %v7741_v0  ;;  %v7761_v50 = vunpack.i.h.bf16 %v7759_v22  ;;  %v4657_v22 = vld [vmem:[%s8016_s14 + $0x88] sm:$0xff] }
 0x6c7   :  { %4441 = vmatmul.f32.gmra.mxu3 %v4272_v62  ;;  %v4449_v62 = vmax.f32 %v4323_v39, 0.0  ;;  %v4473_v47 = vmax.f32 %v4395_v45, 0.0  ;;  %v4959_v39 = vld [vmem:[%s7981_s13] sm:$0xff] }
 0x6c8   :  { %v4477_v32 = vmax.f32 %v4407_v37, 0.0  ;;  %v4472_v37 = vmax.f32 %v4392_v24, 0.0 }
 0x6c9   :  { %v4614_v2 = vsel %vm1758_vm2, %v4449_v62, %v7761_v50  ;;  %v4672_v50 = vld [vmem:[%s8016_s14 + $0x100] sm:$0xff] }
 0x6ca   :  { %4579 = vrot.lane.b32.xlu2 %v4477_v32, %s7958_s0  ;;  %v7766_v32 = vunpack.i.h.bf16 %v7764_v20 }
 0x6cb   :  { %v7754_v48 = vpop.permute.xlu0 %7753 }
 0x6cc   :  { %v7755_v25 = vunpack.i.l.bf16 %v7754_v48  ;;  %v7756_v31 = vunpack.i.h.bf16 %v7754_v48  ;;  %v4619_v0 = vsel %vm2926_vm11, %v4614_v2, %v7766_v32 }
 0x6cd   :  { %v4409_v19 = vpop.f32.mrf.mxu3  ;;  %v4624_v18 = vsel %vm4227_vm12, %v4619_v0, %v4544_v3 }
 0x6ce   :  { %v4410_v55 = vadd.f32 %v11123_v21, %v4409_v19  ;;  %v4621_v15 = vsel %vm4227_vm12, %v4616_v54, %v7755_v25  ;;  %v4622_v53 = vsel %vm4227_vm12, %v4617_v52, %v7756_v31  ;;  %v4671_v25 = vld [vmem:[%s8016_s14 + $0xf8] sm:$0xff]  ;;  %v4660_v31 = vld [vmem:[%s8016_s14 + $0xa0] sm:$0xff]  ;;  %v7769_v52 = vpop.permute.xlu2 %7768 }
 0x6cf   :  { %4711 = vmatmul.f32.vlgmr.msra.gmra.mxu3 %v4620_v17  ;;  %v4667_v54 = vld [vmem:[%s8016_s14 + $0xd8] sm:$0xff]  ;;  %v7770_v44 = vunpack.i.l.bf16 %v7769_v52  ;;  %v7771_v24 = vunpack.i.h.bf16 %v7769_v52 }
 0x6d0   :  { %v4478_v35 = vmax.f32 %v4410_v55, 0.0  ;;  %v4474_v55 = vmax.f32 %v4398_v56, 0.0  ;;  %4727 = vmatpush.msrb.mxu3 %v4671_v25 }
 0x6d2   :  { %4581 = vrot.lane.b32.xlu2 %v4478_v35, %s7958_s0  ;;  %4728 = vmatpush.msrb.mxu3 %v4670_v28 }
 0x6d3   :  { %v4542_v11 = vpop.permute.xlu0 %4541 }
 0x6d4   :  { %v4623_v51 = vsel %vm4227_vm12, %v4618_v33, %v4542_v11  ;;  %4729 = vmatpush.msrb.mxu3 %v4669_v14  ;;  %v4675_v11 = vld [vmem:[%s8016_s14 + $0x118] sm:$0xff]  ;;  %v4673_v33 = vld [vmem:[%s8016_s14 + $0x108] sm:$0xff] }
 0x6d5   :  { %v4412_v13 = vpop.f32.mrf.mxu3 }
 0x6d6   :  { %v4413_v36 = vadd.f32 %v11123_v21, %v4412_v13  ;;  %4730 = vmatpush.msrb.mxu3 %v4668_v46  ;;  %v4666_v13 = vld [vmem:[%s8016_s14 + $0xd0] sm:$0xff] }
 0x6d7   :  { %4714 = vmatmul.f32.gmra.mxu3 %v4621_v15  ;;  %v4664_v15 = vld [vmem:[%s8016_s14 + $0xc0] sm:$0xff] }
 0x6d8   :  { %v4479_v29 = vmax.f32 %v4413_v36, 0.0  ;;  %4731 = vmatpush.msrb.mxu3 %v4667_v54  ;;  %v4663_v36 = vld [vmem:[%s8016_s14 + $0xb8] sm:$0xff] }
 0x6da   :  { %4583 = vrot.lane.b32.xlu2 %v4479_v29, %s7958_s0  ;;  %4732 = vmatpush.msrb.mxu3 %v4666_v13  ;;  %v4661_v29 = vld [vmem:[%s8016_s14 + $0xa8] sm:$0xff]  ;;  %v4841_v13 = vld [vmem:[%s8031_s30] sm:$0x3f]  ;;  %s12301_s30 = sld [smem:[#allocation17_spill]] }
 0x6dc   :  { %4733 = vmatpush.msrb.mxu3 %v4665_v30 }
 0x6dd   :  { %v4415_v12 = vpop.f32.mrf.mxu3 }
 0x6de   :  { %v4416_v63 = vadd.f32 %v11123_v21, %v4415_v12  ;;  %4734 = vmatpush.msrb.mxu3 %v4664_v15  ;;  %v4371_v12 = vadd.f32 %v11123_v21, %v11167_v38  ;;  %v4674_v38 = vld [vmem:[%s8016_s14 + $0x110] sm:$0xff]  ;;  %s12298_s14 = sld [smem:[#allocation11_spill]] }
 0x6df   :  { %4717 = vmatmul.f32.gmra.mxu3 %v4622_v53 }
 0x6e0   :  { %v4480_v49 = vmax.f32 %v4416_v63, 0.0  ;;  %4735 = vmatpush.msrb.mxu3 %v4663_v36  ;;  %v4465_v53 = vmax.f32 %v4371_v12, 0.0 }
 0x6e2   :  { %4823 = vperm.xlu2 %7390, %v4817_v42   ;;  %4595 = vrot.lane.b32.xlu1 %v4480_v49, %s7960_s21  ;;  %v4625_v42 = vsel %vm1758_vm2, %v4465_v53, %v7770_v44  ;;  %v12289_v44 = vld [vmem:[#allocation18_spill] sm:$0xff]  ;;  %v12290_v53 = vmov 0.0  }
 0x6e3   :  { %4736 = vmatpush.msrb.mxu3 %v4662_v23 }
 0x6e5   :  { %v4418_v43 = vpop.f32.mrf.mxu3  ;;  %4737 = vmatpush.msrb.mxu3 %v4661_v29 }
 0x6e6   :  { %v4419_v16 = vadd.f32 %v11123_v21, %v4418_v43  ;;  %v4466_v43 = vmax.f32 %v4374_v9, 0.0 }
 0x6e7   :  { %4720 = vmatmul.f32.gmra.mxu3 %v4623_v51  ;;  %v4377_v51 = vadd.f32 %v11123_v21, %v11179_v1  ;;  %v4380_v1 = vadd.f32 %v11123_v21, %v11188_v8 }
 0x6e8   :  { %v4481_v27 = vmax.f32 %v4419_v16, 0.0  ;;  %4738 = vmatpush.msrb.mxu3 %v4660_v31  ;;  %v4626_v16 = vsel %vm1758_vm2, %v4466_v43, %v7771_v24  ;;  %v4839_v24 = vld [vmem:[%s8026_s24 + $0x10] sm:$0xff] }
 0x6e9   :  { %v4467_v2 = vmax.f32 %v4377_v51, 0.0  ;;  %v4837_v51 = vld [vmem:[%s8026_s24] sm:$0xff] }
 0x6ea   :  { %4970 = vperm.xlu2 %7390, %v4960_v5   ;;  %4559 = vrot.lane.b32.xlu1 %v4472_v37, %s7959_s5 }
 0x6eb   :  { %4597 = vrot.lane.b32.xlu0 %v4481_v27, %s7960_s21  ;;  %4739 = vmatpush.msrb.mxu3 %v4659_v4  ;;  %v4961_v27 = vld [vmem:[%s7981_s13 + $0x10] sm:$0x3]  ;;  %s12293_s13 = sld [smem:[#allocation9_spill]] }
 0x6ed   :  { %v4421_v60 = vpop.f32.mrf.mxu3  ;;  %4740 = vmatpush.msrb.mxu3 %v4658_v61 }
 0x6ee   :  { %v4422_v58 = vadd.f32 %v11123_v21, %v4421_v60 }
 0x6ef   :  { %4723 = vmatmul.f32.gmra.mxu3 %v4624_v18 }
 0x6f0   :  { %v4482_v19 = vmax.f32 %v4422_v58, 0.0  ;;  %4741 = vmatpush.msrb.mxu3 %v4657_v22  ;;  %v4818_v58 = vld [vmem:[%s7976_s9 + $0x10] sm:$0x3]  ;;  %s12292_s9 = sld [smem:[#allocation6_spill]] }
 0x6f2   :  { %4561 = vrot.lane.b32.xlu1 %v4473_v47, %s7959_s5  ;;  %4742 = vmatpush.msrb.mxu3 %v4656_v10  ;;  %v4468_v47 = vmax.f32 %v4380_v1, 0.0 }
 0x6f3   :  { %4599 = vrot.lane.b32.xlu0 %v4482_v19, %s7960_s21 }
 0x6f4   :  { %4771 = vmatpush.msra.mxu3 %v4675_v11 }
 0x6f5   :  { %v4424_v40 = vpop.f32.mrf.mxu3 }
 0x6f6   :  { %v4425_v17 = vadd.f32 %v11123_v21, %v4424_v40  ;;  %4772 = vmatpush.msra.mxu3 %v4674_v38  ;;  %v4383_v40 = vadd.f32 %v11123_v21, %v11197_v41  ;;  %v4840_v38 = vld [vmem:[%s8026_s24 + $0x18] sm:$0xff] }
 0x6f8   :  { %v4483_v48 = vmax.f32 %v4425_v17, 0.0  ;;  %4773 = vmatpush.msra.mxu3 %v4673_v33 }
 0x6fa   :  { %4563 = vrot.lane.b32.xlu1 %v4474_v55, %s7959_s5  ;;  %4774 = vmatpush.msra.mxu3 %v4672_v50  ;;  %v4838_v50 = vld [vmem:[%s8026_s24 + $0x8] sm:$0xff]  ;;  %s12300_s24 = sld [smem:[#allocation15_spill]] }
 0x6fb   :  { %4601 = vrot.lane.b32.xlu0 %v4483_v48, %s7960_s21 }
 0x6fd   :  { %v4427_v57 = vpop.f32.mrf.mxu3 }
 0x6fe   :  { %v4428_v6 = vadd.f32 %v11123_v21, %v4427_v57  ;;  %v4469_v57 = vmax.f32 %v4383_v40, 0.0 }
 0x700   :  { %v4484_v35 = vmax.f32 %v4428_v6, 0.0 }
 0x702   :  { %4820 = vperm.xlu1 %7772, %v4816_v34  }
 0x703   :  { %4603 = vrot.lane.b32.xlu0 %v4484_v35, %s7960_s21 }
 0x705   :  { %v4430_v6 = vpop.f32.mrf.mxu3 }
 0x706   :  { %v4431_v41 = vadd.f32 %v11123_v21, %v4430_v6 }
 0x708   :  { %v4485_v54 = vmax.f32 %v4431_v41, 0.0 }
 0x70a   :  { %4965 = vperm.xlu1 %7772, %v4959_v39  }
 0x70b   :  { %4826 = vperm.xlu0 %7773, %v4818_v58  }
 0x712   :  { %4975 = vperm.xlu1 %7772, %v4961_v27   ;;  %v4919_v27 = vld [vmem:[%s8036_s6 + $0x10] sm:$0xff] }
 0x71c   :  { %v4578_v59 = vpop.permute.xlu2 %4577 }
 0x71d   :  { %v4631_v7 = vsel %vm2926_vm11, %v4626_v16, %v4578_v59 }
 0x724   :  { %v4580_v32 = vpop.permute.xlu2 %4579 }
 0x72c   :  { %v4576_v63 = vpop.permute.xlu0 %4575  ;;  %v4582_v19 = vpop.permute.xlu2 %4581 }
 0x72d   :  { %v4630_v26 = vsel %vm2926_vm11, %v4625_v42, %v4576_v63  ;;  %v4433_v46 = vpop.f32.mrf.mxu3 }
 0x72e   :  { %v4434_v30 = vadd.f32 %v11123_v21, %v4433_v46 }
 0x730   :  { %v4486_v36 = vmax.f32 %v4434_v30, 0.0 }
 0x734   :  { %v4584_v34 = vpop.permute.xlu2 %4583 }
 0x735   :  { %v4436_v15 = vpop.f32.mrf.mxu3 }
 0x736   :  { %v4437_v23 = vadd.f32 %v11123_v21, %v4436_v15 }
 0x738   :  { %v4487_v29 = vmax.f32 %v4437_v23, 0.0 }
 0x73c   :  { %v4824_v42 = vpop.permute.xlu2 %4823 }
 0x73d   :  { %v4439_v31 = vpop.f32.mrf.mxu3  ;;  %vm4829_vm0 = vcmp.eq.s32.totalorder %v12289_v44, %v4824_v42 }
 0x73e   :  { %v4440_v4 = vadd.f32 %v11123_v21, %v4439_v31 }
 0x740   :  { %v4488_v61 = vmax.f32 %v4440_v4, 0.0 }
 0x74a   :  { %v4442_v22 = vpop.f32.mrf.mxu3 }
 0x74b   :  { %v4443_v10 = vadd.f32 %v11123_v21, %v4442_v22 }
 0x74d   :  { %v4489_v52 = vmax.f32 %v4443_v10, 0.0 }
 0x754   :  { %v4596_v20 = vpop.permute.xlu1 %4595 }
 0x755   :  { %v4635_v49 = vsel %vm4227_vm12, %v4630_v26, %v4596_v20  ;;  %v4712_v26 = vpop.f32.mrf.mxu3  ;;  %v6889_v20 = vsel %vm4829_vm0, 1.0, %v12290_v53 }
 0x756   :  { %4743 = vmatmul.f32.vlgmr.msrb.gmra.mxu3 %v4635_v49 }
 0x757   :  { %6891 = vmatpush.msk.msrb.mxu3 %vm4852_vm13, %v4841_v13 }
 0x75c   :  { %v4560_v5 = vpop.permute.xlu1 %4559 }
 0x75d   :  { %v4598_v62 = vpop.permute.xlu0 %4597  ;;  %v4627_v3 = vsel %vm1758_vm2, %v4467_v2, %v4560_v5  ;;  %v4715_v21 = vpop.f32.mrf.mxu3 }
 0x75e   :  { %v4636_v37 = vsel %vm4227_vm12, %v4631_v7, %v4598_v62  ;;  %v4632_v60 = vsel %vm2926_vm11, %v4627_v3, %v4580_v32  ;;  %v7787_v62 = vld [vmem:[%s8021_s19] ss:$0 sm:$0xff]  ;;  %s12299_s19 = sld [smem:[#allocation12_spill]] }
 0x75f   :  { %4746 = vmatmul.f32.gmra.mxu3 %v4636_v37  ;;  %v4920_v37 = vld [vmem:[%s8036_s6 + $0x18] sm:$0xff]  ;;  %v4713_v2 = vadd.f32 %v7787_v62, %v4712_v26  ;;  %v4971_v26 = vpop.permute.xlu2 %4970 }
 0x764   :  { %v4562_v45 = vpop.permute.xlu1 %4561 }
 0x765   :  { %v4600_v0 = vpop.permute.xlu0 %4599  ;;  %v4628_v56 = vsel %vm1758_vm2, %v4468_v47, %v4562_v45  ;;  %v4718_v49 = vpop.f32.mrf.mxu3  ;;  %v4918_v45 = vld [vmem:[%s8036_s6 + $0x8] sm:$0xff] }
 0x766   :  { %v4637_v18 = vsel %vm4227_vm12, %v4632_v60, %v4600_v0  ;;  %v4633_v55 = vsel %vm2926_vm11, %v4628_v56, %v4582_v19  ;;  %v4917_v0 = vld [vmem:[%s8036_s6] sm:$0xff]  ;;  %v4719_v58 = vadd.f32 %v7787_v62, %v4718_v49  ;;  %s12302_s6 = sld [smem:[#allocation13_spill]] }
 0x767   :  { %4749 = vmatmul.f32.gmra.mxu3 %v4637_v18  ;;  %v4716_v18 = vadd.f32 %v7787_v62, %v4715_v21 }
 0x76c   :  { %v4564_v48 = vpop.permute.xlu1 %4563 }
 0x76d   :  { %v4602_v17 = vpop.permute.xlu0 %4601  ;;  %v4629_v35 = vsel %vm1758_vm2, %v4469_v57, %v4564_v48  ;;  %v4721_v9 = vpop.f32.mrf.mxu3 }
 0x76e   :  { %v4638_v8 = vsel %vm4227_vm12, %v4633_v55, %v4602_v17  ;;  %v4634_v28 = vsel %vm2926_vm11, %v4629_v35, %v4584_v34  ;;  %v12291_v35 = vlaneseq }
 0x76f   :  { %4752 = vmatmul.f32.gmra.mxu3 %v4638_v8  ;;  %v4722_v8 = vadd.f32 %v7787_v62, %v4721_v9 }
 0x770   :  { %v4795_v34 = vshrl.u32 %v12291_v35, 7  ;;  %v5101_v35 = vld [vmem:[%s12293_s13 + $0x70] sm:$0xff] }
 0x772   :  { %vm4798_vm4 = vcmp.eq.s32.totalorder %v4795_v34, 0 }
 0x774   :  { %v4821_v12 = vpop.permute.xlu1 %4820 }
 0x775   :  { %v4604_v25 = vpop.permute.xlu0 %4603  ;;  %vm4828_vm14 = vcmp.eq.s32.totalorder %v12289_v44, %v4821_v12  ;;  %v4724_v59 = vpop.f32.mrf.mxu3 }
 0x776   :  { %v4639_v14 = vsel %vm4227_vm12, %v4634_v28, %v4604_v25  ;;  %v6888_v63 = vsel %vm4828_vm14, 1.0, %v12290_v53  ;;  %v4796_v28 = vadd.s32 8, %v4795_v34  ;;  %v4725_v46 = vadd.f32 %v7787_v62, %v4724_v59  ;;  %v5099_v34 = vld [vmem:[%s12293_s13 + $0x60] sm:$0xff] }
 0x777   :  { %4755 = vmatmul.f32.gmra.mxu3 %v4639_v14  ;;  %v7961_v62 = vmov 64.0  }
 0x778   :  { %vm4802_vm5 = vcmp.eq.s32.totalorder %v4796_v28, 9  ;;  %7802 = vrcp.f32 %v7961_v62  ;;  %v5095_v28 = vld [vmem:[%s12293_s13 + $0x40] sm:$0xff] }
 0x77c   :  { %v4966_v10 = vpop.permute.xlu1 %4965 }
 0x77d   :  { %v4827_v39 = vpop.permute.xlu0 %4826 }
 0x77e   :  { %vm4830_vm1 = vcmp.eq.s32.totalorder %v12289_v44, %v4827_v39 }
 0x77f   :  { %6883 = vmatmul.msk.f32.vlgmr.msra.gmra.mxu3 %vm1758_vm2, %v4485_v54  ;;  %v6890_v33 = vsel %vm4830_vm1, 1.0, %v12290_v53  ;;  %v7788_v53 = vld [vmem:[%s12292_s9] ss:$0 sm:$0xff] }
 0x780   :  { %4903 = vmatpush.msra.mxu3 %v4840_v38 }
 0x782   :  { %4904 = vmatpush.msra.mxu3 %v4839_v24 }
 0x784   :  { %4905 = vmatpush.msra.mxu3 %v4838_v50  ;;  %v4976_v38 = vpop.permute.xlu1 %4975 }
 0x786   :  { %4906 = vmatpush.msra.mxu3 %v4837_v51 }
 0x787   :  { %6884 = vmatmul.msk.f32.gmra.mxu3 %vm1758_vm2, %v4486_v36 }
 0x78f   :  { %6885 = vmatmul.msk.f32.gmra.mxu3 %vm1758_vm2, %v4487_v29 }
 0x797   :  { %6886 = vmatmul.msk.f32.gmra.mxu3 %vm1758_vm2, %v4488_v61  ;;  %v7786_v61 = vld [vmem:[%s8041_s12] ss:$0 sm:$0xff]  ;;  %s12303_s12 = sld [smem:[#allocation14_spill]] }
 0x798   :  { %v4981_v12 = vmul.f32 %v7786_v61, %v4966_v10  ;;  %v4982_v9 = vmul.f32 %v7786_v61, %v4971_v26  ;;  %v4983_v50 = vmul.f32 %v7786_v61, %v4976_v38  ;;  %v5096_v10 = vld [vmem:[%s12293_s13 + $0x48] sm:$0xff] }
 0x79f   :  { %6887 = vmatmul.msk.f32.gmra.mxu3 %vm1758_vm2, %v4489_v52 }
 0x7a7   :  { %6892 = vmatmul.msk.f32.vlgmr.msrb.gmra.mxu3 %vm4842_vm15, %v6888_v63 }
 0x7a8   :  { %4942 = vmatpush.msrb.mxu3 %v4920_v37  ;;  %v7803_v37 = vpop.eup %7802 }
 0x7a9   :  { %vm5016_vm7 = vweird.f32 %v7803_v37 }
 0x7aa   :  { %4943 = vmatpush.msrb.mxu3 %v4919_v27  ;;  %v5012_v27 = vmul.f32 64.0, %v7803_v37 }
 0x7ac   :  { %4944 = vmatpush.msrb.mxu3 %v4918_v45 }
 0x7ae   :  { %4945 = vmatpush.msrb.mxu3 %v4917_v0 }
 0x7af   :  { %6893 = vmatmul.msk.f32.gmra.mxu3 %vm4842_vm15, %v6889_v20 }
 0x7b7   :  { %6894 = vmatmul.msk.f32.gmra.mxu3 %vm4842_vm15, %v6890_v33 }
 0x7d9   :  { %v4744_v11 = vpop.f32.mrf.mxu3 }
 0x7da   :  { %v4745_v32 = vadd.f32 %v4744_v11, %v4713_v2  ;;  %v5013_v2 = vsub.f32 1.0, %v5012_v27 }
 0x7e2   :  { %v4747_v43 = vpop.f32.mrf.mxu3 }
 0x7e3   :  { %v4748_v47 = vadd.f32 %v4747_v43, %v4716_v18 }
 0x7ea   :  { %v4750_v16 = vpop.f32.mrf.mxu3 }
 0x7eb   :  { %v4751_v19 = vadd.f32 %v4750_v16, %v4719_v58 }
 0x7f2   :  { %v4753_v5 = vpop.f32.mrf.mxu3 }
 0x7f3   :  { %v4754_v48 = vadd.f32 %v4753_v5, %v4722_v8 }
 0x7fa   :  { %v4756_v7 = vpop.f32.mrf.mxu3 }
 0x7fb   :  { %v4757_v13 = vadd.f32 %v4756_v7, %v4725_v46  ;;  %v5089_v46 = vld [vmem:[%s12293_s13 + $0x10] sm:$0xff] }
 0x802   :  { %v4776_v3 = vpop.f32.mrf.mxu3 }
 0x803   :  { %v4777_v1 = vadd.f32 %v4776_v3, %v4745_v32  ;;  %v5014_v32 = vmul.f32 %v7803_v37, %v5013_v2 }
 0x805   :  { %6895 = vmatmul.msk.f32.vlgmr.msra.gmra.mxu3 %vm1758_vm2, %v4777_v1  ;;  %v5015_v3 = vadd.f32 %v7803_v37, %v5014_v32 }
 0x806   :  { %5126 = vmatpush.msra.mxu3 %v5101_v35 }
 0x807   :  { %v11449_v1 = vsel %vm5016_vm7, %v7803_v37, %v5015_v3  ;;  %vm5290_vm7 = vcmask 289792  }
 0x808   :  { %5127 = vmatpush.msra.mxu3 %v5099_v34 }
 0x80a   :  { %v4779_v60 = vpop.f32.mrf.mxu3 }
 0x80b   :  { %v4780_v40 = vadd.f32 %v4779_v60, %v4748_v47 }
 0x80d   :  { %v4813_v25 = vsel %vm4798_vm4, 0.0, %v4780_v40  ;;  %vm5173_vm4 = vcmask 1041408  }
 0x812   :  { %v4782_v56 = vpop.f32.mrf.mxu3 }
 0x813   :  { %v4783_v17 = vadd.f32 %v4782_v56, %v4751_v19 }
 0x815   :  { %v4792_v55 = vsel %vm4791_vm3, %v4780_v40, %v4783_v17 }
 0x816   :  { %6896 = vmatmul.msk.f32.gmra.mxu3 %vm1758_vm2, %v4792_v55 }
 0x81a   :  { %v4785_v57 = vpop.f32.mrf.mxu3 }
 0x81b   :  { %v4786_v6 = vadd.f32 %v4785_v57, %v4754_v48 }
 0x81d   :  { %v4793_v14 = vsel %vm4791_vm3, %v4783_v17, %v4786_v6 }
 0x81e   :  { %6897 = vmatmul.msk.f32.gmra.mxu3 %vm1758_vm2, %v4786_v6  ;;  %v4814_v41 = vsel %vm4802_vm5, 0.0, %v4793_v14  ;;  %v5093_v14 = vld [vmem:[%s12293_s13 + $0x30] sm:$0xff]  ;;  %vm5277_vm5 = vcmask 293888  }
 0x822   :  { %v4788_v54 = vpop.f32.mrf.mxu3 }
 0x823   :  { %v4789_v30 = vadd.f32 %v4788_v54, %v4757_v13  ;;  %v5087_v54 = vld [vmem:[%s12293_s13] sm:$0xff] }
 0x826   :  { %6898 = vmatmul.msk.f32.vlgmr.msrb.gmra.mxu3 %vm1758_vm2, %v4813_v25  ;;  %v5097_v25 = vld [vmem:[%s12293_s13 + $0x50] sm:$0xff] }
 0x827   :  { %5128 = vmatpush.msra.mxu3 %v5097_v25 }
 0x829   :  { %5129 = vmatpush.msra.mxu3 %v5095_v28 }
 0x82a   :  { %v4873_v15 = vpop.f32.mrf.mxu3 }
 0x82b   :  { %5130 = vmatpush.msra.mxu3 %v5093_v14 }
 0x82e   :  { %6899 = vmatmul.msk.f32.gmra.mxu3 %vm1758_vm2, %v4814_v41  ;;  %v5091_v41 = vld [vmem:[%s12293_s13 + $0x20] sm:$0xff] }
 0x82f   :  { %5131 = vmatpush.msra.mxu3 %v5091_v41 }
 0x831   :  { %5132 = vmatpush.msra.mxu3 %v5089_v46 }
 0x832   :  { %v4876_v36 = vpop.f32.mrf.mxu3 }
 0x833   :  { %5133 = vmatpush.msra.mxu3 %v5087_v54 }
 0x836   :  { %6900 = vmatmul.msk.f32.gmra.mxu3 %vm1758_vm2, %v4789_v30 }
 0x83a   :  { %v4879_v23 = vpop.f32.mrf.mxu3 }
 0x888   :  { %v4908_v29 = vpop.f32.mrf.mxu3 }
 0x889   :  { %v4909_v22 = vadd.f32 %v4908_v29, %v4873_v15 }
 0x899   :  { %v4911_v31 = vpop.f32.mrf.mxu3 }
 0x89a   :  { %v4912_v20 = vadd.f32 %v4911_v31, %v4876_v36  ;;  %v5102_v36 = vld [vmem:[%s12293_s13 + $0x78] sm:$0xff] }
 0x89b   :  { %5152 = vmatpush.msrb.mxu3 %v5102_v36 }
 0x8a1   :  { %v4914_v4 = vpop.f32.mrf.mxu3 }
 0x8a2   :  { %v4915_v24 = vadd.f32 %v4914_v4, %v4879_v23  ;;  %v5100_v23 = vld [vmem:[%s12293_s13 + $0x68] sm:$0xff]  ;;  %v5098_v4 = vld [vmem:[%s12293_s13 + $0x58] sm:$0xff] }
 0x8a3   :  { %5153 = vmatpush.msrb.mxu3 %v5100_v23 }
 0x8a5   :  { %5154 = vmatpush.msrb.mxu3 %v5098_v4 }
 0x8a7   :  { %5155 = vmatpush.msrb.mxu3 %v5096_v10 }
 0x8a9   :  { %v4947_v52 = vpop.f32.mrf.mxu3 }
 0x8aa   :  { %v4956_v44 = vadd.f32 %v4947_v52, %v4909_v22 }
 0x8ac   :  { %v4984_v63 = vadd.f32 %v4981_v12, %v4956_v44  ;;  %v5094_v12 = vld [vmem:[%s12293_s13 + $0x38] sm:$0xff] }
 0x8ad   :  { %5156 = vmatpush.msrb.mxu3 %v5094_v12 }
 0x8ae   :  { %v11437_v42 = vadd.f32 %v7788_v53, %v4984_v63 }
 0x8b0   :  { %v5001_v21 = vsel %vm2926_vm11, %v11437_v42, 0.0 }
 0x8b1   :  { %v4950_v49 = vpop.f32.mrf.mxu3  ;;  %5002 = vadd.xlane.f32.xlu2 %v5001_v21  ;;  %v5090_v21 = vld [vmem:[%s12293_s13 + $0x18] sm:$0xff] }
 0x8b2   :  { %v4957_v59 = vadd.f32 %v4950_v49, %v4912_v20 }
 0x8b4   :  { %v4985_v11 = vadd.f32 %v4982_v9, %v4957_v59 }
 0x8b6   :  { %v11441_v39 = vadd.f32 %v7788_v53, %v4985_v11  ;;  %v5088_v11 = vld [vmem:[%s12293_s13 + $0x8] sm:$0xff] }
 0x8b8   :  { %v5004_v33 = vsel %vm2926_vm11, %v11441_v39, 0.0 }
 0x8b9   :  { %v4953_v43 = vpop.f32.mrf.mxu3  ;;  %5005 = vadd.xlane.f32.xlu0 %v5004_v33  ;;  %v7789_v33 = vld [vmem:[%s12294_s25] ss:$0 sm:$0xff] }
 0x8ba   :  { %v4958_v51 = vadd.f32 %v4953_v43, %v4915_v24 }
 0x8bc   :  { %v4986_v16 = vadd.f32 %v4983_v50, %v4958_v51  ;;  %v7790_v51 = vld [vmem:[%s12295_s29] ss:$0 sm:$0xff] }
 0x8be   :  { %v11445_v5 = vadd.f32 %v7788_v53, %v4986_v16  ;;  %v5092_v53 = vld [vmem:[%s12293_s13 + $0x28] sm:$0xff] }
 0x8bf   :  { %5157 = vmatpush.msrb.mxu3 %v5092_v53  ;;  %v4994_v53 = vld [vmem:[%s12297_s8] sm:$0xff] }
 0x8c0   :  { %v5008_v7 = vsel %vm5007_vm6, %v11445_v5, 0.0 }
 0x8c1   :  { %5009 = vadd.xlane.f32.xlu1 %v5008_v7  ;;  %5158 = vmatpush.msrb.mxu3 %v5090_v21 }
 0x8c3   :  { %5159 = vmatpush.msrb.mxu3 %v5088_v11 }
 0x924   :  { %v5003_v45 = vpop.xlane.xlu2 %5002 }
 0x925   :  { %v5018_v0 = vmul.f32 %v11449_v1, %v5003_v45 }
 0x927   :  { %v11453_v60 = vsub.f32 %v11437_v42, %v5018_v0 }
 0x929   :  { %v5024_v18 = vmul.f32 %v11453_v60, %v11453_v60 }
 0x92b   :  { %v5027_v58 = vsel %vm2926_vm11, %v5024_v18, 0.0 }
 0x92c   :  { %v5006_v47 = vpop.xlane.xlu0 %5005  ;;  %5028 = vadd.xlane.f32.xlu2 %v5027_v58 }
 0x92d   :  { %v5019_v19 = vmul.f32 %v11449_v1, %v5006_v47 }
 0x92f   :  { %v11460_v56 = vsub.f32 %v11441_v39, %v5019_v19 }
 0x931   :  { %v5025_v40 = vmul.f32 %v11460_v56, %v11460_v56 }
 0x933   :  { %v5030_v17 = vsel %vm2926_vm11, %v5025_v40, 0.0 }
 0x934   :  { %v5010_v55 = vpop.xlane.xlu1 %5009  ;;  %5031 = vadd.xlane.f32.xlu2 %v5030_v17 }
 0x935   :  { %v5020_v8 = vmul.f32 %v11449_v1, %v5010_v55 }
 0x937   :  { %v11467_v48 = vsub.f32 %v11445_v5, %v5020_v8 }
 0x939   :  { %v5026_v57 = vmul.f32 %v11467_v48, %v11467_v48 }
 0x93b   :  { %v5033_v6 = vsel %vm5007_vm6, %v5026_v57, 0.0 }
 0x93c   :  { %5034 = vadd.xlane.f32.xlu0 %v5033_v6 }
 0x99f   :  { %v5029_v13 = vpop.xlane.xlu2 %5028 }
 0x9a0   :  { %v5036_v30 = vmul.f32 %v5029_v13, %v11449_v1 }
 0x9a2   :  { %v5039_v15 = vadd.f32 1e-05, %v5036_v30 }
 0x9a4   :  { %7804 = vrsqrt.f32 %v5039_v15  ;;  %vm5048_vm9 = vweird.f32 %v5039_v15 }
 0x9a7   :  { %v5032_v29 = vpop.xlane.xlu2 %5031 }
 0x9a8   :  { %v5037_v31 = vmul.f32 %v5032_v29, %v11449_v1 }
 0x9aa   :  { %v7805_v61 = vpop.eup %7804  ;;  %v5040_v22 = vadd.f32 1e-05, %v5037_v31 }
 0x9ab   :  { %v5043_v52 = vmul.f32 %v7805_v61, %v5039_v15  ;;  %vm5049_vm8 = vweird.f32 %v7805_v61 }
 0x9ac   :  { %7806 = vrsqrt.f32 %v5040_v22  ;;  %vm5050_vm10 = vmor %vm5048_vm9, %vm5049_vm8  ;;  %vm5058_vm14 = vweird.f32 %v5040_v22  ;;  %vm5349_vm8 = vcmask 1043456  }
 0x9ad   :  { %v5044_v44 = vmul.f32 %v7805_v61, %v5043_v52 }
 0x9af   :  { %v5045_v63 = vmul.f32 0.5, %v5044_v44  ;;  %v5035_v26 = vpop.xlane.xlu0 %5034 }
 0x9b0   :  { %v5038_v20 = vmul.f32 %v5035_v26, %v11449_v1 }
 0x9b1   :  { %v5046_v49 = vsub.f32 1.5, %v5045_v63 }
 0x9b2   :  { %v7807_v9 = vpop.eup %7806  ;;  %v5041_v59 = vadd.f32 1e-05, %v5038_v20 }
 0x9b3   :  { %v5047_v38 = vmul.f32 %v7805_v61, %v5046_v49  ;;  %v5053_v24 = vmul.f32 %v7807_v9, %v5040_v22  ;;  %vm5059_vm12 = vweird.f32 %v7807_v9  ;;  %v4995_v49 = vld [vmem:[%s12297_s8 + $0x8] sm:$0xff] }
 0x9b4   :  { %7808 = vrsqrt.f32 %v5041_v59  ;;  %vm5060_vm15 = vmor %vm5058_vm14, %vm5059_vm12  ;;  %vm5068_vm1 = vweird.f32 %v5041_v59 }
 0x9b5   :  { %v5051_v43 = vsel %vm5050_vm10, %v7805_v61, %v5047_v38  ;;  %v5054_v50 = vmul.f32 %v7807_v9, %v5053_v24  ;;  %v4996_v24 = vld [vmem:[%s12297_s8 + $0x10] sm:$0xff] }
 0x9b6   :  { %v5072_v16 = vmul.f32 %v5051_v43, %v11453_v60 }
 0x9b7   :  { %v5055_v7 = vmul.f32 0.5, %v5054_v50 }
 0x9b8   :  { %v5078_v62 = vmul.f32 %v7789_v33, %v5072_v16  ;;  %v4997_v16 = vld [vmem:[%s12297_s8 + $0x18] sm:$0xff] }
 0x9b9   :  { %v5056_v37 = vsub.f32 1.5, %v5055_v7 }
 0x9ba   :  { %v7809_v27 = vpop.eup %7808  ;;  %v5084_v2 = vadd.f32 %v7790_v51, %v5078_v62 }
 0x9bb   :  { %v5057_v32 = vmul.f32 %v7807_v9, %v5056_v37  ;;  %v5063_v3 = vmul.f32 %v7809_v27, %v5041_v59  ;;  %vm5069_vm0 = vweird.f32 %v7809_v27 }
 0x9bc   :  { %6901 = vmatmul.msk.f32.vlgmr.msra.gmra.mxu3 %vm2926_vm11, %v5084_v2  ;;  %vm5070_vm3 = vmor %vm5068_vm1, %vm5069_vm0 }
 0x9bd   :  { %v5061_v45 = vsel %vm5060_vm15, %v7807_v9, %v5057_v32  ;;  %v5064_v0 = vmul.f32 %v7809_v27, %v5063_v3 }
 0x9be   :  { %v5073_v18 = vmul.f32 %v5061_v45, %v11460_v56  ;;  %v11503_v56 = vld [vmem:[%s12296_s3] sm:$0x3] }
 0x9bf   :  { %v5065_v58 = vmul.f32 0.5, %v5064_v0  ;;  %v5105_v6 = vperm.slane %v11503_v56, 0 }
 0x9c0   :  { %v5079_v47 = vmul.f32 %v7789_v33, %v5073_v18  ;;  %v5106_v18 = vperm.slane %v11503_v56, 1 }
 0x9c1   :  { %v5066_v60 = vsub.f32 1.5, %v5065_v58 }
 0x9c2   :  { %v5085_v19 = vadd.f32 %v7790_v51, %v5079_v47 }
 0x9c3   :  { %v5067_v40 = vmul.f32 %v7809_v27, %v5066_v60 }
 0x9c4   :  { %6902 = vmatmul.msk.f32.gmra.mxu3 %vm2926_vm11, %v5085_v19 }
 0x9c5   :  { %v5071_v17 = vsel %vm5070_vm3, %v7809_v27, %v5067_v40 }
 0x9c6   :  { %v5074_v55 = vmul.f32 %v5071_v17, %v11467_v48 }
 0x9c8   :  { %v5080_v8 = vmul.f32 %v7789_v33, %v5074_v55 }
 0x9ca   :  { %v5086_v57 = vadd.f32 %v7790_v51, %v5080_v8 }
 0x9cc   :  { %6903 = vmatmul.msk.f32.gmra.mxu3 %vm2926_vm11, %v5086_v57 }
 0x9d4   :  { %6904 = vmatmul.msk.f32.vlgmr.msrb.gmra.mxu3 %vm2926_vm11, %v5084_v2  ;;  %v4998_v2 = vld [vmem:[%s12297_s8 + $0x20] sm:$0xf] }
 0x9dc   :  { %6905 = vmatmul.msk.f32.gmra.mxu3 %vm2926_vm11, %v5085_v19 }
 0x9e4   :  { %6906 = vmatmul.msk.f32.gmra.mxu3 %vm2926_vm11, %v5086_v57 }
 0xa3f   :  { %v5135_v35 = vpop.f32.mrf.mxu3 }
 0xa40   :  { %v5136_v34 = vadd.f32 %v5135_v35, %v5105_v6 }
 0xa42   :  { %v5174_v25 = vrot.slane %v5136_v34, 6 }
 0xa44   :  { %5179 = vrot.lane.b32.xlu0 %v5174_v25, %s7960_s21 }
 0xa47   :  { %v5138_v48 = vpop.f32.mrf.mxu3 }
 0xa48   :  { %v5139_v28 = vadd.f32 %v5138_v48, %v5105_v6 }
 0xa4a   :  { %v5175_v14 = vrot.slane %v5139_v28, 6 }
 0xa4c   :  { %v5176_v41 = vsel %vm5173_vm4, %v5174_v25, %v5175_v14 }
 0xa4d   :  { %5181 = vrot.lane.b32.xlu2 %v5176_v41, %s7960_s21 }
 0xa4f   :  { %v5141_v46 = vpop.f32.mrf.mxu3 }
 0xa50   :  { %v5142_v54 = vadd.f32 %v5141_v46, %v5105_v6 }
 0xa52   :  { %v5177_v13 = vrot.slane %v5142_v54, 6 }
 0xa54   :  { %v5178_v30 = vsel %vm5173_vm4, %v5175_v14, %v5177_v13 }
 0xa55   :  { %5183 = vrot.lane.b32.xlu1 %v5178_v30, %s7960_s21 }
 0xa57   :  { %v5161_v52 = vpop.f32.mrf.mxu3 }
 0xa58   :  { %v5162_v40 = vadd.f32 %v5161_v52, %v5106_v18 }
 0xa5a   :  { %v5190_v55 = vrot.slane %v5162_v40, 6 }
 0xa5f   :  { %v5164_v12 = vpop.f32.mrf.mxu3 }
 0xa60   :  { %v5165_v47 = vadd.f32 %v5164_v12, %v5106_v18 }
 0xa62   :  { %v5191_v19 = vrot.slane %v5165_v47, 6 }
 0xa64   :  { %v5192_v8 = vsel %vm5173_vm4, %v5190_v55, %v5191_v19 }
 0xa65   :  { %v7774_v57 = vpack.i.bf16 %v5190_v55, %v5192_v8 }
 0xa67   :  { %v5167_v44 = vpop.f32.mrf.mxu3 }
 0xa68   :  { %v5168_v58 = vadd.f32 %v5167_v44, %v5106_v18  ;;  %v5408_v18 = vld [vmem:[%s12298_s14 + $0x20] sm:$0xff] }
 0xa6a   :  { %v5193_v60 = vrot.slane %v5168_v58, 6 }
 0xa6c   :  { %v5194_v17 = vsel %vm5173_vm4, %v5191_v19, %v5193_v60  ;;  %v5405_v60 = vld [vmem:[%s12298_s14 + $0x8] sm:$0xff] }
 0xaa7   :  { %v5182_v15 = vpop.permute.xlu2 %5181 }
 0xaa8   :  { %5211 = vrot.lane.b32.xlu0 %v5182_v15, %s7958_s0 }
 0xab0   :  { %5205 = vrot.lane.b32.xlu0 %v5136_v34, %s7958_s0 }
 0xab6   :  { %v5180_v36 = vpop.permute.xlu0 %5179 }
 0xab7   :  { %v5186_v23 = vsel %vm5173_vm4, %v5142_v54, %v5180_v36 }
 0xab8   :  { %5209 = vrot.lane.b32.xlu2 %v5186_v23, %s7958_s0 }
 0xac7   :  { %v5184_v29 = vpop.permute.xlu1 %5183 }
 0xac8   :  { %5213 = vrot.lane.b32.xlu1 %v5184_v29, %s7958_s0 }
 0xad0   :  { %5207 = vrot.lane.b32.xlu1 %v5139_v28, %s7958_s0 }
 0xb12   :  { %v5210_v61 = vpop.permute.xlu2 %5209 }
 0xb1a   :  { %v5212_v4 = vpop.permute.xlu0 %5211 }
 0xb22   :  { %v5206_v10 = vpop.permute.xlu0 %5205 }
 0xb3a   :  { %v5214_v31 = vpop.permute.xlu1 %5213 }
 0xb3b   :  { %6907 = vmatpush.xpose.msk.msra.mxu3 %vm1758_vm2, %v5214_v31 }
 0xb3f   :  { %6908 = vmatpush.xpose.msk.msra.mxu3 %vm1758_vm2, %v5212_v4 }
 0xb42   :  { %v5208_v22 = vpop.permute.xlu1 %5207 }
 0xb43   :  { %6909 = vmatpush.xpose.msk.msra.mxu3 %vm1758_vm2, %v5210_v61 }
 0xb47   :  { %6910 = vmatpush.xpose.msk.msra.mxu3 %vm1758_vm2, %v5208_v22 }
 0xb4b   :  { %6911 = vmatpush.xpose.msk.msra.mxu3 %vm1758_vm2, %v5206_v10 }
 0xb4e   :  { %6912 = vmatmul.msk.f32.vlgmr.msra.gmra.mxu3 %vm1758_vm2, %v5136_v34 }
 0xb56   :  { %6913 = vmatmul.msk.f32.gmra.mxu3 %vm1758_vm2, %v5139_v28 }
 0xb5e   :  { %6914 = vmatmul.msk.f32.gmra.mxu3 %vm1758_vm2, %v5186_v23 }
 0xb66   :  { %6915 = vmatmul.msk.f32.gmra.mxu3 %vm1758_vm2, %v5182_v15 }
 0xb6e   :  { %6916 = vmatmul.msk.f32.gmra.mxu3 %vm1758_vm2, %v5184_v29 }
 0xbd1   :  { %v5252_v63 = vpop.f32.mrf.mxu3 }
 0xbd2   :  { %v5267_v26 = vmul.f32 0.17677669, %v5252_v63 }
 0xbd4   :  { %v5272_v20 = vadd.f32 %v5267_v26, %v4994_v53 }
 0xbd6   :  { %v5278_v21 = vsel %vm5277_vm5, %v5272_v20, -inf }
 0xbd7   :  { %5279 = vmax.xlane.f32.xlu2 %v5278_v21 }
 0xbd9   :  { %v5255_v9 = vpop.f32.mrf.mxu3 }
 0xbda   :  { %v5268_v59 = vmul.f32 0.17677669, %v5255_v9 }
 0xbdc   :  { %v5273_v11 = vadd.f32 %v5268_v59, %v4995_v49 }
 0xbde   :  { %v5281_v38 = vsel %vm5277_vm5, %v5273_v11, -inf }
 0xbdf   :  { %5282 = vmax.xlane.f32.xlu1 %v5281_v38 }
 0xbe1   :  { %v5258_v33 = vpop.f32.mrf.mxu3 }
 0xbe2   :  { %v5269_v43 = vmul.f32 0.17677669, %v5258_v33 }
 0xbe4   :  { %v5274_v50 = vadd.f32 %v5269_v43, %v4996_v24 }
 0xbe6   :  { %v5284_v51 = vsel %vm5277_vm5, %v5274_v50, -inf }
 0xbe7   :  { %5285 = vmax.xlane.f32.xlu0 %v5284_v51 }
 0xbe9   :  { %v5261_v7 = vpop.f32.mrf.mxu3 }
 0xbea   :  { %v5270_v62 = vmul.f32 0.17677669, %v5261_v7 }
 0xbec   :  { %v5275_v37 = vadd.f32 %v5270_v62, %v4997_v16 }
 0xbee   :  { %v5287_v27 = vsel %vm5277_vm5, %v5275_v37, -inf }
 0xbef   :  { %5288 = vmax.xlane.f32.xlu2 %v5287_v27 }
 0xbf1   :  { %v5264_v32 = vpop.f32.mrf.mxu3 }
 0xbf2   :  { %v5271_v3 = vmul.f32 0.17677669, %v5264_v32  ;;  %v5411_v32 = vld [vmem:[%s12298_s14 + $0x38] sm:$0xff] }
 0xbf3   :  { %5429 = vmatpush.msra.mxu2 %v5411_v32  ;;  %v5539_v32 = vld [vmem:[%s12300_s24 + $0x10] sm:$0xff] }
 0xbf4   :  { %v5276_v45 = vadd.f32 %v5271_v3, %v4998_v2  ;;  %v5410_v3 = vld [vmem:[%s12298_s14 + $0x30] sm:$0xff] }
 0xbf5   :  { %5430 = vmatpush.msra.mxu2 %v5410_v3  ;;  %v5540_v3 = vld [vmem:[%s12300_s24 + $0x18] sm:$0xff] }
 0xbf6   :  { %v5291_v0 = vsel %vm5290_vm7, %v5276_v45, -inf }
 0xbf7   :  { %5292 = vmax.xlane.f32.xlu1 %v5291_v0 }
 0xc07   :  { %5199 = vrot.lane.b32.xlu2 %v5194_v17, %s7960_s21 }
 0xc10   :  { %7775 = vrot.lane.b32.xlu1 %v7774_v57, %s7960_s21 }
 0xc4a   :  { %v5280_v6 = vpop.xlane.xlu2 %5279 }
 0xc4b   :  { %v5294_v35 = vsub.f32 %v5272_v20, %v5280_v6 }
 0xc4d   :  { %v5299_v34 = vmul.f32 1.442695, %v5294_v35 }
 0xc4f   :  { %7810 = vpow2.f32 %v5299_v34  ;;  %v5404_v34 = vld [vmem:[%s12298_s14] sm:$0xff] }
 0xc52   :  { %v5283_v56 = vpop.xlane.xlu1 %5282 }
 0xc53   :  { %v5295_v25 = vsub.f32 %v5273_v11, %v5283_v56 }
 0xc55   :  { %v7811_v48 = vpop.eup %7810  ;;  %v5301_v28 = vmul.f32 1.442695, %v5295_v25 }
 0xc56   :  { %v5309_v14 = vsel %vm5277_vm5, %v7811_v48, 0.0 }
 0xc57   :  { %7812 = vpow2.f32 %v5301_v28  ;;  %5310 = vadd.xlane.f32.xlu0 %v5309_v14 }
 0xc5a   :  { %v5286_v41 = vpop.xlane.xlu0 %5285 }
 0xc5b   :  { %v5296_v46 = vsub.f32 %v5274_v50, %v5286_v41 }
 0xc5d   :  { %v7813_v54 = vpop.eup %7812  ;;  %v5303_v13 = vmul.f32 1.442695, %v5296_v46  ;;  %v7791_v46 = vld [vmem:[%s12299_s19] ss:$0 sm:$0xff] }
 0xc5e   :  { %v5312_v30 = vsel %vm5277_vm5, %v7813_v54, 0.0 }
 0xc5f   :  { %7814 = vpow2.f32 %v5303_v13  ;;  %5313 = vadd.xlane.f32.xlu0 %v5312_v30 }
 0xc62   :  { %v5289_v15 = vpop.xlane.xlu2 %5288 }
 0xc63   :  { %v5297_v36 = vsub.f32 %v5275_v37, %v5289_v15 }
 0xc65   :  { %v7815_v23 = vpop.eup %7814  ;;  %v5305_v29 = vmul.f32 1.442695, %v5297_v36 }
 0xc66   :  { %v5315_v31 = vsel %vm5277_vm5, %v7815_v23, 0.0 }
 0xc67   :  { %7816 = vpow2.f32 %v5305_v29  ;;  %5316 = vadd.xlane.f32.xlu0 %v5315_v31 }
 0xc6a   :  { %v5200_v4 = vpop.permute.xlu2 %5199  ;;  %v5293_v61 = vpop.xlane.xlu1 %5292 }
 0xc6b   :  { %v5298_v22 = vsub.f32 %v5276_v45, %v5293_v61  ;;  %6917 = vmatpush.msk.msra.mxu1 %vm5349_vm8, %v5200_v4  ;;  %v5409_v45 = vld [vmem:[%s12298_s14 + $0x28] sm:$0xff] }
 0xc6c   :  { %5431 = vmatpush.msra.mxu2 %v5409_v45  ;;  %v5537_v45 = vld [vmem:[%s12300_s24] sm:$0xff] }
 0xc6d   :  { %v7817_v10 = vpop.eup %7816  ;;  %v5307_v52 = vmul.f32 1.442695, %v5298_v22 }
 0xc6e   :  { %v5318_v12 = vsel %vm5277_vm5, %v7817_v10, 0.0  ;;  %5432 = vmatpush.msra.mxu2 %v5408_v18 }
 0xc6f   :  { %7818 = vpow2.f32 %v5307_v52  ;;  %5319 = vadd.xlane.f32.xlu0 %v5318_v12 }
 0xc75   :  { %v7819_v44 = vpop.eup %7818 }
 0xc76   :  { %v5321_v53 = vsel %vm5290_vm7, %v7819_v44, 0.0 }
 0xc77   :  { %5322 = vadd.xlane.f32.xlu2 %v5321_v53 }
 0xc82   :  { %v7776_v63 = vpop.permute.xlu1 %7775 }
 0xc83   :  { %v7778_v26 = vunpack.i.h.bf16 %v7776_v63  ;;  %v7777_v20 = vunpack.i.l.bf16 %v7776_v63 }
 0xc85   :  { %5364 = vmatpush.msra.mxu1 %v7777_v20  ;;  %v5203_v21 = vsel %vm5173_vm4, %v5168_v58, %v7778_v26  ;;  %v5407_v58 = vld [vmem:[%s12298_s14 + $0x18] sm:$0xff] }
 0xc86   :  { %5433 = vmatpush.msra.mxu2 %v5407_v58 }
 0xc87   :  { %5365 = vmatpush.msra.mxu1 %v5203_v21 }
 0xc89   :  { %5366 = vmatpush.msra.mxu1 %v5165_v47  ;;  %v5406_v47 = vld [vmem:[%s12298_s14 + $0x10] sm:$0xff] }
 0xc8a   :  { %5434 = vmatpush.msra.mxu2 %v5406_v47 }
 0xc8b   :  { %5367 = vmatpush.msra.mxu1 %v5162_v40 }
 0xc8c   :  { %5435 = vmatpush.msra.mxu2 %v5405_v60 }
 0xc8e   :  { %5436 = vmatpush.msra.mxu2 %v5404_v34  ;;  %v5704_v34 = vld [vmem:[%s12301_s30 + $0xf0] sm:$0xff] }
 0xcca   :  { %v5311_v49 = vpop.xlane.xlu0 %5310 }
 0xccb   :  { %7820 = vrcp.f32 %v5311_v49 }
 0xcd1   :  { %v7821_v9 = vpop.eup %7820 }
 0xcd2   :  { %v5329_v59 = vmul.f32 %v7821_v9, %v7811_v48  ;;  %v5314_v11 = vpop.xlane.xlu0 %5313 }
 0xcd3   :  { %7822 = vrcp.f32 %v5314_v11 }
 0xcd4   :  { %6918 = vmatmul.msk.f32.vlgmr.msra.gmra.mxu1 %vm5277_vm5, %v5329_v59 }
 0xcd9   :  { %v7823_v38 = vpop.eup %7822 }
 0xcda   :  { %v5317_v24 = vpop.xlane.xlu0 %5316  ;;  %v5330_v33 = vmul.f32 %v7823_v38, %v7813_v54  ;;  %v5551_v38 = vld [vmem:[%s12300_s24 + $0x70] sm:$0xff] }
 0xcdb   :  { %7824 = vrcp.f32 %v5317_v24  ;;  %v5552_v24 = vld [vmem:[%s12300_s24 + $0x78] sm:$0xff]  ;;  %5576 = vmatpush.msrb.mxu3 %v5551_v38 }
 0xcdc   :  { %6919 = vmatmul.msk.f32.gmra.mxu1 %vm5277_vm5, %v5330_v33  ;;  %5602 = vmatpush.msrb.mxu2 %v5552_v24  ;;  %v5549_v33 = vld [vmem:[%s12300_s24 + $0x60] sm:$0xff] }
 0xcdd   :  { %5577 = vmatpush.msrb.mxu3 %v5549_v33 }
 0xce1   :  { %v7825_v43 = vpop.eup %7824 }
 0xce2   :  { %v5320_v50 = vpop.xlane.xlu0 %5319  ;;  %v5331_v51 = vmul.f32 %v7825_v43, %v7815_v23  ;;  %v5550_v43 = vld [vmem:[%s12300_s24 + $0x68] sm:$0xff] }
 0xce3   :  { %7826 = vrcp.f32 %v5320_v50  ;;  %5603 = vmatpush.msrb.mxu2 %v5550_v43  ;;  %v5547_v50 = vld [vmem:[%s12300_s24 + $0x50] sm:$0xff] }
 0xce4   :  { %6920 = vmatmul.msk.f32.gmra.mxu1 %vm5277_vm5, %v5331_v51  ;;  %v5548_v51 = vld [vmem:[%s12300_s24 + $0x58] sm:$0xff]  ;;  %5578 = vmatpush.msrb.mxu3 %v5547_v50  ;;  %v5686_v50 = vld [vmem:[%s12301_s30 + $0x60] sm:$0xff] }
 0xce5   :  { %5604 = vmatpush.msrb.mxu2 %v5548_v51  ;;  %v5702_v51 = vld [vmem:[%s12301_s30 + $0xe0] sm:$0xff] }
 0xce9   :  { %v7827_v16 = vpop.eup %7826 }
 0xcea   :  { %v5323_v7 = vpop.xlane.xlu2 %5322  ;;  %v5332_v62 = vmul.f32 %v7827_v16, %v7817_v10  ;;  %v5545_v16 = vld [vmem:[%s12300_s24 + $0x40] sm:$0xff] }
 0xceb   :  { %7828 = vrcp.f32 %v5323_v7  ;;  %v5546_v7 = vld [vmem:[%s12300_s24 + $0x48] sm:$0xff]  ;;  %5579 = vmatpush.msrb.mxu3 %v5545_v16  ;;  %v5685_v16 = vld [vmem:[%s12301_s30 + $0x58] sm:$0xff] }
 0xcec   :  { %6921 = vmatmul.msk.f32.gmra.mxu1 %vm5277_vm5, %v5332_v62  ;;  %5605 = vmatpush.msrb.mxu2 %v5546_v7  ;;  %v5543_v62 = vld [vmem:[%s12300_s24 + $0x30] sm:$0xff]  ;;  %v5701_v7 = vld [vmem:[%s12301_s30 + $0xd8] sm:$0xff] }
 0xced   :  { %5580 = vmatpush.msrb.mxu3 %v5543_v62  ;;  %v5700_v62 = vld [vmem:[%s12301_s30 + $0xd0] sm:$0xff] }
 0xcf1   :  { %v7829_v37 = vpop.eup %7828 }
 0xcf2   :  { %v5333_v27 = vmul.f32 %v7829_v37, %v7819_v44  ;;  %v5544_v37 = vld [vmem:[%s12300_s24 + $0x38] sm:$0xff] }
 0xcf3   :  { %5606 = vmatpush.msrb.mxu2 %v5544_v37  ;;  %v5683_v37 = vld [vmem:[%s12301_s30 + $0x48] sm:$0xff] }
 0xcf4   :  { %6922 = vmatmul.msk.f32.gmra.mxu1 %vm5277_vm5, %v5333_v27  ;;  %v5541_v27 = vld [vmem:[%s12300_s24 + $0x20] sm:$0xff] }
 0xcf5   :  { %5581 = vmatpush.msrb.mxu3 %v5541_v27  ;;  %v5699_v27 = vld [vmem:[%s12301_s30 + $0xc8] sm:$0xff] }
 0xcf7   :  { %5582 = vmatpush.msrb.mxu3 %v5539_v32  ;;  %v5698_v32 = vld [vmem:[%s12301_s30 + $0xc0] sm:$0xff] }
 0xcf9   :  { %5583 = vmatpush.msrb.mxu3 %v5537_v45  ;;  %v5697_v45 = vld [vmem:[%s12301_s30 + $0xb8] sm:$0xff] }
 0xd51   :  { %v5369_v2 = vpop.f32.mrf.mxu1 }
 0xd59   :  { %v5372_v0 = vpop.f32.mrf.mxu1 }
 0xd61   :  { %v5375_v19 = vpop.f32.mrf.mxu1 }
 0xd62   :  { %v5387_v17 = vrot.slane %v5375_v19, 2 }
 0xd69   :  { %v5378_v40 = vpop.f32.mrf.mxu1 }
 0xd6a   :  { %v5388_v55 = vrot.slane %v5378_v40, 2 }
 0xd6c   :  { %v5389_v8 = vsel %vm4852_vm13, %v5387_v17, %v5388_v55 }
 0xd6d   :  { %5392 = vrot.lane.b32.xlu1 %v5389_v8, %s7959_s5  ;;  %v5689_v8 = vld [vmem:[%s12301_s30 + $0x78] sm:$0xff] }
 0xd6e   :  { %5706 = vmatpush.msra.mxu3 %v5689_v8  ;;  %v5692_v8 = vld [vmem:[%s12301_s30 + $0x90] sm:$0xff] }
 0xd71   :  { %v5381_v57 = vpop.f32.mrf.mxu1 }
 0xd72   :  { %v5390_v6 = vrot.slane %v5381_v57, 2  ;;  %v5705_v57 = vld [vmem:[%s12301_s30 + $0xf8] sm:$0xff] }
 0xd73   :  { %5732 = vmatpush.msrb.mxu1 %v5705_v57  ;;  %v5675_v57 = vld [vmem:[%s12301_s30 + $0x8] sm:$0xff] }
 0xd74   :  { %v5391_v35 = vsel %vm4852_vm13, %v5388_v55, %v5390_v6 }
 0xd75   :  { %5396 = vrot.lane.b32.xlu1 %v5390_v6, %s7959_s5  ;;  %5394 = vrot.lane.b32.xlu0 %v5391_v35, %s7959_s5  ;;  %v5688_v35 = vld [vmem:[%s12301_s30 + $0x70] sm:$0xff] }
 0xd76   :  { %5707 = vmatpush.msra.mxu3 %v5688_v35  ;;  %5733 = vmatpush.msrb.mxu1 %v5704_v34  ;;  %v5674_v35 = vld [vmem:[%s12301_s30] sm:$0xff] }
 0xd77   :  { %v5553_v34 = vld [vmem:[%s12304_s15] sm:$0x3] }
 0xddf   :  { %v5393_v56 = vpop.permute.xlu1 %5392 }
 0xde0   :  { %v5401_v25 = vsel %vm1758_vm2, %v5369_v2, %v5393_v56  ;;  %v5542_v2 = vld [vmem:[%s12300_s24 + $0x28] sm:$0xff] }
 0xde1   :  { %6923 = vmatmul.msk.f32.vlgmr.msra.gmra.mxu2 %vm2926_vm11, %v5401_v25  ;;  %v5687_v56 = vld [vmem:[%s12301_s30 + $0x68] sm:$0xff] }
 0xde2   :  { %5607 = vmatpush.msrb.mxu2 %v5542_v2  ;;  %v5703_v25 = vld [vmem:[%s12301_s30 + $0xe8] sm:$0xff]  ;;  %5708 = vmatpush.msra.mxu3 %v5687_v56  ;;  %v5682_v2 = vld [vmem:[%s12301_s30 + $0x40] sm:$0xff] }
 0xde3   :  { %5734 = vmatpush.msrb.mxu1 %v5703_v25  ;;  %v5690_v56 = vld [vmem:[%s12301_s30 + $0x80] sm:$0xff]  ;;  %v5555_v25 = vperm.slane %v5553_v34, 0 }
 0xde4   :  { %5608 = vmatpush.msrb.mxu2 %v5540_v3  ;;  %5709 = vmatpush.msra.mxu3 %v5686_v50  ;;  %v5681_v3 = vld [vmem:[%s12301_s30 + $0x38] sm:$0xff] }
 0xde5   :  { %5735 = vmatpush.msrb.mxu1 %v5702_v51 }
 0xde6   :  { %5710 = vmatpush.msra.mxu3 %v5685_v16 }
 0xde7   :  { %v5395_v48 = vpop.permute.xlu0 %5394  ;;  %v5397_v14 = vpop.permute.xlu1 %5396  ;;  %5736 = vmatpush.msrb.mxu1 %v5701_v7 }
 0xde8   :  { %v5402_v28 = vsel %vm1758_vm2, %v5372_v0, %v5395_v48  ;;  %v5403_v41 = vsel %vm1758_vm2, %v5375_v19, %v5397_v14  ;;  %v5538_v0 = vld [vmem:[%s12300_s24 + $0x8] sm:$0xff] }
 0xde9   :  { %6924 = vmatmul.msk.f32.gmra.mxu2 %vm2926_vm11, %v5402_v28  ;;  %5737 = vmatpush.msrb.mxu1 %v5700_v62 }
 0xdea   :  { %5609 = vmatpush.msrb.mxu2 %v5538_v0  ;;  %v5680_v0 = vld [vmem:[%s12301_s30 + $0x30] sm:$0xff] }
 0xdeb   :  { %5738 = vmatpush.msrb.mxu1 %v5699_v27 }
 0xded   :  { %5739 = vmatpush.msrb.mxu1 %v5698_v32 }
 0xdef   :  { %5740 = vmatpush.msrb.mxu1 %v5697_v45 }
 0xdf1   :  { %6925 = vmatmul.msk.f32.gmra.mxu2 %vm2926_vm11, %v5403_v41 }
 0xe64   :  { %v5438_v54 = vpop.f32.mrf.mxu2 }
 0xe65   :  { %v5447_v13 = vadd.f32 %v5438_v54, %v11437_v42 }
 0xe67   :  { %v11575_v30 = vadd.f32 %v7791_v46, %v5447_v13 }
 0xe69   :  { %v5459_v15 = vsel %vm2926_vm11, %v11575_v30, 0.0 }
 0xe6a   :  { %5460 = vadd.xlane.f32.xlu1 %v5459_v15 }
 0xe6c   :  { %v5441_v36 = vpop.f32.mrf.mxu2 }
 0xe6d   :  { %v5448_v23 = vadd.f32 %v5441_v36, %v11441_v39  ;;  %v7792_v36 = vld [vmem:[%s12302_s6] ss:$0 sm:$0xff] }
 0xe6f   :  { %v11580_v29 = vadd.f32 %v7791_v46, %v5448_v23 }
 0xe71   :  { %v5462_v31 = vsel %vm2926_vm11, %v11580_v29, 0.0 }
 0xe72   :  { %5463 = vadd.xlane.f32.xlu0 %v5462_v31 }
 0xe74   :  { %v5444_v4 = vpop.f32.mrf.mxu2 }
 0xe75   :  { %v5449_v61 = vadd.f32 %v5444_v4, %v11445_v5  ;;  %v7793_v4 = vld [vmem:[%s12303_s12] ss:$0 sm:$0xff] }
 0xe77   :  { %v11585_v22 = vadd.f32 %v7791_v46, %v5449_v61 }
 0xe79   :  { %v5465_v42 = vsel %vm5007_vm6, %v11585_v22, 0.0 }
 0xe7a   :  { %5466 = vadd.xlane.f32.xlu2 %v5465_v42 }
 0xedd   :  { %v5461_v10 = vpop.xlane.xlu1 %5460 }
 0xede   :  { %v5468_v52 = vmul.f32 %v5461_v10, %v11449_v1 }
 0xee0   :  { %v11591_v39 = vsub.f32 %v11575_v30, %v5468_v52 }
 0xee2   :  { %v5474_v12 = vmul.f32 %v11591_v39, %v11591_v39 }
 0xee4   :  { %v5477_v44 = vsel %vm2926_vm11, %v5474_v12, 0.0 }
 0xee5   :  { %v5464_v5 = vpop.xlane.xlu0 %5463  ;;  %5478 = vadd.xlane.f32.xlu2 %v5477_v44 }
 0xee6   :  { %v5469_v53 = vmul.f32 %v5464_v5, %v11449_v1 }
 0xee8   :  { %v11598_v63 = vsub.f32 %v11580_v29, %v5469_v53 }
 0xeea   :  { %v5475_v26 = vmul.f32 %v11598_v63, %v11598_v63 }
 0xeec   :  { %v5480_v20 = vsel %vm2926_vm11, %v5475_v26, 0.0 }
 0xeed   :  { %5481 = vadd.xlane.f32.xlu2 %v5480_v20  ;;  %v5467_v21 = vpop.xlane.xlu2 %5466 }
 0xeee   :  { %v5470_v49 = vmul.f32 %v5467_v21, %v11449_v1 }
 0xef0   :  { %v11605_v9 = vsub.f32 %v11585_v22, %v5470_v49 }
 0xef2   :  { %v5476_v59 = vmul.f32 %v11605_v9, %v11605_v9 }
 0xef4   :  { %v5483_v11 = vsel %vm5007_vm6, %v5476_v59, 0.0 }
 0xef5   :  { %5484 = vadd.xlane.f32.xlu1 %v5483_v11 }
 0xf58   :  { %v5479_v18 = vpop.xlane.xlu2 %5478 }
 0xf59   :  { %v5486_v58 = vmul.f32 %v5479_v18, %v11449_v1  ;;  %v5696_v18 = vld [vmem:[%s12301_s30 + $0xb0] sm:$0xff] }
 0xf5a   :  { %5741 = vmatpush.msrb.mxu1 %v5696_v18 }
 0xf5b   :  { %v5489_v47 = vadd.f32 1e-05, %v5486_v58  ;;  %v5679_v58 = vld [vmem:[%s12301_s30 + $0x28] sm:$0xff] }
 0xf5d   :  { %7830 = vrsqrt.f32 %v5489_v47  ;;  %vm5498_vm10 = vweird.f32 %v5489_v47 }
 0xf60   :  { %v5482_v60 = vpop.xlane.xlu2 %5481 }
 0xf61   :  { %v5487_v19 = vmul.f32 %v5482_v60, %v11449_v1  ;;  %v5678_v60 = vld [vmem:[%s12301_s30 + $0x20] sm:$0xff] }
 0xf63   :  { %v7831_v40 = vpop.eup %7830  ;;  %v5490_v17 = vadd.f32 1e-05, %v5487_v19  ;;  %v5694_v19 = vld [vmem:[%s12301_s30 + $0xa0] sm:$0xff] }
 0xf64   :  { %v5493_v55 = vmul.f32 %v7831_v40, %v5489_v47  ;;  %vm5499_vm9 = vweird.f32 %v7831_v40  ;;  %v5695_v47 = vld [vmem:[%s12301_s30 + $0xa8] sm:$0xff] }
 0xf65   :  { %7832 = vrsqrt.f32 %v5490_v17  ;;  %vm5500_vm12 = vmor %vm5498_vm10, %vm5499_vm9  ;;  %vm5508_vm15 = vweird.f32 %v5490_v17  ;;  %5742 = vmatpush.msrb.mxu1 %v5695_v47 }
 0xf66   :  { %v5494_v6 = vmul.f32 %v7831_v40, %v5493_v55  ;;  %v5676_v55 = vld [vmem:[%s12301_s30 + $0x10] sm:$0xff] }
 0xf67   :  { %5743 = vmatpush.msrb.mxu1 %v5694_v19 }
 0xf68   :  { %v5495_v48 = vmul.f32 0.5, %v5494_v6  ;;  %v5485_v28 = vpop.xlane.xlu1 %5484  ;;  %v5691_v6 = vld [vmem:[%s12301_s30 + $0x88] sm:$0xff] }
 0xf69   :  { %v5488_v14 = vmul.f32 %v5485_v28, %v11449_v1 }
 0xf6a   :  { %v5496_v41 = vsub.f32 1.5, %v5495_v48  ;;  %v5556_v48 = vperm.slane %v5553_v34, 1 }
 0xf6b   :  { %v7833_v46 = vpop.eup %7832  ;;  %v5491_v54 = vadd.f32 1e-05, %v5488_v14 }
 0xf6c   :  { %v5497_v13 = vmul.f32 %v7831_v40, %v5496_v41  ;;  %v5503_v15 = vmul.f32 %v7833_v46, %v5490_v17  ;;  %vm5509_vm14 = vweird.f32 %v7833_v46  ;;  %v5693_v17 = vld [vmem:[%s12301_s30 + $0x98] sm:$0xff] }
 0xf6d   :  { %7834 = vrsqrt.f32 %v5491_v54  ;;  %vm5510_vm0 = vmor %vm5508_vm15, %vm5509_vm14  ;;  %vm5518_vm3 = vweird.f32 %v5491_v54  ;;  %5744 = vmatpush.msrb.mxu1 %v5693_v17 }
 0xf6e   :  { %v5501_v23 = vsel %vm5500_vm12, %v7831_v40, %v5497_v13  ;;  %v5504_v31 = vmul.f32 %v7833_v46, %v5503_v15  ;;  %v5677_v40 = vld [vmem:[%s12301_s30 + $0x18] sm:$0xff] }
 0xf6f   :  { %v5522_v61 = vmul.f32 %v5501_v23, %v11591_v39  ;;  %5745 = vmatpush.msrb.mxu1 %v5692_v8 }
 0xf70   :  { %v5505_v42 = vmul.f32 0.5, %v5504_v31 }
 0xf71   :  { %v5528_v10 = vmul.f32 %v7792_v36, %v5522_v61  ;;  %5746 = vmatpush.msrb.mxu1 %v5691_v6 }
 0xf72   :  { %v5506_v52 = vsub.f32 1.5, %v5505_v42 }
 0xf73   :  { %v7835_v12 = vpop.eup %7834  ;;  %v5534_v44 = vadd.f32 %v7793_v4, %v5528_v10  ;;  %5747 = vmatpush.msrb.mxu1 %v5690_v56 }
 0xf74   :  { %v5507_v5 = vmul.f32 %v7833_v46, %v5506_v52  ;;  %v5513_v53 = vmul.f32 %v7835_v12, %v5491_v54  ;;  %vm5519_vm1 = vweird.f32 %v7835_v12 }
 0xf75   :  { %6926 = vmatmul.msk.f32.vlgmr.msrb.gmra.mxu3 %vm2926_vm11, %v5534_v44  ;;  %6929 = vmatmul.msk.f32.vlgmr.msrb.gmra.mxu2 %vm2926_vm11, %v5534_v44  ;;  %vm5520_vm9 = vmor %vm5518_vm3, %vm5519_vm1 }
 0xf76   :  { %v5511_v26 = vsel %vm5510_vm0, %v7833_v46, %v5507_v5  ;;  %v5514_v20 = vmul.f32 %v7835_v12, %v5513_v53 }
 0xf77   :  { %v5523_v21 = vmul.f32 %v5511_v26, %v11598_v63 }
 0xf78   :  { %v5515_v49 = vmul.f32 0.5, %v5514_v20 }
 0xf79   :  { %v5529_v39 = vmul.f32 %v7792_v36, %v5523_v21 }
 0xf7a   :  { %v5516_v59 = vsub.f32 1.5, %v5515_v49 }
 0xf7b   :  { %v5535_v11 = vadd.f32 %v7793_v4, %v5529_v39 }
 0xf7c   :  { %v5517_v38 = vmul.f32 %v7835_v12, %v5516_v59 }
 0xf7d   :  { %6927 = vmatmul.msk.f32.gmra.mxu3 %vm2926_vm11, %v5535_v11  ;;  %6930 = vmatmul.msk.f32.gmra.mxu2 %vm2926_vm11, %v5535_v11 }
 0xf7e   :  { %v5521_v24 = vsel %vm5520_vm9, %v7835_v12, %v5517_v38 }
 0xf7f   :  { %v5524_v63 = vmul.f32 %v5521_v24, %v11605_v9  ;;  %v5684_v9 = vld [vmem:[%s12301_s30 + $0x50] sm:$0xff] }
 0xf80   :  { %5711 = vmatpush.msra.mxu3 %v5684_v9 }
 0xf81   :  { %v5530_v33 = vmul.f32 %v7792_v36, %v5524_v63 }
 0xf82   :  { %5712 = vmatpush.msra.mxu3 %v5683_v37 }
 0xf83   :  { %v5536_v43 = vadd.f32 %v7793_v4, %v5530_v33 }
 0xf84   :  { %5713 = vmatpush.msra.mxu3 %v5682_v2 }
 0xf85   :  { %6928 = vmatmul.msk.f32.gmra.mxu3 %vm2926_vm11, %v5536_v43  ;;  %6931 = vmatmul.msk.f32.gmra.mxu2 %vm2926_vm11, %v5536_v43 }
 0xf86   :  { %5714 = vmatpush.msra.mxu3 %v5681_v3 }
 0xf88   :  { %5715 = vmatpush.msra.mxu3 %v5680_v0 }
 0xf8a   :  { %5716 = vmatpush.msra.mxu3 %v5679_v58 }
 0xf8c   :  { %5717 = vmatpush.msra.mxu3 %v5678_v60 }
 0xf8e   :  { %5718 = vmatpush.msra.mxu3 %v5677_v40 }
 0xf90   :  { %5719 = vmatpush.msra.mxu3 %v5676_v55 }
 0xf92   :  { %5720 = vmatpush.msra.mxu3 %v5675_v57 }
 0xf94   :  { %5721 = vmatpush.msra.mxu3 %v5674_v35 }
 0xff8   :  { %v5585_v28 = vpop.f32.mrf.mxu3  ;;  %v5611_v14 = vpop.f32.mrf.mxu2 }
 0xff9   :  { %v5586_v41 = vadd.f32 %v5585_v28, %v5555_v25  ;;  %v5612_v46 = vadd.f32 %v5611_v14, %v5556_v48 }
 0xffb   :  { %v5620_v54 = vmul.f32 %v5586_v41, %v5586_v41  ;;  %v5621_v13 = vmul.f32 %v5612_v46, %v5612_v46 }
 0xffd   :  { %v5626_v15 = vmul.f32 %v5620_v54, %v5586_v41  ;;  %v5627_v36 = vmul.f32 %v5621_v13, %v5612_v46 }
 0xfff   :  { %v5632_v23 = vmul.f32 0.044715, %v5626_v15  ;;  %v5633_v31 = vmul.f32 0.044715, %v5627_v36 }
0x1000   :  { %v5588_v4 = vpop.f32.mrf.mxu3  ;;  %v5614_v61 = vpop.f32.mrf.mxu2 }
0x1001   :  { %v5638_v42 = vadd.f32 %v5632_v23, %v5586_v41  ;;  %v5639_v10 = vadd.f32 %v5633_v31, %v5612_v46  ;;  %v5589_v52 = vadd.f32 %v5588_v4, %v5555_v25  ;;  %v5615_v12 = vadd.f32 %v5614_v61, %v5556_v48  ;;  %v7794_v31 = vld [vmem:[%s8106_s20] ss:$0 sm:$0xff] }
0x1003   :  { %v5644_v44 = vmul.f32 0.7978846, %v5638_v42  ;;  %v5645_v5 = vmul.f32 0.7978846, %v5639_v10  ;;  %v5622_v53 = vmul.f32 %v5589_v52, %v5589_v52  ;;  %v5623_v26 = vmul.f32 %v5615_v12, %v5615_v12 }
0x1005   :  { %7836 = vtanh.f32 %v5644_v44  ;;  %v5628_v20 = vmul.f32 %v5622_v53, %v5589_v52  ;;  %v5629_v21 = vmul.f32 %v5623_v26, %v5615_v12 }
0x1006   :  { %7838 = vtanh.f32 %v5645_v5 }
0x1007   :  { %v5634_v49 = vmul.f32 0.044715, %v5628_v20  ;;  %v5635_v39 = vmul.f32 0.044715, %v5629_v21 }
0x1008   :  { %v5591_v59 = vpop.f32.mrf.mxu3  ;;  %v5617_v11 = vpop.f32.mrf.mxu2 }
0x1009   :  { %v5640_v38 = vadd.f32 %v5634_v49, %v5589_v52  ;;  %v5641_v24 = vadd.f32 %v5635_v39, %v5615_v12  ;;  %v5592_v63 = vadd.f32 %v5591_v59, %v5555_v25  ;;  %v5618_v33 = vadd.f32 %v5617_v11, %v5556_v48 }
0x100b   :  { %v7837_v43 = vpop.eup %7836  ;;  %v5624_v50 = vmul.f32 %v5592_v63, %v5592_v63  ;;  %v5625_v51 = vmul.f32 %v5618_v33, %v5618_v33  ;;  %v5646_v16 = vmul.f32 0.7978846, %v5640_v38  ;;  %v5647_v7 = vmul.f32 0.7978846, %v5641_v24 }
0x100c   :  { %v7839_v9 = vpop.eup %7838  ;;  %v5656_v62 = vadd.f32 1.0, %v7837_v43 }
0x100d   :  { %v5657_v37 = vadd.f32 1.0, %v7839_v9  ;;  %v5630_v27 = vmul.f32 %v5624_v50, %v5592_v63  ;;  %v5631_v2 = vmul.f32 %v5625_v51, %v5618_v33  ;;  %7840 = vtanh.f32 %v5646_v16 }
0x100e   :  { %v5662_v32 = vmul.f32 0.5, %v5656_v62  ;;  %7842 = vtanh.f32 %v5647_v7 }
0x100f   :  { %v5663_v3 = vmul.f32 0.5, %v5657_v37  ;;  %v5636_v45 = vmul.f32 0.044715, %v5630_v27  ;;  %v5637_v0 = vmul.f32 0.044715, %v5631_v2  ;;  %v6948_v37 = vld [vmem:[%s12293_s13 + $0xf0] sm:$0xff] }
0x1010   :  { %v5668_v18 = vmul.f32 %v5662_v32, %v5586_v41  ;;  %v6949_v27 = vld [vmem:[%s12293_s13 + $0xf8] sm:$0xff]  ;;  %5891 = vmatpush.msra.mxu2 %v6948_v37  ;;  %v6946_v2 = vld [vmem:[%s12293_s13 + $0xe0] sm:$0xff]  ;;  %v6947_v32 = vld [vmem:[%s12293_s13 + $0xe8] sm:$0xff] }
0x1011   :  { %v5669_v58 = vmul.f32 %v5663_v3, %v5612_v46  ;;  %v5642_v47 = vadd.f32 %v5636_v45, %v5592_v63  ;;  %v5643_v60 = vadd.f32 %v5637_v0, %v5618_v33  ;;  %5917 = vmatpush.msrb.mxu3 %v6949_v27  ;;  %v6944_v3 = vld [vmem:[%s12293_s13 + $0xd0] sm:$0xff]  ;;  %v6945_v45 = vld [vmem:[%s12293_s13 + $0xd8] sm:$0xff]  ;;  %v6942_v0 = vld [vmem:[%s12293_s13 + $0xc0] sm:$0xff] }
0x1012   :  { %5722 = vmatmul.f32.vlgmr.msra.gmra.mxu3 %v5668_v18  ;;  %5892 = vmatpush.msra.mxu2 %v6946_v2  ;;  %v6943_v18 = vld [vmem:[%s12293_s13 + $0xc8] sm:$0xff] }
0x1013   :  { %v7841_v19 = vpop.eup %7840  ;;  %5748 = vmatmul.f32.vlgmr.msrb.gmra.mxu1 %v5669_v58  ;;  %v5648_v40 = vmul.f32 0.7978846, %v5642_v47  ;;  %v5649_v17 = vmul.f32 0.7978846, %v5643_v60  ;;  %5918 = vmatpush.msrb.mxu3 %v6947_v32  ;;  %v6940_v58 = vld [vmem:[%s12293_s13 + $0xb0] sm:$0xff]  ;;  %v6941_v47 = vld [vmem:[%s12293_s13 + $0xb8] sm:$0xff] }
0x1014   :  { %v7843_v55 = vpop.eup %7842  ;;  %v5658_v8 = vadd.f32 1.0, %v7841_v19  ;;  %5893 = vmatpush.msra.mxu2 %v6944_v3  ;;  %v6938_v60 = vld [vmem:[%s12293_s13 + $0xa0] sm:$0xff]  ;;  %v6939_v19 = vld [vmem:[%s12293_s13 + $0xa8] sm:$0xff] }
0x1015   :  { %v5659_v57 = vadd.f32 1.0, %v7843_v55  ;;  %7844 = vtanh.f32 %v5648_v40  ;;  %5919 = vmatpush.msrb.mxu3 %v6945_v45  ;;  %v6936_v40 = vld [vmem:[%s12293_s13 + $0x90] sm:$0xff]  ;;  %v6934_v55 = vld [vmem:[%s12293_s13 + $0x80] sm:$0xff] }
0x1016   :  { %v5664_v6 = vmul.f32 0.5, %v5658_v8  ;;  %7846 = vtanh.f32 %v5649_v17  ;;  %5894 = vmatpush.msra.mxu2 %v6942_v0  ;;  %v6937_v17 = vld [vmem:[%s12293_s13 + $0x98] sm:$0xff]  ;;  %v6935_v8 = vld [vmem:[%s12293_s13 + $0x88] sm:$0xff] }
0x1017   :  { %v5665_v35 = vmul.f32 0.5, %v5659_v57  ;;  %5920 = vmatpush.msrb.mxu3 %v6943_v18 }
0x1018   :  { %v5670_v34 = vmul.f32 %v5664_v6, %v5589_v52  ;;  %5895 = vmatpush.msra.mxu2 %v6940_v58 }
0x1019   :  { %v5671_v56 = vmul.f32 %v5665_v35, %v5615_v12  ;;  %5921 = vmatpush.msrb.mxu3 %v6941_v47 }
0x101a   :  { %5725 = vmatmul.f32.gmra.mxu3 %v5670_v34  ;;  %5896 = vmatpush.msra.mxu2 %v6938_v60 }
0x101b   :  { %v7845_v25 = vpop.eup %7844  ;;  %5751 = vmatmul.f32.gmra.mxu1 %v5671_v56  ;;  %5922 = vmatpush.msrb.mxu3 %v6939_v19 }
0x101c   :  { %v7847_v48 = vpop.eup %7846  ;;  %v5660_v28 = vadd.f32 1.0, %v7845_v25  ;;  %5897 = vmatpush.msra.mxu2 %v6936_v40 }
0x101d   :  { %v5661_v14 = vadd.f32 1.0, %v7847_v48  ;;  %5923 = vmatpush.msrb.mxu3 %v6937_v17 }
0x101e   :  { %v5666_v41 = vmul.f32 0.5, %v5660_v28  ;;  %5898 = vmatpush.msra.mxu2 %v6934_v55 }
0x101f   :  { %v5667_v46 = vmul.f32 0.5, %v5661_v14  ;;  %5924 = vmatpush.msrb.mxu3 %v6935_v8 }
0x1020   :  { %v5672_v54 = vmul.f32 %v5666_v41, %v5592_v63 }
0x1021   :  { %v5673_v13 = vmul.f32 %v5667_v46, %v5618_v33 }
0x1022   :  { %5728 = vmatmul.f32.gmra.mxu3 %v5672_v54 }
0x1023   :  { %5754 = vmatmul.f32.gmra.mxu1 %v5673_v13 }
0x1090   :  { %v5749_v15 = vpop.f32.mrf.mxu1 }
0x1095   :  { %v5723_v36 = vpop.f32.mrf.mxu3 }
0x1096   :  { %v5750_v23 = vadd.f32 %v5749_v15, %v5723_v36 }
0x1098   :  { %v5758_v4 = vadd.f32 %v5750_v23, %v11575_v30  ;;  %v5752_v42 = vpop.f32.mrf.mxu1 }
0x109a   :  { %v11675_v61 = vadd.f32 %v7794_v31, %v5758_v4  ;;  %v7795_v4 = vld [vmem:[%s12294_s25 + $0x1] ss:$0 sm:$0xff] }
0x109c   :  { %v5772_v10 = vsel %vm2926_vm11, %v11675_v61, 0.0 }
0x109d   :  { %5773 = vadd.xlane.f32.xlu2 %v5772_v10  ;;  %v5726_v52 = vpop.f32.mrf.mxu3 }
0x109e   :  { %v5753_v12 = vadd.f32 %v5752_v42, %v5726_v52  ;;  %v7796_v52 = vld [vmem:[%s12295_s29 + $0x1] ss:$0 sm:$0xff] }
0x10a0   :  { %v5759_v44 = vadd.f32 %v5753_v12, %v11580_v29  ;;  %v5755_v26 = vpop.f32.mrf.mxu1 }
0x10a2   :  { %v11680_v5 = vadd.f32 %v7794_v31, %v5759_v44 }
0x10a4   :  { %v5775_v53 = vsel %vm2926_vm11, %v11680_v5, 0.0 }
0x10a5   :  { %5776 = vadd.xlane.f32.xlu0 %v5775_v53  ;;  %v5729_v20 = vpop.f32.mrf.mxu3 }
0x10a6   :  { %v5756_v30 = vadd.f32 %v5755_v26, %v5729_v20 }
0x10a8   :  { %v5760_v21 = vadd.f32 %v5756_v30, %v11585_v22 }
0x10aa   :  { %v11685_v49 = vadd.f32 %v7794_v31, %v5760_v21 }
0x10ac   :  { %v5778_v39 = vsel %vm5007_vm6, %v11685_v49, 0.0 }
0x10ad   :  { %5779 = vadd.xlane.f32.xlu1 %v5778_v39 }
0x1110   :  { %v5774_v59 = vpop.xlane.xlu2 %5773 }
0x1111   :  { %v5781_v29 = vmul.f32 %v5774_v59, %v11449_v1 }
0x1113   :  { %v11691_v11 = vsub.f32 %v11675_v61, %v5781_v29 }
0x1115   :  { %v5787_v38 = vmul.f32 %v11691_v11, %v11691_v11 }
0x1117   :  { %v5790_v24 = vsel %vm2926_vm11, %v5787_v38, 0.0 }
0x1118   :  { %5791 = vadd.xlane.f32.xlu2 %v5790_v24  ;;  %v5777_v22 = vpop.xlane.xlu0 %5776 }
0x1119   :  { %v5782_v63 = vmul.f32 %v5777_v22, %v11449_v1 }
0x111b   :  { %v11698_v33 = vsub.f32 %v11680_v5, %v5782_v63 }
0x111d   :  { %v5788_v43 = vmul.f32 %v11698_v33, %v11698_v33 }
0x111f   :  { %v5793_v50 = vsel %vm2926_vm11, %v5788_v43, 0.0 }
0x1120   :  { %5794 = vadd.xlane.f32.xlu0 %v5793_v50  ;;  %v5780_v51 = vpop.xlane.xlu1 %5779 }
0x1121   :  { %v5783_v16 = vmul.f32 %v5780_v51, %v11449_v1 }
0x1123   :  { %v11705_v7 = vsub.f32 %v11685_v49, %v5783_v16 }
0x1125   :  { %v5789_v9 = vmul.f32 %v11705_v7, %v11705_v7 }
0x1127   :  { %v5796_v62 = vsel %vm5007_vm6, %v5789_v9, 0.0 }
0x1128   :  { %5797 = vadd.xlane.f32.xlu1 %v5796_v62 }
0x118b   :  { %v5792_v57 = vpop.xlane.xlu2 %5791 }
0x118c   :  { %v5799_v6 = vmul.f32 %v5792_v57, %v11449_v1 }
0x118e   :  { %v5802_v35 = vadd.f32 1e-05, %v5799_v6 }
0x1190   :  { %7848 = vrsqrt.f32 %v5802_v35  ;;  %vm5811_vm12 = vweird.f32 %v5802_v35 }
0x1193   :  { %v5795_v34 = vpop.xlane.xlu0 %5794 }
0x1194   :  { %v5800_v56 = vmul.f32 %v5795_v34, %v11449_v1 }
0x1196   :  { %v7849_v25 = vpop.eup %7848  ;;  %v5803_v48 = vadd.f32 1e-05, %v5800_v56 }
0x1197   :  { %v5806_v28 = vmul.f32 %v7849_v25, %v5802_v35  ;;  %vm5812_vm10 = vweird.f32 %v7849_v25 }
0x1198   :  { %7850 = vrsqrt.f32 %v5803_v48  ;;  %vm5813_vm14 = vmor %vm5811_vm12, %vm5812_vm10  ;;  %vm5821_vm0 = vweird.f32 %v5803_v48 }
0x1199   :  { %v5807_v14 = vmul.f32 %v7849_v25, %v5806_v28 }
0x119b   :  { %v5808_v41 = vmul.f32 0.5, %v5807_v14  ;;  %v5798_v46 = vpop.xlane.xlu1 %5797 }
0x119c   :  { %v5801_v54 = vmul.f32 %v5798_v46, %v11449_v1  ;;  %v7895_v46 = vld [vmem:[%s12297_s8 + $0x8] sm:$0xff] }
0x119d   :  { %v5809_v13 = vsub.f32 1.5, %v5808_v41 }
0x119e   :  { %v7851_v15 = vpop.eup %7850  ;;  %v5804_v36 = vadd.f32 1e-05, %v5801_v54 }
0x119f   :  { %v5810_v23 = vmul.f32 %v7849_v25, %v5809_v13  ;;  %v5816_v31 = vmul.f32 %v7851_v15, %v5803_v48  ;;  %vm5822_vm15 = vweird.f32 %v7851_v15 }
0x11a0   :  { %7852 = vrsqrt.f32 %v5804_v36  ;;  %vm5823_vm1 = vmor %vm5821_vm0, %vm5822_vm15  ;;  %vm5831_vm9 = vweird.f32 %v5804_v36  ;;  %vm6583_vm15 = vcmask 40960   ;;  %vm6585_vm0 = vcmask 41985  }
0x11a1   :  { %v5814_v42 = vsel %vm5813_vm14, %v7849_v25, %v5810_v23  ;;  %v5817_v10 = vmul.f32 %v7851_v15, %v5816_v31  ;;  %v7894_v25 = vld [vmem:[%s12297_s8] sm:$0xff]  ;;  %v7896_v23 = vld [vmem:[%s12297_s8 + $0x10] sm:$0xff] }
0x11a2   :  { %v5835_v12 = vmul.f32 %v5814_v42, %v11691_v11 }
0x11a3   :  { %v5818_v44 = vmul.f32 0.5, %v5817_v10 }
0x11a4   :  { %v5841_v53 = vmul.f32 %v7795_v4, %v5835_v12  ;;  %v7897_v12 = vld [vmem:[%s12297_s8 + $0x18] sm:$0xff] }
0x11a5   :  { %v5819_v26 = vsub.f32 1.5, %v5818_v44 }
0x11a6   :  { %v7853_v20 = vpop.eup %7852  ;;  %v5847_v30 = vadd.f32 %v7796_v52, %v5841_v53 }
0x11a7   :  { %v5820_v21 = vmul.f32 %v7851_v15, %v5819_v26  ;;  %v5826_v39 = vmul.f32 %v7853_v20, %v5804_v36  ;;  %vm5832_vm3 = vweird.f32 %v7853_v20 }
0x11a8   :  { %6951 = vmatmul.msk.f32.vlgmr.msra.gmra.mxu2 %vm2926_vm11, %v5847_v30  ;;  %6954 = vmatmul.msk.f32.vlgmr.msrb.gmra.mxu3 %vm2926_vm11, %v5847_v30  ;;  %vm5833_vm10 = vmor %vm5831_vm9, %vm5832_vm3 }
0x11a9   :  { %v5824_v59 = vsel %vm5823_vm1, %v7851_v15, %v5820_v21  ;;  %v5827_v29 = vmul.f32 %v7853_v20, %v5826_v39  ;;  %v7898_v21 = vld [vmem:[%s12297_s8 + $0x20] sm:$0xf] }
0x11aa   :  { %v5836_v38 = vmul.f32 %v5824_v59, %v11698_v33  ;;  %v11741_v33 = vld [vmem:[%s12296_s3 + $0x2] sm:$0x3] }
0x11ab   :  { %v5828_v24 = vmul.f32 0.5, %v5827_v29  ;;  %v5870_v62 = vperm.slane %v11741_v33, 0  ;;  %v5871_v29 = vperm.slane %v11741_v33, 1 }
0x11ac   :  { %v5842_v11 = vmul.f32 %v7795_v4, %v5836_v38 }
0x11ad   :  { %v5829_v22 = vsub.f32 1.5, %v5828_v24 }
0x11ae   :  { %v5848_v63 = vadd.f32 %v7796_v52, %v5842_v11 }
0x11af   :  { %v5830_v43 = vmul.f32 %v7853_v20, %v5829_v22 }
0x11b0   :  { %6952 = vmatmul.msk.f32.gmra.mxu2 %vm2926_vm11, %v5848_v63  ;;  %6955 = vmatmul.msk.f32.gmra.mxu3 %vm2926_vm11, %v5848_v63 }
0x11b1   :  { %v5834_v50 = vsel %vm5833_vm10, %v7853_v20, %v5830_v43 }
0x11b2   :  { %v5837_v51 = vmul.f32 %v5834_v50, %v11705_v7 }
0x11b4   :  { %v5843_v16 = vmul.f32 %v7795_v4, %v5837_v51 }
0x11b6   :  { %v5849_v9 = vadd.f32 %v7796_v52, %v5843_v16 }
0x11b8   :  { %6953 = vmatmul.msk.f32.gmra.mxu2 %vm2926_vm11, %v5849_v9  ;;  %6956 = vmatmul.msk.f32.gmra.mxu3 %vm2926_vm11, %v5849_v9 }
0x122b   :  { %v5900_v37 = vpop.f32.mrf.mxu2  ;;  %v5926_v42 = vpop.f32.mrf.mxu3 }
0x122c   :  { %v5901_v27 = vadd.f32 %v5900_v37, %v5870_v62  ;;  %v5927_v22 = vadd.f32 %v5926_v42, %v5871_v29 }
0x122e   :  { %v5938_v2 = vrot.slane %v5901_v27, 6  ;;  %v5954_v50 = vrot.slane %v5927_v22, 6 }
0x1230   :  { %5943 = vrot.lane.b32.xlu1 %v5938_v2, %s7960_s21 }
0x1233   :  { %v5903_v32 = vpop.f32.mrf.mxu2  ;;  %v5929_v20 = vpop.f32.mrf.mxu3 }
0x1234   :  { %v5904_v3 = vadd.f32 %v5903_v32, %v5870_v62  ;;  %v5930_v24 = vadd.f32 %v5929_v20, %v5871_v29 }
0x1236   :  { %v5939_v45 = vrot.slane %v5904_v3, 6  ;;  %v5955_v63 = vrot.slane %v5930_v24, 6 }
0x1238   :  { %v5940_v7 = vsel %vm5173_vm4, %v5938_v2, %v5939_v45  ;;  %v5956_v51 = vsel %vm5173_vm4, %v5954_v50, %v5955_v63 }
0x1239   :  { %5945 = vrot.lane.b32.xlu0 %v5940_v7, %s7960_s21  ;;  %v7779_v9 = vpack.i.bf16 %v5954_v50, %v5956_v51  ;;  %v6979_v50 = vld [vmem:[%s12298_s14 + $0x70] sm:$0xff]  ;;  %v6978_v51 = vld [vmem:[%s12298_s14 + $0x68] sm:$0xff] }
0x123b   :  { %v5906_v0 = vpop.f32.mrf.mxu2  ;;  %v5932_v38 = vpop.f32.mrf.mxu3 }
0x123c   :  { %v5907_v18 = vadd.f32 %v5906_v0, %v5870_v62  ;;  %v5933_v11 = vadd.f32 %v5932_v38, %v5871_v29 }
0x123e   :  { %v5941_v58 = vrot.slane %v5907_v18, 6  ;;  %v5957_v43 = vrot.slane %v5933_v11, 6 }
0x1240   :  { %v5942_v47 = vsel %vm5173_vm4, %v5939_v45, %v5941_v58  ;;  %v5958_v16 = vsel %vm5173_vm4, %v5955_v63, %v5957_v43  ;;  %v6980_v43 = vld [vmem:[%s12298_s14 + $0x78] sm:$0xff] }
0x1241   :  { %5947 = vrot.lane.b32.xlu2 %v5942_v47, %s7960_s21  ;;  %6191 = vmatpush.msra.mxu3 %v6980_v43 }
0x1243   :  { %6192 = vmatpush.msra.mxu3 %v6979_v50 }
0x1245   :  { %6193 = vmatpush.msra.mxu3 %v6978_v51 }
0x129b   :  { %v5948_v60 = vpop.permute.xlu2 %5947 }
0x129c   :  { %5977 = vrot.lane.b32.xlu0 %v5948_v60, %s7958_s0 }
0x12a2   :  { %v5944_v19 = vpop.permute.xlu1 %5943 }
0x12a3   :  { %v5950_v40 = vsel %vm5173_vm4, %v5907_v18, %v5944_v19 }
0x12a4   :  { %5971 = vrot.lane.b32.xlu0 %v5904_v3, %s7958_s0  ;;  %5973 = vrot.lane.b32.xlu1 %v5950_v40, %s7958_s0 }
0x12ab   :  { %v5946_v17 = vpop.permute.xlu0 %5945 }
0x12ac   :  { %5975 = vrot.lane.b32.xlu2 %v5946_v17, %s7958_s0 }
0x12b4   :  { %5969 = vrot.lane.b32.xlu2 %v5901_v27, %s7958_s0 }
0x1306   :  { %v5976_v8 = vpop.permute.xlu2 %5975 }
0x130e   :  { %v5978_v55 = vpop.permute.xlu0 %5977  ;;  %v5970_v35 = vpop.permute.xlu2 %5969 }
0x130f   :  { %6957 = vmatpush.xpose.msk.msra.mxu1 %vm1758_vm2, %v5978_v55 }
0x1313   :  { %6958 = vmatpush.xpose.msk.msra.mxu1 %vm1758_vm2, %v5976_v8 }
0x1316   :  { %v5974_v57 = vpop.permute.xlu1 %5973  ;;  %v5972_v6 = vpop.permute.xlu0 %5971 }
0x1317   :  { %6959 = vmatpush.xpose.msk.msra.mxu1 %vm1758_vm2, %v5974_v57 }
0x131b   :  { %6960 = vmatpush.xpose.msk.msra.mxu1 %vm1758_vm2, %v5972_v6 }
0x131f   :  { %6961 = vmatpush.xpose.msk.msra.mxu1 %vm1758_vm2, %v5970_v35 }
0x1322   :  { %6962 = vmatmul.msk.f32.vlgmr.msra.gmra.mxu1 %vm1758_vm2, %v5901_v27 }
0x132a   :  { %6963 = vmatmul.msk.f32.gmra.mxu1 %vm1758_vm2, %v5904_v3 }
0x1332   :  { %6964 = vmatmul.msk.f32.gmra.mxu1 %vm1758_vm2, %v5950_v40 }
0x133a   :  { %6965 = vmatmul.msk.f32.gmra.mxu1 %vm1758_vm2, %v5946_v17 }
0x1342   :  { %6966 = vmatmul.msk.f32.gmra.mxu1 %vm1758_vm2, %v5948_v60 }
0x139f   :  { %v6016_v34 = vpop.f32.mrf.mxu1 }
0x13a0   :  { %v6031_v56 = vmul.f32 0.17677669, %v6016_v34 }
0x13a2   :  { %v6036_v48 = vadd.f32 %v7894_v25, %v6031_v56 }
0x13a4   :  { %v6041_v28 = vsel %vm5277_vm5, %v6036_v48, -inf }
0x13a5   :  { %6042 = vmax.xlane.f32.xlu1 %v6041_v28 }
0x13a7   :  { %v6019_v14 = vpop.f32.mrf.mxu1 }
0x13a8   :  { %v6032_v41 = vmul.f32 0.17677669, %v6019_v14 }
0x13aa   :  { %v6037_v54 = vadd.f32 %v7895_v46, %v6032_v41 }
0x13ac   :  { %v6044_v13 = vsel %vm5277_vm5, %v6037_v54, -inf }
0x13ad   :  { %6045 = vmax.xlane.f32.xlu0 %v6044_v13 }
0x13af   :  { %v6022_v15 = vpop.f32.mrf.mxu1 }
0x13b0   :  { %v6033_v36 = vmul.f32 0.17677669, %v6022_v15 }
0x13b2   :  { %v6038_v31 = vadd.f32 %v7896_v23, %v6033_v36 }
0x13b4   :  { %v6047_v4 = vsel %vm5277_vm5, %v6038_v31, -inf }
0x13b5   :  { %6048 = vmax.xlane.f32.xlu2 %v6047_v4 }
0x13b7   :  { %v6025_v10 = vpop.f32.mrf.mxu1 }
0x13b8   :  { %v6034_v52 = vmul.f32 0.17677669, %v6025_v10 }
0x13ba   :  { %v6039_v44 = vadd.f32 %v7897_v12, %v6034_v52 }
0x13bc   :  { %v6050_v53 = vsel %vm5277_vm5, %v6039_v44, -inf }
0x13bd   :  { %6051 = vmax.xlane.f32.xlu1 %v6050_v53 }
0x13bf   :  { %v6028_v26 = vpop.f32.mrf.mxu1 }
0x13c0   :  { %v6035_v30 = vmul.f32 0.17677669, %v6028_v26 }
0x13c2   :  { %v6040_v39 = vadd.f32 %v7898_v21, %v6035_v30 }
0x13c4   :  { %v6053_v59 = vsel %vm5290_vm7, %v6040_v39, -inf }
0x13c5   :  { %6054 = vmax.xlane.f32.xlu0 %v6053_v59 }
0x13d6   :  { %5963 = vrot.lane.b32.xlu1 %v5958_v16, %s7960_s21  ;;  %v6977_v16 = vld [vmem:[%s12298_s14 + $0x60] sm:$0xff] }
0x13d7   :  { %6194 = vmatpush.msra.mxu3 %v6977_v16  ;;  %v7025_v16 = vld [vmem:[%s12301_s30 + $0x178] sm:$0xff] }
0x13d9   :  { %7780 = vrot.lane.b32.xlu0 %v7779_v9, %s7960_s21  ;;  %v6976_v9 = vld [vmem:[%s12298_s14 + $0x58] sm:$0xff] }
0x13da   :  { %6195 = vmatpush.msra.mxu3 %v6976_v9  ;;  %v7024_v9 = vld [vmem:[%s12301_s30 + $0x170] sm:$0xff] }
0x1418   :  { %v6043_v62 = vpop.xlane.xlu1 %6042 }
0x1419   :  { %v6056_v37 = vsub.f32 %v6036_v48, %v6043_v62  ;;  %v6975_v62 = vld [vmem:[%s12298_s14 + $0x50] sm:$0xff] }
0x141a   :  { %6196 = vmatpush.msra.mxu3 %v6975_v62 }
0x141b   :  { %v6061_v27 = vmul.f32 1.442695, %v6056_v37  ;;  %v6974_v37 = vld [vmem:[%s12298_s14 + $0x48] sm:$0xff] }
0x141c   :  { %6197 = vmatpush.msra.mxu3 %v6974_v37  ;;  %v7023_v37 = vld [vmem:[%s12301_s30 + $0x168] sm:$0xff] }
0x141d   :  { %7854 = vpow2.f32 %v6061_v27  ;;  %v6973_v27 = vld [vmem:[%s12298_s14 + $0x40] sm:$0xff] }
0x141e   :  { %6198 = vmatpush.msra.mxu3 %v6973_v27 }
0x1420   :  { %v6046_v33 = vpop.xlane.xlu0 %6045 }
0x1421   :  { %v6057_v2 = vsub.f32 %v6037_v54, %v6046_v33 }
0x1423   :  { %v7855_v32 = vpop.eup %7854  ;;  %v6063_v3 = vmul.f32 1.442695, %v6057_v2 }
0x1424   :  { %v6071_v45 = vsel %vm5277_vm5, %v7855_v32, 0.0 }
0x1425   :  { %7856 = vpow2.f32 %v6063_v3  ;;  %6072 = vadd.xlane.f32.xlu2 %v6071_v45 }
0x1428   :  { %v6049_v7 = vpop.xlane.xlu2 %6048 }
0x1429   :  { %v6058_v0 = vsub.f32 %v6038_v31, %v6049_v7 }
0x142b   :  { %v7857_v18 = vpop.eup %7856  ;;  %v6065_v58 = vmul.f32 1.442695, %v6058_v0  ;;  %v7797_v0 = vld [vmem:[%s12299_s19 + $0x1] ss:$0 sm:$0xff] }
0x142c   :  { %v6074_v47 = vsel %vm5277_vm5, %v7857_v18, 0.0 }
0x142d   :  { %7858 = vpow2.f32 %v6065_v58  ;;  %6075 = vadd.xlane.f32.xlu2 %v6074_v47 }
0x1430   :  { %v6052_v60 = vpop.xlane.xlu1 %6051 }
0x1431   :  { %v6059_v19 = vsub.f32 %v6039_v44, %v6052_v60 }
0x1433   :  { %v7859_v40 = vpop.eup %7858  ;;  %v6067_v17 = vmul.f32 1.442695, %v6059_v19 }
0x1434   :  { %v6077_v55 = vsel %vm5277_vm5, %v7859_v40, 0.0 }
0x1435   :  { %7860 = vpow2.f32 %v6067_v17  ;;  %6078 = vadd.xlane.f32.xlu2 %v6077_v55 }
0x1438   :  { %v6055_v8 = vpop.xlane.xlu0 %6054 }
0x1439   :  { %v6060_v57 = vsub.f32 %v6040_v39, %v6055_v8 }
0x143b   :  { %v7861_v6 = vpop.eup %7860  ;;  %v6069_v35 = vmul.f32 1.442695, %v6060_v57 }
0x143c   :  { %v6080_v34 = vsel %vm5277_vm5, %v7861_v6, 0.0 }
0x143d   :  { %7862 = vpow2.f32 %v6069_v35  ;;  %6081 = vadd.xlane.f32.xlu2 %v6080_v34 }
0x1443   :  { %v7863_v56 = vpop.eup %7862 }
0x1444   :  { %v6083_v25 = vsel %vm5290_vm7, %v7863_v56, 0.0 }
0x1445   :  { %6084 = vadd.xlane.f32.xlu0 %v6083_v25 }
0x1448   :  { %v5964_v48 = vpop.permute.xlu1 %5963 }
0x1449   :  { %6967 = vmatpush.msk.msrb.mxu2 %vm5349_vm8, %v5964_v48 }
0x144b   :  { %v7781_v28 = vpop.permute.xlu0 %7780 }
0x144c   :  { %v7783_v14 = vunpack.i.h.bf16 %v7781_v28  ;;  %v7782_v41 = vunpack.i.l.bf16 %v7781_v28 }
0x144e   :  { %6125 = vmatpush.msrb.mxu2 %v7782_v41  ;;  %v5967_v46 = vsel %vm5173_vm4, %v5933_v11, %v7783_v14 }
0x1450   :  { %6126 = vmatpush.msrb.mxu2 %v5967_v46 }
0x1452   :  { %6127 = vmatpush.msrb.mxu2 %v5930_v24 }
0x1454   :  { %6128 = vmatpush.msrb.mxu2 %v5927_v22 }
0x1456   :  { %6474 = vmatpush.msra.mxu2 %v7025_v16  ;;  %v7010_v16 = vld [vmem:[%s12301_s30 + $0x100] sm:$0xff] }
0x1458   :  { %6475 = vmatpush.msra.mxu2 %v7024_v9  ;;  %v7029_v9 = vld [vmem:[%s12301_s30 + $0x198] sm:$0xff] }
0x145a   :  { %6476 = vmatpush.msra.mxu2 %v7023_v37  ;;  %v7028_v37 = vld [vmem:[%s12301_s30 + $0x190] sm:$0xff] }
0x1498   :  { %v6073_v54 = vpop.xlane.xlu2 %6072 }
0x1499   :  { %7864 = vrcp.f32 %v6073_v54 }
0x149f   :  { %v7865_v13 = vpop.eup %7864 }
0x14a0   :  { %v6091_v15 = vmul.f32 %v7865_v13, %v7855_v32  ;;  %v6076_v36 = vpop.xlane.xlu2 %6075 }
0x14a1   :  { %7866 = vrcp.f32 %v6076_v36 }
0x14a2   :  { %6968 = vmatmul.msk.f32.vlgmr.msrb.gmra.mxu2 %vm5277_vm5, %v6091_v15 }
0x14a7   :  { %v7867_v23 = vpop.eup %7866 }
0x14a8   :  { %v6079_v31 = vpop.xlane.xlu2 %6078  ;;  %v6092_v4 = vmul.f32 %v7867_v23, %v7857_v18  ;;  %v7001_v23 = vld [vmem:[%s12300_s24 + $0xf0] sm:$0xff] }
0x14a9   :  { %7868 = vrcp.f32 %v6079_v31  ;;  %v7002_v31 = vld [vmem:[%s12300_s24 + $0xf8] sm:$0xff]  ;;  %6343 = vmatpush.msrb.mxu1 %v7001_v23  ;;  %v7022_v23 = vld [vmem:[%s12301_s30 + $0x160] sm:$0xff] }
0x14aa   :  { %6969 = vmatmul.msk.f32.gmra.mxu2 %vm5277_vm5, %v6092_v4  ;;  %6369 = vmatpush.msrb.mxu3 %v7002_v31  ;;  %v6999_v4 = vld [vmem:[%s12300_s24 + $0xe0] sm:$0xff]  ;;  %v7041_v31 = vld [vmem:[%s12301_s30 + $0x1f8] sm:$0xff] }
0x14ab   :  { %6344 = vmatpush.msrb.mxu1 %v6999_v4  ;;  %6477 = vmatpush.msra.mxu2 %v7022_v23  ;;  %v7021_v4 = vld [vmem:[%s12301_s30 + $0x158] sm:$0xff] }
0x14ad   :  { %6478 = vmatpush.msra.mxu2 %v7021_v4 }
0x14af   :  { %v7869_v42 = vpop.eup %7868 }
0x14b0   :  { %v6082_v10 = vpop.xlane.xlu2 %6081  ;;  %v6093_v52 = vmul.f32 %v7869_v42, %v7859_v40  ;;  %v7000_v42 = vld [vmem:[%s12300_s24 + $0xe8] sm:$0xff] }
0x14b1   :  { %7870 = vrcp.f32 %v6082_v10  ;;  %6370 = vmatpush.msrb.mxu3 %v7000_v42  ;;  %v6997_v10 = vld [vmem:[%s12300_s24 + $0xd0] sm:$0xff] }
0x14b2   :  { %6970 = vmatmul.msk.f32.gmra.mxu2 %vm5277_vm5, %v6093_v52  ;;  %v6998_v52 = vld [vmem:[%s12300_s24 + $0xd8] sm:$0xff]  ;;  %6345 = vmatpush.msrb.mxu1 %v6997_v10  ;;  %v7040_v42 = vld [vmem:[%s12301_s30 + $0x1f0] sm:$0xff]  ;;  %v7039_v10 = vld [vmem:[%s12301_s30 + $0x1e8] sm:$0xff] }
0x14b3   :  { %6371 = vmatpush.msrb.mxu3 %v6998_v52  ;;  %v7019_v52 = vld [vmem:[%s12301_s30 + $0x148] sm:$0xff] }
0x14b7   :  { %v7871_v12 = vpop.eup %7870 }
0x14b8   :  { %v6085_v44 = vpop.xlane.xlu0 %6084  ;;  %v6094_v53 = vmul.f32 %v7871_v12, %v7861_v6  ;;  %v6995_v12 = vld [vmem:[%s12300_s24 + $0xc0] sm:$0xff] }
0x14b9   :  { %7872 = vrcp.f32 %v6085_v44  ;;  %v6996_v44 = vld [vmem:[%s12300_s24 + $0xc8] sm:$0xff]  ;;  %6346 = vmatpush.msrb.mxu1 %v6995_v12  ;;  %v7038_v12 = vld [vmem:[%s12301_s30 + $0x1e0] sm:$0xff] }
0x14ba   :  { %6971 = vmatmul.msk.f32.gmra.mxu2 %vm5277_vm5, %v6094_v53  ;;  %6372 = vmatpush.msrb.mxu3 %v6996_v44  ;;  %v6993_v53 = vld [vmem:[%s12300_s24 + $0xb0] sm:$0xff]  ;;  %v7018_v44 = vld [vmem:[%s12301_s30 + $0x140] sm:$0xff] }
0x14bb   :  { %6347 = vmatpush.msrb.mxu1 %v6993_v53  ;;  %v7037_v53 = vld [vmem:[%s12301_s30 + $0x1d8] sm:$0xff] }
0x14bf   :  { %v7873_v26 = vpop.eup %7872 }
0x14c0   :  { %v6095_v20 = vmul.f32 %v7873_v26, %v7863_v56  ;;  %v6994_v26 = vld [vmem:[%s12300_s24 + $0xb8] sm:$0xff] }
0x14c1   :  { %6373 = vmatpush.msrb.mxu3 %v6994_v26  ;;  %v7017_v26 = vld [vmem:[%s12301_s30 + $0x138] sm:$0xff] }
0x14c2   :  { %6972 = vmatmul.msk.f32.gmra.mxu2 %vm5277_vm5, %v6095_v20  ;;  %v6991_v20 = vld [vmem:[%s12300_s24 + $0xa0] sm:$0xff] }
0x14c3   :  { %6348 = vmatpush.msrb.mxu1 %v6991_v20  ;;  %v7036_v20 = vld [vmem:[%s12301_s30 + $0x1d0] sm:$0xff] }
0x1525   :  { %v6130_v30 = vpop.f32.mrf.mxu2 }
0x152d   :  { %v6133_v21 = vpop.f32.mrf.mxu2 }
0x1535   :  { %v6136_v39 = vpop.f32.mrf.mxu2 }
0x1536   :  { %v6148_v29 = vrot.slane %v6136_v39, 2 }
0x153d   :  { %v6139_v59 = vpop.f32.mrf.mxu2 }
0x153e   :  { %v6149_v38 = vrot.slane %v6139_v59, 2  ;;  %v6987_v59 = vld [vmem:[%s12300_s24 + $0x80] sm:$0xff] }
0x1540   :  { %v6150_v24 = vsel %vm4852_vm13, %v6148_v29, %v6149_v38  ;;  %v6988_v29 = vld [vmem:[%s12300_s24 + $0x88] sm:$0xff] }
0x1541   :  { %6153 = vrot.lane.b32.xlu1 %v6150_v24, %s7959_s5 }
0x1545   :  { %v6142_v11 = vpop.f32.mrf.mxu2 }
0x1546   :  { %v6151_v22 = vrot.slane %v6142_v11, 2 }
0x1548   :  { %v6152_v63 = vsel %vm4852_vm13, %v6149_v38, %v6151_v22 }
0x1549   :  { %6157 = vrot.lane.b32.xlu1 %v6151_v22, %s7959_s5  ;;  %6155 = vrot.lane.b32.xlu2 %v6152_v63, %s7959_s5 }
0x15a3   :  { %v6156_v32 = vpop.permute.xlu2 %6155 }
0x15a4   :  { %v6163_v3 = vsel %vm1758_vm2, %v6133_v21, %v6156_v32  ;;  %v6989_v21 = vld [vmem:[%s12300_s24 + $0x90] sm:$0xff] }
0x15a5   :  { %6349 = vmatpush.msrb.mxu1 %v6989_v21  ;;  %v7035_v21 = vld [vmem:[%s12301_s30 + $0x1c8] sm:$0xff] }
0x15a7   :  { %6350 = vmatpush.msrb.mxu1 %v6987_v59  ;;  %v7034_v59 = vld [vmem:[%s12301_s30 + $0x1c0] sm:$0xff] }
0x15a9   :  { %6500 = vmatpush.msra.mxu1 %v7041_v31 }
0x15ab   :  { %6501 = vmatpush.msra.mxu1 %v7040_v42 }
0x15ad   :  { %6502 = vmatpush.msra.mxu1 %v7039_v10 }
0x15af   :  { %6503 = vmatpush.msra.mxu1 %v7038_v12 }
0x15b1   :  { %6504 = vmatpush.msra.mxu1 %v7037_v53 }
0x15b3   :  { %v6154_v33 = vpop.permute.xlu1 %6153  ;;  %6505 = vmatpush.msra.mxu1 %v7036_v20 }
0x15b4   :  { %v6162_v2 = vsel %vm1758_vm2, %v6130_v30, %v6154_v33  ;;  %v6992_v30 = vld [vmem:[%s12300_s24 + $0xa8] sm:$0xff] }
0x15b5   :  { %6981 = vmatmul.msk.f32.vlgmr.msra.gmra.mxu3 %vm2926_vm11, %v6162_v2  ;;  %6506 = vmatpush.msra.mxu1 %v7035_v21 }
0x15b6   :  { %6374 = vmatpush.msrb.mxu3 %v6992_v30  ;;  %v7016_v30 = vld [vmem:[%s12301_s30 + $0x130] sm:$0xff] }
0x15b7   :  { %6507 = vmatpush.msra.mxu1 %v7034_v59 }
0x15bb   :  { %v6158_v45 = vpop.permute.xlu1 %6157 }
0x15bc   :  { %v6164_v7 = vsel %vm1758_vm2, %v6136_v39, %v6158_v45  ;;  %v6990_v39 = vld [vmem:[%s12300_s24 + $0x98] sm:$0xff] }
0x15bd   :  { %6982 = vmatmul.msk.f32.gmra.mxu3 %vm2926_vm11, %v6163_v3 }
0x15be   :  { %6375 = vmatpush.msrb.mxu3 %v6990_v39  ;;  %v7015_v39 = vld [vmem:[%s12301_s30 + $0x128] sm:$0xff] }
0x15c0   :  { %6376 = vmatpush.msrb.mxu3 %v6988_v29  ;;  %v7014_v29 = vld [vmem:[%s12301_s30 + $0x120] sm:$0xff] }
0x15c5   :  { %6983 = vmatmul.msk.f32.gmra.mxu3 %vm2926_vm11, %v6164_v7 }
0x1638   :  { %v6200_v18 = vpop.f32.mrf.mxu3 }
0x1639   :  { %v6209_v58 = vadd.f32 %v6200_v18, %v11675_v61  ;;  %v7798_v18 = vld [vmem:[%s12302_s6 + $0x1] ss:$0 sm:$0xff] }
0x163b   :  { %v11813_v47 = vadd.f32 %v7797_v0, %v6209_v58 }
0x163d   :  { %v6224_v60 = vsel %vm2926_vm11, %v11813_v47, 0.0 }
0x163e   :  { %6225 = vadd.xlane.f32.xlu1 %v6224_v60 }
0x1640   :  { %v6203_v19 = vpop.f32.mrf.mxu3 }
0x1641   :  { %v6210_v40 = vadd.f32 %v6203_v19, %v11680_v5  ;;  %v7799_v19 = vld [vmem:[%s12303_s12 + $0x1] ss:$0 sm:$0xff] }
0x1643   :  { %v11818_v17 = vadd.f32 %v7797_v0, %v6210_v40 }
0x1645   :  { %v6227_v55 = vsel %vm2926_vm11, %v11818_v17, 0.0 }
0x1646   :  { %6228 = vadd.xlane.f32.xlu2 %v6227_v55 }
0x1648   :  { %v6206_v8 = vpop.f32.mrf.mxu3 }
0x1649   :  { %v6211_v57 = vadd.f32 %v6206_v8, %v11685_v49 }
0x164b   :  { %v11823_v6 = vadd.f32 %v7797_v0, %v6211_v57 }
0x164d   :  { %v6230_v61 = vsel %vm5007_vm6, %v11823_v6, 0.0 }
0x164e   :  { %6231 = vadd.xlane.f32.xlu0 %v6230_v61 }
0x16b1   :  { %v6226_v35 = vpop.xlane.xlu1 %6225 }
0x16b2   :  { %v6233_v34 = vmul.f32 %v6226_v35, %v11449_v1 }
0x16b4   :  { %v11829_v5 = vsub.f32 %v11813_v47, %v6233_v34 }
0x16b6   :  { %v6239_v56 = vmul.f32 %v11829_v5, %v11829_v5 }
0x16b8   :  { %v6242_v25 = vsel %vm2926_vm11, %v6239_v56, 0.0 }
0x16b9   :  { %v6229_v49 = vpop.xlane.xlu2 %6228  ;;  %6243 = vadd.xlane.f32.xlu0 %v6242_v25 }
0x16ba   :  { %v6234_v48 = vmul.f32 %v6229_v49, %v11449_v1 }
0x16bc   :  { %v11836_v28 = vsub.f32 %v11818_v17, %v6234_v48 }
0x16be   :  { %v6240_v14 = vmul.f32 %v11836_v28, %v11836_v28 }
0x16c0   :  { %v6245_v41 = vsel %vm2926_vm11, %v6240_v14, 0.0 }
0x16c1   :  { %6246 = vadd.xlane.f32.xlu0 %v6245_v41  ;;  %v6232_v46 = vpop.xlane.xlu0 %6231 }
0x16c2   :  { %v6235_v54 = vmul.f32 %v6232_v46, %v11449_v1 }
0x16c4   :  { %v11843_v13 = vsub.f32 %v11823_v6, %v6235_v54 }
0x16c6   :  { %v6241_v15 = vmul.f32 %v11843_v13, %v11843_v13 }
0x16c8   :  { %v6248_v36 = vsel %vm5007_vm6, %v6241_v15, 0.0 }
0x16c9   :  { %6249 = vadd.xlane.f32.xlu1 %v6248_v36 }
0x172c   :  { %v6244_v38 = vpop.xlane.xlu0 %6243 }
0x172d   :  { %v6251_v24 = vmul.f32 %v6244_v38, %v11449_v1  ;;  %v7033_v38 = vld [vmem:[%s12301_s30 + $0x1b8] sm:$0xff] }
0x172e   :  { %6508 = vmatpush.msra.mxu1 %v7033_v38 }
0x172f   :  { %v6254_v11 = vadd.f32 1e-05, %v6251_v24  ;;  %v7013_v24 = vld [vmem:[%s12301_s30 + $0x118] sm:$0xff] }
0x1731   :  { %7874 = vrsqrt.f32 %v6254_v11  ;;  %vm6263_vm13 = vweird.f32 %v6254_v11 }
0x1734   :  { %v6247_v22 = vpop.xlane.xlu0 %6246 }
0x1735   :  { %v6252_v63 = vmul.f32 %v6247_v22, %v11449_v1  ;;  %v7012_v22 = vld [vmem:[%s12301_s30 + $0x110] sm:$0xff] }
0x1737   :  { %v7875_v43 = vpop.eup %7874  ;;  %v6255_v50 = vadd.f32 1e-05, %v6252_v63  ;;  %v7031_v63 = vld [vmem:[%s12301_s30 + $0x1a8] sm:$0xff] }
0x1738   :  { %v6258_v51 = vmul.f32 %v7875_v43, %v6254_v11  ;;  %vm6264_vm2 = vweird.f32 %v7875_v43  ;;  %v7032_v11 = vld [vmem:[%s12301_s30 + $0x1b0] sm:$0xff] }
0x1739   :  { %7876 = vrsqrt.f32 %v6255_v50  ;;  %vm6265_vm6 = vmor %vm6263_vm13, %vm6264_vm2  ;;  %vm6273_vm5 = vweird.f32 %v6255_v50  ;;  %6509 = vmatpush.msra.mxu1 %v7032_v11 }
0x173a   :  { %v6259_v62 = vmul.f32 %v7875_v43, %v6258_v51  ;;  %v7003_v51 = vld [vmem:[%s12304_s15 + $0x2] sm:$0x3] }
0x173b   :  { %6510 = vmatpush.msra.mxu1 %v7031_v63 }
0x173c   :  { %v6260_v27 = vmul.f32 0.5, %v6259_v62  ;;  %v6250_v33 = vpop.xlane.xlu1 %6249  ;;  %v6322_v62 = vperm.slane %v7003_v51, 0 }
0x173d   :  { %v6253_v2 = vmul.f32 %v6250_v33, %v11449_v1  ;;  %v7026_v33 = vld [vmem:[%s12301_s30 + $0x180] sm:$0xff] }
0x173e   :  { %v6261_v32 = vsub.f32 1.5, %v6260_v27  ;;  %v7027_v27 = vld [vmem:[%s12301_s30 + $0x188] sm:$0xff] }
0x173f   :  { %v7877_v3 = vpop.eup %7876  ;;  %v6256_v45 = vadd.f32 1e-05, %v6253_v2 }
0x1740   :  { %v6262_v7 = vmul.f32 %v7875_v43, %v6261_v32  ;;  %v6268_v0 = vmul.f32 %v7877_v3, %v6255_v50  ;;  %vm6274_vm4 = vweird.f32 %v7877_v3  ;;  %v7030_v50 = vld [vmem:[%s12301_s30 + $0x1a0] sm:$0xff] }
0x1741   :  { %7878 = vrsqrt.f32 %v6256_v45  ;;  %vm6275_vm7 = vmor %vm6273_vm5, %vm6274_vm4  ;;  %vm6283_vm12 = vweird.f32 %v6256_v45  ;;  %6511 = vmatpush.msra.mxu1 %v7030_v50 }
0x1742   :  { %v6266_v58 = vsel %vm6265_vm6, %v7875_v43, %v6262_v7  ;;  %v6269_v60 = vmul.f32 %v7877_v3, %v6268_v0  ;;  %v7011_v43 = vld [vmem:[%s12301_s30 + $0x108] sm:$0xff] }
0x1743   :  { %v6287_v40 = vmul.f32 %v6266_v58, %v11829_v5  ;;  %6512 = vmatpush.msra.mxu1 %v7029_v9 }
0x1744   :  { %v6270_v55 = vmul.f32 0.5, %v6269_v60 }
0x1745   :  { %v6293_v8 = vmul.f32 %v7798_v18, %v6287_v40  ;;  %6513 = vmatpush.msra.mxu1 %v7028_v37 }
0x1746   :  { %v6271_v57 = vsub.f32 1.5, %v6270_v55 }
0x1747   :  { %v7879_v1 = vpop.eup %7878  ;;  %v6299_v61 = vadd.f32 %v7799_v19, %v6293_v8  ;;  %6514 = vmatpush.msra.mxu1 %v7027_v27 }
0x1748   :  { %v6272_v35 = vmul.f32 %v7877_v3, %v6271_v57  ;;  %v6278_v34 = vmul.f32 %v7879_v1, %v6256_v45  ;;  %vm6284_vm8 = vweird.f32 %v7879_v1  ;;  %v6323_v45 = vperm.slane %v7003_v51, 1 }
0x1749   :  { %7004 = vmatmul.msk.f32.vlgmr.msrb.gmra.mxu1 %vm2926_vm11, %v6299_v61  ;;  %7007 = vmatmul.msk.f32.vlgmr.msrb.gmra.mxu3 %vm2926_vm11, %v6299_v61  ;;  %vm6285_vm14 = vmor %vm6283_vm12, %vm6284_vm8 }
0x174a   :  { %v6276_v56 = vsel %vm6275_vm7, %v7877_v3, %v6272_v35  ;;  %v6279_v25 = vmul.f32 %v7879_v1, %v6278_v34  ;;  %6515 = vmatpush.msra.mxu1 %v7026_v33 }
0x174b   :  { %v6288_v49 = vmul.f32 %v6276_v56, %v11836_v28 }
0x174c   :  { %v6280_v48 = vmul.f32 0.5, %v6279_v25 }
0x174d   :  { %v6294_v5 = vmul.f32 %v7798_v18, %v6288_v49 }
0x174e   :  { %v6281_v14 = vsub.f32 1.5, %v6280_v48 }
0x174f   :  { %v6300_v41 = vadd.f32 %v7799_v19, %v6294_v5  ;;  %v6544_v5 = vld [vmem:[%s8111_s27 + $0x38] sm:$0xff] }
0x1750   :  { %v6282_v46 = vmul.f32 %v7879_v1, %v6281_v14  ;;  %v6543_v14 = vld [vmem:[%s8111_s27 + $0x30] sm:$0xff]  ;;  %6566 = vmatpush.msra.mxu3 %v6544_v5 }
0x1751   :  { %7005 = vmatmul.msk.f32.gmra.mxu1 %vm2926_vm11, %v6300_v41  ;;  %7008 = vmatmul.msk.f32.gmra.mxu3 %vm2926_vm11, %v6300_v41 }
0x1752   :  { %v6286_v54 = vsel %vm6285_vm14, %v7879_v1, %v6282_v46  ;;  %6567 = vmatpush.msra.mxu3 %v6543_v14 }
0x1753   :  { %v6289_v28 = vmul.f32 %v6286_v54, %v11843_v13  ;;  %v7020_v13 = vld [vmem:[%s12301_s30 + $0x150] sm:$0xff] }
0x1754   :  { %6479 = vmatpush.msra.mxu2 %v7020_v13  ;;  %v6541_v13 = vld [vmem:[%s8111_s27 + $0x20] sm:$0xff] }
0x1755   :  { %v6295_v15 = vmul.f32 %v7798_v18, %v6289_v28 }
0x1756   :  { %6480 = vmatpush.msra.mxu2 %v7019_v52 }
0x1757   :  { %v6301_v36 = vadd.f32 %v7799_v19, %v6295_v15  ;;  %v6542_v15 = vld [vmem:[%s8111_s27 + $0x28] sm:$0xff] }
0x1758   :  { %6481 = vmatpush.msra.mxu2 %v7018_v44  ;;  %6568 = vmatpush.msra.mxu3 %v6542_v15 }
0x1759   :  { %7006 = vmatmul.msk.f32.gmra.mxu1 %vm2926_vm11, %v6301_v36  ;;  %7009 = vmatmul.msk.f32.gmra.mxu3 %vm2926_vm11, %v6301_v36 }
0x175a   :  { %6482 = vmatpush.msra.mxu2 %v7017_v26  ;;  %6569 = vmatpush.msra.mxu3 %v6541_v13 }
0x175c   :  { %6483 = vmatpush.msra.mxu2 %v7016_v30 }
0x175e   :  { %6484 = vmatpush.msra.mxu2 %v7015_v39 }
0x1760   :  { %6485 = vmatpush.msra.mxu2 %v7014_v29 }
0x1762   :  { %6486 = vmatpush.msra.mxu2 %v7013_v24 }
0x1764   :  { %6487 = vmatpush.msra.mxu2 %v7012_v22 }
0x1766   :  { %6488 = vmatpush.msra.mxu2 %v7011_v43 }
0x1768   :  { %6489 = vmatpush.msra.mxu2 %v7010_v16 }
0x17c6   :  { %v6352_v2 = vpop.f32.mrf.mxu1 }
0x17c7   :  { %v6353_v32 = vadd.f32 %v6352_v2, %v6322_v62 }
0x17c9   :  { %v6387_v3 = vmul.f32 %v6353_v32, %v6353_v32 }
0x17cb   :  { %v6393_v7 = vmul.f32 %v6387_v3, %v6353_v32 }
0x17cc   :  { %v6378_v0 = vpop.f32.mrf.mxu3 }
0x17cd   :  { %v6399_v18 = vmul.f32 0.044715, %v6393_v7  ;;  %v6379_v58 = vadd.f32 %v6378_v0, %v6323_v45 }
0x17ce   :  { %v6355_v60 = vpop.f32.mrf.mxu1 }
0x17cf   :  { %v6405_v19 = vadd.f32 %v6399_v18, %v6353_v32  ;;  %v6388_v40 = vmul.f32 %v6379_v58, %v6379_v58  ;;  %v6356_v55 = vadd.f32 %v6355_v60, %v6322_v62 }
0x17d1   :  { %v6411_v8 = vmul.f32 0.7978846, %v6405_v19  ;;  %v6394_v57 = vmul.f32 %v6388_v40, %v6379_v58  ;;  %v6389_v1 = vmul.f32 %v6356_v55, %v6356_v55  ;;  %v6540_v40 = vld [vmem:[%s8111_s27 + $0x18] sm:$0xff] }
0x17d2   :  { %6570 = vmatpush.msra.mxu3 %v6540_v40 }
0x17d3   :  { %7880 = vtanh.f32 %v6411_v8  ;;  %v6400_v61 = vmul.f32 0.044715, %v6394_v57  ;;  %v6395_v35 = vmul.f32 %v6389_v1, %v6356_v55  ;;  %v6538_v8 = vld [vmem:[%s8111_s27 + $0x8] sm:$0xff]  ;;  %v6537_v57 = vld [vmem:[%s8111_s27] sm:$0xff] }
0x17d4   :  { %v6381_v34 = vpop.f32.mrf.mxu3 }
0x17d5   :  { %v6406_v56 = vadd.f32 %v6400_v61, %v6379_v58  ;;  %v6401_v25 = vmul.f32 0.044715, %v6395_v35  ;;  %v6382_v49 = vadd.f32 %v6381_v34, %v6323_v45  ;;  %v7800_v34 = vld [vmem:[%s8106_s20 + $0x1] ss:$0 sm:$0xff]  ;;  %s7962_s20 = smov [#allocation2]  }
0x17d6   :  { %v6358_v48 = vpop.f32.mrf.mxu1 }
0x17d7   :  { %v6412_v41 = vmul.f32 0.7978846, %v6406_v56  ;;  %v6407_v46 = vadd.f32 %v6401_v25, %v6356_v55  ;;  %v6390_v54 = vmul.f32 %v6382_v49, %v6382_v49  ;;  %v6359_v28 = vadd.f32 %v6358_v48, %v6322_v62 }
0x17d9   :  { %v7881_v36 = vpop.eup %7880  ;;  %7882 = vtanh.f32 %v6412_v41  ;;  %v6396_v23 = vmul.f32 %v6390_v54, %v6382_v49  ;;  %v6391_v31 = vmul.f32 %v6359_v28, %v6359_v28  ;;  %v6413_v4 = vmul.f32 0.7978846, %v6407_v46 }
0x17da   :  { %v6423_v42 = vadd.f32 1.0, %v7881_v36 }
0x17db   :  { %v6402_v10 = vmul.f32 0.044715, %v6396_v23  ;;  %v6397_v52 = vmul.f32 %v6391_v31, %v6359_v28  ;;  %7884 = vtanh.f32 %v6413_v4  ;;  %v7801_v23 = vld [vmem:[%s8116_s4] ss:$0 sm:$0xff]  ;;  %s7915_s4 = scalar_lea.hbm %s8121_s17, 2 }
0x17dc   :  { %v6429_v12 = vmul.f32 0.5, %v6423_v42  ;;  %v6384_v44 = vpop.f32.mrf.mxu3  ;;  %p7917_p2 = scmp.lt.s32.totalorder %s7915_s4, %s7913_s22 }
0x17dd   :  { %v6408_v53 = vadd.f32 %v6402_v10, %v6382_v49  ;;  %v6403_v26 = vmul.f32 0.044715, %v6397_v52  ;;  %v6385_v20 = vadd.f32 %v6384_v44, %v6323_v45 }
0x17de   :  { %v6435_v30 = vmul.f32 %v6429_v12, %v6353_v32  ;;  %p7918_p3 = por %p7917_p2, %p7916_p1 }
0x17df   :  { %v7883_v21 = vpop.eup %7882  ;;  %v6409_v39 = vadd.f32 %v6403_v26, %v6359_v28  ;;  %v6392_v59 = vmul.f32 %v6385_v20, %v6385_v20  ;;  %v6414_v29 = vmul.f32 0.7978846, %v6408_v53 }
0x17e0   :  { %v6424_v38 = vadd.f32 1.0, %v7883_v21  ;;  %6490 = vmatmul.f32.vlgmr.msra.gmra.mxu2 %v6435_v30  ;;  %p7919_p4 = pnand %p7918_p3, %p7914_p0 }
0x17e1   :  { %v7885_v24 = vpop.eup %7884  ;;  %v6398_v11 = vmul.f32 %v6392_v59, %v6385_v20  ;;  %7886 = vtanh.f32 %v6414_v29  ;;  %v6415_v22 = vmul.f32 0.7978846, %v6409_v39 }
0x17e2   :  { %v6430_v63 = vmul.f32 0.5, %v6424_v38  ;;  %v6425_v43 = vadd.f32 1.0, %v7885_v24 }
0x17e3   :  { %v6404_v50 = vmul.f32 0.044715, %v6398_v11  ;;  %7888 = vtanh.f32 %v6415_v22 }
0x17e4   :  { %v6436_v51 = vmul.f32 %v6430_v63, %v6379_v58  ;;  %v6431_v16 = vmul.f32 0.5, %v6425_v43 }
0x17e5   :  { %v6410_v9 = vadd.f32 %v6404_v50, %v6385_v20 }
0x17e6   :  { %6516 = vmatmul.f32.vlgmr.msra.gmra.mxu1 %v6436_v51  ;;  %v6437_v62 = vmul.f32 %v6431_v16, %v6356_v55  ;;  %v6539_v55 = vld [vmem:[%s8111_s27 + $0x10] sm:$0xff]  ;;  %s6592_s27 = sshll.u32 %s7962_s20, 4  ;;  %s6593_s27 = int_to_ptr.vmem [resolvable:$true] %s6592_s27 }
0x17e7   :  { %v7887_v37 = vpop.eup %7886  ;;  %v6416_v27 = vmul.f32 0.7978846, %v6410_v9  ;;  %6571 = vmatpush.msra.mxu3 %v6539_v55 }
0x17e8   :  { %6493 = vmatmul.f32.gmra.mxu2 %v6437_v62  ;;  %v6426_v33 = vadd.f32 1.0, %v7887_v37 }
0x17e9   :  { %v7889_v2 = vpop.eup %7888  ;;  %7890 = vtanh.f32 %v6416_v27  ;;  %6572 = vmatpush.msra.mxu3 %v6538_v8 }
0x17ea   :  { %v6432_v32 = vmul.f32 0.5, %v6426_v33  ;;  %v6427_v3 = vadd.f32 1.0, %v7889_v2 }
0x17eb   :  { %6573 = vmatpush.msra.mxu3 %v6537_v57 }
0x17ec   :  { %v6438_v45 = vmul.f32 %v6432_v32, %v6382_v49  ;;  %v6433_v7 = vmul.f32 0.5, %v6427_v3 }
0x17ee   :  { %6519 = vmatmul.f32.gmra.mxu1 %v6438_v45  ;;  %v6439_v0 = vmul.f32 %v6433_v7, %v6359_v28 }
0x17ef   :  { %v7891_v18 = vpop.eup %7890 }
0x17f0   :  { %6496 = vmatmul.f32.gmra.mxu2 %v6439_v0  ;;  %v6428_v58 = vadd.f32 1.0, %v7891_v18 }
0x17f2   :  { %v6434_v60 = vmul.f32 0.5, %v6428_v58 }
0x17f4   :  { %v6440_v19 = vmul.f32 %v6434_v60, %v6385_v20 }
0x17f6   :  { %6522 = vmatmul.f32.gmra.mxu1 %v6440_v19 }
0x1863   :  { %v6491_v1 = vpop.f32.mrf.mxu2  ;;  %v6517_v61 = vpop.f32.mrf.mxu1 }
0x1864   :  { %v6518_v35 = vadd.f32 %v6517_v61, %v6491_v1 }
0x1866   :  { %v6526_v56 = vadd.f32 %v6518_v35, %v11813_v47 }
0x1868   :  { %v6534_v25 = vadd.f32 %v7800_v34, %v6526_v56 }
0x186a   :  { %7043 = vmatmul.msk.f32.vlgmr.msra.gmra.mxu3 %vm2926_vm11, %v6534_v25 }
0x186b   :  { %v6494_v49 = vpop.f32.mrf.mxu2  ;;  %v6520_v48 = vpop.f32.mrf.mxu1 }
0x186c   :  { %v6521_v5 = vadd.f32 %v6520_v48, %v6494_v49 }
0x186e   :  { %v6527_v14 = vadd.f32 %v6521_v5, %v11818_v17 }
0x1870   :  { %v6535_v41 = vadd.f32 %v7800_v34, %v6527_v14 }
0x1872   :  { %7044 = vmatmul.msk.f32.gmra.mxu3 %vm2926_vm11, %v6535_v41 }
0x1873   :  { %v6497_v46 = vpop.f32.mrf.mxu2  ;;  %v6523_v54 = vpop.f32.mrf.mxu1 }
0x1874   :  { %v6524_v28 = vadd.f32 %v6523_v54, %v6497_v46 }
0x1876   :  { %v6528_v15 = vadd.f32 %v6524_v28, %v11823_v6 }
0x1878   :  { %v6536_v36 = vadd.f32 %v7800_v34, %v6528_v15 }
0x187a   :  { %7045 = vmatmul.msk.f32.gmra.mxu3 %vm2926_vm11, %v6536_v36 }
0x18ed   :  { %v6575_v47 = vpop.f32.mrf.mxu3 }
0x18f5   :  { %v6577_v31 = vpop.f32.mrf.mxu3 }
0x18f6   :  { %v6578_v4 = vadd.f32 %v7801_v23, %v6577_v31 }
0x18f8   :  { %6584 = vst.msk [vmem:[#allocation2] sm:$0x1] %vm6583_vm15, %v6578_v4 }
0x18fd   :  { %v6580_v17 = vpop.f32.mrf.mxu3 }
0x18fe   :  { %v6581_v42 = vadd.f32 %v7801_v23, %v6580_v17 }
0x1900   :  { %6586 = vst.msk [vmem:[#allocation2] sm:$0x2] %vm6585_vm0, %v6581_v42 }
0x1901   :  { %7922 = shalt.err (!%p7919_p4)
}
0x1902   :  { %6597 = dma.vmem_to_hbm [thread:$0]  %s6593_s27, 32, %s6595_s16, [#allocation3]  }
0x1903   :  { %7923 = dma.done.wait [#allocation3], 32  }
0x1904   :  { %7924 = vsyncadd [#allocation3], 4294967264 }
0x1905   :  { %6602 = vsyncpa [#allocation3], 1 }

</bundles_post_ra>
